<compile_context>
chip_gen: v7x
topology: tpu7x:2x2x1
jax: 0.10.0
libtpu: 0.0.40
codegen_flags: <defaults>
</compile_context>

<pallas_src>
import jax
import jax.numpy as jnp
from jax.experimental import pallas as pl
from jax.experimental.pallas import tpu as pltpu

# --- architecture constants from EEGShallowConvNet.__init__ ---
K1 = 13           # temporal conv kernel
K2 = 35           # avg-pool kernel width
S1 = 7            # avg-pool stride
F1 = 40           # feature maps
CHANNEL = 118     # EEG electrodes (spatial conv kernel height)
NCLASS = 2
T_IN = 348                      # smallest T consistent with Map = 1760
T1 = T_IN - K1 + 1              # 336
TP = (T1 - K2) // S1 + 1        # 44
MAP = F1 * TP                   # 1760  (matches self.Map)
HID1 = 128
HID2 = 64
T_PAD = 384                     # time axis zero-padded to 3 lane tiles (input block)
P_PAD = 128                     # pooled-time axis padded to one lane tile
N = 4                           # demo batch
B_BLK = 2                       # batch rows per grid step -> grid = (2,)

assert MAP == 1760
assert N % B_BLK == 0


# ------------------------------------------------------------------ fused kernel
def _eeg_fused_kernel(x_ref, wall_ref, sh2_ref, pm_ref,
                      w1_ref, s1_ref, t1_ref,
                      w2_ref, s2_ref, t2_ref,
                      w3_ref, b3_ref, o_ref):
    """Whole network for B_BLK batch rows (grid=(N//B_BLK,)).

    x_ref   : (B_BLK, CHANNEL, T_PAD) bf16   zero-padded input rows
    wall_ref: (K1*F1, CHANNEL)        bf16   merged conv1*conv2 stencil, BN2d scale folded in
    sh2_ref : (F1, 1)                 f32    merged conv biases + BN2d shift
    pm_ref  : (T1, P_PAD)             f32    avg-pool matrix (1/K2 entries, zero pad columns)
    w1_ref  : (F1, P_PAD, HID1)       bf16   fc1 weights per feature, zero rows for pad lanes
    w2_ref  : (HID1, HID2), w3_ref: (HID2, NCLASS)  bf16
    s*/t*   : folded BatchNorm1d scale / shift (f32)
    """
    for b in range(B_BLK):
        xb = x_ref[b]                                             # (CHANNEL, T_PAD) bf16

        # ---- merged temporal+spatial conv: ONE M=520 MXU matmul ----
        z = jnp.dot(wall_ref[...], xb,
                    preferred_element_type=jnp.float32)           # (K1*F1, T_PAD) f32

        # accumulate the 13 tap blocks by shifting the small (F1, T) output, not the input
        acc = z[0:F1, 0:T1]
        for k in range(1, K1):
            acc = acc + z[k * F1:(k + 1) * F1, k:k + T1]
        y = acc + sh2_ref[...]                                    # biases + folded BatchNorm2d
        sq = y * y                                                # ActSquare (f32)

        # ---- AvgPool2d((1,K2),(1,S1)) as a lane-dense MXU matmul, then ActLog ----
        pool = jnp.dot(sq, pm_ref[...],
                       preferred_element_type=jnp.float32)        # (F1, P_PAD), pad lanes = 0
        y3 = jnp.log(jnp.maximum(pool, 1e-6))                     # ActLog; pad lanes hit 0-weights

        # ---- fc-1 + BN1d: per-feature MXU accumulation (no flatten / scratch needed) ----
        h = jnp.zeros((1, HID1), jnp.float32)
        for f in range(F1):
            h = h + jnp.dot(y3[f:f + 1, :].astype(jnp.bfloat16), w1_ref[f],
                            preferred_element_type=jnp.float32)
        h = h * s1_ref[...] + t1_ref[...]

        # ---- fc-2 + BN1d, fc-3 (Dropout = identity in eval) ----
        h = jnp.dot(h.astype(jnp.bfloat16), w2_ref[...],
                    preferred_element_type=jnp.float32)
        h = h * s2_ref[...] + t2_ref[...]
        o_ref[b] = (jnp.dot(h.astype(jnp.bfloat16), w3_ref[...],
                            preferred_element_type=jnp.float32) + b3_ref[...])


def eeg_shallow_convnet_forward(x, f):
    xs = x[:, 0, :, :]                                            # (N, CHANNEL, T_IN)
    xs = jnp.pad(xs, ((0, 0), (0, 0), (0, T_PAD - T_IN)))         # lane-dense time axis
    xs = xs.astype(jnp.bfloat16)

    def const_spec(shape):
        return pl.BlockSpec(shape, lambda n: (0,) * len(shape))

    out3 = pl.pallas_call(
        _eeg_fused_kernel,
        out_shape=jax.ShapeDtypeStruct((N, 1, NCLASS), jnp.float32),
        grid=(N // B_BLK,),
        in_specs=[
            pl.BlockSpec((B_BLK, CHANNEL, T_PAD), lambda n: (n, 0, 0)),  # batch block
            const_spec((K1 * F1, CHANNEL)),                              # merged conv stencil
            const_spec((F1, 1)),                                         # merged shift
            const_spec((T1, P_PAD)),                                     # pool matrix
            const_spec((F1, P_PAD, HID1)),                               # fc1 (per-feature)
            const_spec((1, HID1)),                                       # fc1 BN scale
            const_spec((1, HID1)),                                       # fc1 BN shift
            const_spec((HID1, HID2)),                                    # fc2
            const_spec((1, HID2)),                                       # fc2 BN scale
            const_spec((1, HID2)),                                       # fc2 BN shift
            const_spec((HID2, NCLASS)),                                  # fc3
            const_spec((1, NCLASS)),                                     # fc3 bias
        ],
        out_specs=pl.BlockSpec((B_BLK, 1, NCLASS), lambda n: (n, 0, 0)),
        compiler_params=pltpu.CompilerParams(
            dimension_semantics=("parallel",)),                          # rows across TCs (v7x)
    )(xs, f["w_all"], f["shift2"], f["pool_mat"],
      f["w_fc1r"], f["s_fc1"], f["t_fc1"],
      f["w_fc2t"], f["s_fc2"], f["t_fc2"],
      f["w_fc3t"], f["b_fc3"])

    logits = out3.reshape(N, NCLASS)
    zero = jnp.array(0, jnp.int32)                                # loss_1/2/3 placeholders
    return logits, zero, zero, zero


# ------------------------------------------------------------------ params
def init_params(key):
    ks = jax.random.split(key, 22)
    p = {}
    p["w_c1"] = 0.3 * jax.random.normal(ks[0], (F1, 1, 1, K1), jnp.float32)
    p["b_c1"] = 0.1 * jax.random.normal(ks[1], (F1,), jnp.float32)
    p["w_c2"] = 0.05 * jax.random.normal(ks[2], (F1, F1, CHANNEL, 1), jnp.float32)
    p["b_c2"] = 0.1 * jax.random.normal(ks[3], (F1,), jnp.float32)
    p["bn2_g"] = 1.0 + 0.1 * jax.random.normal(ks[4], (F1,), jnp.float32)
    p["bn2_b"] = 0.1 * jax.random.normal(ks[5], (F1,), jnp.float32)
    p["bn2_m"] = 0.1 * jax.random.normal(ks[6], (F1,), jnp.float32)
    p["bn2_v"] = jax.random.uniform(ks[7], (F1,), jnp.float32, 0.5, 1.5)
    p["w_fc1"] = jax.random.normal(ks[8], (HID1, MAP), jnp.float32) / jnp.sqrt(1.0 * MAP)
    p["b_fc1"] = 0.1 * jax.random.normal(ks[9], (HID1,), jnp.float32)
    p["bn3_g"] = 1.0 + 0.1 * jax.random.normal(ks[10], (HID1,), jnp.float32)
    p["bn3_b"] = 0.1 * jax.random.normal(ks[11], (HID1,), jnp.float32)
    p["bn3_m"] = 0.1 * jax.random.normal(ks[12], (HID1,), jnp.float32)
    p["bn3_v"] = jax.random.uniform(ks[13], (HID1,), jnp.float32, 0.5, 1.5)
    p["w_fc2"] = jax.random.normal(ks[14], (HID2, HID1), jnp.float32) / jnp.sqrt(1.0 * HID1)
    p["b_fc2"] = 0.1 * jax.random.normal(ks[15], (HID2,), jnp.float32)
    p["bn4_g"] = 1.0 + 0.1 * jax.random.normal(ks[16], (HID2,), jnp.float32)
    p["bn4_b"] = 0.1 * jax.random.normal(ks[17], (HID2,), jnp.float32)
    p["bn4_m"] = 0.1 * jax.random.normal(ks[18], (HID2,), jnp.float32)
    p["bn4_v"] = jax.random.uniform(ks[19], (HID2,), jnp.float32, 0.5, 1.5)
    p["w_fc3"] = jax.random.normal(ks[20], (NCLASS, HID2), jnp.float32) / jnp.sqrt(1.0 * HID2)
    p["b_fc3"] = 0.1 * jax.random.normal(ks[21], (NCLASS,), jnp.float32)
    return p


def fold_params(p):
    """Host-side algebraic folding: conv1*conv2 merge, BN folds, pool matrix, fc1 reorder, bf16."""
    eps2d = 0.0      # nn.BatchNorm2d(F1, False): eps = False == 0.0
    eps1d = 1e-5     # BatchNorm1d default eps
    f = {}
    # --- merge conv1 and conv2 (both linear): Wm[g,c,k] = sum_f w2[g,f,c] * w1[f,k] ---
    w1 = p["w_c1"].reshape(F1, K1)                          # (F, K)
    w2 = p["w_c2"][..., 0]                                  # (G, F, C)
    wm = jnp.einsum('gfc,fk->gck', w2, w1)                  # (G, C, K)
    b_merged = p["b_c2"] + w2.sum(axis=2) @ p["b_c1"]       # (G,)
    s2 = p["bn2_g"] / jnp.sqrt(p["bn2_v"] + eps2d)
    w_taps = jnp.transpose(wm * s2[:, None, None], (2, 0, 1))            # (K, G, C)
    f["w_all"] = w_taps.reshape(K1 * F1, CHANNEL).astype(jnp.bfloat16)   # row k*F1+g
    f["shift2"] = (p["bn2_b"] + s2 * (b_merged - p["bn2_m"])).reshape(F1, 1)
    # --- AvgPool2d((1,K2),(1,S1)) as a (T1, P_PAD) matrix, 1/K2 entries, zero pad columns ---
    t_idx = jnp.arange(T1)[:, None]
    p_idx = jnp.arange(P_PAD)[None, :]
    f["pool_mat"] = (((p_idx < TP) & (t_idx >= p_idx * S1) & (t_idx < p_idx * S1 + K2))
                     .astype(jnp.float32) / K2)             # (T1, P_PAD)
    # --- fc-1 + BN1d: per-feature weight (F1, P_PAD, HID1), pad rows (p>=TP) are zero ---
    s3 = p["bn3_g"] / jnp.sqrt(p["bn3_v"] + eps1d)
    w_fc1t = p["w_fc1"].T.reshape(F1, TP, HID1)             # row f*TP+p -> [f, p, :]
    f["w_fc1r"] = (jnp.zeros((F1, P_PAD, HID1), jnp.float32)
                   .at[:, :TP, :].set(w_fc1t)).astype(jnp.bfloat16)
    f["s_fc1"] = s3.reshape(1, HID1)
    f["t_fc1"] = (p["bn3_b"] + s3 * (p["b_fc1"] - p["bn3_m"])).reshape(1, HID1)
    # --- fc-2 + BN1d ---
    s4 = p["bn4_g"] / jnp.sqrt(p["bn4_v"] + eps1d)
    f["w_fc2t"] = p["w_fc2"].T.astype(jnp.bfloat16)         # (128, 64)
    f["s_fc2"] = s4.reshape(1, HID2)
    f["t_fc2"] = (p["bn4_b"] + s4 * (p["b_fc2"] - p["bn4_m"])).reshape(1, HID2)
    # --- fc-3 ---
    f["w_fc3t"] = p["w_fc3"].T.astype(jnp.bfloat16)         # (64, NCLASS)
    f["b_fc3"] = p["b_fc3"].reshape(1, NCLASS)
    return f


# ------------------------------------------------------------------ pure-JAX reference
def reference_forward(x, p):
    xs = x[:, 0]
    w1 = p["w_c1"].reshape(F1, K1)
    xw = jnp.stack([xs[:, :, k:k + T1] for k in range(K1)], axis=-1)   # (N,CH,T1,K1)
    y1 = jnp.einsum('nctk,fk->nfct', xw, w1) + p["b_c1"][None, :, None, None]
    w2 = p["w_c2"][..., 0]                                             # (F1,F1,CH)
    y2 = jnp.einsum('nfct,gfc->ngt', y1, w2) + p["b_c2"][None, :, None]
    s2 = p["bn2_g"] / jnp.sqrt(p["bn2_v"] + 0.0)
    y2 = s2[None, :, None] * (y2 - p["bn2_m"][None, :, None]) + p["bn2_b"][None, :, None]
    y2 = y2 * y2
    z = y2.reshape(N, F1, T1 // S1, S1).sum(-1)
    pool = sum(z[:, :, r:r + TP] for r in range(K2 // S1)) / K2
    y3 = jnp.log(jnp.maximum(pool, 1e-6))
    g = y3.reshape(N, MAP)
    h = g @ p["w_fc1"].T + p["b_fc1"]
    s3 = p["bn3_g"] / jnp.sqrt(p["bn3_v"] + 1e-5)
    h = s3 * (h - p["bn3_m"]) + p["bn3_b"]
    h = h @ p["w_fc2"].T + p["b_fc2"]
    s4 = p["bn4_g"] / jnp.sqrt(p["bn4_v"] + 1e-5)
    h = s4 * (h - p["bn4_m"]) + p["bn4_b"]
    return h @ p["w_fc3"].T + p["b_fc3"]


if __name__ == "__main__":
    key = jax.random.PRNGKey(0)
    kx, kp = jax.random.split(key)
    x = jax.random.normal(kx, (N, 1, CHANNEL, T_IN), jnp.float32)
    params = init_params(kp)
    folded = fold_params(params)

    logits, l1, l2, l3 = eeg_shallow_convnet_forward(x, folded)
    logits = jax.block_until_ready(logits)

    assert logits.shape == (N, NCLASS)
    assert bool(jnp.all(jnp.isfinite(logits)))

    ref = reference_forward(x, params)
    max_err = float(jnp.max(jnp.abs(logits - ref)))
    # bf16 matmul operands (f32 accumulation) -> slightly looser tolerance than pure f32
    assert max_err < 0.3, f"mismatch vs pure-JAX reference: {max_err}"

    print("KERNEL_OK")
</pallas_src>

<mosaic_0001>
module attributes {stable_mosaic.version = 11 : i64} {
  func.func @_eeg_fused_kernel(%arg0: i32, %arg1: memref<2x118x384xbf16, #tpu.memory_space<vmem>>, %arg2: memref<520x118xbf16, #tpu.memory_space<vmem>>, %arg3: memref<40x1xf32, #tpu.memory_space<vmem>>, %arg4: memref<336x128xf32, #tpu.memory_space<vmem>>, %arg5: memref<40x128x128xbf16, #tpu.memory_space<vmem>>, %arg6: memref<1x128xf32, #tpu.memory_space<vmem>>, %arg7: memref<1x128xf32, #tpu.memory_space<vmem>>, %arg8: memref<128x64xbf16, #tpu.memory_space<vmem>>, %arg9: memref<1x64xf32, #tpu.memory_space<vmem>>, %arg10: memref<1x64xf32, #tpu.memory_space<vmem>>, %arg11: memref<64x2xbf16, #tpu.memory_space<vmem>>, %arg12: memref<1x2xf32, #tpu.memory_space<vmem>>, %arg13: memref<2x1x2xf32, #tpu.memory_space<vmem>>) attributes {dimension_semantics = [#tpu.dimension_semantics<parallel>], iteration_bounds = array<i64: 2>, scalar_prefetch = 0 : i64, scratch_operands = 0 : i64, tpu.core_type = #tpu.core_type<tc>, window_params = [{transform_indices = @transform_0, window_bounds = array<i64: 2, 118, 384>}, {pipeline_mode = #tpu.pipeline_mode<synchronous>, transform_indices = @transform_1, window_bounds = array<i64: 520, 118>}, {pipeline_mode = #tpu.pipeline_mode<synchronous>, transform_indices = @transform_2, window_bounds = array<i64: 40, 1>}, {pipeline_mode = #tpu.pipeline_mode<synchronous>, transform_indices = @transform_3, window_bounds = array<i64: 336, 128>}, {pipeline_mode = #tpu.pipeline_mode<synchronous>, transform_indices = @transform_4, window_bounds = array<i64: 40, 128, 128>}, {pipeline_mode = #tpu.pipeline_mode<synchronous>, transform_indices = @transform_5, window_bounds = array<i64: 1, 128>}, {pipeline_mode = #tpu.pipeline_mode<synchronous>, transform_indices = @transform_6, window_bounds = array<i64: 1, 128>}, {pipeline_mode = #tpu.pipeline_mode<synchronous>, transform_indices = @transform_7, window_bounds = array<i64: 128, 64>}, {pipeline_mode = #tpu.pipeline_mode<synchronous>, transform_indices = @transform_8, window_bounds = array<i64: 1, 64>}, {pipeline_mode = #tpu.pipeline_mode<synchronous>, transform_indices = @transform_9, window_bounds = array<i64: 1, 64>}, {pipeline_mode = #tpu.pipeline_mode<synchronous>, transform_indices = @transform_10, window_bounds = array<i64: 64, 2>}, {pipeline_mode = #tpu.pipeline_mode<synchronous>, transform_indices = @transform_11, window_bounds = array<i64: 1, 2>}, {transform_indices = @transform_12, window_bounds = array<i64: 2, 1, 2>}]} {
    %c0 = arith.constant 0 : index
    %c0_0 = arith.constant 0 : index
    %c0_1 = arith.constant 0 : index
    %0 = vector.load %arg1[%c0, %c0_0, %c0_1] : memref<2x118x384xbf16, #tpu.memory_space<vmem>>, vector<1x118x384xbf16>
    %1 = vector.shape_cast %0 : vector<1x118x384xbf16> to vector<118x384xbf16>
    %c0_2 = arith.constant 0 : index
    %c0_3 = arith.constant 0 : index
    %2 = vector.load %arg2[%c0_2, %c0_3] : memref<520x118xbf16, #tpu.memory_space<vmem>>, vector<520x118xbf16>
    %cst = arith.constant dense<0.000000e+00> : vector<520x384xf32>
    %3 = tpu.matmul %2, %1, %cst {dimension_numbers = #tpu.dot_dimension_numbers<[1], [0], [0], [1], [0, 0, 1, 1], [], []>} : vector<520x118xbf16>, vector<118x384xbf16>, vector<520x384xf32> -> vector<520x384xf32>
    %4 = vector.extract_strided_slice %3 {offsets = [0, 0], sizes = [40, 336], strides = [1, 1]} : vector<520x384xf32> to vector<40x336xf32>
    %5 = vector.extract_strided_slice %3 {offsets = [40, 1], sizes = [40, 336], strides = [1, 1]} : vector<520x384xf32> to vector<40x336xf32>
    %6 = arith.addf %4, %5 : vector<40x336xf32>
    %7 = vector.extract_strided_slice %3 {offsets = [80, 2], sizes = [40, 336], strides = [1, 1]} : vector<520x384xf32> to vector<40x336xf32>
    %8 = arith.addf %6, %7 : vector<40x336xf32>
    %9 = vector.extract_strided_slice %3 {offsets = [120, 3], sizes = [40, 336], strides = [1, 1]} : vector<520x384xf32> to vector<40x336xf32>
    %10 = arith.addf %8, %9 : vector<40x336xf32>
    %11 = vector.extract_strided_slice %3 {offsets = [160, 4], sizes = [40, 336], strides = [1, 1]} : vector<520x384xf32> to vector<40x336xf32>
    %12 = arith.addf %10, %11 : vector<40x336xf32>
    %13 = vector.extract_strided_slice %3 {offsets = [200, 5], sizes = [40, 336], strides = [1, 1]} : vector<520x384xf32> to vector<40x336xf32>
    %14 = arith.addf %12, %13 : vector<40x336xf32>
    %15 = vector.extract_strided_slice %3 {offsets = [240, 6], sizes = [40, 336], strides = [1, 1]} : vector<520x384xf32> to vector<40x336xf32>
    %16 = arith.addf %14, %15 : vector<40x336xf32>
    %17 = vector.extract_strided_slice %3 {offsets = [280, 7], sizes = [40, 336], strides = [1, 1]} : vector<520x384xf32> to vector<40x336xf32>
    %18 = arith.addf %16, %17 : vector<40x336xf32>
    %19 = vector.extract_strided_slice %3 {offsets = [320, 8], sizes = [40, 336], strides = [1, 1]} : vector<520x384xf32> to vector<40x336xf32>
    %20 = arith.addf %18, %19 : vector<40x336xf32>
    %21 = vector.extract_strided_slice %3 {offsets = [360, 9], sizes = [40, 336], strides = [1, 1]} : vector<520x384xf32> to vector<40x336xf32>
    %22 = arith.addf %20, %21 : vector<40x336xf32>
    %23 = vector.extract_strided_slice %3 {offsets = [400, 10], sizes = [40, 336], strides = [1, 1]} : vector<520x384xf32> to vector<40x336xf32>
    %24 = arith.addf %22, %23 : vector<40x336xf32>
    %25 = vector.extract_strided_slice %3 {offsets = [440, 11], sizes = [40, 336], strides = [1, 1]} : vector<520x384xf32> to vector<40x336xf32>
    %26 = arith.addf %24, %25 : vector<40x336xf32>
    %27 = vector.extract_strided_slice %3 {offsets = [480, 12], sizes = [40, 336], strides = [1, 1]} : vector<520x384xf32> to vector<40x336xf32>
    %28 = arith.addf %26, %27 : vector<40x336xf32>
    %c0_4 = arith.constant 0 : index
    %c0_5 = arith.constant 0 : index
    %29 = vector.load %arg3[%c0_4, %c0_5] : memref<40x1xf32, #tpu.memory_space<vmem>>, vector<40x1xf32>
    %30 = vector.broadcast %29 : vector<40x1xf32> to vector<40x336xf32>
    %31 = arith.addf %28, %30 : vector<40x336xf32>
    %32 = arith.mulf %31, %31 : vector<40x336xf32>
    %c0_6 = arith.constant 0 : index
    %c0_7 = arith.constant 0 : index
    %33 = vector.load %arg4[%c0_6, %c0_7] : memref<336x128xf32, #tpu.memory_space<vmem>>, vector<336x128xf32>
    %cst_8 = arith.constant dense<0.000000e+00> : vector<40x128xf32>
    %34 = tpu.matmul %32, %33, %cst_8 {dimension_numbers = #tpu.dot_dimension_numbers<[1], [0], [0], [1], [0, 0, 1, 1], [], []>} : vector<40x336xf32>, vector<336x128xf32>, vector<40x128xf32> -> vector<40x128xf32>
    %cst_9 = arith.constant 9.99999997E-7 : f32
    %35 = vector.broadcast %cst_9 : f32 to vector<40x128xf32>
    %36 = arith.maximumf %34, %35 : vector<40x128xf32>
    %37 = math.log %36 : vector<40x128xf32>
    %cst_10 = arith.constant 0.000000e+00 : f32
    %38 = vector.broadcast %cst_10 : f32 to vector<1x128xf32>
    %39 = vector.extract_strided_slice %37 {offsets = [0, 0], sizes = [1, 128], strides = [1, 1]} : vector<40x128xf32> to vector<1x128xf32>
    %40 = arith.truncf %39 : vector<1x128xf32> to vector<1x128xbf16>
    %c0_11 = arith.constant 0 : index
    %c0_12 = arith.constant 0 : index
    %c0_13 = arith.constant 0 : index
    %41 = vector.load %arg5[%c0_11, %c0_12, %c0_13] : memref<40x128x128xbf16, #tpu.memory_space<vmem>>, vector<1x128x128xbf16>
    %42 = vector.shape_cast %41 : vector<1x128x128xbf16> to vector<128x128xbf16>
    %cst_14 = arith.constant dense<0.000000e+00> : vector<1x128xf32>
    %43 = tpu.matmul %40, %42, %cst_14 {dimension_numbers = #tpu.dot_dimension_numbers<[1], [0], [0], [1], [0, 0, 1, 1], [], []>} : vector<1x128xbf16>, vector<128x128xbf16>, vector<1x128xf32> -> vector<1x128xf32>
    %44 = arith.addf %38, %43 : vector<1x128xf32>
    %45 = vector.extract_strided_slice %37 {offsets = [1, 0], sizes = [1, 128], strides = [1, 1]} : vector<40x128xf32> to vector<1x128xf32>
    %46 = arith.truncf %45 : vector<1x128xf32> to vector<1x128xbf16>
    %c1 = arith.constant 1 : index
    %c0_15 = arith.constant 0 : index
    %c0_16 = arith.constant 0 : index
    %47 = vector.load %arg5[%c1, %c0_15, %c0_16] : memref<40x128x128xbf16, #tpu.memory_space<vmem>>, vector<1x128x128xbf16>
    %48 = vector.shape_cast %47 : vector<1x128x128xbf16> to vector<128x128xbf16>
    %cst_17 = arith.constant dense<0.000000e+00> : vector<1x128xf32>
    %49 = tpu.matmul %46, %48, %cst_17 {dimension_numbers = #tpu.dot_dimension_numbers<[1], [0], [0], [1], [0, 0, 1, 1], [], []>} : vector<1x128xbf16>, vector<128x128xbf16>, vector<1x128xf32> -> vector<1x128xf32>
    %50 = arith.addf %44, %49 : vector<1x128xf32>
    %51 = vector.extract_strided_slice %37 {offsets = [2, 0], sizes = [1, 128], strides = [1, 1]} : vector<40x128xf32> to vector<1x128xf32>
    %52 = arith.truncf %51 : vector<1x128xf32> to vector<1x128xbf16>
    %c2 = arith.constant 2 : index
    %c0_18 = arith.constant 0 : index
    %c0_19 = arith.constant 0 : index
    %53 = vector.load %arg5[%c2, %c0_18, %c0_19] : memref<40x128x128xbf16, #tpu.memory_space<vmem>>, vector<1x128x128xbf16>
    %54 = vector.shape_cast %53 : vector<1x128x128xbf16> to vector<128x128xbf16>
    %cst_20 = arith.constant dense<0.000000e+00> : vector<1x128xf32>
    %55 = tpu.matmul %52, %54, %cst_20 {dimension_numbers = #tpu.dot_dimension_numbers<[1], [0], [0], [1], [0, 0, 1, 1], [], []>} : vector<1x128xbf16>, vector<128x128xbf16>, vector<1x128xf32> -> vector<1x128xf32>
    %56 = arith.addf %50, %55 : vector<1x128xf32>
    %57 = vector.extract_strided_slice %37 {offsets = [3, 0], sizes = [1, 128], strides = [1, 1]} : vector<40x128xf32> to vector<1x128xf32>
    %58 = arith.truncf %57 : vector<1x128xf32> to vector<1x128xbf16>
    %c3 = arith.constant 3 : index
    %c0_21 = arith.constant 0 : index
    %c0_22 = arith.constant 0 : index
    %59 = vector.load %arg5[%c3, %c0_21, %c0_22] : memref<40x128x128xbf16, #tpu.memory_space<vmem>>, vector<1x128x128xbf16>
    %60 = vector.shape_cast %59 : vector<1x128x128xbf16> to vector<128x128xbf16>
    %cst_23 = arith.constant dense<0.000000e+00> : vector<1x128xf32>
    %61 = tpu.matmul %58, %60, %cst_23 {dimension_numbers = #tpu.dot_dimension_numbers<[1], [0], [0], [1], [0, 0, 1, 1], [], []>} : vector<1x128xbf16>, vector<128x128xbf16>, vector<1x128xf32> -> vector<1x128xf32>
    %62 = arith.addf %56, %61 : vector<1x128xf32>
    %63 = vector.extract_strided_slice %37 {offsets = [4, 0], sizes = [1, 128], strides = [1, 1]} : vector<40x128xf32> to vector<1x128xf32>
    %64 = arith.truncf %63 : vector<1x128xf32> to vector<1x128xbf16>
    %c4 = arith.constant 4 : index
    %c0_24 = arith.constant 0 : index
    %c0_25 = arith.constant 0 : index
    %65 = vector.load %arg5[%c4, %c0_24, %c0_25] : memref<40x128x128xbf16, #tpu.memory_space<vmem>>, vector<1x128x128xbf16>
    %66 = vector.shape_cast %65 : vector<1x128x128xbf16> to vector<128x128xbf16>
    %cst_26 = arith.constant dense<0.000000e+00> : vector<1x128xf32>
    %67 = tpu.matmul %64, %66, %cst_26 {dimension_numbers = #tpu.dot_dimension_numbers<[1], [0], [0], [1], [0, 0, 1, 1], [], []>} : vector<1x128xbf16>, vector<128x128xbf16>, vector<1x128xf32> -> vector<1x128xf32>
    %68 = arith.addf %62, %67 : vector<1x128xf32>
    %69 = vector.extract_strided_slice %37 {offsets = [5, 0], sizes = [1, 128], strides = [1, 1]} : vector<40x128xf32> to vector<1x128xf32>
    %70 = arith.truncf %69 : vector<1x128xf32> to vector<1x128xbf16>
    %c5 = arith.constant 5 : index
    %c0_27 = arith.constant 0 : index
    %c0_28 = arith.constant 0 : index
    %71 = vector.load %arg5[%c5, %c0_27, %c0_28] : memref<40x128x128xbf16, #tpu.memory_space<vmem>>, vector<1x128x128xbf16>
    %72 = vector.shape_cast %71 : vector<1x128x128xbf16> to vector<128x128xbf16>
    %cst_29 = arith.constant dense<0.000000e+00> : vector<1x128xf32>
    %73 = tpu.matmul %70, %72, %cst_29 {dimension_numbers = #tpu.dot_dimension_numbers<[1], [0], [0], [1], [0, 0, 1, 1], [], []>} : vector<1x128xbf16>, vector<128x128xbf16>, vector<1x128xf32> -> vector<1x128xf32>
    %74 = arith.addf %68, %73 : vector<1x128xf32>
    %75 = vector.extract_strided_slice %37 {offsets = [6, 0], sizes = [1, 128], strides = [1, 1]} : vector<40x128xf32> to vector<1x128xf32>
    %76 = arith.truncf %75 : vector<1x128xf32> to vector<1x128xbf16>
    %c6 = arith.constant 6 : index
    %c0_30 = arith.constant 0 : index
    %c0_31 = arith.constant 0 : index
    %77 = vector.load %arg5[%c6, %c0_30, %c0_31] : memref<40x128x128xbf16, #tpu.memory_space<vmem>>, vector<1x128x128xbf16>
    %78 = vector.shape_cast %77 : vector<1x128x128xbf16> to vector<128x128xbf16>
    %cst_32 = arith.constant dense<0.000000e+00> : vector<1x128xf32>
    %79 = tpu.matmul %76, %78, %cst_32 {dimension_numbers = #tpu.dot_dimension_numbers<[1], [0], [0], [1], [0, 0, 1, 1], [], []>} : vector<1x128xbf16>, vector<128x128xbf16>, vector<1x128xf32> -> vector<1x128xf32>
    %80 = arith.addf %74, %79 : vector<1x128xf32>
    %81 = vector.extract_strided_slice %37 {offsets = [7, 0], sizes = [1, 128], strides = [1, 1]} : vector<40x128xf32> to vector<1x128xf32>
    %82 = arith.truncf %81 : vector<1x128xf32> to vector<1x128xbf16>
    %c7 = arith.constant 7 : index
    %c0_33 = arith.constant 0 : index
    %c0_34 = arith.constant 0 : index
    %83 = vector.load %arg5[%c7, %c0_33, %c0_34] : memref<40x128x128xbf16, #tpu.memory_space<vmem>>, vector<1x128x128xbf16>
    %84 = vector.shape_cast %83 : vector<1x128x128xbf16> to vector<128x128xbf16>
    %cst_35 = arith.constant dense<0.000000e+00> : vector<1x128xf32>
    %85 = tpu.matmul %82, %84, %cst_35 {dimension_numbers = #tpu.dot_dimension_numbers<[1], [0], [0], [1], [0, 0, 1, 1], [], []>} : vector<1x128xbf16>, vector<128x128xbf16>, vector<1x128xf32> -> vector<1x128xf32>
    %86 = arith.addf %80, %85 : vector<1x128xf32>
    %87 = vector.extract_strided_slice %37 {offsets = [8, 0], sizes = [1, 128], strides = [1, 1]} : vector<40x128xf32> to vector<1x128xf32>
    %88 = arith.truncf %87 : vector<1x128xf32> to vector<1x128xbf16>
    %c8 = arith.constant 8 : index
    %c0_36 = arith.constant 0 : index
    %c0_37 = arith.constant 0 : index
    %89 = vector.load %arg5[%c8, %c0_36, %c0_37] : memref<40x128x128xbf16, #tpu.memory_space<vmem>>, vector<1x128x128xbf16>
    %90 = vector.shape_cast %89 : vector<1x128x128xbf16> to vector<128x128xbf16>
    %cst_38 = arith.constant dense<0.000000e+00> : vector<1x128xf32>
    %91 = tpu.matmul %88, %90, %cst_38 {dimension_numbers = #tpu.dot_dimension_numbers<[1], [0], [0], [1], [0, 0, 1, 1], [], []>} : vector<1x128xbf16>, vector<128x128xbf16>, vector<1x128xf32> -> vector<1x128xf32>
    %92 = arith.addf %86, %91 : vector<1x128xf32>
    %93 = vector.extract_strided_slice %37 {offsets = [9, 0], sizes = [1, 128], strides = [1, 1]} : vector<40x128xf32> to vector<1x128xf32>
    %94 = arith.truncf %93 : vector<1x128xf32> to vector<1x128xbf16>
    %c9 = arith.constant 9 : index
    %c0_39 = arith.constant 0 : index
    %c0_40 = arith.constant 0 : index
    %95 = vector.load %arg5[%c9, %c0_39, %c0_40] : memref<40x128x128xbf16, #tpu.memory_space<vmem>>, vector<1x128x128xbf16>
    %96 = vector.shape_cast %95 : vector<1x128x128xbf16> to vector<128x128xbf16>
    %cst_41 = arith.constant dense<0.000000e+00> : vector<1x128xf32>
    %97 = tpu.matmul %94, %96, %cst_41 {dimension_numbers = #tpu.dot_dimension_numbers<[1], [0], [0], [1], [0, 0, 1, 1], [], []>} : vector<1x128xbf16>, vector<128x128xbf16>, vector<1x128xf32> -> vector<1x128xf32>
    %98 = arith.addf %92, %97 : vector<1x128xf32>
    %99 = vector.extract_strided_slice %37 {offsets = [10, 0], sizes = [1, 128], strides = [1, 1]} : vector<40x128xf32> to vector<1x128xf32>
    %100 = arith.truncf %99 : vector<1x128xf32> to vector<1x128xbf16>
    %c10 = arith.constant 10 : index
    %c0_42 = arith.constant 0 : index
    %c0_43 = arith.constant 0 : index
    %101 = vector.load %arg5[%c10, %c0_42, %c0_43] : memref<40x128x128xbf16, #tpu.memory_space<vmem>>, vector<1x128x128xbf16>
    %102 = vector.shape_cast %101 : vector<1x128x128xbf16> to vector<128x128xbf16>
    %cst_44 = arith.constant dense<0.000000e+00> : vector<1x128xf32>
    %103 = tpu.matmul %100, %102, %cst_44 {dimension_numbers = #tpu.dot_dimension_numbers<[1], [0], [0], [1], [0, 0, 1, 1], [], []>} : vector<1x128xbf16>, vector<128x128xbf16>, vector<1x128xf32> -> vector<1x128xf32>
    %104 = arith.addf %98, %103 : vector<1x128xf32>
    %105 = vector.extract_strided_slice %37 {offsets = [11, 0], sizes = [1, 128], strides = [1, 1]} : vector<40x128xf32> to vector<1x128xf32>
    %106 = arith.truncf %105 : vector<1x128xf32> to vector<1x128xbf16>
    %c11 = arith.constant 11 : index
    %c0_45 = arith.constant 0 : index
    %c0_46 = arith.constant 0 : index
    %107 = vector.load %arg5[%c11, %c0_45, %c0_46] : memref<40x128x128xbf16, #tpu.memory_space<vmem>>, vector<1x128x128xbf16>
    %108 = vector.shape_cast %107 : vector<1x128x128xbf16> to vector<128x128xbf16>
    %cst_47 = arith.constant dense<0.000000e+00> : vector<1x128xf32>
    %109 = tpu.matmul %106, %108, %cst_47 {dimension_numbers = #tpu.dot_dimension_numbers<[1], [0], [0], [1], [0, 0, 1, 1], [], []>} : vector<1x128xbf16>, vector<128x128xbf16>, vector<1x128xf32> -> vector<1x128xf32>
    %110 = arith.addf %104, %109 : vector<1x128xf32>
    %111 = vector.extract_strided_slice %37 {offsets = [12, 0], sizes = [1, 128], strides = [1, 1]} : vector<40x128xf32> to vector<1x128xf32>
    %112 = arith.truncf %111 : vector<1x128xf32> to vector<1x128xbf16>
    %c12 = arith.constant 12 : index
    %c0_48 = arith.constant 0 : index
    %c0_49 = arith.constant 0 : index
    %113 = vector.load %arg5[%c12, %c0_48, %c0_49] : memref<40x128x128xbf16, #tpu.memory_space<vmem>>, vector<1x128x128xbf16>
    %114 = vector.shape_cast %113 : vector<1x128x128xbf16> to vector<128x128xbf16>
    %cst_50 = arith.constant dense<0.000000e+00> : vector<1x128xf32>
    %115 = tpu.matmul %112, %114, %cst_50 {dimension_numbers = #tpu.dot_dimension_numbers<[1], [0], [0], [1], [0, 0, 1, 1], [], []>} : vector<1x128xbf16>, vector<128x128xbf16>, vector<1x128xf32> -> vector<1x128xf32>
    %116 = arith.addf %110, %115 : vector<1x128xf32>
    %117 = vector.extract_strided_slice %37 {offsets = [13, 0], sizes = [1, 128], strides = [1, 1]} : vector<40x128xf32> to vector<1x128xf32>
    %118 = arith.truncf %117 : vector<1x128xf32> to vector<1x128xbf16>
    %c13 = arith.constant 13 : index
    %c0_51 = arith.constant 0 : index
    %c0_52 = arith.constant 0 : index
    %119 = vector.load %arg5[%c13, %c0_51, %c0_52] : memref<40x128x128xbf16, #tpu.memory_space<vmem>>, vector<1x128x128xbf16>
    %120 = vector.shape_cast %119 : vector<1x128x128xbf16> to vector<128x128xbf16>
    %cst_53 = arith.constant dense<0.000000e+00> : vector<1x128xf32>
    %121 = tpu.matmul %118, %120, %cst_53 {dimension_numbers = #tpu.dot_dimension_numbers<[1], [0], [0], [1], [0, 0, 1, 1], [], []>} : vector<1x128xbf16>, vector<128x128xbf16>, vector<1x128xf32> -> vector<1x128xf32>
    %122 = arith.addf %116, %121 : vector<1x128xf32>
    %123 = vector.extract_strided_slice %37 {offsets = [14, 0], sizes = [1, 128], strides = [1, 1]} : vector<40x128xf32> to vector<1x128xf32>
    %124 = arith.truncf %123 : vector<1x128xf32> to vector<1x128xbf16>
    %c14 = arith.constant 14 : index
    %c0_54 = arith.constant 0 : index
    %c0_55 = arith.constant 0 : index
    %125 = vector.load %arg5[%c14, %c0_54, %c0_55] : memref<40x128x128xbf16, #tpu.memory_space<vmem>>, vector<1x128x128xbf16>
    %126 = vector.shape_cast %125 : vector<1x128x128xbf16> to vector<128x128xbf16>
    %cst_56 = arith.constant dense<0.000000e+00> : vector<1x128xf32>
    %127 = tpu.matmul %124, %126, %cst_56 {dimension_numbers = #tpu.dot_dimension_numbers<[1], [0], [0], [1], [0, 0, 1, 1], [], []>} : vector<1x128xbf16>, vector<128x128xbf16>, vector<1x128xf32> -> vector<1x128xf32>
    %128 = arith.addf %122, %127 : vector<1x128xf32>
    %129 = vector.extract_strided_slice %37 {offsets = [15, 0], sizes = [1, 128], strides = [1, 1]} : vector<40x128xf32> to vector<1x128xf32>
    %130 = arith.truncf %129 : vector<1x128xf32> to vector<1x128xbf16>
    %c15 = arith.constant 15 : index
    %c0_57 = arith.constant 0 : index
    %c0_58 = arith.constant 0 : index
    %131 = vector.load %arg5[%c15, %c0_57, %c0_58] : memref<40x128x128xbf16, #tpu.memory_space<vmem>>, vector<1x128x128xbf16>
    %132 = vector.shape_cast %131 : vector<1x128x128xbf16> to vector<128x128xbf16>
    %cst_59 = arith.constant dense<0.000000e+00> : vector<1x128xf32>
    %133 = tpu.matmul %130, %132, %cst_59 {dimension_numbers = #tpu.dot_dimension_numbers<[1], [0], [0], [1], [0, 0, 1, 1], [], []>} : vector<1x128xbf16>, vector<128x128xbf16>, vector<1x128xf32> -> vector<1x128xf32>
    %134 = arith.addf %128, %133 : vector<1x128xf32>
    %135 = vector.extract_strided_slice %37 {offsets = [16, 0], sizes = [1, 128], strides = [1, 1]} : vector<40x128xf32> to vector<1x128xf32>
    %136 = arith.truncf %135 : vector<1x128xf32> to vector<1x128xbf16>
    %c16 = arith.constant 16 : index
    %c0_60 = arith.constant 0 : index
    %c0_61 = arith.constant 0 : index
    %137 = vector.load %arg5[%c16, %c0_60, %c0_61] : memref<40x128x128xbf16, #tpu.memory_space<vmem>>, vector<1x128x128xbf16>
    %138 = vector.shape_cast %137 : vector<1x128x128xbf16> to vector<128x128xbf16>
    %cst_62 = arith.constant dense<0.000000e+00> : vector<1x128xf32>
    %139 = tpu.matmul %136, %138, %cst_62 {dimension_numbers = #tpu.dot_dimension_numbers<[1], [0], [0], [1], [0, 0, 1, 1], [], []>} : vector<1x128xbf16>, vector<128x128xbf16>, vector<1x128xf32> -> vector<1x128xf32>
    %140 = arith.addf %134, %139 : vector<1x128xf32>
    %141 = vector.extract_strided_slice %37 {offsets = [17, 0], sizes = [1, 128], strides = [1, 1]} : vector<40x128xf32> to vector<1x128xf32>
    %142 = arith.truncf %141 : vector<1x128xf32> to vector<1x128xbf16>
    %c17 = arith.constant 17 : index
    %c0_63 = arith.constant 0 : index
    %c0_64 = arith.constant 0 : index
    %143 = vector.load %arg5[%c17, %c0_63, %c0_64] : memref<40x128x128xbf16, #tpu.memory_space<vmem>>, vector<1x128x128xbf16>
    %144 = vector.shape_cast %143 : vector<1x128x128xbf16> to vector<128x128xbf16>
    %cst_65 = arith.constant dense<0.000000e+00> : vector<1x128xf32>
    %145 = tpu.matmul %142, %144, %cst_65 {dimension_numbers = #tpu.dot_dimension_numbers<[1], [0], [0], [1], [0, 0, 1, 1], [], []>} : vector<1x128xbf16>, vector<128x128xbf16>, vector<1x128xf32> -> vector<1x128xf32>
    %146 = arith.addf %140, %145 : vector<1x128xf32>
    %147 = vector.extract_strided_slice %37 {offsets = [18, 0], sizes = [1, 128], strides = [1, 1]} : vector<40x128xf32> to vector<1x128xf32>
    %148 = arith.truncf %147 : vector<1x128xf32> to vector<1x128xbf16>
    %c18 = arith.constant 18 : index
    %c0_66 = arith.constant 0 : index
    %c0_67 = arith.constant 0 : index
    %149 = vector.load %arg5[%c18, %c0_66, %c0_67] : memref<40x128x128xbf16, #tpu.memory_space<vmem>>, vector<1x128x128xbf16>
    %150 = vector.shape_cast %149 : vector<1x128x128xbf16> to vector<128x128xbf16>
    %cst_68 = arith.constant dense<0.000000e+00> : vector<1x128xf32>
    %151 = tpu.matmul %148, %150, %cst_68 {dimension_numbers = #tpu.dot_dimension_numbers<[1], [0], [0], [1], [0, 0, 1, 1], [], []>} : vector<1x128xbf16>, vector<128x128xbf16>, vector<1x128xf32> -> vector<1x128xf32>
    %152 = arith.addf %146, %151 : vector<1x128xf32>
    %153 = vector.extract_strided_slice %37 {offsets = [19, 0], sizes = [1, 128], strides = [1, 1]} : vector<40x128xf32> to vector<1x128xf32>
    %154 = arith.truncf %153 : vector<1x128xf32> to vector<1x128xbf16>
    %c19 = arith.constant 19 : index
    %c0_69 = arith.constant 0 : index
    %c0_70 = arith.constant 0 : index
    %155 = vector.load %arg5[%c19, %c0_69, %c0_70] : memref<40x128x128xbf16, #tpu.memory_space<vmem>>, vector<1x128x128xbf16>
    %156 = vector.shape_cast %155 : vector<1x128x128xbf16> to vector<128x128xbf16>
    %cst_71 = arith.constant dense<0.000000e+00> : vector<1x128xf32>
    %157 = tpu.matmul %154, %156, %cst_71 {dimension_numbers = #tpu.dot_dimension_numbers<[1], [0], [0], [1], [0, 0, 1, 1], [], []>} : vector<1x128xbf16>, vector<128x128xbf16>, vector<1x128xf32> -> vector<1x128xf32>
    %158 = arith.addf %152, %157 : vector<1x128xf32>
    %159 = vector.extract_strided_slice %37 {offsets = [20, 0], sizes = [1, 128], strides = [1, 1]} : vector<40x128xf32> to vector<1x128xf32>
    %160 = arith.truncf %159 : vector<1x128xf32> to vector<1x128xbf16>
    %c20 = arith.constant 20 : index
    %c0_72 = arith.constant 0 : index
    %c0_73 = arith.constant 0 : index
    %161 = vector.load %arg5[%c20, %c0_72, %c0_73] : memref<40x128x128xbf16, #tpu.memory_space<vmem>>, vector<1x128x128xbf16>
    %162 = vector.shape_cast %161 : vector<1x128x128xbf16> to vector<128x128xbf16>
    %cst_74 = arith.constant dense<0.000000e+00> : vector<1x128xf32>
    %163 = tpu.matmul %160, %162, %cst_74 {dimension_numbers = #tpu.dot_dimension_numbers<[1], [0], [0], [1], [0, 0, 1, 1], [], []>} : vector<1x128xbf16>, vector<128x128xbf16>, vector<1x128xf32> -> vector<1x128xf32>
    %164 = arith.addf %158, %163 : vector<1x128xf32>
    %165 = vector.extract_strided_slice %37 {offsets = [21, 0], sizes = [1, 128], strides = [1, 1]} : vector<40x128xf32> to vector<1x128xf32>
    %166 = arith.truncf %165 : vector<1x128xf32> to vector<1x128xbf16>
    %c21 = arith.constant 21 : index
    %c0_75 = arith.constant 0 : index
    %c0_76 = arith.constant 0 : index
    %167 = vector.load %arg5[%c21, %c0_75, %c0_76] : memref<40x128x128xbf16, #tpu.memory_space<vmem>>, vector<1x128x128xbf16>
    %168 = vector.shape_cast %167 : vector<1x128x128xbf16> to vector<128x128xbf16>
    %cst_77 = arith.constant dense<0.000000e+00> : vector<1x128xf32>
    %169 = tpu.matmul %166, %168, %cst_77 {dimension_numbers = #tpu.dot_dimension_numbers<[1], [0], [0], [1], [0, 0, 1, 1], [], []>} : vector<1x128xbf16>, vector<128x128xbf16>, vector<1x128xf32> -> vector<1x128xf32>
    %170 = arith.addf %164, %169 : vector<1x128xf32>
    %171 = vector.extract_strided_slice %37 {offsets = [22, 0], sizes = [1, 128], strides = [1, 1]} : vector<40x128xf32> to vector<1x128xf32>
    %172 = arith.truncf %171 : vector<1x128xf32> to vector<1x128xbf16>
    %c22 = arith.constant 22 : index
    %c0_78 = arith.constant 0 : index
    %c0_79 = arith.constant 0 : index
    %173 = vector.load %arg5[%c22, %c0_78, %c0_79] : memref<40x128x128xbf16, #tpu.memory_space<vmem>>, vector<1x128x128xbf16>
    %174 = vector.shape_cast %173 : vector<1x128x128xbf16> to vector<128x128xbf16>
    %cst_80 = arith.constant dense<0.000000e+00> : vector<1x128xf32>
    %175 = tpu.matmul %172, %174, %cst_80 {dimension_numbers = #tpu.dot_dimension_numbers<[1], [0], [0], [1], [0, 0, 1, 1], [], []>} : vector<1x128xbf16>, vector<128x128xbf16>, vector<1x128xf32> -> vector<1x128xf32>
    %176 = arith.addf %170, %175 : vector<1x128xf32>
    %177 = vector.extract_strided_slice %37 {offsets = [23, 0], sizes = [1, 128], strides = [1, 1]} : vector<40x128xf32> to vector<1x128xf32>
    %178 = arith.truncf %177 : vector<1x128xf32> to vector<1x128xbf16>
    %c23 = arith.constant 23 : index
    %c0_81 = arith.constant 0 : index
    %c0_82 = arith.constant 0 : index
    %179 = vector.load %arg5[%c23, %c0_81, %c0_82] : memref<40x128x128xbf16, #tpu.memory_space<vmem>>, vector<1x128x128xbf16>
    %180 = vector.shape_cast %179 : vector<1x128x128xbf16> to vector<128x128xbf16>
    %cst_83 = arith.constant dense<0.000000e+00> : vector<1x128xf32>
    %181 = tpu.matmul %178, %180, %cst_83 {dimension_numbers = #tpu.dot_dimension_numbers<[1], [0], [0], [1], [0, 0, 1, 1], [], []>} : vector<1x128xbf16>, vector<128x128xbf16>, vector<1x128xf32> -> vector<1x128xf32>
    %182 = arith.addf %176, %181 : vector<1x128xf32>
    %183 = vector.extract_strided_slice %37 {offsets = [24, 0], sizes = [1, 128], strides = [1, 1]} : vector<40x128xf32> to vector<1x128xf32>
    %184 = arith.truncf %183 : vector<1x128xf32> to vector<1x128xbf16>
    %c24 = arith.constant 24 : index
    %c0_84 = arith.constant 0 : index
    %c0_85 = arith.constant 0 : index
    %185 = vector.load %arg5[%c24, %c0_84, %c0_85] : memref<40x128x128xbf16, #tpu.memory_space<vmem>>, vector<1x128x128xbf16>
    %186 = vector.shape_cast %185 : vector<1x128x128xbf16> to vector<128x128xbf16>
    %cst_86 = arith.constant dense<0.000000e+00> : vector<1x128xf32>
    %187 = tpu.matmul %184, %186, %cst_86 {dimension_numbers = #tpu.dot_dimension_numbers<[1], [0], [0], [1], [0, 0, 1, 1], [], []>} : vector<1x128xbf16>, vector<128x128xbf16>, vector<1x128xf32> -> vector<1x128xf32>
    %188 = arith.addf %182, %187 : vector<1x128xf32>
    %189 = vector.extract_strided_slice %37 {offsets = [25, 0], sizes = [1, 128], strides = [1, 1]} : vector<40x128xf32> to vector<1x128xf32>
    %190 = arith.truncf %189 : vector<1x128xf32> to vector<1x128xbf16>
    %c25 = arith.constant 25 : index
    %c0_87 = arith.constant 0 : index
    %c0_88 = arith.constant 0 : index
    %191 = vector.load %arg5[%c25, %c0_87, %c0_88] : memref<40x128x128xbf16, #tpu.memory_space<vmem>>, vector<1x128x128xbf16>
    %192 = vector.shape_cast %191 : vector<1x128x128xbf16> to vector<128x128xbf16>
    %cst_89 = arith.constant dense<0.000000e+00> : vector<1x128xf32>
    %193 = tpu.matmul %190, %192, %cst_89 {dimension_numbers = #tpu.dot_dimension_numbers<[1], [0], [0], [1], [0, 0, 1, 1], [], []>} : vector<1x128xbf16>, vector<128x128xbf16>, vector<1x128xf32> -> vector<1x128xf32>
    %194 = arith.addf %188, %193 : vector<1x128xf32>
    %195 = vector.extract_strided_slice %37 {offsets = [26, 0], sizes = [1, 128], strides = [1, 1]} : vector<40x128xf32> to vector<1x128xf32>
    %196 = arith.truncf %195 : vector<1x128xf32> to vector<1x128xbf16>
    %c26 = arith.constant 26 : index
    %c0_90 = arith.constant 0 : index
    %c0_91 = arith.constant 0 : index
    %197 = vector.load %arg5[%c26, %c0_90, %c0_91] : memref<40x128x128xbf16, #tpu.memory_space<vmem>>, vector<1x128x128xbf16>
    %198 = vector.shape_cast %197 : vector<1x128x128xbf16> to vector<128x128xbf16>
    %cst_92 = arith.constant dense<0.000000e+00> : vector<1x128xf32>
    %199 = tpu.matmul %196, %198, %cst_92 {dimension_numbers = #tpu.dot_dimension_numbers<[1], [0], [0], [1], [0, 0, 1, 1], [], []>} : vector<1x128xbf16>, vector<128x128xbf16>, vector<1x128xf32> -> vector<1x128xf32>
    %200 = arith.addf %194, %199 : vector<1x128xf32>
    %201 = vector.extract_strided_slice %37 {offsets = [27, 0], sizes = [1, 128], strides = [1, 1]} : vector<40x128xf32> to vector<1x128xf32>
    %202 = arith.truncf %201 : vector<1x128xf32> to vector<1x128xbf16>
    %c27 = arith.constant 27 : index
    %c0_93 = arith.constant 0 : index
    %c0_94 = arith.constant 0 : index
    %203 = vector.load %arg5[%c27, %c0_93, %c0_94] : memref<40x128x128xbf16, #tpu.memory_space<vmem>>, vector<1x128x128xbf16>
    %204 = vector.shape_cast %203 : vector<1x128x128xbf16> to vector<128x128xbf16>
    %cst_95 = arith.constant dense<0.000000e+00> : vector<1x128xf32>
    %205 = tpu.matmul %202, %204, %cst_95 {dimension_numbers = #tpu.dot_dimension_numbers<[1], [0], [0], [1], [0, 0, 1, 1], [], []>} : vector<1x128xbf16>, vector<128x128xbf16>, vector<1x128xf32> -> vector<1x128xf32>
    %206 = arith.addf %200, %205 : vector<1x128xf32>
    %207 = vector.extract_strided_slice %37 {offsets = [28, 0], sizes = [1, 128], strides = [1, 1]} : vector<40x128xf32> to vector<1x128xf32>
    %208 = arith.truncf %207 : vector<1x128xf32> to vector<1x128xbf16>
    %c28 = arith.constant 28 : index
    %c0_96 = arith.constant 0 : index
    %c0_97 = arith.constant 0 : index
    %209 = vector.load %arg5[%c28, %c0_96, %c0_97] : memref<40x128x128xbf16, #tpu.memory_space<vmem>>, vector<1x128x128xbf16>
    %210 = vector.shape_cast %209 : vector<1x128x128xbf16> to vector<128x128xbf16>
    %cst_98 = arith.constant dense<0.000000e+00> : vector<1x128xf32>
    %211 = tpu.matmul %208, %210, %cst_98 {dimension_numbers = #tpu.dot_dimension_numbers<[1], [0], [0], [1], [0, 0, 1, 1], [], []>} : vector<1x128xbf16>, vector<128x128xbf16>, vector<1x128xf32> -> vector<1x128xf32>
    %212 = arith.addf %206, %211 : vector<1x128xf32>
    %213 = vector.extract_strided_slice %37 {offsets = [29, 0], sizes = [1, 128], strides = [1, 1]} : vector<40x128xf32> to vector<1x128xf32>
    %214 = arith.truncf %213 : vector<1x128xf32> to vector<1x128xbf16>
    %c29 = arith.constant 29 : index
    %c0_99 = arith.constant 0 : index
    %c0_100 = arith.constant 0 : index
    %215 = vector.load %arg5[%c29, %c0_99, %c0_100] : memref<40x128x128xbf16, #tpu.memory_space<vmem>>, vector<1x128x128xbf16>
    %216 = vector.shape_cast %215 : vector<1x128x128xbf16> to vector<128x128xbf16>
    %cst_101 = arith.constant dense<0.000000e+00> : vector<1x128xf32>
    %217 = tpu.matmul %214, %216, %cst_101 {dimension_numbers = #tpu.dot_dimension_numbers<[1], [0], [0], [1], [0, 0, 1, 1], [], []>} : vector<1x128xbf16>, vector<128x128xbf16>, vector<1x128xf32> -> vector<1x128xf32>
    %218 = arith.addf %212, %217 : vector<1x128xf32>
    %219 = vector.extract_strided_slice %37 {offsets = [30, 0], sizes = [1, 128], strides = [1, 1]} : vector<40x128xf32> to vector<1x128xf32>
    %220 = arith.truncf %219 : vector<1x128xf32> to vector<1x128xbf16>
    %c30 = arith.constant 30 : index
    %c0_102 = arith.constant 0 : index
    %c0_103 = arith.constant 0 : index
    %221 = vector.load %arg5[%c30, %c0_102, %c0_103] : memref<40x128x128xbf16, #tpu.memory_space<vmem>>, vector<1x128x128xbf16>
    %222 = vector.shape_cast %221 : vector<1x128x128xbf16> to vector<128x128xbf16>
    %cst_104 = arith.constant dense<0.000000e+00> : vector<1x128xf32>
    %223 = tpu.matmul %220, %222, %cst_104 {dimension_numbers = #tpu.dot_dimension_numbers<[1], [0], [0], [1], [0, 0, 1, 1], [], []>} : vector<1x128xbf16>, vector<128x128xbf16>, vector<1x128xf32> -> vector<1x128xf32>
    %224 = arith.addf %218, %223 : vector<1x128xf32>
    %225 = vector.extract_strided_slice %37 {offsets = [31, 0], sizes = [1, 128], strides = [1, 1]} : vector<40x128xf32> to vector<1x128xf32>
    %226 = arith.truncf %225 : vector<1x128xf32> to vector<1x128xbf16>
    %c31 = arith.constant 31 : index
    %c0_105 = arith.constant 0 : index
    %c0_106 = arith.constant 0 : index
    %227 = vector.load %arg5[%c31, %c0_105, %c0_106] : memref<40x128x128xbf16, #tpu.memory_space<vmem>>, vector<1x128x128xbf16>
    %228 = vector.shape_cast %227 : vector<1x128x128xbf16> to vector<128x128xbf16>
    %cst_107 = arith.constant dense<0.000000e+00> : vector<1x128xf32>
    %229 = tpu.matmul %226, %228, %cst_107 {dimension_numbers = #tpu.dot_dimension_numbers<[1], [0], [0], [1], [0, 0, 1, 1], [], []>} : vector<1x128xbf16>, vector<128x128xbf16>, vector<1x128xf32> -> vector<1x128xf32>
    %230 = arith.addf %224, %229 : vector<1x128xf32>
    %231 = vector.extract_strided_slice %37 {offsets = [32, 0], sizes = [1, 128], strides = [1, 1]} : vector<40x128xf32> to vector<1x128xf32>
    %232 = arith.truncf %231 : vector<1x128xf32> to vector<1x128xbf16>
    %c32 = arith.constant 32 : index
    %c0_108 = arith.constant 0 : index
    %c0_109 = arith.constant 0 : index
    %233 = vector.load %arg5[%c32, %c0_108, %c0_109] : memref<40x128x128xbf16, #tpu.memory_space<vmem>>, vector<1x128x128xbf16>
    %234 = vector.shape_cast %233 : vector<1x128x128xbf16> to vector<128x128xbf16>
    %cst_110 = arith.constant dense<0.000000e+00> : vector<1x128xf32>
    %235 = tpu.matmul %232, %234, %cst_110 {dimension_numbers = #tpu.dot_dimension_numbers<[1], [0], [0], [1], [0, 0, 1, 1], [], []>} : vector<1x128xbf16>, vector<128x128xbf16>, vector<1x128xf32> -> vector<1x128xf32>
    %236 = arith.addf %230, %235 : vector<1x128xf32>
    %237 = vector.extract_strided_slice %37 {offsets = [33, 0], sizes = [1, 128], strides = [1, 1]} : vector<40x128xf32> to vector<1x128xf32>
    %238 = arith.truncf %237 : vector<1x128xf32> to vector<1x128xbf16>
    %c33 = arith.constant 33 : index
    %c0_111 = arith.constant 0 : index
    %c0_112 = arith.constant 0 : index
    %239 = vector.load %arg5[%c33, %c0_111, %c0_112] : memref<40x128x128xbf16, #tpu.memory_space<vmem>>, vector<1x128x128xbf16>
    %240 = vector.shape_cast %239 : vector<1x128x128xbf16> to vector<128x128xbf16>
    %cst_113 = arith.constant dense<0.000000e+00> : vector<1x128xf32>
    %241 = tpu.matmul %238, %240, %cst_113 {dimension_numbers = #tpu.dot_dimension_numbers<[1], [0], [0], [1], [0, 0, 1, 1], [], []>} : vector<1x128xbf16>, vector<128x128xbf16>, vector<1x128xf32> -> vector<1x128xf32>
    %242 = arith.addf %236, %241 : vector<1x128xf32>
    %243 = vector.extract_strided_slice %37 {offsets = [34, 0], sizes = [1, 128], strides = [1, 1]} : vector<40x128xf32> to vector<1x128xf32>
    %244 = arith.truncf %243 : vector<1x128xf32> to vector<1x128xbf16>
    %c34 = arith.constant 34 : index
    %c0_114 = arith.constant 0 : index
    %c0_115 = arith.constant 0 : index
    %245 = vector.load %arg5[%c34, %c0_114, %c0_115] : memref<40x128x128xbf16, #tpu.memory_space<vmem>>, vector<1x128x128xbf16>
    %246 = vector.shape_cast %245 : vector<1x128x128xbf16> to vector<128x128xbf16>
    %cst_116 = arith.constant dense<0.000000e+00> : vector<1x128xf32>
    %247 = tpu.matmul %244, %246, %cst_116 {dimension_numbers = #tpu.dot_dimension_numbers<[1], [0], [0], [1], [0, 0, 1, 1], [], []>} : vector<1x128xbf16>, vector<128x128xbf16>, vector<1x128xf32> -> vector<1x128xf32>
    %248 = arith.addf %242, %247 : vector<1x128xf32>
    %249 = vector.extract_strided_slice %37 {offsets = [35, 0], sizes = [1, 128], strides = [1, 1]} : vector<40x128xf32> to vector<1x128xf32>
    %250 = arith.truncf %249 : vector<1x128xf32> to vector<1x128xbf16>
    %c35 = arith.constant 35 : index
    %c0_117 = arith.constant 0 : index
    %c0_118 = arith.constant 0 : index
    %251 = vector.load %arg5[%c35, %c0_117, %c0_118] : memref<40x128x128xbf16, #tpu.memory_space<vmem>>, vector<1x128x128xbf16>
    %252 = vector.shape_cast %251 : vector<1x128x128xbf16> to vector<128x128xbf16>
    %cst_119 = arith.constant dense<0.000000e+00> : vector<1x128xf32>
    %253 = tpu.matmul %250, %252, %cst_119 {dimension_numbers = #tpu.dot_dimension_numbers<[1], [0], [0], [1], [0, 0, 1, 1], [], []>} : vector<1x128xbf16>, vector<128x128xbf16>, vector<1x128xf32> -> vector<1x128xf32>
    %254 = arith.addf %248, %253 : vector<1x128xf32>
    %255 = vector.extract_strided_slice %37 {offsets = [36, 0], sizes = [1, 128], strides = [1, 1]} : vector<40x128xf32> to vector<1x128xf32>
    %256 = arith.truncf %255 : vector<1x128xf32> to vector<1x128xbf16>
    %c36 = arith.constant 36 : index
    %c0_120 = arith.constant 0 : index
    %c0_121 = arith.constant 0 : index
    %257 = vector.load %arg5[%c36, %c0_120, %c0_121] : memref<40x128x128xbf16, #tpu.memory_space<vmem>>, vector<1x128x128xbf16>
    %258 = vector.shape_cast %257 : vector<1x128x128xbf16> to vector<128x128xbf16>
    %cst_122 = arith.constant dense<0.000000e+00> : vector<1x128xf32>
    %259 = tpu.matmul %256, %258, %cst_122 {dimension_numbers = #tpu.dot_dimension_numbers<[1], [0], [0], [1], [0, 0, 1, 1], [], []>} : vector<1x128xbf16>, vector<128x128xbf16>, vector<1x128xf32> -> vector<1x128xf32>
    %260 = arith.addf %254, %259 : vector<1x128xf32>
    %261 = vector.extract_strided_slice %37 {offsets = [37, 0], sizes = [1, 128], strides = [1, 1]} : vector<40x128xf32> to vector<1x128xf32>
    %262 = arith.truncf %261 : vector<1x128xf32> to vector<1x128xbf16>
    %c37 = arith.constant 37 : index
    %c0_123 = arith.constant 0 : index
    %c0_124 = arith.constant 0 : index
    %263 = vector.load %arg5[%c37, %c0_123, %c0_124] : memref<40x128x128xbf16, #tpu.memory_space<vmem>>, vector<1x128x128xbf16>
    %264 = vector.shape_cast %263 : vector<1x128x128xbf16> to vector<128x128xbf16>
    %cst_125 = arith.constant dense<0.000000e+00> : vector<1x128xf32>
    %265 = tpu.matmul %262, %264, %cst_125 {dimension_numbers = #tpu.dot_dimension_numbers<[1], [0], [0], [1], [0, 0, 1, 1], [], []>} : vector<1x128xbf16>, vector<128x128xbf16>, vector<1x128xf32> -> vector<1x128xf32>
    %266 = arith.addf %260, %265 : vector<1x128xf32>
    %267 = vector.extract_strided_slice %37 {offsets = [38, 0], sizes = [1, 128], strides = [1, 1]} : vector<40x128xf32> to vector<1x128xf32>
    %268 = arith.truncf %267 : vector<1x128xf32> to vector<1x128xbf16>
    %c38 = arith.constant 38 : index
    %c0_126 = arith.constant 0 : index
    %c0_127 = arith.constant 0 : index
    %269 = vector.load %arg5[%c38, %c0_126, %c0_127] : memref<40x128x128xbf16, #tpu.memory_space<vmem>>, vector<1x128x128xbf16>
    %270 = vector.shape_cast %269 : vector<1x128x128xbf16> to vector<128x128xbf16>
    %cst_128 = arith.constant dense<0.000000e+00> : vector<1x128xf32>
    %271 = tpu.matmul %268, %270, %cst_128 {dimension_numbers = #tpu.dot_dimension_numbers<[1], [0], [0], [1], [0, 0, 1, 1], [], []>} : vector<1x128xbf16>, vector<128x128xbf16>, vector<1x128xf32> -> vector<1x128xf32>
    %272 = arith.addf %266, %271 : vector<1x128xf32>
    %273 = vector.extract_strided_slice %37 {offsets = [39, 0], sizes = [1, 128], strides = [1, 1]} : vector<40x128xf32> to vector<1x128xf32>
    %274 = arith.truncf %273 : vector<1x128xf32> to vector<1x128xbf16>
    %c39 = arith.constant 39 : index
    %c0_129 = arith.constant 0 : index
    %c0_130 = arith.constant 0 : index
    %275 = vector.load %arg5[%c39, %c0_129, %c0_130] : memref<40x128x128xbf16, #tpu.memory_space<vmem>>, vector<1x128x128xbf16>
    %276 = vector.shape_cast %275 : vector<1x128x128xbf16> to vector<128x128xbf16>
    %cst_131 = arith.constant dense<0.000000e+00> : vector<1x128xf32>
    %277 = tpu.matmul %274, %276, %cst_131 {dimension_numbers = #tpu.dot_dimension_numbers<[1], [0], [0], [1], [0, 0, 1, 1], [], []>} : vector<1x128xbf16>, vector<128x128xbf16>, vector<1x128xf32> -> vector<1x128xf32>
    %278 = arith.addf %272, %277 : vector<1x128xf32>
    %c0_132 = arith.constant 0 : index
    %c0_133 = arith.constant 0 : index
    %279 = vector.load %arg6[%c0_132, %c0_133] : memref<1x128xf32, #tpu.memory_space<vmem>>, vector<1x128xf32>
    %280 = arith.mulf %278, %279 : vector<1x128xf32>
    %c0_134 = arith.constant 0 : index
    %c0_135 = arith.constant 0 : index
    %281 = vector.load %arg7[%c0_134, %c0_135] : memref<1x128xf32, #tpu.memory_space<vmem>>, vector<1x128xf32>
    %282 = arith.addf %280, %281 : vector<1x128xf32>
    %283 = arith.truncf %282 : vector<1x128xf32> to vector<1x128xbf16>
    %c0_136 = arith.constant 0 : index
    %c0_137 = arith.constant 0 : index
    %284 = vector.load %arg8[%c0_136, %c0_137] : memref<128x64xbf16, #tpu.memory_space<vmem>>, vector<128x64xbf16>
    %cst_138 = arith.constant dense<0.000000e+00> : vector<1x64xf32>
    %285 = tpu.matmul %283, %284, %cst_138 {dimension_numbers = #tpu.dot_dimension_numbers<[1], [0], [0], [1], [0, 0, 1, 1], [], []>} : vector<1x128xbf16>, vector<128x64xbf16>, vector<1x64xf32> -> vector<1x64xf32>
    %c0_139 = arith.constant 0 : index
    %c0_140 = arith.constant 0 : index
    %286 = vector.load %arg9[%c0_139, %c0_140] : memref<1x64xf32, #tpu.memory_space<vmem>>, vector<1x64xf32>
    %287 = arith.mulf %285, %286 : vector<1x64xf32>
    %c0_141 = arith.constant 0 : index
    %c0_142 = arith.constant 0 : index
    %288 = vector.load %arg10[%c0_141, %c0_142] : memref<1x64xf32, #tpu.memory_space<vmem>>, vector<1x64xf32>
    %289 = arith.addf %287, %288 : vector<1x64xf32>
    %290 = arith.truncf %289 : vector<1x64xf32> to vector<1x64xbf16>
    %c0_143 = arith.constant 0 : index
    %c0_144 = arith.constant 0 : index
    %291 = vector.load %arg11[%c0_143, %c0_144] : memref<64x2xbf16, #tpu.memory_space<vmem>>, vector<64x2xbf16>
    %cst_145 = arith.constant dense<0.000000e+00> : vector<1x2xf32>
    %292 = tpu.matmul %290, %291, %cst_145 {dimension_numbers = #tpu.dot_dimension_numbers<[1], [0], [0], [1], [0, 0, 1, 1], [], []>} : vector<1x64xbf16>, vector<64x2xbf16>, vector<1x2xf32> -> vector<1x2xf32>
    %c0_146 = arith.constant 0 : index
    %c0_147 = arith.constant 0 : index
    %293 = vector.load %arg12[%c0_146, %c0_147] : memref<1x2xf32, #tpu.memory_space<vmem>>, vector<1x2xf32>
    %294 = arith.addf %292, %293 : vector<1x2xf32>
    %c0_148 = arith.constant 0 : index
    %c0_149 = arith.constant 0 : index
    %c0_150 = arith.constant 0 : index
    %295 = vector.load %arg13[%c0_148, %c0_149, %c0_150] : memref<2x1x2xf32, #tpu.memory_space<vmem>>, vector<1x1x2xf32>
    %296 = vector.shape_cast %295 : vector<1x1x2xf32> to vector<1x2xf32>
    %297 = vector.shape_cast %294 : vector<1x2xf32> to vector<1x1x2xf32>
    tpu.vector_store %arg13[%c0_148, %c0_149, %c0_150], %297 {strides = array<i32>} : memref<2x1x2xf32, #tpu.memory_space<vmem>>, vector<1x1x2xf32>,
    %c1_151 = arith.constant 1 : index
    %c0_152 = arith.constant 0 : index
    %c0_153 = arith.constant 0 : index
    %298 = vector.load %arg1[%c1_151, %c0_152, %c0_153] : memref<2x118x384xbf16, #tpu.memory_space<vmem>>, vector<1x118x384xbf16>
    %299 = vector.shape_cast %298 : vector<1x118x384xbf16> to vector<118x384xbf16>
    %c0_154 = arith.constant 0 : index
    %c0_155 = arith.constant 0 : index
    %300 = vector.load %arg2[%c0_154, %c0_155] : memref<520x118xbf16, #tpu.memory_space<vmem>>, vector<520x118xbf16>
    %cst_156 = arith.constant dense<0.000000e+00> : vector<520x384xf32>
    %301 = tpu.matmul %300, %299, %cst_156 {dimension_numbers = #tpu.dot_dimension_numbers<[1], [0], [0], [1], [0, 0, 1, 1], [], []>} : vector<520x118xbf16>, vector<118x384xbf16>, vector<520x384xf32> -> vector<520x384xf32>
    %302 = vector.extract_strided_slice %301 {offsets = [0, 0], sizes = [40, 336], strides = [1, 1]} : vector<520x384xf32> to vector<40x336xf32>
    %303 = vector.extract_strided_slice %301 {offsets = [40, 1], sizes = [40, 336], strides = [1, 1]} : vector<520x384xf32> to vector<40x336xf32>
    %304 = arith.addf %302, %303 : vector<40x336xf32>
    %305 = vector.extract_strided_slice %301 {offsets = [80, 2], sizes = [40, 336], strides = [1, 1]} : vector<520x384xf32> to vector<40x336xf32>
    %306 = arith.addf %304, %305 : vector<40x336xf32>
    %307 = vector.extract_strided_slice %301 {offsets = [120, 3], sizes = [40, 336], strides = [1, 1]} : vector<520x384xf32> to vector<40x336xf32>
    %308 = arith.addf %306, %307 : vector<40x336xf32>
    %309 = vector.extract_strided_slice %301 {offsets = [160, 4], sizes = [40, 336], strides = [1, 1]} : vector<520x384xf32> to vector<40x336xf32>
    %310 = arith.addf %308, %309 : vector<40x336xf32>
    %311 = vector.extract_strided_slice %301 {offsets = [200, 5], sizes = [40, 336], strides = [1, 1]} : vector<520x384xf32> to vector<40x336xf32>
    %312 = arith.addf %310, %311 : vector<40x336xf32>
    %313 = vector.extract_strided_slice %301 {offsets = [240, 6], sizes = [40, 336], strides = [1, 1]} : vector<520x384xf32> to vector<40x336xf32>
    %314 = arith.addf %312, %313 : vector<40x336xf32>
    %315 = vector.extract_strided_slice %301 {offsets = [280, 7], sizes = [40, 336], strides = [1, 1]} : vector<520x384xf32> to vector<40x336xf32>
    %316 = arith.addf %314, %315 : vector<40x336xf32>
    %317 = vector.extract_strided_slice %301 {offsets = [320, 8], sizes = [40, 336], strides = [1, 1]} : vector<520x384xf32> to vector<40x336xf32>
    %318 = arith.addf %316, %317 : vector<40x336xf32>
    %319 = vector.extract_strided_slice %301 {offsets = [360, 9], sizes = [40, 336], strides = [1, 1]} : vector<520x384xf32> to vector<40x336xf32>
    %320 = arith.addf %318, %319 : vector<40x336xf32>
    %321 = vector.extract_strided_slice %301 {offsets = [400, 10], sizes = [40, 336], strides = [1, 1]} : vector<520x384xf32> to vector<40x336xf32>
    %322 = arith.addf %320, %321 : vector<40x336xf32>
    %323 = vector.extract_strided_slice %301 {offsets = [440, 11], sizes = [40, 336], strides = [1, 1]} : vector<520x384xf32> to vector<40x336xf32>
    %324 = arith.addf %322, %323 : vector<40x336xf32>
    %325 = vector.extract_strided_slice %301 {offsets = [480, 12], sizes = [40, 336], strides = [1, 1]} : vector<520x384xf32> to vector<40x336xf32>
    %326 = arith.addf %324, %325 : vector<40x336xf32>
    %c0_157 = arith.constant 0 : index
    %c0_158 = arith.constant 0 : index
    %327 = vector.load %arg3[%c0_157, %c0_158] : memref<40x1xf32, #tpu.memory_space<vmem>>, vector<40x1xf32>
    %328 = vector.broadcast %327 : vector<40x1xf32> to vector<40x336xf32>
    %329 = arith.addf %326, %328 : vector<40x336xf32>
    %330 = arith.mulf %329, %329 : vector<40x336xf32>
    %c0_159 = arith.constant 0 : index
    %c0_160 = arith.constant 0 : index
    %331 = vector.load %arg4[%c0_159, %c0_160] : memref<336x128xf32, #tpu.memory_space<vmem>>, vector<336x128xf32>
    %cst_161 = arith.constant dense<0.000000e+00> : vector<40x128xf32>
    %332 = tpu.matmul %330, %331, %cst_161 {dimension_numbers = #tpu.dot_dimension_numbers<[1], [0], [0], [1], [0, 0, 1, 1], [], []>} : vector<40x336xf32>, vector<336x128xf32>, vector<40x128xf32> -> vector<40x128xf32>
    %cst_162 = arith.constant 9.99999997E-7 : f32
    %333 = vector.broadcast %cst_162 : f32 to vector<40x128xf32>
    %334 = arith.maximumf %332, %333 : vector<40x128xf32>
    %335 = math.log %334 : vector<40x128xf32>
    %cst_163 = arith.constant 0.000000e+00 : f32
    %336 = vector.broadcast %cst_163 : f32 to vector<1x128xf32>
    %337 = vector.extract_strided_slice %335 {offsets = [0, 0], sizes = [1, 128], strides = [1, 1]} : vector<40x128xf32> to vector<1x128xf32>
    %338 = arith.truncf %337 : vector<1x128xf32> to vector<1x128xbf16>
    %c0_164 = arith.constant 0 : index
    %c0_165 = arith.constant 0 : index
    %c0_166 = arith.constant 0 : index
    %339 = vector.load %arg5[%c0_164, %c0_165, %c0_166] : memref<40x128x128xbf16, #tpu.memory_space<vmem>>, vector<1x128x128xbf16>
    %340 = vector.shape_cast %339 : vector<1x128x128xbf16> to vector<128x128xbf16>
    %cst_167 = arith.constant dense<0.000000e+00> : vector<1x128xf32>
    %341 = tpu.matmul %338, %340, %cst_167 {dimension_numbers = #tpu.dot_dimension_numbers<[1], [0], [0], [1], [0, 0, 1, 1], [], []>} : vector<1x128xbf16>, vector<128x128xbf16>, vector<1x128xf32> -> vector<1x128xf32>
    %342 = arith.addf %336, %341 : vector<1x128xf32>
    %343 = vector.extract_strided_slice %335 {offsets = [1, 0], sizes = [1, 128], strides = [1, 1]} : vector<40x128xf32> to vector<1x128xf32>
    %344 = arith.truncf %343 : vector<1x128xf32> to vector<1x128xbf16>
    %c1_168 = arith.constant 1 : index
    %c0_169 = arith.constant 0 : index
    %c0_170 = arith.constant 0 : index
    %345 = vector.load %arg5[%c1_168, %c0_169, %c0_170] : memref<40x128x128xbf16, #tpu.memory_space<vmem>>, vector<1x128x128xbf16>
    %346 = vector.shape_cast %345 : vector<1x128x128xbf16> to vector<128x128xbf16>
    %cst_171 = arith.constant dense<0.000000e+00> : vector<1x128xf32>
    %347 = tpu.matmul %344, %346, %cst_171 {dimension_numbers = #tpu.dot_dimension_numbers<[1], [0], [0], [1], [0, 0, 1, 1], [], []>} : vector<1x128xbf16>, vector<128x128xbf16>, vector<1x128xf32> -> vector<1x128xf32>
    %348 = arith.addf %342, %347 : vector<1x128xf32>
    %349 = vector.extract_strided_slice %335 {offsets = [2, 0], sizes = [1, 128], strides = [1, 1]} : vector<40x128xf32> to vector<1x128xf32>
    %350 = arith.truncf %349 : vector<1x128xf32> to vector<1x128xbf16>
    %c2_172 = arith.constant 2 : index
    %c0_173 = arith.constant 0 : index
    %c0_174 = arith.constant 0 : index
    %351 = vector.load %arg5[%c2_172, %c0_173, %c0_174] : memref<40x128x128xbf16, #tpu.memory_space<vmem>>, vector<1x128x128xbf16>
    %352 = vector.shape_cast %351 : vector<1x128x128xbf16> to vector<128x128xbf16>
    %cst_175 = arith.constant dense<0.000000e+00> : vector<1x128xf32>
    %353 = tpu.matmul %350, %352, %cst_175 {dimension_numbers = #tpu.dot_dimension_numbers<[1], [0], [0], [1], [0, 0, 1, 1], [], []>} : vector<1x128xbf16>, vector<128x128xbf16>, vector<1x128xf32> -> vector<1x128xf32>
    %354 = arith.addf %348, %353 : vector<1x128xf32>
    %355 = vector.extract_strided_slice %335 {offsets = [3, 0], sizes = [1, 128], strides = [1, 1]} : vector<40x128xf32> to vector<1x128xf32>
    %356 = arith.truncf %355 : vector<1x128xf32> to vector<1x128xbf16>
    %c3_176 = arith.constant 3 : index
    %c0_177 = arith.constant 0 : index
    %c0_178 = arith.constant 0 : index
    %357 = vector.load %arg5[%c3_176, %c0_177, %c0_178] : memref<40x128x128xbf16, #tpu.memory_space<vmem>>, vector<1x128x128xbf16>
    %358 = vector.shape_cast %357 : vector<1x128x128xbf16> to vector<128x128xbf16>
    %cst_179 = arith.constant dense<0.000000e+00> : vector<1x128xf32>
    %359 = tpu.matmul %356, %358, %cst_179 {dimension_numbers = #tpu.dot_dimension_numbers<[1], [0], [0], [1], [0, 0, 1, 1], [], []>} : vector<1x128xbf16>, vector<128x128xbf16>, vector<1x128xf32> -> vector<1x128xf32>
    %360 = arith.addf %354, %359 : vector<1x128xf32>
    %361 = vector.extract_strided_slice %335 {offsets = [4, 0], sizes = [1, 128], strides = [1, 1]} : vector<40x128xf32> to vector<1x128xf32>
    %362 = arith.truncf %361 : vector<1x128xf32> to vector<1x128xbf16>
    %c4_180 = arith.constant 4 : index
    %c0_181 = arith.constant 0 : index
    %c0_182 = arith.constant 0 : index
    %363 = vector.load %arg5[%c4_180, %c0_181, %c0_182] : memref<40x128x128xbf16, #tpu.memory_space<vmem>>, vector<1x128x128xbf16>
    %364 = vector.shape_cast %363 : vector<1x128x128xbf16> to vector<128x128xbf16>
    %cst_183 = arith.constant dense<0.000000e+00> : vector<1x128xf32>
    %365 = tpu.matmul %362, %364, %cst_183 {dimension_numbers = #tpu.dot_dimension_numbers<[1], [0], [0], [1], [0, 0, 1, 1], [], []>} : vector<1x128xbf16>, vector<128x128xbf16>, vector<1x128xf32> -> vector<1x128xf32>
    %366 = arith.addf %360, %365 : vector<1x128xf32>
    %367 = vector.extract_strided_slice %335 {offsets = [5, 0], sizes = [1, 128], strides = [1, 1]} : vector<40x128xf32> to vector<1x128xf32>
    %368 = arith.truncf %367 : vector<1x128xf32> to vector<1x128xbf16>
    %c5_184 = arith.constant 5 : index
    %c0_185 = arith.constant 0 : index
    %c0_186 = arith.constant 0 : index
    %369 = vector.load %arg5[%c5_184, %c0_185, %c0_186] : memref<40x128x128xbf16, #tpu.memory_space<vmem>>, vector<1x128x128xbf16>
    %370 = vector.shape_cast %369 : vector<1x128x128xbf16> to vector<128x128xbf16>
    %cst_187 = arith.constant dense<0.000000e+00> : vector<1x128xf32>
    %371 = tpu.matmul %368, %370, %cst_187 {dimension_numbers = #tpu.dot_dimension_numbers<[1], [0], [0], [1], [0, 0, 1, 1], [], []>} : vector<1x128xbf16>, vector<128x128xbf16>, vector<1x128xf32> -> vector<1x128xf32>
    %372 = arith.addf %366, %371 : vector<1x128xf32>
    %373 = vector.extract_strided_slice %335 {offsets = [6, 0], sizes = [1, 128], strides = [1, 1]} : vector<40x128xf32> to vector<1x128xf32>
    %374 = arith.truncf %373 : vector<1x128xf32> to vector<1x128xbf16>
    %c6_188 = arith.constant 6 : index
    %c0_189 = arith.constant 0 : index
    %c0_190 = arith.constant 0 : index
    %375 = vector.load %arg5[%c6_188, %c0_189, %c0_190] : memref<40x128x128xbf16, #tpu.memory_space<vmem>>, vector<1x128x128xbf16>
    %376 = vector.shape_cast %375 : vector<1x128x128xbf16> to vector<128x128xbf16>
    %cst_191 = arith.constant dense<0.000000e+00> : vector<1x128xf32>
    %377 = tpu.matmul %374, %376, %cst_191 {dimension_numbers = #tpu.dot_dimension_numbers<[1], [0], [0], [1], [0, 0, 1, 1], [], []>} : vector<1x128xbf16>, vector<128x128xbf16>, vector<1x128xf32> -> vector<1x128xf32>
    %378 = arith.addf %372, %377 : vector<1x128xf32>
    %379 = vector.extract_strided_slice %335 {offsets = [7, 0], sizes = [1, 128], strides = [1, 1]} : vector<40x128xf32> to vector<1x128xf32>
    %380 = arith.truncf %379 : vector<1x128xf32> to vector<1x128xbf16>
    %c7_192 = arith.constant 7 : index
    %c0_193 = arith.constant 0 : index
    %c0_194 = arith.constant 0 : index
    %381 = vector.load %arg5[%c7_192, %c0_193, %c0_194] : memref<40x128x128xbf16, #tpu.memory_space<vmem>>, vector<1x128x128xbf16>
    %382 = vector.shape_cast %381 : vector<1x128x128xbf16> to vector<128x128xbf16>
    %cst_195 = arith.constant dense<0.000000e+00> : vector<1x128xf32>
    %383 = tpu.matmul %380, %382, %cst_195 {dimension_numbers = #tpu.dot_dimension_numbers<[1], [0], [0], [1], [0, 0, 1, 1], [], []>} : vector<1x128xbf16>, vector<128x128xbf16>, vector<1x128xf32> -> vector<1x128xf32>
    %384 = arith.addf %378, %383 : vector<1x128xf32>
    %385 = vector.extract_strided_slice %335 {offsets = [8, 0], sizes = [1, 128], strides = [1, 1]} : vector<40x128xf32> to vector<1x128xf32>
    %386 = arith.truncf %385 : vector<1x128xf32> to vector<1x128xbf16>
    %c8_196 = arith.constant 8 : index
    %c0_197 = arith.constant 0 : index
    %c0_198 = arith.constant 0 : index
    %387 = vector.load %arg5[%c8_196, %c0_197, %c0_198] : memref<40x128x128xbf16, #tpu.memory_space<vmem>>, vector<1x128x128xbf16>
    %388 = vector.shape_cast %387 : vector<1x128x128xbf16> to vector<128x128xbf16>
    %cst_199 = arith.constant dense<0.000000e+00> : vector<1x128xf32>
    %389 = tpu.matmul %386, %388, %cst_199 {dimension_numbers = #tpu.dot_dimension_numbers<[1], [0], [0], [1], [0, 0, 1, 1], [], []>} : vector<1x128xbf16>, vector<128x128xbf16>, vector<1x128xf32> -> vector<1x128xf32>
    %390 = arith.addf %384, %389 : vector<1x128xf32>
    %391 = vector.extract_strided_slice %335 {offsets = [9, 0], sizes = [1, 128], strides = [1, 1]} : vector<40x128xf32> to vector<1x128xf32>
    %392 = arith.truncf %391 : vector<1x128xf32> to vector<1x128xbf16>
    %c9_200 = arith.constant 9 : index
    %c0_201 = arith.constant 0 : index
    %c0_202 = arith.constant 0 : index
    %393 = vector.load %arg5[%c9_200, %c0_201, %c0_202] : memref<40x128x128xbf16, #tpu.memory_space<vmem>>, vector<1x128x128xbf16>
    %394 = vector.shape_cast %393 : vector<1x128x128xbf16> to vector<128x128xbf16>
    %cst_203 = arith.constant dense<0.000000e+00> : vector<1x128xf32>
    %395 = tpu.matmul %392, %394, %cst_203 {dimension_numbers = #tpu.dot_dimension_numbers<[1], [0], [0], [1], [0, 0, 1, 1], [], []>} : vector<1x128xbf16>, vector<128x128xbf16>, vector<1x128xf32> -> vector<1x128xf32>
    %396 = arith.addf %390, %395 : vector<1x128xf32>
    %397 = vector.extract_strided_slice %335 {offsets = [10, 0], sizes = [1, 128], strides = [1, 1]} : vector<40x128xf32> to vector<1x128xf32>
    %398 = arith.truncf %397 : vector<1x128xf32> to vector<1x128xbf16>
    %c10_204 = arith.constant 10 : index
    %c0_205 = arith.constant 0 : index
    %c0_206 = arith.constant 0 : index
    %399 = vector.load %arg5[%c10_204, %c0_205, %c0_206] : memref<40x128x128xbf16, #tpu.memory_space<vmem>>, vector<1x128x128xbf16>
    %400 = vector.shape_cast %399 : vector<1x128x128xbf16> to vector<128x128xbf16>
    %cst_207 = arith.constant dense<0.000000e+00> : vector<1x128xf32>
    %401 = tpu.matmul %398, %400, %cst_207 {dimension_numbers = #tpu.dot_dimension_numbers<[1], [0], [0], [1], [0, 0, 1, 1], [], []>} : vector<1x128xbf16>, vector<128x128xbf16>, vector<1x128xf32> -> vector<1x128xf32>
    %402 = arith.addf %396, %401 : vector<1x128xf32>
    %403 = vector.extract_strided_slice %335 {offsets = [11, 0], sizes = [1, 128], strides = [1, 1]} : vector<40x128xf32> to vector<1x128xf32>
    %404 = arith.truncf %403 : vector<1x128xf32> to vector<1x128xbf16>
    %c11_208 = arith.constant 11 : index
    %c0_209 = arith.constant 0 : index
    %c0_210 = arith.constant 0 : index
    %405 = vector.load %arg5[%c11_208, %c0_209, %c0_210] : memref<40x128x128xbf16, #tpu.memory_space<vmem>>, vector<1x128x128xbf16>
    %406 = vector.shape_cast %405 : vector<1x128x128xbf16> to vector<128x128xbf16>
    %cst_211 = arith.constant dense<0.000000e+00> : vector<1x128xf32>
    %407 = tpu.matmul %404, %406, %cst_211 {dimension_numbers = #tpu.dot_dimension_numbers<[1], [0], [0], [1], [0, 0, 1, 1], [], []>} : vector<1x128xbf16>, vector<128x128xbf16>, vector<1x128xf32> -> vector<1x128xf32>
    %408 = arith.addf %402, %407 : vector<1x128xf32>
    %409 = vector.extract_strided_slice %335 {offsets = [12, 0], sizes = [1, 128], strides = [1, 1]} : vector<40x128xf32> to vector<1x128xf32>
    %410 = arith.truncf %409 : vector<1x128xf32> to vector<1x128xbf16>
    %c12_212 = arith.constant 12 : index
    %c0_213 = arith.constant 0 : index
    %c0_214 = arith.constant 0 : index
    %411 = vector.load %arg5[%c12_212, %c0_213, %c0_214] : memref<40x128x128xbf16, #tpu.memory_space<vmem>>, vector<1x128x128xbf16>
    %412 = vector.shape_cast %411 : vector<1x128x128xbf16> to vector<128x128xbf16>
    %cst_215 = arith.constant dense<0.000000e+00> : vector<1x128xf32>
    %413 = tpu.matmul %410, %412, %cst_215 {dimension_numbers = #tpu.dot_dimension_numbers<[1], [0], [0], [1], [0, 0, 1, 1], [], []>} : vector<1x128xbf16>, vector<128x128xbf16>, vector<1x128xf32> -> vector<1x128xf32>
    %414 = arith.addf %408, %413 : vector<1x128xf32>
    %415 = vector.extract_strided_slice %335 {offsets = [13, 0], sizes = [1, 128], strides = [1, 1]} : vector<40x128xf32> to vector<1x128xf32>
    %416 = arith.truncf %415 : vector<1x128xf32> to vector<1x128xbf16>
    %c13_216 = arith.constant 13 : index
    %c0_217 = arith.constant 0 : index
    %c0_218 = arith.constant 0 : index
    %417 = vector.load %arg5[%c13_216, %c0_217, %c0_218] : memref<40x128x128xbf16, #tpu.memory_space<vmem>>, vector<1x128x128xbf16>
    %418 = vector.shape_cast %417 : vector<1x128x128xbf16> to vector<128x128xbf16>
    %cst_219 = arith.constant dense<0.000000e+00> : vector<1x128xf32>
    %419 = tpu.matmul %416, %418, %cst_219 {dimension_numbers = #tpu.dot_dimension_numbers<[1], [0], [0], [1], [0, 0, 1, 1], [], []>} : vector<1x128xbf16>, vector<128x128xbf16>, vector<1x128xf32> -> vector<1x128xf32>
    %420 = arith.addf %414, %419 : vector<1x128xf32>
    %421 = vector.extract_strided_slice %335 {offsets = [14, 0], sizes = [1, 128], strides = [1, 1]} : vector<40x128xf32> to vector<1x128xf32>
    %422 = arith.truncf %421 : vector<1x128xf32> to vector<1x128xbf16>
    %c14_220 = arith.constant 14 : index
    %c0_221 = arith.constant 0 : index
    %c0_222 = arith.constant 0 : index
    %423 = vector.load %arg5[%c14_220, %c0_221, %c0_222] : memref<40x128x128xbf16, #tpu.memory_space<vmem>>, vector<1x128x128xbf16>
    %424 = vector.shape_cast %423 : vector<1x128x128xbf16> to vector<128x128xbf16>
    %cst_223 = arith.constant dense<0.000000e+00> : vector<1x128xf32>
    %425 = tpu.matmul %422, %424, %cst_223 {dimension_numbers = #tpu.dot_dimension_numbers<[1], [0], [0], [1], [0, 0, 1, 1], [], []>} : vector<1x128xbf16>, vector<128x128xbf16>, vector<1x128xf32> -> vector<1x128xf32>
    %426 = arith.addf %420, %425 : vector<1x128xf32>
    %427 = vector.extract_strided_slice %335 {offsets = [15, 0], sizes = [1, 128], strides = [1, 1]} : vector<40x128xf32> to vector<1x128xf32>
    %428 = arith.truncf %427 : vector<1x128xf32> to vector<1x128xbf16>
    %c15_224 = arith.constant 15 : index
    %c0_225 = arith.constant 0 : index
    %c0_226 = arith.constant 0 : index
    %429 = vector.load %arg5[%c15_224, %c0_225, %c0_226] : memref<40x128x128xbf16, #tpu.memory_space<vmem>>, vector<1x128x128xbf16>
    %430 = vector.shape_cast %429 : vector<1x128x128xbf16> to vector<128x128xbf16>
    %cst_227 = arith.constant dense<0.000000e+00> : vector<1x128xf32>
    %431 = tpu.matmul %428, %430, %cst_227 {dimension_numbers = #tpu.dot_dimension_numbers<[1], [0], [0], [1], [0, 0, 1, 1], [], []>} : vector<1x128xbf16>, vector<128x128xbf16>, vector<1x128xf32> -> vector<1x128xf32>
    %432 = arith.addf %426, %431 : vector<1x128xf32>
    %433 = vector.extract_strided_slice %335 {offsets = [16, 0], sizes = [1, 128], strides = [1, 1]} : vector<40x128xf32> to vector<1x128xf32>
    %434 = arith.truncf %433 : vector<1x128xf32> to vector<1x128xbf16>
    %c16_228 = arith.constant 16 : index
    %c0_229 = arith.constant 0 : index
    %c0_230 = arith.constant 0 : index
    %435 = vector.load %arg5[%c16_228, %c0_229, %c0_230] : memref<40x128x128xbf16, #tpu.memory_space<vmem>>, vector<1x128x128xbf16>
    %436 = vector.shape_cast %435 : vector<1x128x128xbf16> to vector<128x128xbf16>
    %cst_231 = arith.constant dense<0.000000e+00> : vector<1x128xf32>
    %437 = tpu.matmul %434, %436, %cst_231 {dimension_numbers = #tpu.dot_dimension_numbers<[1], [0], [0], [1], [0, 0, 1, 1], [], []>} : vector<1x128xbf16>, vector<128x128xbf16>, vector<1x128xf32> -> vector<1x128xf32>
    %438 = arith.addf %432, %437 : vector<1x128xf32>
    %439 = vector.extract_strided_slice %335 {offsets = [17, 0], sizes = [1, 128], strides = [1, 1]} : vector<40x128xf32> to vector<1x128xf32>
    %440 = arith.truncf %439 : vector<1x128xf32> to vector<1x128xbf16>
    %c17_232 = arith.constant 17 : index
    %c0_233 = arith.constant 0 : index
    %c0_234 = arith.constant 0 : index
    %441 = vector.load %arg5[%c17_232, %c0_233, %c0_234] : memref<40x128x128xbf16, #tpu.memory_space<vmem>>, vector<1x128x128xbf16>
    %442 = vector.shape_cast %441 : vector<1x128x128xbf16> to vector<128x128xbf16>
    %cst_235 = arith.constant dense<0.000000e+00> : vector<1x128xf32>
    %443 = tpu.matmul %440, %442, %cst_235 {dimension_numbers = #tpu.dot_dimension_numbers<[1], [0], [0], [1], [0, 0, 1, 1], [], []>} : vector<1x128xbf16>, vector<128x128xbf16>, vector<1x128xf32> -> vector<1x128xf32>
    %444 = arith.addf %438, %443 : vector<1x128xf32>
    %445 = vector.extract_strided_slice %335 {offsets = [18, 0], sizes = [1, 128], strides = [1, 1]} : vector<40x128xf32> to vector<1x128xf32>
    %446 = arith.truncf %445 : vector<1x128xf32> to vector<1x128xbf16>
    %c18_236 = arith.constant 18 : index
    %c0_237 = arith.constant 0 : index
    %c0_238 = arith.constant 0 : index
    %447 = vector.load %arg5[%c18_236, %c0_237, %c0_238] : memref<40x128x128xbf16, #tpu.memory_space<vmem>>, vector<1x128x128xbf16>
    %448 = vector.shape_cast %447 : vector<1x128x128xbf16> to vector<128x128xbf16>
    %cst_239 = arith.constant dense<0.000000e+00> : vector<1x128xf32>
    %449 = tpu.matmul %446, %448, %cst_239 {dimension_numbers = #tpu.dot_dimension_numbers<[1], [0], [0], [1], [0, 0, 1, 1], [], []>} : vector<1x128xbf16>, vector<128x128xbf16>, vector<1x128xf32> -> vector<1x128xf32>
    %450 = arith.addf %444, %449 : vector<1x128xf32>
    %451 = vector.extract_strided_slice %335 {offsets = [19, 0], sizes = [1, 128], strides = [1, 1]} : vector<40x128xf32> to vector<1x128xf32>
    %452 = arith.truncf %451 : vector<1x128xf32> to vector<1x128xbf16>
    %c19_240 = arith.constant 19 : index
    %c0_241 = arith.constant 0 : index
    %c0_242 = arith.constant 0 : index
    %453 = vector.load %arg5[%c19_240, %c0_241, %c0_242] : memref<40x128x128xbf16, #tpu.memory_space<vmem>>, vector<1x128x128xbf16>
    %454 = vector.shape_cast %453 : vector<1x128x128xbf16> to vector<128x128xbf16>
    %cst_243 = arith.constant dense<0.000000e+00> : vector<1x128xf32>
    %455 = tpu.matmul %452, %454, %cst_243 {dimension_numbers = #tpu.dot_dimension_numbers<[1], [0], [0], [1], [0, 0, 1, 1], [], []>} : vector<1x128xbf16>, vector<128x128xbf16>, vector<1x128xf32> -> vector<1x128xf32>
    %456 = arith.addf %450, %455 : vector<1x128xf32>
    %457 = vector.extract_strided_slice %335 {offsets = [20, 0], sizes = [1, 128], strides = [1, 1]} : vector<40x128xf32> to vector<1x128xf32>
    %458 = arith.truncf %457 : vector<1x128xf32> to vector<1x128xbf16>
    %c20_244 = arith.constant 20 : index
    %c0_245 = arith.constant 0 : index
    %c0_246 = arith.constant 0 : index
    %459 = vector.load %arg5[%c20_244, %c0_245, %c0_246] : memref<40x128x128xbf16, #tpu.memory_space<vmem>>, vector<1x128x128xbf16>
    %460 = vector.shape_cast %459 : vector<1x128x128xbf16> to vector<128x128xbf16>
    %cst_247 = arith.constant dense<0.000000e+00> : vector<1x128xf32>
    %461 = tpu.matmul %458, %460, %cst_247 {dimension_numbers = #tpu.dot_dimension_numbers<[1], [0], [0], [1], [0, 0, 1, 1], [], []>} : vector<1x128xbf16>, vector<128x128xbf16>, vector<1x128xf32> -> vector<1x128xf32>
    %462 = arith.addf %456, %461 : vector<1x128xf32>
    %463 = vector.extract_strided_slice %335 {offsets = [21, 0], sizes = [1, 128], strides = [1, 1]} : vector<40x128xf32> to vector<1x128xf32>
    %464 = arith.truncf %463 : vector<1x128xf32> to vector<1x128xbf16>
    %c21_248 = arith.constant 21 : index
    %c0_249 = arith.constant 0 : index
    %c0_250 = arith.constant 0 : index
    %465 = vector.load %arg5[%c21_248, %c0_249, %c0_250] : memref<40x128x128xbf16, #tpu.memory_space<vmem>>, vector<1x128x128xbf16>
    %466 = vector.shape_cast %465 : vector<1x128x128xbf16> to vector<128x128xbf16>
    %cst_251 = arith.constant dense<0.000000e+00> : vector<1x128xf32>
    %467 = tpu.matmul %464, %466, %cst_251 {dimension_numbers = #tpu.dot_dimension_numbers<[1], [0], [0], [1], [0, 0, 1, 1], [], []>} : vector<1x128xbf16>, vector<128x128xbf16>, vector<1x128xf32> -> vector<1x128xf32>
    %468 = arith.addf %462, %467 : vector<1x128xf32>
    %469 = vector.extract_strided_slice %335 {offsets = [22, 0], sizes = [1, 128], strides = [1, 1]} : vector<40x128xf32> to vector<1x128xf32>
    %470 = arith.truncf %469 : vector<1x128xf32> to vector<1x128xbf16>
    %c22_252 = arith.constant 22 : index
    %c0_253 = arith.constant 0 : index
    %c0_254 = arith.constant 0 : index
    %471 = vector.load %arg5[%c22_252, %c0_253, %c0_254] : memref<40x128x128xbf16, #tpu.memory_space<vmem>>, vector<1x128x128xbf16>
    %472 = vector.shape_cast %471 : vector<1x128x128xbf16> to vector<128x128xbf16>
    %cst_255 = arith.constant dense<0.000000e+00> : vector<1x128xf32>
    %473 = tpu.matmul %470, %472, %cst_255 {dimension_numbers = #tpu.dot_dimension_numbers<[1], [0], [0], [1], [0, 0, 1, 1], [], []>} : vector<1x128xbf16>, vector<128x128xbf16>, vector<1x128xf32> -> vector<1x128xf32>
    %474 = arith.addf %468, %473 : vector<1x128xf32>
    %475 = vector.extract_strided_slice %335 {offsets = [23, 0], sizes = [1, 128], strides = [1, 1]} : vector<40x128xf32> to vector<1x128xf32>
    %476 = arith.truncf %475 : vector<1x128xf32> to vector<1x128xbf16>
    %c23_256 = arith.constant 23 : index
    %c0_257 = arith.constant 0 : index
    %c0_258 = arith.constant 0 : index
    %477 = vector.load %arg5[%c23_256, %c0_257, %c0_258] : memref<40x128x128xbf16, #tpu.memory_space<vmem>>, vector<1x128x128xbf16>
    %478 = vector.shape_cast %477 : vector<1x128x128xbf16> to vector<128x128xbf16>
    %cst_259 = arith.constant dense<0.000000e+00> : vector<1x128xf32>
    %479 = tpu.matmul %476, %478, %cst_259 {dimension_numbers = #tpu.dot_dimension_numbers<[1], [0], [0], [1], [0, 0, 1, 1], [], []>} : vector<1x128xbf16>, vector<128x128xbf16>, vector<1x128xf32> -> vector<1x128xf32>
    %480 = arith.addf %474, %479 : vector<1x128xf32>
    %481 = vector.extract_strided_slice %335 {offsets = [24, 0], sizes = [1, 128], strides = [1, 1]} : vector<40x128xf32> to vector<1x128xf32>
    %482 = arith.truncf %481 : vector<1x128xf32> to vector<1x128xbf16>
    %c24_260 = arith.constant 24 : index
    %c0_261 = arith.constant 0 : index
    %c0_262 = arith.constant 0 : index
    %483 = vector.load %arg5[%c24_260, %c0_261, %c0_262] : memref<40x128x128xbf16, #tpu.memory_space<vmem>>, vector<1x128x128xbf16>
    %484 = vector.shape_cast %483 : vector<1x128x128xbf16> to vector<128x128xbf16>
    %cst_263 = arith.constant dense<0.000000e+00> : vector<1x128xf32>
    %485 = tpu.matmul %482, %484, %cst_263 {dimension_numbers = #tpu.dot_dimension_numbers<[1], [0], [0], [1], [0, 0, 1, 1], [], []>} : vector<1x128xbf16>, vector<128x128xbf16>, vector<1x128xf32> -> vector<1x128xf32>
    %486 = arith.addf %480, %485 : vector<1x128xf32>
    %487 = vector.extract_strided_slice %335 {offsets = [25, 0], sizes = [1, 128], strides = [1, 1]} : vector<40x128xf32> to vector<1x128xf32>
    %488 = arith.truncf %487 : vector<1x128xf32> to vector<1x128xbf16>
    %c25_264 = arith.constant 25 : index
    %c0_265 = arith.constant 0 : index
    %c0_266 = arith.constant 0 : index
    %489 = vector.load %arg5[%c25_264, %c0_265, %c0_266] : memref<40x128x128xbf16, #tpu.memory_space<vmem>>, vector<1x128x128xbf16>
    %490 = vector.shape_cast %489 : vector<1x128x128xbf16> to vector<128x128xbf16>
    %cst_267 = arith.constant dense<0.000000e+00> : vector<1x128xf32>
    %491 = tpu.matmul %488, %490, %cst_267 {dimension_numbers = #tpu.dot_dimension_numbers<[1], [0], [0], [1], [0, 0, 1, 1], [], []>} : vector<1x128xbf16>, vector<128x128xbf16>, vector<1x128xf32> -> vector<1x128xf32>
    %492 = arith.addf %486, %491 : vector<1x128xf32>
    %493 = vector.extract_strided_slice %335 {offsets = [26, 0], sizes = [1, 128], strides = [1, 1]} : vector<40x128xf32> to vector<1x128xf32>
    %494 = arith.truncf %493 : vector<1x128xf32> to vector<1x128xbf16>
    %c26_268 = arith.constant 26 : index
    %c0_269 = arith.constant 0 : index
    %c0_270 = arith.constant 0 : index
    %495 = vector.load %arg5[%c26_268, %c0_269, %c0_270] : memref<40x128x128xbf16, #tpu.memory_space<vmem>>, vector<1x128x128xbf16>
    %496 = vector.shape_cast %495 : vector<1x128x128xbf16> to vector<128x128xbf16>
    %cst_271 = arith.constant dense<0.000000e+00> : vector<1x128xf32>
    %497 = tpu.matmul %494, %496, %cst_271 {dimension_numbers = #tpu.dot_dimension_numbers<[1], [0], [0], [1], [0, 0, 1, 1], [], []>} : vector<1x128xbf16>, vector<128x128xbf16>, vector<1x128xf32> -> vector<1x128xf32>
    %498 = arith.addf %492, %497 : vector<1x128xf32>
    %499 = vector.extract_strided_slice %335 {offsets = [27, 0], sizes = [1, 128], strides = [1, 1]} : vector<40x128xf32> to vector<1x128xf32>
    %500 = arith.truncf %499 : vector<1x128xf32> to vector<1x128xbf16>
    %c27_272 = arith.constant 27 : index
    %c0_273 = arith.constant 0 : index
    %c0_274 = arith.constant 0 : index
    %501 = vector.load %arg5[%c27_272, %c0_273, %c0_274] : memref<40x128x128xbf16, #tpu.memory_space<vmem>>, vector<1x128x128xbf16>
    %502 = vector.shape_cast %501 : vector<1x128x128xbf16> to vector<128x128xbf16>
    %cst_275 = arith.constant dense<0.000000e+00> : vector<1x128xf32>
    %503 = tpu.matmul %500, %502, %cst_275 {dimension_numbers = #tpu.dot_dimension_numbers<[1], [0], [0], [1], [0, 0, 1, 1], [], []>} : vector<1x128xbf16>, vector<128x128xbf16>, vector<1x128xf32> -> vector<1x128xf32>
    %504 = arith.addf %498, %503 : vector<1x128xf32>
    %505 = vector.extract_strided_slice %335 {offsets = [28, 0], sizes = [1, 128], strides = [1, 1]} : vector<40x128xf32> to vector<1x128xf32>
    %506 = arith.truncf %505 : vector<1x128xf32> to vector<1x128xbf16>
    %c28_276 = arith.constant 28 : index
    %c0_277 = arith.constant 0 : index
    %c0_278 = arith.constant 0 : index
    %507 = vector.load %arg5[%c28_276, %c0_277, %c0_278] : memref<40x128x128xbf16, #tpu.memory_space<vmem>>, vector<1x128x128xbf16>
    %508 = vector.shape_cast %507 : vector<1x128x128xbf16> to vector<128x128xbf16>
    %cst_279 = arith.constant dense<0.000000e+00> : vector<1x128xf32>
    %509 = tpu.matmul %506, %508, %cst_279 {dimension_numbers = #tpu.dot_dimension_numbers<[1], [0], [0], [1], [0, 0, 1, 1], [], []>} : vector<1x128xbf16>, vector<128x128xbf16>, vector<1x128xf32> -> vector<1x128xf32>
    %510 = arith.addf %504, %509 : vector<1x128xf32>
    %511 = vector.extract_strided_slice %335 {offsets = [29, 0], sizes = [1, 128], strides = [1, 1]} : vector<40x128xf32> to vector<1x128xf32>
    %512 = arith.truncf %511 : vector<1x128xf32> to vector<1x128xbf16>
    %c29_280 = arith.constant 29 : index
    %c0_281 = arith.constant 0 : index
    %c0_282 = arith.constant 0 : index
    %513 = vector.load %arg5[%c29_280, %c0_281, %c0_282] : memref<40x128x128xbf16, #tpu.memory_space<vmem>>, vector<1x128x128xbf16>
    %514 = vector.shape_cast %513 : vector<1x128x128xbf16> to vector<128x128xbf16>
    %cst_283 = arith.constant dense<0.000000e+00> : vector<1x128xf32>
    %515 = tpu.matmul %512, %514, %cst_283 {dimension_numbers = #tpu.dot_dimension_numbers<[1], [0], [0], [1], [0, 0, 1, 1], [], []>} : vector<1x128xbf16>, vector<128x128xbf16>, vector<1x128xf32> -> vector<1x128xf32>
    %516 = arith.addf %510, %515 : vector<1x128xf32>
    %517 = vector.extract_strided_slice %335 {offsets = [30, 0], sizes = [1, 128], strides = [1, 1]} : vector<40x128xf32> to vector<1x128xf32>
    %518 = arith.truncf %517 : vector<1x128xf32> to vector<1x128xbf16>
    %c30_284 = arith.constant 30 : index
    %c0_285 = arith.constant 0 : index
    %c0_286 = arith.constant 0 : index
    %519 = vector.load %arg5[%c30_284, %c0_285, %c0_286] : memref<40x128x128xbf16, #tpu.memory_space<vmem>>, vector<1x128x128xbf16>
    %520 = vector.shape_cast %519 : vector<1x128x128xbf16> to vector<128x128xbf16>
    %cst_287 = arith.constant dense<0.000000e+00> : vector<1x128xf32>
    %521 = tpu.matmul %518, %520, %cst_287 {dimension_numbers = #tpu.dot_dimension_numbers<[1], [0], [0], [1], [0, 0, 1, 1], [], []>} : vector<1x128xbf16>, vector<128x128xbf16>, vector<1x128xf32> -> vector<1x128xf32>
    %522 = arith.addf %516, %521 : vector<1x128xf32>
    %523 = vector.extract_strided_slice %335 {offsets = [31, 0], sizes = [1, 128], strides = [1, 1]} : vector<40x128xf32> to vector<1x128xf32>
    %524 = arith.truncf %523 : vector<1x128xf32> to vector<1x128xbf16>
    %c31_288 = arith.constant 31 : index
    %c0_289 = arith.constant 0 : index
    %c0_290 = arith.constant 0 : index
    %525 = vector.load %arg5[%c31_288, %c0_289, %c0_290] : memref<40x128x128xbf16, #tpu.memory_space<vmem>>, vector<1x128x128xbf16>
    %526 = vector.shape_cast %525 : vector<1x128x128xbf16> to vector<128x128xbf16>
    %cst_291 = arith.constant dense<0.000000e+00> : vector<1x128xf32>
    %527 = tpu.matmul %524, %526, %cst_291 {dimension_numbers = #tpu.dot_dimension_numbers<[1], [0], [0], [1], [0, 0, 1, 1], [], []>} : vector<1x128xbf16>, vector<128x128xbf16>, vector<1x128xf32> -> vector<1x128xf32>
    %528 = arith.addf %522, %527 : vector<1x128xf32>
    %529 = vector.extract_strided_slice %335 {offsets = [32, 0], sizes = [1, 128], strides = [1, 1]} : vector<40x128xf32> to vector<1x128xf32>
    %530 = arith.truncf %529 : vector<1x128xf32> to vector<1x128xbf16>
    %c32_292 = arith.constant 32 : index
    %c0_293 = arith.constant 0 : index
    %c0_294 = arith.constant 0 : index
    %531 = vector.load %arg5[%c32_292, %c0_293, %c0_294] : memref<40x128x128xbf16, #tpu.memory_space<vmem>>, vector<1x128x128xbf16>
    %532 = vector.shape_cast %531 : vector<1x128x128xbf16> to vector<128x128xbf16>
    %cst_295 = arith.constant dense<0.000000e+00> : vector<1x128xf32>
    %533 = tpu.matmul %530, %532, %cst_295 {dimension_numbers = #tpu.dot_dimension_numbers<[1], [0], [0], [1], [0, 0, 1, 1], [], []>} : vector<1x128xbf16>, vector<128x128xbf16>, vector<1x128xf32> -> vector<1x128xf32>
    %534 = arith.addf %528, %533 : vector<1x128xf32>
    %535 = vector.extract_strided_slice %335 {offsets = [33, 0], sizes = [1, 128], strides = [1, 1]} : vector<40x128xf32> to vector<1x128xf32>
    %536 = arith.truncf %535 : vector<1x128xf32> to vector<1x128xbf16>
    %c33_296 = arith.constant 33 : index
    %c0_297 = arith.constant 0 : index
    %c0_298 = arith.constant 0 : index
    %537 = vector.load %arg5[%c33_296, %c0_297, %c0_298] : memref<40x128x128xbf16, #tpu.memory_space<vmem>>, vector<1x128x128xbf16>
    %538 = vector.shape_cast %537 : vector<1x128x128xbf16> to vector<128x128xbf16>
    %cst_299 = arith.constant dense<0.000000e+00> : vector<1x128xf32>
    %539 = tpu.matmul %536, %538, %cst_299 {dimension_numbers = #tpu.dot_dimension_numbers<[1], [0], [0], [1], [0, 0, 1, 1], [], []>} : vector<1x128xbf16>, vector<128x128xbf16>, vector<1x128xf32> -> vector<1x128xf32>
    %540 = arith.addf %534, %539 : vector<1x128xf32>
    %541 = vector.extract_strided_slice %335 {offsets = [34, 0], sizes = [1, 128], strides = [1, 1]} : vector<40x128xf32> to vector<1x128xf32>
    %542 = arith.truncf %541 : vector<1x128xf32> to vector<1x128xbf16>
    %c34_300 = arith.constant 34 : index
    %c0_301 = arith.constant 0 : index
    %c0_302 = arith.constant 0 : index
    %543 = vector.load %arg5[%c34_300, %c0_301, %c0_302] : memref<40x128x128xbf16, #tpu.memory_space<vmem>>, vector<1x128x128xbf16>
    %544 = vector.shape_cast %543 : vector<1x128x128xbf16> to vector<128x128xbf16>
    %cst_303 = arith.constant dense<0.000000e+00> : vector<1x128xf32>
    %545 = tpu.matmul %542, %544, %cst_303 {dimension_numbers = #tpu.dot_dimension_numbers<[1], [0], [0], [1], [0, 0, 1, 1], [], []>} : vector<1x128xbf16>, vector<128x128xbf16>, vector<1x128xf32> -> vector<1x128xf32>
    %546 = arith.addf %540, %545 : vector<1x128xf32>
    %547 = vector.extract_strided_slice %335 {offsets = [35, 0], sizes = [1, 128], strides = [1, 1]} : vector<40x128xf32> to vector<1x128xf32>
    %548 = arith.truncf %547 : vector<1x128xf32> to vector<1x128xbf16>
    %c35_304 = arith.constant 35 : index
    %c0_305 = arith.constant 0 : index
    %c0_306 = arith.constant 0 : index
    %549 = vector.load %arg5[%c35_304, %c0_305, %c0_306] : memref<40x128x128xbf16, #tpu.memory_space<vmem>>, vector<1x128x128xbf16>
    %550 = vector.shape_cast %549 : vector<1x128x128xbf16> to vector<128x128xbf16>
    %cst_307 = arith.constant dense<0.000000e+00> : vector<1x128xf32>
    %551 = tpu.matmul %548, %550, %cst_307 {dimension_numbers = #tpu.dot_dimension_numbers<[1], [0], [0], [1], [0, 0, 1, 1], [], []>} : vector<1x128xbf16>, vector<128x128xbf16>, vector<1x128xf32> -> vector<1x128xf32>
    %552 = arith.addf %546, %551 : vector<1x128xf32>
    %553 = vector.extract_strided_slice %335 {offsets = [36, 0], sizes = [1, 128], strides = [1, 1]} : vector<40x128xf32> to vector<1x128xf32>
    %554 = arith.truncf %553 : vector<1x128xf32> to vector<1x128xbf16>
    %c36_308 = arith.constant 36 : index
    %c0_309 = arith.constant 0 : index
    %c0_310 = arith.constant 0 : index
    %555 = vector.load %arg5[%c36_308, %c0_309, %c0_310] : memref<40x128x128xbf16, #tpu.memory_space<vmem>>, vector<1x128x128xbf16>
    %556 = vector.shape_cast %555 : vector<1x128x128xbf16> to vector<128x128xbf16>
    %cst_311 = arith.constant dense<0.000000e+00> : vector<1x128xf32>
    %557 = tpu.matmul %554, %556, %cst_311 {dimension_numbers = #tpu.dot_dimension_numbers<[1], [0], [0], [1], [0, 0, 1, 1], [], []>} : vector<1x128xbf16>, vector<128x128xbf16>, vector<1x128xf32> -> vector<1x128xf32>
    %558 = arith.addf %552, %557 : vector<1x128xf32>
    %559 = vector.extract_strided_slice %335 {offsets = [37, 0], sizes = [1, 128], strides = [1, 1]} : vector<40x128xf32> to vector<1x128xf32>
    %560 = arith.truncf %559 : vector<1x128xf32> to vector<1x128xbf16>
    %c37_312 = arith.constant 37 : index
    %c0_313 = arith.constant 0 : index
    %c0_314 = arith.constant 0 : index
    %561 = vector.load %arg5[%c37_312, %c0_313, %c0_314] : memref<40x128x128xbf16, #tpu.memory_space<vmem>>, vector<1x128x128xbf16>
    %562 = vector.shape_cast %561 : vector<1x128x128xbf16> to vector<128x128xbf16>
    %cst_315 = arith.constant dense<0.000000e+00> : vector<1x128xf32>
    %563 = tpu.matmul %560, %562, %cst_315 {dimension_numbers = #tpu.dot_dimension_numbers<[1], [0], [0], [1], [0, 0, 1, 1], [], []>} : vector<1x128xbf16>, vector<128x128xbf16>, vector<1x128xf32> -> vector<1x128xf32>
    %564 = arith.addf %558, %563 : vector<1x128xf32>
    %565 = vector.extract_strided_slice %335 {offsets = [38, 0], sizes = [1, 128], strides = [1, 1]} : vector<40x128xf32> to vector<1x128xf32>
    %566 = arith.truncf %565 : vector<1x128xf32> to vector<1x128xbf16>
    %c38_316 = arith.constant 38 : index
    %c0_317 = arith.constant 0 : index
    %c0_318 = arith.constant 0 : index
    %567 = vector.load %arg5[%c38_316, %c0_317, %c0_318] : memref<40x128x128xbf16, #tpu.memory_space<vmem>>, vector<1x128x128xbf16>
    %568 = vector.shape_cast %567 : vector<1x128x128xbf16> to vector<128x128xbf16>
    %cst_319 = arith.constant dense<0.000000e+00> : vector<1x128xf32>
    %569 = tpu.matmul %566, %568, %cst_319 {dimension_numbers = #tpu.dot_dimension_numbers<[1], [0], [0], [1], [0, 0, 1, 1], [], []>} : vector<1x128xbf16>, vector<128x128xbf16>, vector<1x128xf32> -> vector<1x128xf32>
    %570 = arith.addf %564, %569 : vector<1x128xf32>
    %571 = vector.extract_strided_slice %335 {offsets = [39, 0], sizes = [1, 128], strides = [1, 1]} : vector<40x128xf32> to vector<1x128xf32>
    %572 = arith.truncf %571 : vector<1x128xf32> to vector<1x128xbf16>
    %c39_320 = arith.constant 39 : index
    %c0_321 = arith.constant 0 : index
    %c0_322 = arith.constant 0 : index
    %573 = vector.load %arg5[%c39_320, %c0_321, %c0_322] : memref<40x128x128xbf16, #tpu.memory_space<vmem>>, vector<1x128x128xbf16>
    %574 = vector.shape_cast %573 : vector<1x128x128xbf16> to vector<128x128xbf16>
    %cst_323 = arith.constant dense<0.000000e+00> : vector<1x128xf32>
    %575 = tpu.matmul %572, %574, %cst_323 {dimension_numbers = #tpu.dot_dimension_numbers<[1], [0], [0], [1], [0, 0, 1, 1], [], []>} : vector<1x128xbf16>, vector<128x128xbf16>, vector<1x128xf32> -> vector<1x128xf32>
    %576 = arith.addf %570, %575 : vector<1x128xf32>
    %c0_324 = arith.constant 0 : index
    %c0_325 = arith.constant 0 : index
    %577 = vector.load %arg6[%c0_324, %c0_325] : memref<1x128xf32, #tpu.memory_space<vmem>>, vector<1x128xf32>
    %578 = arith.mulf %576, %577 : vector<1x128xf32>
    %c0_326 = arith.constant 0 : index
    %c0_327 = arith.constant 0 : index
    %579 = vector.load %arg7[%c0_326, %c0_327] : memref<1x128xf32, #tpu.memory_space<vmem>>, vector<1x128xf32>
    %580 = arith.addf %578, %579 : vector<1x128xf32>
    %581 = arith.truncf %580 : vector<1x128xf32> to vector<1x128xbf16>
    %c0_328 = arith.constant 0 : index
    %c0_329 = arith.constant 0 : index
    %582 = vector.load %arg8[%c0_328, %c0_329] : memref<128x64xbf16, #tpu.memory_space<vmem>>, vector<128x64xbf16>
    %cst_330 = arith.constant dense<0.000000e+00> : vector<1x64xf32>
    %583 = tpu.matmul %581, %582, %cst_330 {dimension_numbers = #tpu.dot_dimension_numbers<[1], [0], [0], [1], [0, 0, 1, 1], [], []>} : vector<1x128xbf16>, vector<128x64xbf16>, vector<1x64xf32> -> vector<1x64xf32>
    %c0_331 = arith.constant 0 : index
    %c0_332 = arith.constant 0 : index
    %584 = vector.load %arg9[%c0_331, %c0_332] : memref<1x64xf32, #tpu.memory_space<vmem>>, vector<1x64xf32>
    %585 = arith.mulf %583, %584 : vector<1x64xf32>
    %c0_333 = arith.constant 0 : index
    %c0_334 = arith.constant 0 : index
    %586 = vector.load %arg10[%c0_333, %c0_334] : memref<1x64xf32, #tpu.memory_space<vmem>>, vector<1x64xf32>
    %587 = arith.addf %585, %586 : vector<1x64xf32>
    %588 = arith.truncf %587 : vector<1x64xf32> to vector<1x64xbf16>
    %c0_335 = arith.constant 0 : index
    %c0_336 = arith.constant 0 : index
    %589 = vector.load %arg11[%c0_335, %c0_336] : memref<64x2xbf16, #tpu.memory_space<vmem>>, vector<64x2xbf16>
    %cst_337 = arith.constant dense<0.000000e+00> : vector<1x2xf32>
    %590 = tpu.matmul %588, %589, %cst_337 {dimension_numbers = #tpu.dot_dimension_numbers<[1], [0], [0], [1], [0, 0, 1, 1], [], []>} : vector<1x64xbf16>, vector<64x2xbf16>, vector<1x2xf32> -> vector<1x2xf32>
    %c0_338 = arith.constant 0 : index
    %c0_339 = arith.constant 0 : index
    %591 = vector.load %arg12[%c0_338, %c0_339] : memref<1x2xf32, #tpu.memory_space<vmem>>, vector<1x2xf32>
    %592 = arith.addf %590, %591 : vector<1x2xf32>
    %c1_340 = arith.constant 1 : index
    %c0_341 = arith.constant 0 : index
    %c0_342 = arith.constant 0 : index
    %593 = vector.load %arg13[%c1_340, %c0_341, %c0_342] : memref<2x1x2xf32, #tpu.memory_space<vmem>>, vector<1x1x2xf32>
    %594 = vector.shape_cast %593 : vector<1x1x2xf32> to vector<1x2xf32>
    %595 = vector.shape_cast %592 : vector<1x2xf32> to vector<1x1x2xf32>
    tpu.vector_store %arg13[%c1_340, %c0_341, %c0_342], %595 {strides = array<i32>} : memref<2x1x2xf32, #tpu.memory_space<vmem>>, vector<1x1x2xf32>,
    return
  }
  func.func @transform_0(%arg0: i32) -> (i32, i32, i32) {
    %c0_i32 = arith.constant 0 : i32
    %c0_i32_0 = arith.constant 0 : i32
    %c0_i32_1 = arith.constant 0 : i32
    return %arg0, %c0_i32, %c0_i32_0 : i32, i32, i32
  }
  func.func @transform_1(%arg0: i32) -> (i32, i32) {
    %c0_i32 = arith.constant 0 : i32
    %c0_i32_0 = arith.constant 0 : i32
    %c0_i32_1 = arith.constant 0 : i32
    return %c0_i32, %c0_i32_0 : i32, i32
  }
  func.func @transform_2(%arg0: i32) -> (i32, i32) {
    %c0_i32 = arith.constant 0 : i32
    %c0_i32_0 = arith.constant 0 : i32
    %c0_i32_1 = arith.constant 0 : i32
    return %c0_i32, %c0_i32_0 : i32, i32
  }
  func.func @transform_3(%arg0: i32) -> (i32, i32) {
    %c0_i32 = arith.constant 0 : i32
    %c0_i32_0 = arith.constant 0 : i32
    %c0_i32_1 = arith.constant 0 : i32
    return %c0_i32, %c0_i32_0 : i32, i32
  }
  func.func @transform_4(%arg0: i32) -> (i32, i32, i32) {
    %c0_i32 = arith.constant 0 : i32
    %c0_i32_0 = arith.constant 0 : i32
    %c0_i32_1 = arith.constant 0 : i32
    %c0_i32_2 = arith.constant 0 : i32
    return %c0_i32, %c0_i32_0, %c0_i32_1 : i32, i32, i32
  }
  func.func @transform_5(%arg0: i32) -> (i32, i32) {
    %c0_i32 = arith.constant 0 : i32
    %c0_i32_0 = arith.constant 0 : i32
    %c0_i32_1 = arith.constant 0 : i32
    return %c0_i32, %c0_i32_0 : i32, i32
  }
  func.func @transform_6(%arg0: i32) -> (i32, i32) {
    %c0_i32 = arith.constant 0 : i32
    %c0_i32_0 = arith.constant 0 : i32
    %c0_i32_1 = arith.constant 0 : i32
    return %c0_i32, %c0_i32_0 : i32, i32
  }
  func.func @transform_7(%arg0: i32) -> (i32, i32) {
    %c0_i32 = arith.constant 0 : i32
    %c0_i32_0 = arith.constant 0 : i32
    %c0_i32_1 = arith.constant 0 : i32
    return %c0_i32, %c0_i32_0 : i32, i32
  }
  func.func @transform_8(%arg0: i32) -> (i32, i32) {
    %c0_i32 = arith.constant 0 : i32
    %c0_i32_0 = arith.constant 0 : i32
    %c0_i32_1 = arith.constant 0 : i32
    return %c0_i32, %c0_i32_0 : i32, i32
  }
  func.func @transform_9(%arg0: i32) -> (i32, i32) {
    %c0_i32 = arith.constant 0 : i32
    %c0_i32_0 = arith.constant 0 : i32
    %c0_i32_1 = arith.constant 0 : i32
    return %c0_i32, %c0_i32_0 : i32, i32
  }
  func.func @transform_10(%arg0: i32) -> (i32, i32) {
    %c0_i32 = arith.constant 0 : i32
    %c0_i32_0 = arith.constant 0 : i32
    %c0_i32_1 = arith.constant 0 : i32
    return %c0_i32, %c0_i32_0 : i32, i32
  }
  func.func @transform_11(%arg0: i32) -> (i32, i32) {
    %c0_i32 = arith.constant 0 : i32
    %c0_i32_0 = arith.constant 0 : i32
    %c0_i32_1 = arith.constant 0 : i32
    return %c0_i32, %c0_i32_0 : i32, i32
  }
  func.func @transform_12(%arg0: i32) -> (i32, i32, i32) {
    %c0_i32 = arith.constant 0 : i32
    %c0_i32_0 = arith.constant 0 : i32
    %c0_i32_1 = arith.constant 0 : i32
    return %arg0, %c0_i32, %c0_i32_0 : i32, i32, i32
  }
}

</mosaic_0001>

<bundles_post_ra>
// kernel: tpu_custom_call.1
= control target key start
LH: loop header
LB: loop body
LE: loop exit
PB: predicated region body
PF: predicated region fallthrough
CT: control target
= control target key end

     0   :  { %s24202_s0 = inlined_call_operand.vmem [shape: bf16[4,118,384], index: 0, kind: input, shape index: {}]   ;;  %s24203_s1 = inlined_call_operand.hbm [shape: bf16[520,118], index: 1, kind: input, shape index: {}]   ;;  %s24204_s2 = inlined_call_operand.vmem [shape: f32[40,1], index: 2, kind: input, shape index: {}]   ;;  %s24205_s3 = inlined_call_operand.hbm [shape: f32[336,128], index: 3, kind: input, shape index: {}]   ;;  %s24206_s4 = inlined_call_operand.hbm [shape: bf16[40,128,128], index: 4, kind: input, shape index: {}]   ;;  %s24207_s5 = inlined_call_operand.hbm [shape: f32[1,128], index: 5, kind: input, shape index: {}]   ;;  %s24208_s6 = inlined_call_operand.hbm [shape: f32[1,128], index: 6, kind: input, shape index: {}]   ;;  %s24209_s7 = inlined_call_operand.vmem [shape: bf16[128,64], index: 7, kind: input, shape index: {}]   ;;  %s24210_s8 = inlined_call_operand.hbm [shape: f32[1,64], index: 8, kind: input, shape index: {}]   ;;  %s24211_s9 = inlined_call_operand.hbm [shape: f32[1,64], index: 9, kind: input, shape index: {}]   ;;  %s24212_s10 = inlined_call_operand.vmem [shape: bf16[64,2], index: 10, kind: input, shape index: {}]   ;;  %s24213_s11 = inlined_call_operand.hbm [shape: f32[1,2], index: 11, kind: input, shape index: {}]   ;;  %s24214_s12 = inlined_call_operand.vmem [shape: f32[4,1,2], index: 12, kind: output, shape index: {}]  }
   0x1   :  { %24360 = sst [smem:[#allocation144_spill]] %s24205_s3 }
   0x2   :  { %24361 = sst [smem:[#allocation145_spill]] %s24212_s10 }
   0x3   :  { %24362 = sst [smem:[#allocation146_spill]] %s24214_s12 }
   0x4   :  { %17 = vsyncpa [#allocation3], 0 }
   0x5   :  { %18 = vsyncpa [#allocation5], 0 }
   0x6   :  { %19 = vsyncpa [#allocation8], 0 }
   0x7   :  { %20 = vsyncpa [#allocation11], 0 }
   0x8   :  { %21 = vsyncpa [#allocation14], 0  ;;  %s20293_s21 = smov 0  }
   0x9 LB: > { %s20200_s22 = smov [#allocation4]   ;;  %s24215_s24 = sadd.s32 4294967295, %s20198_s21   ;;  %s20198_s21 = sphi %s20293_s21, %s27_s21  }
   0xa   : > { %s343_s23 = sshll.u32 %s20200_s22, 4  ;;  %p14622_p0 = scmp.ge.s32.totalorder %s20198_s21, 1  ;;  %s20307_s23 = int_to_ptr.vmem [resolvable:$true] %s343_s23 }
   0xb   : > { %p315_p1 = scmp.lt.s32.totalorder %s20198_s21, 3  ;;  %p20303_p2 = scmp.eq.s32.totalorder %s24215_s24, 0 }
   0xc   : > { %s20201_s27 = smov [#allocation7]   ;;  %s20202_s30 = smov [#allocation10]  }
   0xd   : > { %s24363_s25 = scalar_select %p20303_p2, 1, 0 }
   0xe   : > { %p20309_p3 = pnand %p14622_p0, %p315_p1  ;;  %s370_s28 = sshll.u32 %s20201_s27, 4  ;;  %s20315_s28 = int_to_ptr.vmem [resolvable:$true] %s370_s28 }
   0xf   : > { %s395_s13 = sshll.u32 %s20202_s30, 4  ;;  %s20203_s14 = smov [#allocation2]   ;;  %s20323_s13 = int_to_ptr.vmem [resolvable:$true] %s395_s13 }
  0x10   : > { %s24364_s26 = scalar_select %p20309_p3, 1, 0 }
  0x11   : > { %p19024_p4 = pneg %p20309_p3  ;;  %s20325_s15 = sshll.u32 %s20203_s14, 4  ;;  %s328_s15 = int_to_ptr.vmem [resolvable:$true] %s20325_s15 }
  0x12   : > { %s24366_s3 = sld [smem:[#allocation144_spill]] }
  0x13   : > { %p20319_p5 = pnand %p20303_p2, %p19024_p4 }
  0x15   : > { %p20335_p7 = pneg %p20319_p5 }
  0x18   : > { %s19948_s18 = scalar_lea.hbm %s24366_s3, 5376 }
  0x19   : > { %p19949_p6 = scmp.ne.s32.totalorder %s24366_s3, %s19948_s18  ;;  %p19955_p10 = scmp.lt.u32.totalorder %s19948_s18, %s24366_s3 }
  0x1b   : > { %p19951_p8 = pnand %p20335_p7, %p19949_p6 }
  0x1d   : > { %p19952_p9 = pneg %p19951_p8 }
  0x1f   : > { %p19957_p11 = pnand %p19955_p10, %p19952_p9 }
  0x21   : > { %19960 = shalt.err (!%p19957_p11)
}
  0x22   : > { %s19961_s14 = scalar_lea.vmem %s20307_s23, 5376  ;;  %p19969_p1 = scmp.lt.s32.totalorder %s20307_s23, %s20307_s23 }
  0x23   : > { %p19962_p12 = scmp.ne.s32.totalorder %s20307_s23, %s19961_s14  ;;  %p19970_p4 = scmp.lt.s32.totalorder %s19961_s14, %s19961_s14 }
  0x25   : > { %p19964_p13 = pnand %p19962_p12, %p20335_p7  ;;  %p19971_p6 = por %p19970_p4, %p19969_p1 }
  0x27   : > { %p19965_p0 = pneg %p19964_p13 }
  0x29   : > { %p19972_p8 = pnand %p19971_p6, %p19965_p0 }
  0x2b   : > { %19975 = shalt.err (!%p19972_p8)
}
  0x2c   : > { %s20204_s16 = smov 128   ;;  %s20205_s17 = smov 8  }
  0x2d   : > { %19030 = dma.hbm_to_vmem [thread:$0]  (!%p20319_p5), %s24366_s3, 5376, %s20307_s23, [#allocation5], %s20204_s16, %s20204_s16, %s20205_s17  }
  0x2e   : > { %s19976_s30 = scalar_lea.hbm %s24207_s5, 16 }
  0x2f   : > { %p19977_p9 = scmp.ne.s32.totalorder %s24207_s5, %s19976_s30  ;;  %p19983_p12 = scmp.lt.u32.totalorder %s19976_s30, %s24207_s5 }
  0x31   : > { %p19979_p10 = pnand %p19977_p9, %p20335_p7 }
  0x33   : > { %p19980_p11 = pneg %p19979_p10 }
  0x35   : > { %p19985_p13 = pnand %p19983_p12, %p19980_p11 }
  0x37   : > { %19988 = shalt.err (!%p19985_p13)
}
  0x38   : > { %s19989_s23 = scalar_lea.vmem %s20315_s28, 16  ;;  %s19996_s12 = scalar_lea.vmem %s20315_s28, 32 }
  0x39   : > { %p19990_p0 = scmp.ne.s32.totalorder %s20315_s28, %s19989_s23  ;;  %p19997_p6 = scmp.lt.s32.totalorder %s20315_s28, %s20315_s28 }
  0x3a   : > { %p19998_p8 = scmp.lt.s32.totalorder %s19996_s12, %s19989_s23 }
  0x3b   : > { %p19992_p1 = pnand %p19990_p0, %p20335_p7 }
  0x3c   : > { %p19999_p9 = por %p19998_p8, %p19997_p6 }
  0x3d   : > { %p19993_p4 = pneg %p19992_p1 }
  0x3f   : > { %p20000_p10 = pnand %p19999_p9, %p19993_p4 }
  0x41   : > { %20003 = shalt.err (!%p20000_p10)
}
  0x42   : > { %19036 = dma.hbm_to_vmem [thread:$0]  (!%p20319_p5), %s24207_s5, 16, %s20315_s28, [#allocation8]  }
  0x43   : > { %s20004_s18 = scalar_lea.hbm %s24210_s8, 16 }
  0x44   : > { %p20005_p11 = scmp.ne.s32.totalorder %s24210_s8, %s20004_s18  ;;  %p20011_p0 = scmp.lt.u32.totalorder %s20004_s18, %s24210_s8 }
  0x46   : > { %p20007_p12 = pnand %p20005_p11, %p20335_p7 }
  0x48   : > { %p20008_p13 = pneg %p20007_p12 }
  0x4a   : > { %p20013_p1 = pnand %p20011_p0, %p20008_p13 }
  0x4c   : > { %20016 = shalt.err (!%p20013_p1)
}
  0x4d   : > { %s20017_s28 = scalar_lea.vmem %s20323_s13, 16  ;;  %s20024_s14 = scalar_lea.vmem %s20323_s13, 32 }
  0x4e   : > { %p20018_p4 = scmp.ne.s32.totalorder %s20323_s13, %s20017_s28  ;;  %p20025_p9 = scmp.lt.s32.totalorder %s20323_s13, %s20323_s13 }
  0x4f   : > { %p20026_p10 = scmp.lt.s32.totalorder %s20024_s14, %s20017_s28 }
  0x50   : > { %p20020_p6 = pnand %p20018_p4, %p20335_p7 }
  0x51   : > { %p20027_p11 = por %p20026_p10, %p20025_p9 }
  0x52   : > { %p20021_p8 = pneg %p20020_p6 }
  0x54   : > { %p20028_p12 = pnand %p20027_p11, %p20021_p8 }
  0x56   : > { %20031 = shalt.err (!%p20028_p12)
}
  0x57   : > { %19042 = dma.hbm_to_vmem [thread:$0]  (!%p20319_p5), %s24210_s8, 16, %s20323_s13, [#allocation11]  }
  0x58   : > { %s20032_s16 = scalar_lea.hbm %s24203_s1, 4160 }
  0x59   : > { %p20033_p13 = scmp.ne.s32.totalorder %s24203_s1, %s20032_s16  ;;  %p20039_p4 = scmp.lt.u32.totalorder %s20032_s16, %s24203_s1 }
  0x5b   : > { %p20035_p0 = pnand %p20033_p13, %p20335_p7 }
  0x5d   : > { %p20036_p1 = pneg %p20035_p0 }
  0x5f   : > { %p20041_p6 = pnand %p20039_p4, %p20036_p1 }
  0x61   : > { %20044 = shalt.err (!%p20041_p6)
}
  0x62   : > { %s20045_s27 = scalar_lea.vmem %s328_s15, 4160  ;;  %p20053_p11 = scmp.lt.s32.totalorder %s328_s15, %s328_s15 }
  0x63   : > { %p20046_p8 = scmp.ne.s32.totalorder %s328_s15, %s20045_s27  ;;  %p20054_p12 = scmp.lt.s32.totalorder %s20045_s27, %s20045_s27 }
  0x65   : > { %p20048_p9 = pnand %p20046_p8, %p20335_p7  ;;  %p20055_p2 = por %p20054_p12, %p20053_p11 }
  0x67   : > { %p20049_p10 = pneg %p20048_p9 }
  0x69   : > { %p20056_p3 = pnand %p20055_p2, %p20049_p10 }
  0x6b   : > { %20059 = shalt.err (!%p20056_p3)
}
  0x6c   : > { %s20206_s13 = smov 64   ;;  %s20207_s30 = smov 4  }
  0x6d   : > { %19027 = dma.hbm_to_vmem [thread:$0]  (!%p20319_p5), %s24203_s1, 4160, %s328_s15, [#allocation3], %s20206_s13, %s20206_s13, %s20207_s30  }
  0x6e   : > { %s20208_s23 = smov [#allocation6]   ;;  %s20209_s10 = smov [#allocation9]  }
  0x6f   : > { %s356_s12 = sshll.u32 %s20208_s23, 4  ;;  %s381_s24 = sshll.u32 %s20209_s10, 4  ;;  %s357_s12 = int_to_ptr.vmem [resolvable:$true] %s356_s12  ;;  %s382_s24 = int_to_ptr.vmem [resolvable:$true] %s381_s24 }
  0x70   : > { %s20060_s18 = scalar_lea.hbm %s24206_s4, 40960 }
  0x71   : > { %p20061_p2 = scmp.ne.s32.totalorder %s24206_s4, %s20060_s18  ;;  %p20067_p0 = scmp.lt.u32.totalorder %s20060_s18, %s24206_s4 }
  0x73   : > { %p20063_p3 = pnand %p20061_p2, %p20335_p7 }
  0x75   : > { %p20064_p13 = pneg %p20063_p3 }
  0x77   : > { %p20069_p1 = pnand %p20067_p0, %p20064_p13 }
  0x79   : > { %20072 = shalt.err (!%p20069_p1)
}
  0x7a   : > { %s20073_s15 = scalar_lea.vmem %s357_s12, 40960  ;;  %p20081_p9 = scmp.lt.s32.totalorder %s357_s12, %s357_s12 }
  0x7b   : > { %p20074_p4 = scmp.ne.s32.totalorder %s357_s12, %s20073_s15  ;;  %p20082_p10 = scmp.lt.s32.totalorder %s20073_s15, %s20073_s15 }
  0x7d   : > { %p20076_p6 = pnand %p20074_p4, %p20335_p7  ;;  %p20083_p11 = por %p20082_p10, %p20081_p9 }
  0x7f   : > { %p20077_p8 = pneg %p20076_p6 }
  0x81   : > { %p20084_p12 = pnand %p20083_p11, %p20077_p8 }
  0x83   : > { %20087 = shalt.err (!%p20084_p12)
}
  0x84   : > { %19033 = dma.hbm_to_vmem [thread:$0]  (!%p20319_p5), %s24206_s4, 40960, %s357_s12, [#allocation5], %s20206_s13, %s20206_s13, %s20207_s30  }
  0x85   : > { %s20088_s10 = scalar_lea.hbm %s24208_s6, 16 }
  0x86   : > { %p20089_p2 = scmp.ne.s32.totalorder %s24208_s6, %s20088_s10  ;;  %p20095_p0 = scmp.lt.u32.totalorder %s20088_s10, %s24208_s6 }
  0x88   : > { %p20091_p3 = pnand %p20089_p2, %p20335_p7 }
  0x8a   : > { %p20092_p13 = pneg %p20091_p3 }
  0x8c   : > { %p20097_p1 = pnand %p20095_p0, %p20092_p13 }
  0x8e   : > { %20100 = shalt.err (!%p20097_p1)
}
  0x8f   : > { %s20101_s20 = scalar_lea.vmem %s382_s24, 16  ;;  %s20108_s13 = scalar_lea.vmem %s382_s24, 32 }
  0x90   : > { %p20102_p4 = scmp.ne.s32.totalorder %s382_s24, %s20101_s20  ;;  %p20109_p9 = scmp.lt.s32.totalorder %s382_s24, %s382_s24 }
  0x91   : > { %p20110_p10 = scmp.lt.s32.totalorder %s20108_s13, %s20101_s20 }
  0x92   : > { %p20104_p6 = pnand %p20102_p4, %p20335_p7 }
  0x93   : > { %p20111_p11 = por %p20110_p10, %p20109_p9 }
  0x94   : > { %p20105_p8 = pneg %p20104_p6 }
  0x96   : > { %p20112_p12 = pnand %p20111_p11, %p20105_p8 }
  0x98   : > { %20115 = shalt.err (!%p20112_p12)
}
  0x99   : > { %19039 = dma.hbm_to_vmem [thread:$0]  (!%p20319_p5), %s24208_s6, 16, %s382_s24, [#allocation8]  }
  0x9a   : > { %s20210_s27 = smov [#allocation12]   ;;  %s20211_s28 = smov [#allocation13]  }
  0x9b   : > { %s406_s15 = sshll.u32 %s20210_s27, 4  ;;  %s420_s14 = sshll.u32 %s20211_s28, 4  ;;  %s407_s15 = int_to_ptr.vmem [resolvable:$true] %s406_s15  ;;  %s421_s14 = int_to_ptr.vmem [resolvable:$true] %s420_s14 }
  0x9c   : > { %s20116_s10 = scalar_lea.hbm %s24211_s9, 16 }
  0x9d   : > { %p20117_p2 = scmp.ne.s32.totalorder %s24211_s9, %s20116_s10  ;;  %p20123_p0 = scmp.lt.u32.totalorder %s20116_s10, %s24211_s9 }
  0x9f   : > { %p20119_p3 = pnand %p20117_p2, %p20335_p7 }
  0xa1   : > { %p20120_p13 = pneg %p20119_p3 }
  0xa3   : > { %p20125_p1 = pnand %p20123_p0, %p20120_p13 }
  0xa5   : > { %20128 = shalt.err (!%p20125_p1)
}
  0xa6   : > { %s20129_s24 = scalar_lea.vmem %s407_s15, 16  ;;  %s20136_s20 = scalar_lea.vmem %s407_s15, 32 }
  0xa7   : > { %p20130_p4 = scmp.ne.s32.totalorder %s407_s15, %s20129_s24  ;;  %p20137_p9 = scmp.lt.s32.totalorder %s407_s15, %s407_s15 }
  0xa8   : > { %p20138_p10 = scmp.lt.s32.totalorder %s20136_s20, %s20129_s24 }
  0xa9   : > { %p20132_p6 = pnand %p20130_p4, %p20335_p7 }
  0xaa   : > { %p20139_p11 = por %p20138_p10, %p20137_p9 }
  0xab   : > { %p20133_p8 = pneg %p20132_p6 }
  0xad   : > { %p20140_p12 = pnand %p20139_p11, %p20133_p8 }
  0xaf   : > { %20143 = shalt.err (!%p20140_p12)
}
  0xb0   : > { %19045 = dma.hbm_to_vmem [thread:$0]  (!%p20319_p5), %s24211_s9, 16, %s407_s15, [#allocation11]  }
  0xb1   : > { %s20144_s28 = scalar_lea.hbm %s24213_s11, 16 }
  0xb2   : > { %p20145_p2 = scmp.ne.s32.totalorder %s24213_s11, %s20144_s28  ;;  %p20151_p0 = scmp.lt.u32.totalorder %s20144_s28, %s24213_s11 }
  0xb4   : > { %p20147_p3 = pnand %p20145_p2, %p20335_p7 }
  0xb6   : > { %p20148_p13 = pneg %p20147_p3 }
  0xb8   : > { %p20153_p1 = pnand %p20151_p0, %p20148_p13 }
  0xba   : > { %20156 = shalt.err (!%p20153_p1)
}
  0xbb   : > { %s20157_s17 = scalar_lea.vmem %s421_s14, 16  ;;  %s20164_s15 = scalar_lea.vmem %s421_s14, 32 }
  0xbc   : > { %p20158_p4 = scmp.ne.s32.totalorder %s421_s14, %s20157_s17  ;;  %p20165_p9 = scmp.lt.s32.totalorder %s421_s14, %s421_s14 }
  0xbd   : > { %p20166_p10 = scmp.lt.s32.totalorder %s20164_s15, %s20157_s17 }
  0xbe   : > { %p20160_p6 = pnand %p20158_p4, %p20335_p7 }
  0xbf   : > { %p20167_p11 = por %p20166_p10, %p20165_p9 }
  0xc0   : > { %p20161_p8 = pneg %p20160_p6 }
  0xc2   : > { %p20168_p12 = pnand %p20167_p11, %p20161_p8 }
  0xc4   : > { %20171 = shalt.err (!%p20168_p12)
}
  0xc5   : > { %19048 = dma.hbm_to_vmem [thread:$0]  (!%p20319_p5), %s24213_s11, 16, %s421_s14, [#allocation14]  }
  0xc6   : > { %p24368_p2 = scmp.ne.s32.totalorder %s24364_s26, 0 }
  0xc8   : > { %443 = sbr.rel (%p24368_p2) target bundleno = 6074 (0x17ba), region = 68 }
  0xcf   : > { %p24369_p3 = scmp.ne.s32.totalorder %s24363_s25, 0 }
  0xd1   : > { %20177 = dma.done.wait (%p24369_p3), [#allocation3], 4160  }
  0xd2   : > { %20179 = vsyncadd (%p24369_p3), [#allocation3], 4294963136 }
  0xd3   : > { %20181 = dma.done.wait (%p24369_p3), [#allocation5], 46336  }
  0xd4   : > { %20183 = vsyncadd (%p24369_p3), [#allocation5], 4294920960 }
  0xd5   : > { %20185 = dma.done.wait (%p24369_p3), [#allocation8], 32  }
  0xd6   : > { %20187 = vsyncadd (%p24369_p3), [#allocation8], 4294967264 }
  0xd7   : > { %20189 = dma.done.wait (%p24369_p3), [#allocation11], 32  }
  0xd8   : > { %20191 = vsyncadd (%p24369_p3), [#allocation11], 4294967264 }
  0xd9   : > { %20193 = dma.done.wait (%p24369_p3), [#allocation14], 16  }
  0xda   : > { %20195 = vsyncadd (%p24369_p3), [#allocation14], 4294967280  ;;  %s24370_s26 = sadd.s32 4294967295, %s20198_s21   ;;  %v24220_v0 = vmov 0   ;;  %v24224_v1 = vmov 0.0   ;;  %vm1004_vm0 = vcmask 1042432  }
  0xdb   : > { %s14641_s29 = sshll.u32 %s24370_s26, 1  ;;  %1046 = vmatprep.mubr.bf16.mxu0 %v24220_v0  ;;  %19101 = vset.pattern.permute.xlu1 %v24220_v0  ;;  %vm904_vm1 = vcmask 965632   ;;  %v19126_v20 = vld [vmem:[#allocation2] sm:$0xff]   ;;  %v19128_v23 = vld [vmem:[#allocation2 + $0x8] sm:$0xff]   ;;  %v19129_v26 = vld [vmem:[#allocation2 + $0x10] sm:$0xff]   ;;  %vm20214_vm2 = vmmov 0  }
  0xdc   : > { %p514_p5 = scmp.lt.s32.totalorder %s14641_s29, 3  ;;  %19102 = vset.pattern.permute.xlu0 %v24220_v0  ;;  %17538 = vmatprep.subr.bf16.mxu1 %v24224_v1  ;;  %v19130_v28 = vld [vmem:[#allocation2 + $0x18] sm:$0xff]   ;;  %v19131_v29 = vld [vmem:[#allocation2 + $0x20] sm:$0xff]   ;;  %v19133_v31 = vld [vmem:[#allocation2 + $0x28] sm:$0xff]   ;;  %s20215_s10 = smov 127   ;;  %vm1716_vm3 = vcmask 1039360  }
  0xdd   : > { %v19134_v32 = vld [vmem:[#allocation2 + $0x30] sm:$0xff]   ;;  %v19135_v33 = vld [vmem:[#allocation2 + $0x38] sm:$0xff]   ;;  %v19136_v34 = vld [vmem:[#allocation2 + $0x40] sm:$0xff]   ;;  %17554 = vmatprep.mubr.msk.bf16.mxu1 %vm20214_vm2, %v24224_v1  ;;  %s20216_s16 = smov 126   ;;  %s20217_s17 = smov 125   ;;  %vm1802_vm4 = vcmask 1031168  }
  0xde   : > { %s24826_s29 = smov (!%p514_p5, %s14641_s29), 3  ;;  %v19138_v36 = vld [vmem:[#allocation2 + $0x48] sm:$0xff]   ;;  %v2702_v37 = vld [vmem:[%s24204_s2] sm:$0xff]  ;;  %v19139_v38 = vld [vmem:[#allocation2 + $0x50] sm:$0xff]   ;;  %s20218_s15 = smov 124   ;;  %vm1888_vm5 = vcmask 1022976  }
  0xdf   : > { %s18991_s22 = smul.u32 180, %s24826_s29  ;;  %2709 = vperm.xlu1 %19101, %v2702_v37   ;;  %v2704_v39 = vld [vmem:[%s24204_s2 + $0x10] sm:$0xff]  ;;  %v19140_v40 = vld [vmem:[#allocation2 + $0x58] sm:$0xff]   ;;  %v2703_v42 = vld [vmem:[%s24204_s2 + $0x8] sm:$0xff]  ;;  %s20219_s18 = smov 123   ;;  %vm1974_vm6 = vcmask 1014784  }
  0xe0   : > { %v2705_v41 = vld [vmem:[%s24204_s2 + $0x18] sm:$0xff]  ;;  %2714 = vperm.xlu0 %19102, %v2703_v42   ;;  %v19141_v43 = vld [vmem:[#allocation2 + $0x60] sm:$0xff]   ;;  %v19143_v44 = vld [vmem:[#allocation2 + $0x68] sm:$0xff]   ;;  %s20220_s19 = smov 122   ;;  %s20221_s26 = smov 121   ;;  %vm2060_vm7 = vcmask 1006592  }
  0xe1   : > { %s20529_s24 = scalar_lea.vmem %s24202_s0, %s18991_s22  ;;  %v19144_v46 = vld [vmem:[#allocation2 + $0x70] sm:$0xff]   ;;  %v19145_v48 = vld [vmem:[#allocation2 + $0x78] sm:$0xff]   ;;  %v19146_v49 = vld [vmem:[#allocation2 + $0x80] sm:$0xff]   ;;  %s20222_s22 = smov 120   ;;  %vm2146_vm8 = vcmask 998400   ;;  %vm2232_vm9 = vcmask 990208  }
  0xe2   : > { %v19103_v2 = vld [vmem:[%s20529_s24 + $0x4] ss:$12 sps:$4 sm:$0xff]   ;;  %v19105_v3 = vld [vmem:[%s20529_s24] ss:$12 sps:$4 sm:$0xff]   ;;  %v19106_v4 = vld [vmem:[%s20529_s24 + $0x1c] ss:$12 sps:$4 sm:$0xff]  }
  0xe3   : > { %1014 = vmatprep.subr.bf16.mxu0 %v19103_v2  ;;  %v19108_v5 = vld [vmem:[%s20529_s24 + $0x18] ss:$12 sps:$4 sm:$0xff]   ;;  %v19109_v6 = vld [vmem:[%s20529_s24 + $0x34] ss:$12 sps:$4 sm:$0xff]   ;;  %v19111_v7 = vld [vmem:[%s20529_s24 + $0x30] ss:$12 sps:$4 sm:$0xff]   ;;  %2719 = vperm.xlu1 %19101, %v2704_v39  }
  0xe4   : > { %1015 = vmatpush1.bf16.msra.mxu0 %v19105_v3  ;;  %v19112_v8 = vld [vmem:[%s20529_s24 + $0x4c] ss:$12 sps:$4 sm:$0xff]   ;;  %v19114_v9 = vld [vmem:[%s20529_s24 + $0x48] ss:$12 sps:$4 sm:$0xff]   ;;  %v19115_v10 = vld [vmem:[%s20529_s24 + $0x64] ss:$12 sps:$4 sm:$0xff]  }
  0xe5   : > { %1016 = vmatprep.subr.bf16.mxu0 %v19106_v4  ;;  %v19117_v11 = vld [vmem:[%s20529_s24 + $0x60] ss:$12 sps:$4 sm:$0xff]   ;;  %v19118_v12 = vld [vmem:[%s20529_s24 + $0x7c] ss:$12 sps:$4 sm:$0xff]   ;;  %v19120_v13 = vld [vmem:[%s20529_s24 + $0x78] ss:$12 sps:$4 sm:$0xff]  }
  0xe6   : > { %v19121_v14 = vld [vmem:[%s20529_s24 + $0x94] ss:$12 sps:$4 sm:$0xff]   ;;  %v554_v15 = vld [vmem:[%s20529_s24 + $0xa8] sm:$0x77]  ;;  %v19123_v16 = vld [vmem:[%s20529_s24 + $0x90] ss:$12 sps:$4 sm:$0xff]  }
  0xe7   : > { %v14699_v17 = vcombine.high %v554_v15, %v554_v15  ;;  %v14698_v18 = vcombine.low %v554_v15, %v554_v15  ;;  %v19127_v21 = vld [vmem:[%s20529_s24 + $0x8] ss:$12 sps:$4 sm:$0xff]   ;;  %v19132_v22 = vld [vmem:[%s20529_s24 + $0x20] ss:$12 sps:$4 sm:$0xff]   ;;  %v19137_v24 = vld [vmem:[%s20529_s24 + $0x38] ss:$12 sps:$4 sm:$0xff]   ;;  %2724 = vperm.xlu1 %19101, %v2705_v41  }
  0xe8   : > { %1017 = vmatpush1.bf16.msra.mxu0 %v19108_v5  ;;  %v19142_v25 = vld [vmem:[%s20529_s24 + $0x50] ss:$12 sps:$4 sm:$0xff]   ;;  %v19147_v27 = vld [vmem:[%s20529_s24 + $0x68] ss:$12 sps:$4 sm:$0xff]   ;;  %v19152_v30 = vld [vmem:[%s20529_s24 + $0x80] ss:$12 sps:$4 sm:$0xff]  }
  0xe9   : > { %1018 = vmatprep.subr.bf16.mxu0 %v19109_v6  ;;  %v1006_v19 = vsel %vm1004_vm0, %v14698_v18, 0  ;;  %v19157_v35 = vld [vmem:[%s20529_s24 + $0x98] ss:$12 sps:$4 sm:$0xff]   ;;  %v19163_v45 = vld [vmem:[%s20529_s24 + $0xb0] ss:$0 sps:$4 sm:$0x77]  }
  0xea   : > { %v1012_v47 = vsel %vm1004_vm0, %v19163_v45, 0  ;;  %v19148_v50 = vld [vmem:[#allocation2 + $0x88] sm:$0xff]   ;;  %v19149_v51 = vld [vmem:[#allocation2 + $0x90] sm:$0xff]   ;;  %v19150_v52 = vld [vmem:[#allocation2 + $0x98] sm:$0xff]   ;;  %s20223_s25 = smov 119   ;;  %s20224_s14 = smov 118  }
  0xeb   : > { %v19151_v53 = vld [vmem:[#allocation2 + $0xa0] sm:$0xff]   ;;  %v19153_v54 = vld [vmem:[#allocation2 + $0xa8] sm:$0xff]   ;;  %v19154_v55 = vld [vmem:[#allocation2 + $0xb0] sm:$0xff]   ;;  %s24275_s20 = smov 117   ;;  %s24273_s13 = smov 116   ;;  %vm2318_vm10 = vcmask 982016  }
  0xec   : > { %1019 = vmatpush1.bf16.msra.mxu0 %v19111_v7  ;;  %v19155_v56 = vld [vmem:[#allocation2 + $0xb8] sm:$0xff]   ;;  %v19156_v57 = vld [vmem:[#allocation2 + $0xc0] sm:$0xff]   ;;  %v19158_v58 = vld [vmem:[#allocation2 + $0xc8] sm:$0xff]   ;;  %vm2404_vm11 = vcmask 973824   ;;  %vm2575_vm12 = vcmask 957440   ;;  %vm2661_vm13 = vcmask 949248  }
  0xed   : > { %1020 = vmatprep.subr.bf16.mxu0 %v19112_v8  ;;  %v19159_v59 = vld [vmem:[#allocation2 + $0xd0] sm:$0xff]   ;;  %v19160_v60 = vld [vmem:[#allocation2 + $0xd8] sm:$0xff]   ;;  %v19161_v5 = vld [vmem:[#allocation2 + $0xe0] sm:$0xff]   ;;  %vm2804_vm14 = vcmask 654336   ;;  %s24679_s27 = sld [smem:[#allocation145_spill]]  ;;  %vm7489_vm15 = vcmask 523264  }
  0xee   : > { %v19164_v15 = vld [vmem:[#allocation2 + $0xf0] sm:$0xff]   ;;  %v19916_v37 = vld [vmem:[#allocation2 + $0x8] sm:$0xff]   ;;  %s24681_s28 = sld [smem:[#allocation146_spill]]  ;;  %s24716_s23 = smov 116  }
  0xef   : > { %v19917_v42 = vld [vmem:[#allocation2 + $0x10] sm:$0xff]  }
  0xf0   : > { %1021 = vmatpush1.bf16.msra.mxu0 %v19114_v9 }
  0xf1   : > { %1022 = vmatprep.subr.bf16.mxu0 %v19115_v10  ;;  %v19162_v10 = vld [vmem:[#allocation2 + $0xe8] sm:$0xff]  }
  0xf4   : > { %1023 = vmatpush1.bf16.msra.mxu0 %v19117_v11  ;;  %s22512_s3 = scalar_lea.vmem %s24681_s28, %s24826_s29  ;;  %s24710_s29 = smov 117  }
  0xf5   : > { %1024 = vmatprep.subr.bf16.mxu0 %v19118_v12 }
  0xf8   : > { %1025 = vmatpush1.bf16.msra.mxu0 %v19120_v13 }
  0xf9   : > { %1026 = vmatprep.subr.bf16.mxu0 %v19121_v14 }
  0xfc   : > { %1027 = vmatpush1.bf16.msra.mxu0 %v19123_v16 }
  0xfd   : > { %14701 = vmatprep.subr.msk.bf16.mxu0 %vm1004_vm0, %v14699_v17 }
 0x100   : > { %1029 = vmatpush1.bf16.msra.mxu0 %v1006_v19 }
 0x101   : > { %16555 = vmatprep.subr.bf16.mxu0 %v24224_v1 }
 0x103   : > { %14702 = vmatmul.mubr.msk.bf16.vlgmr.msra.gmra.mrb[0].mxu0 %vm904_vm1, %v19126_v20  ;;  %v19165_v20 = vld [vmem:[#allocation2 + $0xf8] sm:$0xff]  }
 0x104   : > { %16556 = vmatpush3.bf16.msra.mxu0 %v19127_v21  ;;  %1056 = vmatprep.mubr.bf16.mxu0 %v24220_v0 }
 0x105   : > { %16557 = vmatprep.subr.bf16.mxu0 %v24224_v1 }
 0x108   : > { %16558 = vmatpush3.bf16.msra.mxu0 %v19132_v22 }
 0x109   : > { %16559 = vmatprep.subr.bf16.mxu0 %v24224_v1 }
 0x10b   : > { %14703 = vmatmul.mubr.msk.bf16.gmra.mrb[4].mxu0 %vm904_vm1, %v19128_v23  ;;  %v19166_v23 = vld [vmem:[#allocation2 + $0x100] ss:$0 sps:$4 sm:$0xff]  }
 0x10c   : > { %1066 = vmatprep.mubr.bf16.mxu0 %v24220_v0  ;;  %16560 = vmatpush3.bf16.msra.mxu0 %v19137_v24 }
 0x10d   : > { %16561 = vmatprep.subr.bf16.mxu0 %v24224_v1 }
 0x110   : > { %16562 = vmatpush3.bf16.msra.mxu0 %v19142_v25 }
 0x111   : > { %16563 = vmatprep.subr.bf16.mxu0 %v24224_v1 }
 0x113   : > { %14704 = vmatmul.mubr.msk.bf16.gmra.mrb[8].mxu0 %vm904_vm1, %v19129_v26 }
 0x114   : > { %1076 = vmatprep.mubr.bf16.mxu0 %v24220_v0  ;;  %16564 = vmatpush3.bf16.msra.mxu0 %v19147_v27 }
 0x115   : > { %16565 = vmatprep.subr.bf16.mxu0 %v24224_v1 }
 0x118   : > { %16566 = vmatpush3.bf16.msra.mxu0 %v19152_v30 }
 0x119   : > { %16567 = vmatprep.subr.bf16.mxu0 %v24224_v1 }
 0x11b   : > { %14705 = vmatmul.mubr.msk.bf16.gmra.mrb[12].mxu0 %vm904_vm1, %v19130_v28 }
 0x11c   : > { %1086 = vmatprep.mubr.bf16.mxu0 %v24220_v0  ;;  %16568 = vmatpush3.bf16.msra.mxu0 %v19157_v35 }
 0x11d   : > { %16569 = vmatprep.subr.bf16.mxu0 %v24224_v1 }
 0x120   : > { %16570 = vmatpush3.bf16.msra.mxu0 %v1012_v47  ;;  %v19918_v47 = vld [vmem:[#allocation2 + $0x18] sm:$0xff]  }
 0x123   : > { %14706 = vmatmul.mubr.msk.bf16.gmra.mrb[16].mxu0 %vm904_vm1, %v19131_v29 }
 0x124   : > { %1096 = vmatprep.mubr.bf16.mxu0 %v24220_v0 }
 0x12b   : > { %14707 = vmatmul.mubr.msk.bf16.gmra.mrb[20].mxu0 %vm904_vm1, %v19133_v31 }
 0x12c   : > { %1106 = vmatprep.mubr.bf16.mxu0 %v24220_v0 }
 0x133   : > { %14708 = vmatmul.mubr.msk.bf16.gmra.mrb[24].mxu0 %vm904_vm1, %v19134_v32  ;;  %v19915_v32 = vld [vmem:[#allocation2] sm:$0xff]  }
 0x134   : > { %1116 = vmatprep.mubr.bf16.mxu0 %v24220_v0 }
 0x13b   : > { %14709 = vmatmul.mubr.msk.bf16.gmra.mrb[28].mxu0 %vm904_vm1, %v19135_v33 }
 0x13c   : > { %1126 = vmatprep.mubr.bf16.mxu0 %v24220_v0 }
 0x143   : > { %14710 = vmatmul.mubr.msk.bf16.gmra.mrb[32].mxu0 %vm904_vm1, %v19136_v34 }
 0x144   : > { %1136 = vmatprep.mubr.bf16.mxu0 %v24220_v0 }
 0x14b   : > { %14711 = vmatmul.mubr.msk.bf16.gmra.mrb[36].mxu0 %vm904_vm1, %v19138_v36 }
 0x14c   : > { %1146 = vmatprep.mubr.bf16.mxu0 %v24220_v0 }
 0x153   : > { %14712 = vmatmul.mubr.msk.bf16.gmra.mrb[40].mxu0 %vm904_vm1, %v19139_v38 }
 0x154   : > { %1156 = vmatprep.mubr.bf16.mxu0 %v24220_v0 }
 0x15b   : > { %14713 = vmatmul.mubr.msk.bf16.gmra.mrb[44].mxu0 %vm904_vm1, %v19140_v40 }
 0x15c   : > { %1166 = vmatprep.mubr.bf16.mxu0 %v24220_v0 }
 0x163   : > { %14714 = vmatmul.mubr.msk.bf16.gmra.mrb[48].mxu0 %vm904_vm1, %v19141_v43 }
 0x164   : > { %1176 = vmatprep.mubr.bf16.mxu0 %v24220_v0 }
 0x16b   : > { %14715 = vmatmul.mubr.msk.bf16.gmra.mrb[52].mxu0 %vm904_vm1, %v19143_v44 }
 0x16c   : > { %1186 = vmatprep.mubr.bf16.mxu0 %v24220_v0 }
 0x173   : > { %14716 = vmatmul.mubr.msk.bf16.gmra.mrb[56].mxu0 %vm904_vm1, %v19144_v46 }
 0x174   : > { %1196 = vmatprep.mubr.bf16.mxu0 %v24220_v0 }
 0x17b   : > { %14717 = vmatmul.mubr.msk.bf16.gmra.mrb[60].mxu0 %vm904_vm1, %v19145_v48 }
 0x17c   : > { %1206 = vmatprep.mubr.bf16.mxu0 %v24220_v0 }
 0x183   : > { %14718 = vmatmul.mubr.msk.bf16.gmra.mrb[64].mxu0 %vm904_vm1, %v19146_v49 }
 0x184   : > { %1216 = vmatprep.mubr.bf16.mxu0 %v24220_v0 }
 0x18b   : > { %14719 = vmatmul.mubr.msk.bf16.gmra.mrb[68].mxu0 %vm904_vm1, %v19148_v50 }
 0x18c   : > { %1226 = vmatprep.mubr.bf16.mxu0 %v24220_v0 }
 0x193   : > { %14720 = vmatmul.mubr.msk.bf16.gmra.mrb[72].mxu0 %vm904_vm1, %v19149_v51 }
 0x194   : > { %1236 = vmatprep.mubr.bf16.mxu0 %v24220_v0 }
 0x19b   : > { %14721 = vmatmul.mubr.msk.bf16.gmra.mrb[76].mxu0 %vm904_vm1, %v19150_v52  ;;  %v19919_v52 = vld [vmem:[#allocation2 + $0x20] sm:$0xff]  }
 0x19c   : > { %1246 = vmatprep.mubr.bf16.mxu0 %v24220_v0 }
 0x1a3   : > { %14722 = vmatmul.mubr.msk.bf16.gmra.mrb[80].mxu0 %vm904_vm1, %v19151_v53 }
 0x1a4   : > { %1256 = vmatprep.mubr.bf16.mxu0 %v24220_v0 }
 0x1ab   : > { %14723 = vmatmul.mubr.msk.bf16.gmra.mrb[84].mxu0 %vm904_vm1, %v19153_v54 }
 0x1ac   : > { %1266 = vmatprep.mubr.bf16.mxu0 %v24220_v0 }
 0x1b3   : > { %14724 = vmatmul.mubr.msk.bf16.gmra.mrb[88].mxu0 %vm904_vm1, %v19154_v55 }
 0x1b4   : > { %1276 = vmatprep.mubr.bf16.mxu0 %v24220_v0 }
 0x1bb   : > { %14725 = vmatmul.mubr.msk.bf16.gmra.mrb[92].mxu0 %vm904_vm1, %v19155_v56 }
 0x1bc   : > { %1286 = vmatprep.mubr.bf16.mxu0 %v24220_v0 }
 0x1c3   : > { %14726 = vmatmul.mubr.msk.bf16.gmra.mrb[96].mxu0 %vm904_vm1, %v19156_v57  ;;  %v19920_v57 = vld [vmem:[#allocation2 + $0x28] sm:$0xff]  }
 0x1c4   : > { %1296 = vmatprep.mubr.bf16.mxu0 %v24220_v0 }
 0x1cb   : > { %14727 = vmatmul.mubr.msk.bf16.gmra.mrb[100].mxu0 %vm904_vm1, %v19158_v58 }
 0x1cc   : > { %1306 = vmatprep.mubr.bf16.mxu0 %v24220_v0 }
 0x1d3   : > { %14728 = vmatmul.mubr.msk.bf16.gmra.mrb[104].mxu0 %vm904_vm1, %v19159_v59 }
 0x1d4   : > { %1316 = vmatprep.mubr.bf16.mxu0 %v24220_v0 }
 0x1d6   : > { %v20633_v61 = vpop.f32.mrb[0].mxu0 }
 0x1d7   : > { %v20635_v62 = vpop.f32.mrb[1].mxu0 }
 0x1d8   : > { %24371 = vst [vmem:[#allocation20_spill] sm:$0xff] %v20635_v62  ;;  %v20637_v63 = vpop.f32.mrb[2].mxu0  ;;  %v2764_v62 = vld [vmem:[#allocation4 + $0x10] sm:$0xff] }
 0x1d9   : > { %v20639_v2 = vpop.f32.mrb[3].mxu0 }
 0x1da   : > { %24372 = vst [vmem:[#allocation21_spill] sm:$0xff] %v20639_v2 }
 0x1db   : > { %14729 = vmatmul.mubr.msk.bf16.gmra.mrb[108].mxu0 %vm904_vm1, %v19160_v60 }
 0x1dc   : > { %1326 = vmatprep.mubr.bf16.mxu0 %v24220_v0 }
 0x1de   : > { %v20643_v3 = vpop.f32.mrb[4].mxu0 }
 0x1df   : > { %v20645_v4 = vpop.f32.mrb[5].mxu0 }
 0x1e0   : > { %24373 = vst [vmem:[#allocation22_spill] sm:$0xff] %v20645_v4  ;;  %v20647_v6 = vpop.f32.mrb[6].mxu0 }
 0x1e1   : > { %v20649_v7 = vpop.f32.mrb[7].mxu0 }
 0x1e2   : > { %24374 = vst [vmem:[#allocation23_spill] sm:$0xff] %v20649_v7  ;;  %v19943_v7 = vld [vmem:[#allocation2 + $0xe0] sm:$0xff]  }
 0x1e3   : > { %14730 = vmatmul.mubr.msk.bf16.gmra.mrb[112].mxu0 %vm904_vm1, %v19161_v5 }
 0x1e4   : > { %1336 = vmatprep.mubr.bf16.mxu0 %v24220_v0 }
 0x1e6   : > { %v20653_v8 = vpop.f32.mrb[8].mxu0 }
 0x1e7   : > { %v20655_v9 = vpop.f32.mrb[9].mxu0 }
 0x1e8   : > { %24375 = vst [vmem:[#allocation24_spill] sm:$0xff] %v20655_v9  ;;  %v1072_v11 = vpop.f32.mrb[10].mxu0 }
 0x1e9   : > { %1686 = vrot.lane.b32.xlu1 %v1072_v11, %s20215_s10  ;;  %v1074_v12 = vpop.f32.mrb[11].mxu0 }
 0x1ea   : > { %1688 = vrot.lane.b32.xlu0 %v1074_v12, %s20215_s10 }
 0x1eb   : > { %14731 = vmatmul.mubr.msk.bf16.gmra.mrb[116].mxu0 %vm904_vm1, %v19162_v10  ;;  %v19921_v10 = vld [vmem:[#allocation2 + $0x30] sm:$0xff]  }
 0x1ec   : > { %1346 = vmatprep.mubr.bf16.mxu0 %v24220_v0 }
 0x1ee   : > { %v1078_v13 = vpop.f32.mrb[12].mxu0 }
 0x1ef   : > { %1692 = vrot.lane.b32.xlu0 %v1078_v13, %s20215_s10  ;;  %v1080_v14 = vpop.f32.mrb[13].mxu0 }
 0x1f0   : > { %v1082_v16 = vpop.f32.mrb[14].mxu0 }
 0x1f1   : > { %v1084_v17 = vpop.f32.mrb[15].mxu0 }
 0x1f3   : > { %14732 = vmatmul.mubr.msk.bf16.gmra.mrb[120].mxu0 %vm904_vm1, %v19164_v15  ;;  %1694 = vrot.lane.b32.xlu0 %v1080_v14, %s20215_s10  ;;  %v19922_v15 = vld [vmem:[#allocation2 + $0x38] sm:$0xff]  }
 0x1f4   : > { %1356 = vmatprep.mubr.bf16.mxu0 %v24220_v0 }
 0x1f6   : > { %v1088_v18 = vpop.f32.mrb[16].mxu0 }
 0x1f7   : > { %1698 = vrot.lane.b32.xlu0 %v1082_v16, %s20215_s10  ;;  %v1090_v19 = vpop.f32.mrb[17].mxu0 }
 0x1f8   : > { %v1092_v21 = vpop.f32.mrb[18].mxu0 }
 0x1f9   : > { %v1094_v22 = vpop.f32.mrb[19].mxu0 }
 0x1fb   : > { %14733 = vmatmul.mubr.msk.bf16.gmra.mrb[124].mxu0 %vm904_vm1, %v19165_v20  ;;  %1700 = vrot.lane.b32.xlu0 %v1084_v17, %s20215_s10  ;;  %v19923_v20 = vld [vmem:[#allocation2 + $0x40] sm:$0xff]  }
 0x1fc   : > { %1366 = vmatprep.mubr.bf16.mxu0 %v24220_v0 }
 0x1fe   : > { %v1098_v24 = vpop.f32.mrb[20].mxu0 }
 0x1ff   : > { %1704 = vrot.lane.b32.xlu0 %v1088_v18, %s20215_s10  ;;  %1772 = vrot.lane.b32.xlu1 %v1098_v24, %s20216_s16  ;;  %v1100_v25 = vpop.f32.mrb[21].mxu0 }
 0x200   : > { %v1102_v26 = vpop.f32.mrb[22].mxu0 }
 0x201   : > { %v1104_v27 = vpop.f32.mrb[23].mxu0 }
 0x203   : > { %14734 = vmatmul.mubr.msk.bf16.gmra.mrb[128].mxu0 %vm904_vm1, %v19166_v23  ;;  %1706 = vrot.lane.b32.xlu0 %v1090_v19, %s20215_s10 }
 0x204   : > { %1774 = vrot.lane.b32.xlu1 %v1100_v25, %s20216_s16  ;;  %16571 = vmatprep.mubr.msk.bf16.mxu0 %vm20214_vm2, %v24224_v1  ;;  %v19924_v25 = vld [vmem:[#allocation2 + $0x48] sm:$0xff]  }
 0x206   : > { %v1108_v28 = vpop.f32.mrb[24].mxu0 }
 0x207   : > { %1710 = vrot.lane.b32.xlu0 %v1092_v21, %s20215_s10  ;;  %v1110_v29 = vpop.f32.mrb[25].mxu0 }
 0x208   : > { %1784 = vrot.lane.b32.xlu1 %v1108_v28, %s20216_s16  ;;  %v1112_v30 = vpop.f32.mrb[26].mxu0 }
 0x209   : > { %v1114_v31 = vpop.f32.mrb[27].mxu0 }
 0x20b   : > { %16572 = vmatmul.mubr.msk.bf16.vlgmr.msra.gmra.mrb[132].mxu0 %vm904_vm1, %v19915_v32  ;;  %1712 = vrot.lane.b32.xlu0 %v1094_v22, %s20215_s10 }
 0x20c   : > { %1786 = vrot.lane.b32.xlu1 %v1110_v29, %s20216_s16  ;;  %16575 = vmatprep.mubr.msk.bf16.mxu0 %vm20214_vm2, %v24224_v1 }
 0x20e   : > { %v1118_v33 = vpop.f32.mrb[28].mxu0 }
 0x20f   : > { %1778 = vrot.lane.b32.xlu0 %v1102_v26, %s20216_s16  ;;  %v1120_v34 = vpop.f32.mrb[29].mxu0 }
 0x210   : > { %1798 = vrot.lane.b32.xlu1 %v1120_v34, %s20216_s16  ;;  %v1122_v35 = vpop.f32.mrb[30].mxu0 }
 0x211   : > { %v1124_v36 = vpop.f32.mrb[31].mxu0 }
 0x213   : > { %16576 = vmatmul.mubr.msk.bf16.gmra.mrb[136].mxu0 %vm904_vm1, %v19916_v37  ;;  %1780 = vrot.lane.b32.xlu0 %v1104_v27, %s20216_s16 }
 0x214   : > { %1858 = vrot.lane.b32.xlu1 %v1122_v35, %s20217_s17  ;;  %16579 = vmatprep.mubr.msk.bf16.mxu0 %vm20214_vm2, %v24224_v1  ;;  %v20754_v35 = vpop.permute.xlu1 %2709 }
 0x215   : > { %24376 = vst [vmem:[#allocation25_spill] sm:$0xff] %v20754_v35 }
 0x216   : > { %v1128_v38 = vpop.f32.mrb[32].mxu0 }
 0x217   : > { %1790 = vrot.lane.b32.xlu0 %v1112_v30, %s20216_s16  ;;  %v1130_v39 = vpop.f32.mrb[33].mxu0  ;;  %v19925_v30 = vld [vmem:[#allocation2 + $0x50] sm:$0xff]  }
 0x218   : > { %1864 = vrot.lane.b32.xlu1 %v1128_v38, %s20217_s17  ;;  %v1132_v40 = vpop.f32.mrb[34].mxu0 }
 0x219   : > { %v1134_v41 = vpop.f32.mrb[35].mxu0 }
 0x21b   : > { %16580 = vmatmul.mubr.msk.bf16.gmra.mrb[140].mxu0 %vm904_vm1, %v19917_v42  ;;  %1792 = vrot.lane.b32.xlu0 %v1114_v31, %s20216_s16  ;;  %v19927_v42 = vld [vmem:[#allocation2 + $0x60] sm:$0xff]  }
 0x21c   : > { %1870 = vrot.lane.b32.xlu1 %v1132_v40, %s20217_s17  ;;  %16583 = vmatprep.mubr.msk.bf16.mxu0 %vm20214_vm2, %v24224_v1 }
 0x21e   : > { %v1138_v43 = vpop.f32.mrb[36].mxu0 }
 0x21f   : > { %1796 = vrot.lane.b32.xlu0 %v1118_v33, %s20216_s16  ;;  %v1140_v44 = vpop.f32.mrb[37].mxu0 }
 0x220   : > { %1876 = vrot.lane.b32.xlu1 %v1138_v43, %s20217_s17  ;;  %v1142_v45 = vpop.f32.mrb[38].mxu0 }
 0x221   : > { %v1144_v46 = vpop.f32.mrb[39].mxu0 }
 0x223   : > { %16584 = vmatmul.mubr.msk.bf16.gmra.mrb[144].mxu0 %vm904_vm1, %v19918_v47  ;;  %1860 = vrot.lane.b32.xlu0 %v1124_v36, %s20217_s17  ;;  %v19926_v36 = vld [vmem:[#allocation2 + $0x58] sm:$0xff]  }
 0x224   : > { %1882 = vrot.lane.b32.xlu1 %v1142_v45, %s20217_s17  ;;  %16587 = vmatprep.mubr.msk.bf16.mxu0 %vm20214_vm2, %v24224_v1  ;;  %v20772_v45 = vpop.permute.xlu0 %2714 }
 0x225   : > { %24379 = vst [vmem:[#allocation28_spill] sm:$0xff] %v20772_v45  ;;  %v19941_v45 = vld [vmem:[#allocation2 + $0xd0] sm:$0xff]  }
 0x226   : > { %v1148_v48 = vpop.f32.mrb[40].mxu0 }
 0x227   : > { %1866 = vrot.lane.b32.xlu0 %v1130_v39, %s20217_s17  ;;  %v1150_v49 = vpop.f32.mrb[41].mxu0  ;;  %v20762_v39 = vpop.permute.xlu1 %2719 }
 0x228   : > { %1884 = vrot.lane.b32.xlu1 %v1144_v46, %s20217_s17  ;;  %v1152_v50 = vpop.f32.mrb[42].mxu0  ;;  %24377 = vst [vmem:[#allocation26_spill] sm:$0xff] %v20762_v39 }
 0x229   : > { %v1154_v51 = vpop.f32.mrb[43].mxu0 }
 0x22b   : > { %16588 = vmatmul.mubr.msk.bf16.gmra.mrb[148].mxu0 %vm904_vm1, %v19919_v52  ;;  %1872 = vrot.lane.b32.xlu0 %v1134_v41, %s20217_s17  ;;  %v20770_v43 = vpop.permute.xlu1 %2724 }
 0x22c   : > { %1944 = vrot.lane.b32.xlu1 %v1148_v48, %s20218_s15  ;;  %16591 = vmatprep.mubr.msk.bf16.mxu0 %vm20214_vm2, %v24224_v1  ;;  %24378 = vst [vmem:[#allocation27_spill] sm:$0xff] %v20770_v43 }
 0x22e   : > { %v1158_v53 = vpop.f32.mrb[44].mxu0 }
 0x22f   : > { %1878 = vrot.lane.b32.xlu0 %v1140_v44, %s20217_s17  ;;  %v1160_v54 = vpop.f32.mrb[45].mxu0 }
 0x230   : > { %1952 = vrot.lane.b32.xlu1 %v1154_v51, %s20218_s15  ;;  %v1162_v55 = vpop.f32.mrb[46].mxu0 }
 0x231   : > { %v1164_v56 = vpop.f32.mrb[47].mxu0 }
 0x233   : > { %16592 = vmatmul.mubr.msk.bf16.gmra.mrb[152].mxu0 %vm904_vm1, %v19920_v57  ;;  %1946 = vrot.lane.b32.xlu0 %v1150_v49, %s20218_s15  ;;  %v19928_v49 = vld [vmem:[#allocation2 + $0x68] sm:$0xff]  }
 0x234   : > { %1956 = vrot.lane.b32.xlu1 %v1158_v53, %s20218_s15  ;;  %16595 = vmatprep.mubr.msk.bf16.mxu0 %vm20214_vm2, %v24224_v1 }
 0x236   : > { %v1168_v58 = vpop.f32.mrb[48].mxu0 }
 0x237   : > { %1950 = vrot.lane.b32.xlu0 %v1152_v50, %s20218_s15  ;;  %v1170_v59 = vpop.f32.mrb[49].mxu0 }
 0x238   : > { %1962 = vrot.lane.b32.xlu1 %v1162_v55, %s20218_s15  ;;  %v1172_v60 = vpop.f32.mrb[50].mxu0 }
 0x239   : > { %v1174_v5 = vpop.f32.mrb[51].mxu0 }
 0x23b   : > { %16596 = vmatmul.mubr.msk.bf16.gmra.mrb[156].mxu0 %vm904_vm1, %v19921_v10  ;;  %1958 = vrot.lane.b32.xlu0 %v1160_v54, %s20218_s15 }
 0x23c   : > { %1964 = vrot.lane.b32.xlu1 %v1164_v56, %s20218_s15  ;;  %16599 = vmatprep.mubr.msk.bf16.mxu0 %vm20214_vm2, %v24224_v1 }
 0x23e   : > { %v1178_v11 = vpop.f32.mrb[52].mxu0 }
 0x23f   : > { %1970 = vrot.lane.b32.xlu0 %v1170_v59, %s20218_s15  ;;  %v1180_v12 = vpop.f32.mrb[53].mxu0 }
 0x240   : > { %1968 = vrot.lane.b32.xlu1 %v1168_v58, %s20218_s15  ;;  %v1182_v13 = vpop.f32.mrb[54].mxu0  ;;  %v19929_v58 = vld [vmem:[#allocation2 + $0x70] sm:$0xff]  }
 0x241   : > { %v1184_v14 = vpop.f32.mrb[55].mxu0 }
 0x243   : > { %16600 = vmatmul.mubr.msk.bf16.gmra.mrb[160].mxu0 %vm904_vm1, %v19922_v15  ;;  %2030 = vrot.lane.b32.xlu0 %v1172_v60, %s20219_s18 }
 0x244   : > { %16603 = vmatprep.mubr.msk.bf16.mxu0 %vm20214_vm2, %v24224_v1 }
 0x246   : > { %v1188_v16 = vpop.f32.mrb[56].mxu0 }
 0x247   : > { %2032 = vrot.lane.b32.xlu0 %v1174_v5, %s20219_s18  ;;  %v1190_v17 = vpop.f32.mrb[57].mxu0 }
 0x248   : > { %2050 = vrot.lane.b32.xlu1 %v1190_v17, %s20219_s18  ;;  %v1192_v18 = vpop.f32.mrb[58].mxu0 }
 0x249   : > { %v1194_v19 = vpop.f32.mrb[59].mxu0 }
 0x24b   : > { %16604 = vmatmul.mubr.msk.bf16.gmra.mrb[164].mxu0 %vm904_vm1, %v19923_v20  ;;  %2036 = vrot.lane.b32.xlu0 %v1178_v11, %s20219_s18 }
 0x24c   : > { %2054 = vrot.lane.b32.xlu1 %v1192_v18, %s20219_s18  ;;  %16607 = vmatprep.mubr.msk.bf16.mxu0 %vm20214_vm2, %v24224_v1 }
 0x24e   : > { %v1198_v21 = vpop.f32.mrb[60].mxu0 }
 0x24f   : > { %2038 = vrot.lane.b32.xlu0 %v1180_v12, %s20219_s18  ;;  %v1200_v22 = vpop.f32.mrb[61].mxu0 }
 0x250   : > { %2056 = vrot.lane.b32.xlu1 %v1194_v19, %s20219_s18  ;;  %v1202_v23 = vpop.f32.mrb[62].mxu0 }
 0x251   : > { %v1204_v24 = vpop.f32.mrb[63].mxu0 }
 0x253   : > { %16608 = vmatmul.mubr.msk.bf16.gmra.mrb[168].mxu0 %vm904_vm1, %v19924_v25  ;;  %2042 = vrot.lane.b32.xlu0 %v1182_v13, %s20219_s18  ;;  %v19930_v13 = vld [vmem:[#allocation2 + $0x78] sm:$0xff]  }
 0x254   : > { %2116 = vrot.lane.b32.xlu1 %v1198_v21, %s20220_s19  ;;  %16611 = vmatprep.mubr.msk.bf16.mxu0 %vm20214_vm2, %v24224_v1  ;;  %v19931_v21 = vld [vmem:[#allocation2 + $0x80] sm:$0xff]  }
 0x256   : > { %v1208_v26 = vpop.f32.mrb[64].mxu0 }
 0x257   : > { %2044 = vrot.lane.b32.xlu0 %v1184_v14, %s20219_s18  ;;  %v1210_v27 = vpop.f32.mrb[65].mxu0 }
 0x258   : > { %2118 = vrot.lane.b32.xlu1 %v1200_v22, %s20220_s19  ;;  %v1212_v28 = vpop.f32.mrb[66].mxu0 }
 0x259   : > { %v1214_v29 = vpop.f32.mrb[67].mxu0 }
 0x25b   : > { %16612 = vmatmul.mubr.msk.bf16.gmra.mrb[172].mxu0 %vm904_vm1, %v19925_v30  ;;  %2048 = vrot.lane.b32.xlu0 %v1188_v16, %s20219_s18  ;;  %v20778_v50 = vpop.permute.xlu1 %1686 }
 0x25c   : > { %2130 = vrot.lane.b32.xlu1 %v1210_v27, %s20220_s19  ;;  %16615 = vmatprep.mubr.msk.bf16.mxu0 %vm20214_vm2, %v24224_v1  ;;  %v20783_v51 = vpop.permute.xlu0 %1688 }
 0x25e   : > { %v1218_v31 = vpop.f32.mrb[68].mxu0 }
 0x25f   : > { %2122 = vrot.lane.b32.xlu0 %v1202_v23, %s20220_s19  ;;  %v1220_v32 = vpop.f32.mrb[69].mxu0 }
 0x260   : > { %2134 = vrot.lane.b32.xlu1 %v1212_v28, %s20220_s19  ;;  %v1222_v33 = vpop.f32.mrb[70].mxu0 }
 0x261   : > { %v1224_v34 = vpop.f32.mrb[71].mxu0  ;;  %v20789_v57 = vpop.permute.xlu0 %1692 }
 0x263   : > { %16616 = vmatmul.mubr.msk.bf16.gmra.mrb[176].mxu0 %vm904_vm1, %v19926_v36  ;;  %2124 = vrot.lane.b32.xlu0 %v1204_v24, %s20220_s19 }
 0x264   : > { %2142 = vrot.lane.b32.xlu1 %v1220_v32, %s20220_s19  ;;  %16619 = vmatprep.mubr.msk.bf16.mxu0 %vm20214_vm2, %v24224_v1 }
 0x265   : > { %v20800_v11 = vpop.permute.xlu0 %1694 }
 0x266   : > { %v1228_v37 = vpop.f32.mrb[72].mxu0 }
 0x267   : > { %2128 = vrot.lane.b32.xlu0 %v1208_v26, %s20220_s19  ;;  %v1230_v38 = vpop.f32.mrb[73].mxu0 }
 0x268   : > { %2202 = vrot.lane.b32.xlu1 %v1222_v33, %s20221_s26  ;;  %v1232_v40 = vpop.f32.mrb[74].mxu0 }
 0x269   : > { %v1234_v41 = vpop.f32.mrb[75].mxu0  ;;  %v20809_v16 = vpop.permute.xlu0 %1698 }
 0x26b   : > { %16620 = vmatmul.mubr.msk.bf16.gmra.mrb[180].mxu0 %vm904_vm1, %v19927_v42  ;;  %2136 = vrot.lane.b32.xlu0 %v1214_v29, %s20220_s19  ;;  %v19932_v29 = vld [vmem:[#allocation2 + $0x88] sm:$0xff]  }
 0x26c   : > { %2208 = vrot.lane.b32.xlu1 %v1228_v37, %s20221_s26  ;;  %16623 = vmatprep.mubr.msk.bf16.mxu0 %vm20214_vm2, %v24224_v1  ;;  %v19933_v37 = vld [vmem:[#allocation2 + $0x90] sm:$0xff]  }
 0x26d   : > { %v20820_v22 = vpop.permute.xlu0 %1700 }
 0x26e   : > { %v1238_v44 = vpop.f32.mrb[76].mxu0 }
 0x26f   : > { %2140 = vrot.lane.b32.xlu0 %v1218_v31, %s20220_s19  ;;  %v1240_v46 = vpop.f32.mrb[77].mxu0 }
 0x270   : > { %2214 = vrot.lane.b32.xlu1 %v1232_v40, %s20221_s26  ;;  %v1242_v47 = vpop.f32.mrb[78].mxu0 }
 0x271   : > { %v1244_v48 = vpop.f32.mrb[79].mxu0  ;;  %v20786_v54 = vpop.permute.xlu1 %1772 }
 0x272   : > { %v20826_v28 = vpop.permute.xlu0 %1704 }
 0x273   : > { %16624 = vmatmul.mubr.msk.bf16.gmra.mrb[184].mxu0 %vm904_vm1, %v19928_v49  ;;  %2204 = vrot.lane.b32.xlu0 %v1224_v34, %s20221_s26 }
 0x274   : > { %2216 = vrot.lane.b32.xlu1 %v1234_v41, %s20221_s26  ;;  %16627 = vmatprep.mubr.msk.bf16.mxu0 %vm20214_vm2, %v24224_v1 }
 0x276   : > { %v1248_v52 = vpop.f32.mrb[80].mxu0  ;;  %v20796_v59 = vpop.permute.xlu1 %1774 }
 0x277   : > { %2210 = vrot.lane.b32.xlu0 %v1230_v38, %s20221_s26  ;;  %v1250_v53 = vpop.f32.mrb[81].mxu0  ;;  %v20837_v34 = vpop.permute.xlu0 %1706 }
 0x278   : > { %2222 = vrot.lane.b32.xlu1 %v1240_v46, %s20221_s26  ;;  %v1252_v55 = vpop.f32.mrb[82].mxu0 }
 0x279   : > { %v1254_v56 = vpop.f32.mrb[83].mxu0 }
 0x27a   : > { %v20804_v14 = vpop.permute.xlu1 %1784 }
 0x27b   : > { %16628 = vmatmul.mubr.msk.bf16.gmra.mrb[188].mxu0 %vm904_vm1, %v19929_v58  ;;  %2220 = vrot.lane.b32.xlu0 %v1238_v44, %s20221_s26  ;;  %v20846_v41 = vpop.permute.xlu0 %1710 }
 0x27c   : > { %2288 = vrot.lane.b32.xlu1 %v1248_v52, %s20222_s22  ;;  %16631 = vmatprep.mubr.msk.bf16.mxu0 %vm20214_vm2, %v24224_v1 }
 0x27e   : > { %v1258_v60 = vpop.f32.mrb[84].mxu0  ;;  %v20813_v20 = vpop.permute.xlu1 %1786 }
 0x27f   : > { %2226 = vrot.lane.b32.xlu0 %v1242_v47, %s20221_s26  ;;  %v1260_v5 = vpop.f32.mrb[85].mxu0  ;;  %v20857_v49 = vpop.permute.xlu0 %1712 }
 0x280   : > { %2294 = vrot.lane.b32.xlu1 %v1252_v55, %s20222_s22  ;;  %v1262_v10 = vpop.f32.mrb[86].mxu0  ;;  %24381 = vst [vmem:[#allocation30_spill] sm:$0xff] %v20857_v49 }
 0x281   : > { %v1264_v12 = vpop.f32.mrb[87].mxu0 }
 0x282   : > { %v20823_v25 = vpop.permute.xlu1 %1798 }
 0x283   : > { %16632 = vmatmul.mubr.msk.bf16.gmra.mrb[192].mxu0 %vm904_vm1, %v19930_v13  ;;  %2228 = vrot.lane.b32.xlu0 %v1244_v48, %s20221_s26  ;;  %24380 = vst [vmem:[#allocation29_spill] sm:$0xff] %v20823_v25  ;;  %v19934_v48 = vld [vmem:[#allocation2 + $0x98] sm:$0xff]  }
 0x284   : > { %2296 = vrot.lane.b32.xlu1 %v1254_v56, %s20222_s22  ;;  %16635 = vmatprep.mubr.msk.bf16.mxu0 %vm20214_vm2, %v24224_v1 }
 0x286   : > { %v1268_v15 = vpop.f32.mrb[88].mxu0  ;;  %v20833_v30 = vpop.permute.xlu1 %1858 }
 0x287   : > { %2290 = vrot.lane.b32.xlu0 %v1250_v53, %s20222_s22  ;;  %v1270_v17 = vpop.f32.mrb[89].mxu0 }
 0x288   : > { %2306 = vrot.lane.b32.xlu1 %v1262_v10, %s20222_s22  ;;  %v1272_v18 = vpop.f32.mrb[90].mxu0 }
 0x289   : > { %v1274_v19 = vpop.f32.mrb[91].mxu0 }
 0x28a   : > { %v20841_v38 = vpop.permute.xlu1 %1864 }
 0x28b   : > { %16636 = vmatmul.mubr.msk.bf16.gmra.mrb[196].mxu0 %vm904_vm1, %v19931_v21  ;;  %2300 = vrot.lane.b32.xlu0 %v1258_v60, %s20222_s22  ;;  %v20863_v60 = vpop.permute.xlu0 %1778 }
 0x28c   : > { %2308 = vrot.lane.b32.xlu1 %v1264_v12, %s20222_s22  ;;  %16639 = vmatprep.mubr.msk.bf16.mxu0 %vm20214_vm2, %v24224_v1 }
 0x28e   : > { %v1278_v23 = vpop.f32.mrb[92].mxu0  ;;  %v20850_v47 = vpop.permute.xlu1 %1870 }
 0x28f   : > { %2302 = vrot.lane.b32.xlu0 %v1260_v5, %s20222_s22  ;;  %v1280_v24 = vpop.f32.mrb[93].mxu0  ;;  %v19935_v5 = vld [vmem:[#allocation2 + $0xa0] sm:$0xff]  }
 0x290   : > { %2314 = vrot.lane.b32.xlu1 %v1270_v17, %s20222_s22  ;;  %v1282_v26 = vpop.f32.mrb[94].mxu0  ;;  %v20876_v17 = vpop.permute.xlu0 %1780 }
 0x291   : > { %v1284_v27 = vpop.f32.mrb[95].mxu0 }
 0x292   : > { %v20860_v55 = vpop.permute.xlu1 %1876 }
 0x293   : > { %16640 = vmatmul.mubr.msk.bf16.gmra.mrb[200].mxu0 %vm904_vm1, %v19932_v29  ;;  %2312 = vrot.lane.b32.xlu0 %v1268_v15, %s20222_s22 }
 0x294   : > { %2382 = vrot.lane.b32.xlu1 %v1280_v24, %s20223_s25  ;;  %16643 = vmatprep.mubr.msk.bf16.mxu0 %vm20214_vm2, %v24224_v1  ;;  %v20884_v24 = vpop.permute.xlu0 %1790 }
 0x296   : > { %v1288_v31 = vpop.f32.mrb[96].mxu0  ;;  %v20870_v10 = vpop.permute.xlu1 %1882 }
 0x297   : > { %2374 = vrot.lane.b32.xlu0 %v1272_v18, %s20223_s25  ;;  %v1290_v32 = vpop.f32.mrb[97].mxu0 }
 0x298   : > { %2386 = vrot.lane.b32.xlu1 %v1282_v26, %s20223_s25  ;;  %v1292_v33 = vpop.f32.mrb[98].mxu0 }
 0x299   : > { %v1294_v36 = vpop.f32.mrb[99].mxu0 }
 0x29a   : > { %v20879_v21 = vpop.permute.xlu1 %1884 }
 0x29b   : > { %16644 = vmatmul.mubr.msk.bf16.gmra.mrb[204].mxu0 %vm904_vm1, %v19933_v37  ;;  %2376 = vrot.lane.b32.xlu0 %v1274_v19, %s20223_s25  ;;  %v19936_v19 = vld [vmem:[#allocation2 + $0xa8] sm:$0xff]   ;;  %24382 = vst [vmem:[#allocation31_spill] sm:$0xff] %v20879_v21 }
 0x29c   : > { %2388 = vrot.lane.b32.xlu1 %v1284_v27, %s20223_s25  ;;  %16647 = vmatprep.mubr.msk.bf16.mxu0 %vm20214_vm2, %v24224_v1 }
 0x29e   : > { %v1298_v40 = vpop.f32.mrb[100].mxu0 }
 0x29f   : > { %2380 = vrot.lane.b32.xlu0 %v1278_v23, %s20223_s25  ;;  %v1300_v42 = vpop.f32.mrb[101].mxu0 }
 0x2a0   : > { %2392 = vrot.lane.b32.xlu1 %v1288_v31, %s20223_s25  ;;  %v1302_v44 = vpop.f32.mrb[102].mxu0  ;;  %v20888_v31 = vpop.permute.xlu1 %1944 }
 0x2a1   : > { %v1304_v46 = vpop.f32.mrb[103].mxu0 }
 0x2a3   : > { %16648 = vmatmul.mubr.msk.bf16.gmra.mrb[208].mxu0 %vm904_vm1, %v19934_v48  ;;  %2394 = vrot.lane.b32.xlu0 %v1290_v32, %s20223_s25  ;;  %v19937_v32 = vld [vmem:[#allocation2 + $0xb0] sm:$0xff]   ;;  %v19938_v48 = vld [vmem:[#allocation2 + $0xb8] sm:$0xff]  }
 0x2a4   : > { %2398 = vrot.lane.b32.xlu1 %v1292_v33, %s20223_s25  ;;  %16651 = vmatprep.mubr.msk.bf16.mxu0 %vm20214_vm2, %v24224_v1  ;;  %v20895_v33 = vpop.permute.xlu0 %1792 }
 0x2a6   : > { %v1308_v52 = vpop.f32.mrb[104].mxu0 }
 0x2a7   : > { %2460 = vrot.lane.b32.xlu0 %v1298_v40, %s20224_s14  ;;  %v1310_v53 = vpop.f32.mrb[105].mxu0  ;;  %v20898_v40 = vpop.permute.xlu1 %1952 }
 0x2a8   : > { %2400 = vrot.lane.b32.xlu1 %v1294_v36, %s20223_s25  ;;  %v1312_v56 = vpop.f32.mrb[106].mxu0 }
 0x2a9   : > { %v1314_v58 = vpop.f32.mrb[107].mxu0 }
 0x2ab   : > { %16652 = vmatmul.mubr.msk.bf16.gmra.mrb[212].mxu0 %vm904_vm1, %v19935_v5  ;;  %2468 = vrot.lane.b32.xlu0 %v1304_v46, %s20224_s14  ;;  %v20905_v46 = vpop.permute.xlu0 %1796 }
 0x2ac   : > { %2462 = vrot.lane.b32.xlu1 %v1300_v42, %s20224_s14  ;;  %16655 = vmatprep.mubr.msk.bf16.mxu0 %vm20214_vm2, %v24224_v1 }
 0x2ae   : > { %v20872_v12 = vpop.f32.mrb[108].mxu0 }
 0x2af   : > { %2472 = vrot.lane.b32.xlu0 %v1308_v52, %s20224_s14  ;;  %v1320_v13 = vpop.f32.mrb[109].mxu0  ;;  %v20912_v52 = vpop.permute.xlu1 %1956 }
 0x2b0   : > { %2466 = vrot.lane.b32.xlu1 %v1302_v44, %s20224_s14  ;;  %v1322_v15 = vpop.f32.mrb[110].mxu0  ;;  %24383 = vst [vmem:[#allocation32_spill] sm:$0xff] %v20912_v52  ;;  %v20916_v5 = vpop.permute.xlu0 %1860 }
 0x2b1   : > { %v1324_v18 = vpop.f32.mrb[111].mxu0 }
 0x2b3   : > { %16656 = vmatmul.mubr.msk.bf16.gmra.mrb[216].mxu0 %vm904_vm1, %v19936_v19  ;;  %v19939_v19 = vld [vmem:[#allocation2 + $0xc0] sm:$0xff]  }
 0x2b4   : > { %2474 = vrot.lane.b32.xlu1 %v1310_v53, %s20224_s14  ;;  %16659 = vmatprep.mubr.msk.bf16.mxu0 %vm20214_vm2, %v24224_v1 }
 0x2b6   : > { %v1328_v23 = vpop.f32.mrb[112].mxu0 }
 0x2b7   : > { %2551 = vrot.lane.b32.xlu0 %v1328_v23, %s24275_s20  ;;  %v1330_v26 = vpop.f32.mrb[113].mxu0 }
 0x2b8   : > { %2478 = vrot.lane.b32.xlu1 %v1312_v56, %s20224_s14  ;;  %v1332_v27 = vpop.f32.mrb[114].mxu0 }
 0x2b9   : > { %v1334_v29 = vpop.f32.mrb[115].mxu0 }
 0x2bb   : > { %16660 = vmatmul.mubr.msk.bf16.gmra.mrb[220].mxu0 %vm904_vm1, %v19937_v32  ;;  %2557 = vrot.lane.b32.xlu0 %v1332_v27, %s24275_s20  ;;  %v20925_v27 = vpop.permute.xlu0 %1866 }
 0x2bc   : > { %2480 = vrot.lane.b32.xlu1 %v1314_v58, %s20224_s14  ;;  %16663 = vmatprep.mubr.msk.bf16.mxu0 %vm20214_vm2, %v24224_v1 }
 0x2be   : > { %v1338_v36 = vpop.f32.mrb[116].mxu0 }
 0x2bf   : > { %2559 = vrot.lane.b32.xlu0 %v1334_v29, %s24275_s20  ;;  %v1340_v37 = vpop.f32.mrb[117].mxu0 }
 0x2c0   : > { %2486 = vrot.lane.b32.xlu1 %v1320_v13, %s20224_s14  ;;  %v20901_v42 = vpop.f32.mrb[118].mxu0 }
 0x2c1   : > { %v20903_v44 = vpop.f32.mrb[119].mxu0 }
 0x2c3   : > { %16664 = vmatmul.mubr.msk.bf16.gmra.mrb[224].mxu0 %vm904_vm1, %v19938_v48  ;;  %2563 = vrot.lane.b32.xlu0 %v1338_v36, %s24275_s20  ;;  %v19940_v48 = vld [vmem:[#allocation2 + $0xc8] sm:$0xff]  }
 0x2c4   : > { %2545 = vrot.lane.b32.xlu1 %v1322_v15, %s24275_s20  ;;  %16667 = vmatprep.mubr.msk.bf16.mxu0 %vm20214_vm2, %v24224_v1  ;;  %v20920_v15 = vpop.permute.xlu1 %1962 }
 0x2c5   : > { %24384 = vst [vmem:[#allocation33_spill] sm:$0xff] %v20920_v15  ;;  %v19945_v15 = vld [vmem:[#allocation2 + $0xf0] sm:$0xff]  }
 0x2c6   : > { %v1348_v53 = vpop.f32.mrb[120].mxu0 }
 0x2c7   : > { %2631 = vrot.lane.b32.xlu0 %v1348_v53, %s24273_s13  ;;  %v1350_v56 = vpop.f32.mrb[121].mxu0  ;;  %v2779_v53 = vld [vmem:[#allocation4 + $0x88] sm:$0xff] }
 0x2c8   : > { %2547 = vrot.lane.b32.xlu1 %v1324_v18, %s24275_s20  ;;  %v1352_v58 = vpop.f32.mrb[122].mxu0  ;;  %v20931_v36 = vpop.permute.xlu1 %1964 }
 0x2c9   : > { %v1354_v13 = vpop.f32.mrb[123].mxu0  ;;  %24385 = vst [vmem:[#allocation34_spill] sm:$0xff] %v20931_v36  ;;  %v2767_v36 = vld [vmem:[#allocation4 + $0x28] sm:$0xff] }
 0x2cb   : > { %16668 = vmatmul.mubr.msk.bf16.gmra.mrb[228].mxu0 %vm904_vm1, %v19939_v19  ;;  %2633 = vrot.lane.b32.xlu0 %v1350_v56, %s24273_s13  ;;  %v2762_v56 = vld [vmem:[#allocation4] sm:$0xff]  ;;  %v20937_v19 = vpop.permute.xlu0 %1872 }
 0x2cc   : > { %2553 = vrot.lane.b32.xlu1 %v1330_v26, %s24275_s20  ;;  %16671 = vmatprep.mubr.msk.bf16.mxu0 %vm20214_vm2, %v24224_v1  ;;  %v2778_v26 = vld [vmem:[#allocation4 + $0x80] sm:$0xff]  ;;  %v20943_v9 = vpop.permute.xlu1 %1968 }
 0x2cd   : > { %24386 = vst [vmem:[#allocation35_spill] sm:$0xff] %v20943_v9 }
 0x2ce   : > { %v1358_v23 = vpop.f32.mrb[124].mxu0 }
 0x2cf   : > { %2643 = vrot.lane.b32.xlu0 %v1358_v23, %s24273_s13  ;;  %v1360_v18 = vpop.f32.mrb[125].mxu0  ;;  %v18585_v23 = vpack.c.bf16 %v2779_v53, %v2778_v26  ;;  %v24389_v53 = vmov 0.0  }
 0x2d0   : > { %2565 = vrot.lane.b32.xlu1 %v1340_v37, %s24275_s20  ;;  %v20929_v29 = vpop.f32.mrb[126].mxu0  ;;  %v2763_v37 = vld [vmem:[#allocation4 + $0x8] sm:$0xff]  ;;  %v20949_v26 = vpop.permute.xlu1 %2050 }
 0x2d1   : > { %v1364_v32 = vpop.f32.mrb[127].mxu0  ;;  %v18587_v43 = vpack.c.bf16 %v2763_v37, %v2762_v56  ;;  %18586 = vmatprep.subr.bf16.mxu0 %v18585_v23  ;;  %24388 = vst [vmem:[#allocation37_spill] sm:$0xff] %v20949_v26 }
 0x2d3   : > { %16672 = vmatmul.mubr.msk.bf16.gmra.mrb[232].mxu0 %vm904_vm1, %v19940_v48 }
 0x2d4   : > { %2637 = vrot.lane.b32.xlu1 %v1352_v58, %s24273_s13  ;;  %16675 = vmatprep.mubr.msk.bf16.mxu0 %vm20214_vm2, %v24224_v1  ;;  %v20946_v1 = vpop.permute.xlu0 %1878 }
 0x2d5   : > { %18588 = vmatpush3.bf16.msra.mxu0 %v18587_v43  ;;  %24387 = vst [vmem:[#allocation36_spill] sm:$0xff] %v20946_v1 }
 0x2d6   : > { %v20939_v0 = vpop.f32.mrb[128].mxu0 }
 0x2d7   : > { %v20941_v39 = vpop.f32.mrb[129].mxu0 }
 0x2d8   : > { %2639 = vrot.lane.b32.xlu1 %v1354_v13, %s24273_s13  ;;  %v1372_v58 = vpop.f32.mrb[130].mxu0  ;;  %v20959_v43 = vpop.permute.xlu0 %1946 }
 0x2d9   : > { %v1373_v48 = vpop.f32.mrb[131].mxu0  ;;  %v20961_v58 = vpop.permute.xlu1 %2054 }
 0x2da   : > { %24392 = vst [vmem:[#allocation40_spill] sm:$0xff] %v20961_v58 }
 0x2db   : > { %16676 = vmatmul.mubr.msk.bf16.gmra.mrb[236].mxu0 %vm904_vm1, %v19941_v45  ;;  %v19942_v45 = vld [vmem:[#allocation2 + $0xd8] sm:$0xff]  }
 0x2dc   : > { %2645 = vrot.lane.b32.xlu1 %v1360_v18, %s24273_s13  ;;  %16679 = vmatprep.mubr.msk.bf16.mxu0 %vm20214_vm2, %v24389_v53  ;;  %v20968_v48 = vpop.permute.xlu0 %1950 }
 0x2de   : > { %v20954_v56 = vpop.f32.mrb[132].mxu0 }
 0x2df   : > { %24390 = vst [vmem:[#allocation38_spill] sm:$0xff] %v20954_v56  ;;  %v16573_v23 = vpop.f32.mrb[133].mxu0  ;;  %v20970_v56 = vpop.permute.xlu1 %2056 }
 0x2e0   : > { %2651 = vrot.lane.b32.xlu1 %v1364_v32, %s24273_s13  ;;  %v20957_v13 = vpop.f32.mrb[134].mxu0  ;;  %24394 = vst [vmem:[#allocation42_spill] sm:$0xff] %v20970_v56 }
 0x2e1   : > { %24391 = vst [vmem:[#allocation39_spill] sm:$0xff] %v20957_v13  ;;  %v16574_v37 = vpop.f32.mrb[135].mxu0 }
 0x2e2   : > { %v20977_v37 = vpop.permute.xlu0 %1958 }
 0x2e3   : > { %16680 = vmatmul.mubr.msk.bf16.gmra.mrb[240].mxu0 %vm904_vm1, %v19942_v45  ;;  %24396 = vst [vmem:[#allocation44_spill] sm:$0xff] %v20977_v37  ;;  %v20979_v45 = vpop.permute.xlu1 %2116 }
 0x2e4   : > { %16683 = vmatprep.mubr.msk.bf16.mxu0 %vm20214_vm2, %v24389_v53 }
 0x2e6   : > { %v20966_v18 = vpop.f32.mrb[136].mxu0  ;;  %v20984_v35 = vpop.permute.xlu0 %1970 }
 0x2e7   : > { %24393 = vst [vmem:[#allocation41_spill] sm:$0xff] %v20966_v18  ;;  %v16577_v23 = vpop.f32.mrb[137].mxu0  ;;  %24398 = vst [vmem:[#allocation46_spill] sm:$0xff] %v20984_v35  ;;  %v20987_v26 = vpop.permute.xlu1 %2118 }
 0x2e8   : > { %v20972_v32 = vpop.f32.mrb[138].mxu0 }
 0x2e9   : > { %24395 = vst [vmem:[#allocation43_spill] sm:$0xff] %v20972_v32  ;;  %v16578_v13 = vpop.f32.mrb[139].mxu0  ;;  %v2781_v32 = vld [vmem:[#allocation4 + $0x98] sm:$0xff] }
 0x2ea   : > { %v19944_v13 = vld [vmem:[#allocation2 + $0xe8] sm:$0xff]   ;;  %v20992_v9 = vpop.permute.xlu0 %2030 }
 0x2eb   : > { %16684 = vmatmul.mubr.msk.bf16.gmra.mrb[244].mxu0 %vm904_vm1, %v19943_v7  ;;  %v2780_v7 = vld [vmem:[#allocation4 + $0x90] sm:$0xff]  ;;  %v20994_v35 = vpop.permute.xlu1 %2130 }
 0x2ec   : > { %16687 = vmatprep.mubr.msk.bf16.mxu0 %vm20214_vm2, %v24389_v53  ;;  %v18589_v58 = vpack.c.bf16 %v2781_v32, %v2780_v7  ;;  %24399 = vst [vmem:[#allocation47_spill] sm:$0xff] %v20994_v35 }
 0x2ee   : > { %v20981_v4 = vpop.f32.mrb[140].mxu0  ;;  %18590 = vmatprep.subr.bf16.mxu0 %v18589_v58 }
 0x2ef   : > { %24397 = vst [vmem:[#allocation45_spill] sm:$0xff] %v20981_v4  ;;  %v16581_v18 = vpop.f32.mrb[141].mxu0  ;;  %v2765_v4 = vld [vmem:[#allocation4 + $0x18] sm:$0xff]  ;;  %v21003_v58 = vpop.permute.xlu1 %2134 }
 0x2f0   : > { %v1428_v2 = vpop.f32.mrb[142].mxu0  ;;  %v18591_v18 = vpack.c.bf16 %v2765_v4, %v2764_v62  ;;  %v21000_v4 = vpop.permute.xlu0 %2032  ;;  %24400 = vst [vmem:[#allocation48_spill] sm:$0xff] %v21003_v58 }
 0x2f1   : > { %1690 = vrot.lane.b32.xlu0 %v1428_v2, %s20215_s10  ;;  %v16582_v23 = vpop.f32.mrb[143].mxu0 }
 0x2f2   : > { %18592 = vmatpush3.bf16.msra.mxu0 %v18591_v18  ;;  %v19946_v18 = vld [vmem:[#allocation2 + $0xf8] sm:$0xff]  }
 0x2f3   : > { %16688 = vmatmul.mubr.msk.bf16.gmra.mrb[248].mxu0 %vm904_vm1, %v19944_v13 }
 0x2f4   : > { %16691 = vmatprep.mubr.msk.bf16.mxu0 %vm20214_vm2, %v24389_v53 }
 0x2f6   : > { %v1433_v56 = vpop.f32.mrb[144].mxu0 }
 0x2f7   : > { %1696 = vrot.lane.b32.xlu1 %v1433_v56, %s20215_s10  ;;  %v16585_v2 = vpop.f32.mrb[145].mxu0 }
 0x2f8   : > { %v1436_v23 = vpop.f32.mrb[146].mxu0  ;;  %v21011_v2 = vpop.permute.xlu1 %2142 }
 0x2f9   : > { %v16586_v13 = vpop.f32.mrb[147].mxu0  ;;  %24402 = vst [vmem:[#allocation50_spill] sm:$0xff] %v21011_v2 }
 0x2fb   : > { %16692 = vmatmul.mubr.msk.bf16.gmra.mrb[252].mxu0 %vm904_vm1, %v19945_v15  ;;  %1702 = vrot.lane.b32.xlu1 %v1436_v23, %s20215_s10  ;;  %v21009_v15 = vpop.permute.xlu0 %2036 }
 0x2fc   : > { %16695 = vmatprep.mubr.msk.bf16.mxu0 %vm20214_vm2, %v24389_v53  ;;  %24401 = vst [vmem:[#allocation49_spill] sm:$0xff] %v21009_v15  ;;  %v2766_v15 = vld [vmem:[#allocation4 + $0x20] sm:$0xff] }
 0x2fe   : > { %v1441_v62 = vpop.f32.mrb[148].mxu0 }
 0x2ff   : > { %1708 = vrot.lane.b32.xlu1 %v1441_v62, %s20215_s10  ;;  %v16589_v56 = vpop.f32.mrb[149].mxu0 }
 0x300   : > { %v1444_v32 = vpop.f32.mrb[150].mxu0 }
 0x301   : > { %v16590_v7 = vpop.f32.mrb[151].mxu0 }
 0x302   : > { %v21015_v7 = vpop.permute.xlu0 %2038 }
 0x303   : > { %1714 = vrot.lane.b32.xlu1 %v1444_v32, %s20215_s10  ;;  %16696 = vmatmul.mubr.msk.bf16.gmra.mrb[0].mxu0 %vm904_vm1, %v19946_v18  ;;  %24403 = vst [vmem:[#allocation51_spill] sm:$0xff] %v21015_v7  ;;  %v19947_v32 = vld [vmem:[#allocation2 + $0x100] ss:$0 sps:$4 sm:$0xff]   ;;  %v21018_v18 = vpop.permute.xlu1 %2202 }
 0x304   : > { %16699 = vmatprep.mubr.msk.bf16.mxu0 %vm20214_vm2, %v24389_v53  ;;  %24404 = vst [vmem:[#allocation52_spill] sm:$0xff] %v21018_v18 }
 0x306   : > { %v1449_v23 = vpop.f32.mrb[152].mxu0  ;;  %v21021_v35 = vpop.permute.xlu0 %2042 }
 0x307   : > { %1776 = vrot.lane.b32.xlu0 %v1449_v23, %s20216_s16  ;;  %v16593_v13 = vpop.f32.mrb[153].mxu0  ;;  %24405 = vst [vmem:[#allocation53_spill] sm:$0xff] %v21021_v35 }
 0x308   : > { %v1452_v62 = vpop.f32.mrb[154].mxu0  ;;  %v21024_v13 = vpop.permute.xlu1 %2208 }
 0x309   : > { %1782 = vrot.lane.b32.xlu1 %v1452_v62, %s20216_s16  ;;  %v16594_v56 = vpop.f32.mrb[155].mxu0  ;;  %24406 = vst [vmem:[#allocation54_spill] sm:$0xff] %v21024_v13  ;;  %v2782_v62 = vld [vmem:[#allocation4 + $0xa0] sm:$0xff] }
 0x30a   : > { %v2783_v56 = vld [vmem:[#allocation4 + $0xa8] sm:$0xff]  ;;  %v21026_v18 = vpop.permute.xlu0 %2044 }
 0x30b   : > { %16700 = vmatmul.mubr.msk.bf16.gmra.mrb[4].mxu0 %vm904_vm1, %v19947_v32  ;;  %v18593_v7 = vpack.c.bf16 %v2783_v56, %v2782_v62  ;;  %v18595_v32 = vpack.c.bf16 %v2767_v36, %v2766_v15  ;;  %24407 = vst [vmem:[#allocation55_spill] sm:$0xff] %v21026_v18 }
 0x30d   : > { %18594 = vmatprep.subr.bf16.mxu0 %v18593_v7 }
 0x30e   : > { %v1457_v53 = vpop.f32.mrb[156].mxu0  ;;  %18596 = vmatpush3.bf16.msra.mxu0 %v18595_v32  ;;  %v21032_v13 = vpop.permute.xlu0 %2048 }
 0x30f   : > { %1788 = vrot.lane.b32.xlu0 %v1457_v53, %s20216_s16  ;;  %v16597_v58 = vpop.f32.mrb[157].mxu0  ;;  %24409 = vst [vmem:[#allocation57_spill] sm:$0xff] %v21032_v13 }
 0x310   : > { %v1460_v2 = vpop.f32.mrb[158].mxu0  ;;  %v21029_v58 = vpop.permute.xlu1 %2214 }
 0x311   : > { %1794 = vrot.lane.b32.xlu1 %v1460_v2, %s20216_s16  ;;  %v16598_v23 = vpop.f32.mrb[159].mxu0  ;;  %24408 = vst [vmem:[#allocation56_spill] sm:$0xff] %v21029_v58 }
 0x312   : > { %v21037_v56 = vpop.permute.xlu0 %2122 }
 0x313   : > { %24411 = vst [vmem:[#allocation59_spill] sm:$0xff] %v21037_v56  ;;  %v2785_v56 = vld [vmem:[#allocation4 + $0xb8] sm:$0xff] }
 0x314   : > { %v21034_v35 = vpop.permute.xlu1 %2216 }
 0x315   : > { %24410 = vst [vmem:[#allocation58_spill] sm:$0xff] %v21034_v35 }
 0x316   : > { %v1465_v52 = vpop.f32.mrb[160].mxu0 }
 0x317   : > { %1800 = vrot.lane.b32.xlu0 %v1465_v52, %s20216_s16  ;;  %v16601_v53 = vpop.f32.mrb[161].mxu0 }
 0x318   : > { %v1468_v2 = vpop.f32.mrb[162].mxu0  ;;  %v21040_v52 = vpop.permute.xlu1 %2222 }
 0x319   : > { %1862 = vrot.lane.b32.xlu1 %v1468_v2, %s20217_s17  ;;  %v16602_v23 = vpop.f32.mrb[163].mxu0  ;;  %24412 = vst [vmem:[#allocation60_spill] sm:$0xff] %v21040_v52 }
 0x31a   : > { %v21043_v23 = vpop.permute.xlu0 %2124 }
 0x31b   : > { %24413 = vst [vmem:[#allocation61_spill] sm:$0xff] %v21043_v23 }
 0x31e   : > { %v1473_v62 = vpop.f32.mrb[164].mxu0 }
 0x31f   : > { %1868 = vrot.lane.b32.xlu1 %v1473_v62, %s20217_s17  ;;  %v16605_v36 = vpop.f32.mrb[165].mxu0  ;;  %v21046_v62 = vpop.permute.xlu1 %2288 }
 0x320   : > { %v1476_v15 = vpop.f32.mrb[166].mxu0  ;;  %24414 = vst [vmem:[#allocation62_spill] sm:$0xff] %v21046_v62 }
 0x321   : > { %v16606_v7 = vpop.f32.mrb[167].mxu0 }
 0x322   : > { %v21048_v7 = vpop.permute.xlu0 %2128 }
 0x323   : > { %1874 = vrot.lane.b32.xlu1 %v1476_v15, %s20217_s17  ;;  %24415 = vst [vmem:[#allocation63_spill] sm:$0xff] %v21048_v7  ;;  %v21051_v35 = vpop.permute.xlu1 %2294 }
 0x324   : > { %24416 = vst [vmem:[#allocation64_spill] sm:$0xff] %v21051_v35 }
 0x326   : > { %v1481_v32 = vpop.f32.mrb[168].mxu0  ;;  %v21054_v13 = vpop.permute.xlu0 %2136 }
 0x327   : > { %1880 = vrot.lane.b32.xlu1 %v1481_v32, %s20217_s17  ;;  %v16609_v53 = vpop.f32.mrb[169].mxu0  ;;  %24417 = vst [vmem:[#allocation65_spill] sm:$0xff] %v21054_v13 }
 0x328   : > { %v1484_v2 = vpop.f32.mrb[170].mxu0  ;;  %v2784_v53 = vld [vmem:[#allocation4 + $0xb0] sm:$0xff] }
 0x329   : > { %1886 = vrot.lane.b32.xlu0 %v1484_v2, %s20217_s17  ;;  %v16610_v58 = vpop.f32.mrb[171].mxu0  ;;  %v18597_v23 = vpack.c.bf16 %v2785_v56, %v2784_v53 }
 0x32a   : > { %v21056_v58 = vpop.permute.xlu1 %2296 }
 0x32b   : > { %24418 = vst [vmem:[#allocation66_spill] sm:$0xff] %v21056_v58  ;;  %18598 = vmatprep.subr.bf16.mxu0 %v18597_v23 }
 0x32e   : > { %v1489_v36 = vpop.f32.mrb[172].mxu0  ;;  %v21062_v56 = vpop.permute.xlu1 %2306 }
 0x32f   : > { %1948 = vrot.lane.b32.xlu1 %v1489_v36, %s20218_s15  ;;  %v16613_v15 = vpop.f32.mrb[173].mxu0  ;;  %v2768_v36 = vld [vmem:[#allocation4 + $0x30] sm:$0xff]  ;;  %24420 = vst [vmem:[#allocation68_spill] sm:$0xff] %v21062_v56 }
 0x330   : > { %v1492_v52 = vpop.f32.mrb[174].mxu0  ;;  %v2769_v15 = vld [vmem:[#allocation4 + $0x38] sm:$0xff] }
 0x331   : > { %1954 = vrot.lane.b32.xlu0 %v1492_v52, %s20218_s15  ;;  %v16614_v32 = vpop.f32.mrb[175].mxu0  ;;  %v18599_v35 = vpack.c.bf16 %v2769_v15, %v2768_v36 }
 0x332   : > { %v21060_v32 = vpop.permute.xlu0 %2140 }
 0x333   : > { %18600 = vmatpush3.bf16.msra.mxu0 %v18599_v35  ;;  %24419 = vst [vmem:[#allocation67_spill] sm:$0xff] %v21060_v32 }
 0x336   : > { %v1497_v2 = vpop.f32.mrb[176].mxu0  ;;  %v21065_v13 = vpop.permute.xlu0 %2204 }
 0x337   : > { %1960 = vrot.lane.b32.xlu1 %v1497_v2, %s20218_s15  ;;  %v16617_v7 = vpop.f32.mrb[177].mxu0  ;;  %24421 = vst [vmem:[#allocation69_spill] sm:$0xff] %v21065_v13  ;;  %v21067_v2 = vpop.permute.xlu1 %2308 }
 0x338   : > { %v1500_v18 = vpop.f32.mrb[178].mxu0  ;;  %24422 = vst [vmem:[#allocation70_spill] sm:$0xff] %v21067_v2 }
 0x339   : > { %1966 = vrot.lane.b32.xlu0 %v1500_v18, %s20218_s15  ;;  %v16618_v52 = vpop.f32.mrb[179].mxu0 }
 0x33a   : > { %v21070_v18 = vpop.permute.xlu0 %2210 }
 0x33b   : > { %24423 = vst [vmem:[#allocation71_spill] sm:$0xff] %v21070_v18  ;;  %v21073_v15 = vpop.permute.xlu1 %2314 }
 0x33c   : > { %24424 = vst [vmem:[#allocation72_spill] sm:$0xff] %v21073_v15  ;;  %v2770_v15 = vld [vmem:[#allocation4 + $0x40] sm:$0xff] }
 0x33e   : > { %v1505_v53 = vpop.f32.mrb[180].mxu0 }
 0x33f   : > { %1972 = vrot.lane.b32.xlu1 %v1505_v53, %s20218_s15  ;;  %v16621_v58 = vpop.f32.mrb[181].mxu0  ;;  %v21078_v53 = vpop.permute.xlu1 %2382 }
 0x340   : > { %v1508_v23 = vpop.f32.mrb[182].mxu0  ;;  %v21076_v58 = vpop.permute.xlu0 %2220  ;;  %24426 = vst [vmem:[#allocation74_spill] sm:$0xff] %v21078_v53 }
 0x341   : > { %v16622_v7 = vpop.f32.mrb[183].mxu0  ;;  %24425 = vst [vmem:[#allocation73_spill] sm:$0xff] %v21076_v58  ;;  %v2771_v58 = vld [vmem:[#allocation4 + $0x48] sm:$0xff] }
 0x342   : > { %v18603_v13 = vpack.c.bf16 %v2771_v58, %v2770_v15 }
 0x343   : > { %2034 = vrot.lane.b32.xlu1 %v1508_v23, %s20219_s18 }
 0x344   : > { %v21081_v18 = vpop.permute.xlu0 %2226 }
 0x345   : > { %24427 = vst [vmem:[#allocation75_spill] sm:$0xff] %v21081_v18 }
 0x346   : > { %v1513_v36 = vpop.f32.mrb[184].mxu0 }
 0x347   : > { %2040 = vrot.lane.b32.xlu1 %v1513_v36, %s20219_s18  ;;  %v16625_v35 = vpop.f32.mrb[185].mxu0  ;;  %v21084_v36 = vpop.permute.xlu1 %2386 }
 0x348   : > { %v1516_v52 = vpop.f32.mrb[186].mxu0  ;;  %24428 = vst [vmem:[#allocation76_spill] sm:$0xff] %v21084_v36  ;;  %v2786_v35 = vld [vmem:[#allocation4 + $0xc0] sm:$0xff] }
 0x349   : > { %v16626_v56 = vpop.f32.mrb[187].mxu0 }
 0x34a   : > { %v2787_v56 = vld [vmem:[#allocation4 + $0xc8] sm:$0xff] }
 0x34b   : > { %2046 = vrot.lane.b32.xlu1 %v1516_v52, %s20219_s18  ;;  %v18601_v62 = vpack.c.bf16 %v2787_v56, %v2786_v35 }
 0x34d   : > { %18602 = vmatprep.subr.bf16.mxu0 %v18601_v62 }
 0x34e   : > { %v1521_v7 = vpop.f32.mrb[188].mxu0  ;;  %18604 = vmatpush3.bf16.msra.mxu0 %v18603_v13 }
 0x34f   : > { %2052 = vrot.lane.b32.xlu0 %v1521_v7, %s20219_s18  ;;  %v16629_v23 = vpop.f32.mrb[189].mxu0 }
 0x350   : > { %v1524_v2 = vpop.f32.mrb[190].mxu0  ;;  %v21087_v23 = vpop.permute.xlu0 %2228 }
 0x351   : > { %v16630_v32 = vpop.f32.mrb[191].mxu0  ;;  %24429 = vst [vmem:[#allocation77_spill] sm:$0xff] %v21087_v23 }
 0x353   : > { %2058 = vrot.lane.b32.xlu0 %v1524_v2, %s20219_s18  ;;  %v21090_v2 = vpop.permute.xlu1 %2388 }
 0x354   : > { %24430 = vst [vmem:[#allocation78_spill] sm:$0xff] %v21090_v2  ;;  %v21092_v18 = vpop.permute.xlu0 %2290 }
 0x355   : > { %24431 = vst [vmem:[#allocation79_spill] sm:$0xff] %v21092_v18 }
 0x356   : > { %v1529_v52 = vpop.f32.mrb[192].mxu0 }
 0x357   : > { %2120 = vrot.lane.b32.xlu0 %v1529_v52, %s20220_s19  ;;  %v16633_v53 = vpop.f32.mrb[193].mxu0  ;;  %v21095_v56 = vpop.permute.xlu1 %2392 }
 0x358   : > { %v1532_v7 = vpop.f32.mrb[194].mxu0  ;;  %24432 = vst [vmem:[#allocation80_spill] sm:$0xff] %v21095_v56  ;;  %v21098_v15 = vpop.permute.xlu0 %2300 }
 0x359   : > { %2126 = vrot.lane.b32.xlu1 %v1532_v7, %s20220_s19  ;;  %v16634_v32 = vpop.f32.mrb[195].mxu0  ;;  %24433 = vst [vmem:[#allocation81_spill] sm:$0xff] %v21098_v15  ;;  %v2789_v15 = vld [vmem:[#allocation4 + $0xd8] sm:$0xff] }
 0x35b   : > { %v21100_v58 = vpop.permute.xlu1 %2398 }
 0x35c   : > { %24434 = vst [vmem:[#allocation82_spill] sm:$0xff] %v21100_v58 }
 0x35e   : > { %v1537_v36 = vpop.f32.mrb[196].mxu0 }
 0x35f   : > { %2132 = vrot.lane.b32.xlu0 %v1537_v36, %s20220_s19  ;;  %v16637_v35 = vpop.f32.mrb[197].mxu0  ;;  %v21104_v36 = vpop.permute.xlu0 %2302 }
 0x360   : > { %v1540_v53 = vpop.f32.mrb[198].mxu0  ;;  %24435 = vst [vmem:[#allocation83_spill] sm:$0xff] %v21104_v36  ;;  %v21106_v35 = vpop.permute.xlu1 %2400  ;;  %v2773_v36 = vld [vmem:[#allocation4 + $0x58] sm:$0xff] }
 0x361   : > { %2138 = vrot.lane.b32.xlu1 %v1540_v53, %s20220_s19  ;;  %v16638_v62 = vpop.f32.mrb[199].mxu0  ;;  %24436 = vst [vmem:[#allocation84_spill] sm:$0xff] %v21106_v35 }
 0x363   : > { %v21109_v2 = vpop.permute.xlu0 %2312 }
 0x364   : > { %24437 = vst [vmem:[#allocation85_spill] sm:$0xff] %v21109_v2 }
 0x366   : > { %v1545_v52 = vpop.f32.mrb[200].mxu0 }
 0x367   : > { %2144 = vrot.lane.b32.xlu0 %v1545_v52, %s20220_s19  ;;  %v16641_v13 = vpop.f32.mrb[201].mxu0  ;;  %v21112_v52 = vpop.permute.xlu1 %2462 }
 0x368   : > { %v1548_v7 = vpop.f32.mrb[202].mxu0  ;;  %24438 = vst [vmem:[#allocation86_spill] sm:$0xff] %v21112_v52  ;;  %v2788_v13 = vld [vmem:[#allocation4 + $0xd0] sm:$0xff]  ;;  %v21114_v18 = vpop.permute.xlu0 %2374 }
 0x369   : > { %2206 = vrot.lane.b32.xlu1 %v1548_v7, %s20221_s26  ;;  %v16642_v32 = vpop.f32.mrb[203].mxu0  ;;  %v2772_v7 = vld [vmem:[#allocation4 + $0x50] sm:$0xff]  ;;  %v18605_v23 = vpack.c.bf16 %v2789_v15, %v2788_v13  ;;  %24439 = vst [vmem:[#allocation87_spill] sm:$0xff] %v21114_v18 }
 0x36b   : > { %v21117_v35 = vpop.permute.xlu1 %2466  ;;  %18606 = vmatprep.subr.bf16.mxu0 %v18605_v23 }
 0x36c   : > { %24440 = vst [vmem:[#allocation88_spill] sm:$0xff] %v21117_v35 }
 0x36e   : > { %v1553_v56 = vpop.f32.mrb[204].mxu0 }
 0x36f   : > { %2212 = vrot.lane.b32.xlu1 %v1553_v56, %s20221_s26  ;;  %v16645_v53 = vpop.f32.mrb[205].mxu0  ;;  %v21122_v52 = vpop.permute.xlu1 %2474 }
 0x370   : > { %v1556_v62 = vpop.f32.mrb[206].mxu0  ;;  %v18607_v53 = vpack.c.bf16 %v2773_v36, %v2772_v7  ;;  %24442 = vst [vmem:[#allocation90_spill] sm:$0xff] %v21122_v52  ;;  %v2790_v52 = vld [vmem:[#allocation4 + $0xe0] sm:$0xff] }
 0x371   : > { %2218 = vrot.lane.b32.xlu0 %v1556_v62, %s20221_s26  ;;  %v16646_v58 = vpop.f32.mrb[207].mxu0  ;;  %v21120_v62 = vpop.permute.xlu0 %2376 }
 0x372   : > { %18608 = vmatpush3.bf16.msra.mxu0 %v18607_v53  ;;  %24441 = vst [vmem:[#allocation89_spill] sm:$0xff] %v21120_v62  ;;  %v2775_v62 = vld [vmem:[#allocation4 + $0x68] sm:$0xff] }
 0x375   : > { %v21126_v7 = vpop.permute.xlu0 %2380 }
 0x376   : > { %v1561_v32 = vpop.f32.mrb[208].mxu0  ;;  %24443 = vst [vmem:[#allocation91_spill] sm:$0xff] %v21126_v7 }
 0x377   : > { %2224 = vrot.lane.b32.xlu0 %v1561_v32, %s20221_s26  ;;  %v16649_v56 = vpop.f32.mrb[209].mxu0  ;;  %v21128_v32 = vpop.permute.xlu1 %2478 }
 0x378   : > { %v1564_v2 = vpop.f32.mrb[210].mxu0  ;;  %24444 = vst [vmem:[#allocation92_spill] sm:$0xff] %v21128_v32 }
 0x379   : > { %2230 = vrot.lane.b32.xlu1 %v1564_v2, %s20221_s26  ;;  %v16650_v58 = vpop.f32.mrb[211].mxu0  ;;  %v21131_v53 = vpop.permute.xlu0 %2394 }
 0x37a   : > { %24445 = vst [vmem:[#allocation93_spill] sm:$0xff] %v21131_v53  ;;  %v2791_v53 = vld [vmem:[#allocation4 + $0xe8] sm:$0xff] }
 0x37b   : > { %v18609_v7 = vpack.c.bf16 %v2791_v53, %v2790_v52 }
 0x37d   : > { %v21136_v35 = vpop.permute.xlu0 %2460  ;;  %18610 = vmatprep.subr.bf16.mxu0 %v18609_v7 }
 0x37e   : > { %v1569_v15 = vpop.f32.mrb[212].mxu0  ;;  %24447 = vst [vmem:[#allocation95_spill] sm:$0xff] %v21136_v35 }
 0x37f   : > { %2292 = vrot.lane.b32.xlu1 %v1569_v15, %s20222_s22  ;;  %v16653_v13 = vpop.f32.mrb[213].mxu0  ;;  %v21134_v15 = vpop.permute.xlu1 %2480 }
 0x380   : > { %v1572_v18 = vpop.f32.mrb[214].mxu0  ;;  %24446 = vst [vmem:[#allocation94_spill] sm:$0xff] %v21134_v15 }
 0x381   : > { %2298 = vrot.lane.b32.xlu0 %v1572_v18, %s20222_s22  ;;  %v16654_v36 = vpop.f32.mrb[215].mxu0 }
 0x383   : > { %v21139_v36 = vpop.permute.xlu1 %2486 }
 0x384   : > { %24448 = vst [vmem:[#allocation96_spill] sm:$0xff] %v21139_v36 }
 0x386   : > { %v1577_v23 = vpop.f32.mrb[216].mxu0 }
 0x387   : > { %2304 = vrot.lane.b32.xlu1 %v1577_v23, %s20222_s22  ;;  %v16657_v2 = vpop.f32.mrb[217].mxu0 }
 0x388   : > { %v1580_v56 = vpop.f32.mrb[218].mxu0  ;;  %v21142_v2 = vpop.permute.xlu0 %2468 }
 0x389   : > { %2310 = vrot.lane.b32.xlu0 %v1580_v56, %s20222_s22  ;;  %v16658_v58 = vpop.f32.mrb[219].mxu0  ;;  %24449 = vst [vmem:[#allocation97_spill] sm:$0xff] %v21142_v2  ;;  %v2774_v56 = vld [vmem:[#allocation4 + $0x60] sm:$0xff] }
 0x38a   : > { %v21144_v58 = vpop.permute.xlu1 %2545 }
 0x38b   : > { %24450 = vst [vmem:[#allocation98_spill] sm:$0xff] %v21144_v58 }
 0x38e   : > { %v1585_v13 = vpop.f32.mrb[220].mxu0 }
 0x38f   : > { %2316 = vrot.lane.b32.xlu0 %v1585_v13, %s20222_s22  ;;  %v16661_v18 = vpop.f32.mrb[221].mxu0 }
 0x390   : > { %v1588_v32 = vpop.f32.mrb[222].mxu0  ;;  %v18611_v18 = vpack.c.bf16 %v2775_v62, %v2774_v56 }
 0x391   : > { %2378 = vrot.lane.b32.xlu1 %v1588_v32, %s20223_s25  ;;  %v16662_v23 = vpop.f32.mrb[223].mxu0  ;;  %v21147_v32 = vpop.permute.xlu0 %2472 }
 0x392   : > { %18612 = vmatpush3.bf16.msra.mxu0 %v18611_v18  ;;  %24451 = vst [vmem:[#allocation99_spill] sm:$0xff] %v21147_v32  ;;  %v21150_v23 = vpop.permute.xlu1 %2547 }
 0x395   : > { %v21152_v37 = vpop.permute.xlu0 %2551 }
 0x396   : > { %v1593_v15 = vpop.f32.mrb[224].mxu0  ;;  %24452 = vst [vmem:[#allocation100_spill] sm:$0xff] %v21152_v37 }
 0x397   : > { %2384 = vrot.lane.b32.xlu0 %v1593_v15, %s20223_s25  ;;  %v16665_v13 = vpop.f32.mrb[225].mxu0  ;;  %v21156_v15 = vpop.permute.xlu1 %2553 }
 0x398   : > { %v1596_v35 = vpop.f32.mrb[226].mxu0  ;;  %24453 = vst [vmem:[#allocation101_spill] sm:$0xff] %v21156_v15 }
 0x399   : > { %v16666_v36 = vpop.f32.mrb[227].mxu0  ;;  %v21158_v7 = vpop.permute.xlu0 %2557 }
 0x39a   : > { %24454 = vst [vmem:[#allocation102_spill] sm:$0xff] %v21158_v7 }
 0x39b   : > { %2390 = vrot.lane.b32.xlu0 %v1596_v35, %s20223_s25  ;;  %v21161_v56 = vpop.permute.xlu1 %2565 }
 0x39c   : > { %24455 = vst [vmem:[#allocation103_spill] sm:$0xff] %v21161_v56  ;;  %v2793_v56 = vld [vmem:[#allocation4 + $0xf8] sm:$0xff] }
 0x39e   : > { %v1601_v2 = vpop.f32.mrb[228].mxu0 }
 0x39f   : > { %2396 = vrot.lane.b32.xlu1 %v1601_v2, %s20223_s25  ;;  %v16669_v52 = vpop.f32.mrb[229].mxu0  ;;  %v21164_v2 = vpop.permute.xlu0 %2559 }
 0x3a0   : > { %v1604_v53 = vpop.f32.mrb[230].mxu0  ;;  %24456 = vst [vmem:[#allocation104_spill] sm:$0xff] %v21164_v2  ;;  %v21166_v52 = vpop.permute.xlu1 %2637 }
 0x3a1   : > { %2402 = vrot.lane.b32.xlu0 %v1604_v53, %s20223_s25  ;;  %v16670_v62 = vpop.f32.mrb[231].mxu0  ;;  %24457 = vst [vmem:[#allocation105_spill] sm:$0xff] %v21166_v52 }
 0x3a3   : > { %v21169_v15 = vpop.permute.xlu0 %2563 }
 0x3a4   : > { %24458 = vst [vmem:[#allocation106_spill] sm:$0xff] %v21169_v15 }
 0x3a6   : > { %v1609_v36 = vpop.f32.mrb[232].mxu0 }
 0x3a7   : > { %2464 = vrot.lane.b32.xlu0 %v1609_v36, %s20224_s14  ;;  %v16673_v35 = vpop.f32.mrb[233].mxu0  ;;  %v21172_v36 = vpop.permute.xlu1 %2639 }
 0x3a8   : > { %v1612_v13 = vpop.f32.mrb[234].mxu0  ;;  %24459 = vst [vmem:[#allocation107_spill] sm:$0xff] %v21172_v36  ;;  %v2792_v35 = vld [vmem:[#allocation4 + $0xf0] sm:$0xff]  ;;  %v21174_v32 = vpop.permute.xlu0 %2631 }
 0x3a9   : > { %2470 = vrot.lane.b32.xlu1 %v1612_v13, %s20224_s14  ;;  %v16674_v18 = vpop.f32.mrb[235].mxu0 }
 0x3aa   : > { %v18613_v18 = vpack.c.bf16 %v2793_v56, %v2792_v35 }
 0x3ac   : > { %18614 = vmatprep.subr.bf16.mxu0 %v18613_v18  ;;  %v21180_v36 = vpop.permute.xlu0 %2633 }
 0x3ae   : > { %v1617_v53 = vpop.f32.mrb[236].mxu0 }
 0x3af   : > { %2476 = vrot.lane.b32.xlu0 %v1617_v53, %s20224_s14  ;;  %v16677_v62 = vpop.f32.mrb[237].mxu0 }
 0x3b0   : > { %v1620_v37 = vpop.f32.mrb[238].mxu0  ;;  %v21177_v62 = vpop.permute.xlu1 %2645 }
 0x3b1   : > { %v16678_v7 = vpop.f32.mrb[239].mxu0  ;;  %24460 = vst [vmem:[#allocation108_spill] sm:$0xff] %v21177_v62  ;;  %v21186_v18 = vpop.permute.xlu0 %2643 }
 0x3b2   : > { %v2776_v7 = vld [vmem:[#allocation4 + $0x70] sm:$0xff]  ;;  %24462 = vst [vmem:[#allocation110_spill] sm:$0xff] %v21186_v18 }
 0x3b3   : > { %2482 = vrot.lane.b32.xlu0 %v1620_v37, %s20224_s14  ;;  %v2777_v37 = vld [vmem:[#allocation4 + $0x78] sm:$0xff] }
 0x3b4   : > { %v18615_v15 = vpack.c.bf16 %v2777_v37, %v2776_v7  ;;  %v21183_v35 = vpop.permute.xlu1 %2651 }
 0x3b5   : > { %24461 = vst [vmem:[#allocation109_spill] sm:$0xff] %v21183_v35  ;;  %v21190_v62 = vpop.permute.xlu0 %1690 }
 0x3b6   : > { %v1625_v13 = vpop.f32.mrb[240].mxu0  ;;  %18616 = vmatpush3.bf16.msra.mxu0 %v18615_v15  ;;  %24463 = vst [vmem:[#allocation111_spill] sm:$0xff] %v21190_v62 }
 0x3b7   : > { %2488 = vrot.lane.b32.xlu0 %v1625_v13, %s20224_s14  ;;  %v16681_v52 = vpop.f32.mrb[241].mxu0 }
 0x3b8   : > { %v1628_v2 = vpop.f32.mrb[242].mxu0 }
 0x3b9   : > { %v16682_v53 = vpop.f32.mrb[243].mxu0 }
 0x3ba   : > { %v21188_v53 = vpop.permute.xlu1 %1696 }
 0x3bb   : > { %2549 = vrot.lane.b32.xlu0 %v1628_v2, %s24275_s20 }
 0x3be   : > { %v1633_v58 = vpop.f32.mrb[244].mxu0 }
 0x3bf   : > { %2555 = vrot.lane.b32.xlu0 %v1633_v58, %s24275_s20  ;;  %v16685_v56 = vpop.f32.mrb[245].mxu0  ;;  %v21193_v58 = vpop.permute.xlu1 %1702 }
 0x3c0   : > { %v1636_v52 = vpop.f32.mrb[246].mxu0  ;;  %24464 = vst [vmem:[#allocation112_spill] sm:$0xff] %v21193_v58  ;;  %v21195_v56 = vpop.permute.xlu0 %1776 }
 0x3c1   : > { %2561 = vrot.lane.b32.xlu1 %v1636_v52, %s24275_s20  ;;  %v16686_v13 = vpop.f32.mrb[247].mxu0  ;;  %24465 = vst [vmem:[#allocation113_spill] sm:$0xff] %v21195_v56 }
 0x3c4   : > { %v21199_v13 = vpop.permute.xlu0 %1788 }
 0x3c5   : > { %24466 = vst [vmem:[#allocation114_spill] sm:$0xff] %v21199_v13 }
 0x3c6   : > { %v1641_v2 = vpop.f32.mrb[248].mxu0 }
 0x3c7   : > { %2567 = vrot.lane.b32.xlu0 %v1641_v2, %s24275_s20  ;;  %v16689_v7 = vpop.f32.mrb[249].mxu0  ;;  %v21204_v2 = vpop.permute.xlu1 %1708 }
 0x3c8   : > { %v1644_v15 = vpop.f32.mrb[250].mxu0  ;;  %24467 = vst [vmem:[#allocation115_spill] sm:$0xff] %v21204_v2  ;;  %v21209_v58 = vpop.permute.xlu0 %1800 }
 0x3c9   : > { %v16690_v37 = vpop.f32.mrb[251].mxu0  ;;  %24468 = vst [vmem:[#allocation116_spill] sm:$0xff] %v21209_v58 }
 0x3ca   : > { %v2706_v37 = vld [vmem:[%s24204_s2 + $0x20] sm:$0xff] }
 0x3cb   : > { %2484 = vrot.lane.b32.xlu0 %v20872_v12, %s20224_s14  ;;  %v21213_v12 = vpop.permute.xlu1 %1714 }
 0x3cc   : > { %24469 = vst [vmem:[#allocation117_spill] sm:$0xff] %v21213_v12  ;;  %v21215_v13 = vpop.permute.xlu0 %1886 }
 0x3cd   : > { %24470 = vst [vmem:[#allocation118_spill] sm:$0xff] %v21215_v13 }
 0x3ce   : > { %v1649_v52 = vpop.f32.mrb[252].mxu0 }
 0x3cf   : > { %2571 = vrot.lane.b32.xlu0 %v20903_v44, %s24275_s20  ;;  %2635 = vrot.lane.b32.xlu1 %v1649_v52, %s24273_s13  ;;  %v16693_v35 = vpop.f32.mrb[253].mxu0 }
 0x3d0   : > { %v1652_v7 = vpop.f32.mrb[254].mxu0  ;;  %v21222_v58 = vpop.permute.xlu0 %1954 }
 0x3d1   : > { %v16694_v18 = vpop.f32.mrb[255].mxu0  ;;  %24471 = vst [vmem:[#allocation119_spill] sm:$0xff] %v21222_v58 }
 0x3d2   : > { %v21220_v18 = vpop.permute.xlu1 %1782 }
 0x3d3   : > { %2569 = vrot.lane.b32.xlu0 %v20901_v42, %s24275_s20  ;;  %2729 = vperm.xlu1 %19101, %v2706_v37   ;;  %v24277_v42 = vmov 0.0|0.0  }
 0x3d4   : > { %18617 = vmatprep.subr.bf16.mxu0 %v24277_v42 }
 0x3d6   : > { %v1657_v44 = vpop.f32.mrb[0].mxu0  ;;  %v21227_v13 = vpop.permute.xlu1 %1794 }
 0x3d7   : > { %2649 = vrot.lane.b32.xlu1 %v20929_v29, %s24273_s13  ;;  %2641 = vrot.lane.b32.xlu0 %v1652_v7, %s24273_s13  ;;  %v16697_v35 = vpop.f32.mrb[1].mxu0  ;;  %24472 = vst [vmem:[#allocation120_spill] sm:$0xff] %v21227_v13  ;;  %v21229_v29 = vpop.permute.xlu0 %1966 }
 0x3d8   : > { %v1660_v52 = vpop.f32.mrb[2].mxu0  ;;  %24473 = vst [vmem:[#allocation121_spill] sm:$0xff] %v21229_v29 }
 0x3d9   : > { %v16698_v2 = vpop.f32.mrb[3].mxu0 }
 0x3da   : > { %v21234_v58 = vpop.permute.xlu1 %1862 }
 0x3db   : > { %2573 = vrot.lane.b32.xlu1 %v1644_v15, %s24275_s20  ;;  %2647 = vrot.lane.b32.xlu0 %v1657_v44, %s24273_s13  ;;  %v21236_v15 = vpop.permute.xlu0 %2052  ;;  %v9699_v44 = vld [vmem:[%s24204_s2] sm:$0xff] }
 0x3dc   : > { %24474 = vst [vmem:[#allocation122_spill] sm:$0xff] %v21236_v15 }
 0x3de   : > { %v1665_v12 = vpop.f32.mrb[4].mxu0 }
 0x3df   : > { %2657 = vrot.lane.b32.xlu1 %v20941_v39, %s24273_s13  ;;  %2653 = vrot.lane.b32.xlu0 %v1660_v52, %s24273_s13  ;;  %v16701_v2 = vpop.f32.mrb[5].mxu0  ;;  %v9700_v39 = vld [vmem:[%s24204_s2 + $0x8] sm:$0xff]  ;;  %v21247_v52 = vpop.permute.xlu1 %1868 }
 0x3e0   : > { %v1668_v7 = vpop.f32.mrb[6].mxu0  ;;  %24475 = vst [vmem:[#allocation123_spill] sm:$0xff] %v21247_v52  ;;  %v9701_v2 = vld [vmem:[%s24204_s2 + $0x10] sm:$0xff] }
 0x3e1   : > { %v16702_v35 = vpop.f32.mrb[7].mxu0  ;;  %v21252_v7 = vpop.permute.xlu0 %2058 }
 0x3e2   : > { %24476 = vst [vmem:[#allocation124_spill] sm:$0xff] %v21252_v7 }
 0x3e3   : > { %2655 = vrot.lane.b32.xlu1 %v20939_v0, %s24273_s13  ;;  %2659 = vrot.lane.b32.xlu0 %v1665_v12, %s24273_s13  ;;  %v9702_v0 = vld [vmem:[%s24204_s2 + $0x18] sm:$0xff]  ;;  %v21257_v12 = vpop.permute.xlu1 %1874 }
 0x3e4   : > { %24477 = vst [vmem:[#allocation125_spill] sm:$0xff] %v21257_v12 }
 0x3e5   : > { %v21259_v35 = vpop.permute.xlu0 %2120 }
 0x3e7   : > { %9706 = vperm.xlu1 %19101, %v9699_v44   ;;  %9711 = vperm.xlu0 %19102, %v9700_v39   ;;  %v21261_v42 = vpop.permute.xlu1 %1880 }
 0x3e8   : > { %24478 = vst [vmem:[#allocation126_spill] sm:$0xff] %v21261_v42 }
 0x3e9   : > { %v21263_v44 = vpop.permute.xlu0 %2132 }
 0x3ea   : > { %24479 = vst [vmem:[#allocation127_spill] sm:$0xff] %v21263_v44 }
 0x3eb   : > { %9716 = vperm.xlu0 %19102, %v9701_v2   ;;  %v21265_v39 = vpop.permute.xlu1 %1948 }
 0x3ed   : > { %v21267_v15 = vpop.permute.xlu0 %2144 }
 0x3ee   : > { %24480 = vst [vmem:[#allocation128_spill] sm:$0xff] %v21267_v15 }
 0x3ef   : > { %9721 = vperm.xlu0 %19102, %v9702_v0   ;;  %v21269_v7 = vpop.permute.xlu1 %1960 }
 0x3f1   : > { %v21271_v2 = vpop.permute.xlu0 %2218 }
 0x3f2   : > { %24481 = vst [vmem:[#allocation129_spill] sm:$0xff] %v21271_v2 }
 0x3f3   : > { %9726 = vperm.xlu0 %19102, %v2706_v37   ;;  %v21273_v29 = vpop.permute.xlu1 %1972 }
 0x3f4   : > { %24482 = vst [vmem:[#allocation130_spill] sm:$0xff] %v21273_v29  ;;  %v1717_v29 = vsel %vm1716_vm3, %v20778_v50, %v20783_v51 }
 0x3f5   : > { %v21275_v13 = vpop.permute.xlu0 %2224  ;;  %v1742_v50 = vadd.f32 %v1717_v29, %v20633_v61 }
 0x3f6   : > { %24483 = vst [vmem:[#allocation131_spill] sm:$0xff] %v21275_v13 }
 0x3f7   : > { %v21279_v0 = vpop.permute.xlu1 %2034 }
 0x3f9   : > { %v21277_v12 = vpop.permute.xlu0 %2298 }
 0x3fa   : > { %24484 = vst [vmem:[#allocation132_spill] sm:$0xff] %v21277_v12  ;;  %v1725_v12 = vsel %vm1716_vm3, %v20846_v41, %v20857_v49  ;;  %v1805_v49 = vsel %vm1802_vm4, %v20863_v60, %v20876_v17 }
 0x3fb   : > { %v21283_v44 = vpop.permute.xlu1 %2040 }
 0x3fc   : > { %24486 = vst [vmem:[#allocation134_spill] sm:$0xff] %v21283_v44 }
 0x3fd   : > { %v21281_v42 = vpop.permute.xlu0 %2310 }
 0x3fe   : > { %24485 = vst [vmem:[#allocation133_spill] sm:$0xff] %v21281_v42  ;;  %v1719_v42 = vsel %vm1716_vm3, %v20789_v57, %v20800_v11  ;;  %v1807_v57 = vsel %vm1802_vm4, %v20804_v14, %v20813_v20 }
 0x3ff   : > { %v21289_v15 = vpop.permute.xlu1 %2046 }
 0x400   : > { %24489 = vst [vmem:[#allocation137_spill] sm:$0xff] %v21289_v15  ;;  %v1754_v15 = vadd.f32 %v1725_v12, %v20653_v8  ;;  %v2061_v8 = vsel %vm2060_vm7, %v20992_v9, %v21000_v4 }
 0x401   : > { %v21285_v37 = vpop.permute.xlu0 %2316 }
 0x402   : > { %24487 = vst [vmem:[#allocation135_spill] sm:$0xff] %v21285_v37  ;;  %v1721_v37 = vsel %vm1716_vm3, %v20809_v16, %v20820_v22 }
 0x403   : > { %v21294_v13 = vpop.permute.xlu1 %2126  ;;  %v1748_v29 = vadd.f32 %v1721_v37, %v20643_v3  ;;  %v1811_v3 = vsel %vm1802_vm4, %v20905_v46, %v20823_v25  ;;  %v2147_v37 = vsel %vm2146_vm8, %v20979_v45, %v20987_v26  ;;  %v24515_v25 = vld [vmem:[#allocation57_spill] sm:$0xff] }
 0x404   : > { %24490 = vst [vmem:[#allocation138_spill] sm:$0xff] %v21294_v13  ;;  %v1840_v9 = vadd.f32 %v1811_v3, %v1754_v15  ;;  %v24533_v13 = vld [vmem:[#allocation54_spill] sm:$0xff] }
 0x407   : > { %v21320_v61 = vpop.permute.xlu1 %2138 }
 0x408   : > { %24492 = vst [vmem:[#allocation140_spill] sm:$0xff] %v21320_v61  ;;  %v1834_v61 = vadd.f32 %v1807_v57, %v1748_v29  ;;  %v24497_v57 = vld [vmem:[#allocation32_spill] sm:$0xff] }
 0x409   : > { %v21287_v52 = vpop.permute.xlu0 %2384 }
 0x40a   : > { %24488 = vst [vmem:[#allocation136_spill] sm:$0xff] %v21287_v52  ;;  %v1803_v52 = vsel %vm1802_vm4, %v20786_v54, %v20796_v59  ;;  %v1889_v54 = vsel %vm1888_vm5, %v20833_v30, %v20916_v5  ;;  %v1975_v30 = vsel %vm1974_vm6, %v20888_v31, %v20959_v43 }
 0x40b   : > { %v1828_v41 = vadd.f32 %v1803_v52, %v1742_v50  ;;  %v21346_v31 = vpop.permute.xlu1 %2206  ;;  %v24496_v50 = vld [vmem:[#allocation44_spill] sm:$0xff] }
 0x40c   : > { %24494 = vst [vmem:[#allocation142_spill] sm:$0xff] %v21346_v31 }
 0x40d   : > { %v21296_v2 = vpop.permute.xlu0 %2390 }
 0x40e   : > { %24491 = vst [vmem:[#allocation139_spill] sm:$0xff] %v21296_v2  ;;  %v1723_v2 = vsel %vm1716_vm3, %v20826_v28, %v20837_v34  ;;  %v1745_v28 = vadd.f32 %v1719_v42, %v20637_v63  ;;  %v1809_v63 = vsel %vm1802_vm4, %v20884_v24, %v20895_v33  ;;  %v1914_v42 = vadd.f32 %v1889_v54, %v1828_v41  ;;  %v24498_v54 = vld [vmem:[#allocation34_spill] sm:$0xff] }
 0x40f   : > { %v1751_v14 = vadd.f32 %v1723_v2, %v20647_v6  ;;  %v1891_v6 = vsel %vm1888_vm5, %v20841_v38, %v20925_v27  ;;  %v1897_v24 = vsel %vm1888_vm5, %v20870_v10, %v20879_v21  ;;  %v1895_v38 = vsel %vm1888_vm5, %v20860_v55, %v20946_v1  ;;  %v21374_v3 = vpop.permute.xlu1 %2212  ;;  %v24507_v21 = vld [vmem:[#allocation49_spill] sm:$0xff]  ;;  %v24529_v1 = vld [vmem:[#allocation67_spill] sm:$0xff] }
 0x410   : > { %v1831_v60 = vadd.f32 %v1805_v49, %v1745_v28  ;;  %v1893_v49 = vsel %vm1888_vm5, %v20850_v47, %v20937_v19  ;;  %v2000_v46 = vadd.f32 %v1975_v30, %v1914_v42  ;;  %v1977_v2 = vsel %vm1974_vm6, %v20968_v48, %v20898_v40  ;;  %v24499_v28 = vld [vmem:[#allocation33_spill] sm:$0xff]  ;;  %24502 = vst [vmem:[#allocation44_spill] sm:$0xff] %v21374_v3  ;;  %v24523_v3 = vld [vmem:[#allocation63_spill] sm:$0xff] }
 0x411   : > { %v1837_v12 = vadd.f32 %v1809_v63, %v1751_v14  ;;  %v1979_v47 = vsel %vm1974_vm6, %v24497_v57, %v24496_v50  ;;  %v1981_v55 = vsel %vm1974_vm6, %v24499_v28, %v24498_v54  ;;  %v1926_v41 = vadd.f32 %v1897_v24, %v1840_v9  ;;  %v24500_v30 = vld [vmem:[#allocation69_spill] sm:$0xff]  ;;  %v24501_v63 = vld [vmem:[#allocation52_spill] sm:$0xff]  ;;  %v24510_v9 = vld [vmem:[#allocation42_spill] sm:$0xff] }
 0x412   : > { %v1917_v10 = vadd.f32 %v1891_v6, %v1831_v60  ;;  %v2086_v29 = vadd.f32 %v2061_v8, %v2000_v46  ;;  %v1920_v15 = vadd.f32 %v1893_v49, %v1834_v61  ;;  %v2233_v48 = vsel %vm2232_vm9, %v24501_v63, %v24500_v30  ;;  %v24504_v60 = vld [vmem:[#allocation46_spill] sm:$0xff]  ;;  %v24505_v6 = vld [vmem:[#allocation35_spill] sm:$0xff]  ;;  %v24511_v28 = vld [vmem:[#allocation40_spill] sm:$0xff] }
 0x413   : > { %v21322_v16 = vpop.permute.xlu0 %2402  ;;  %v1923_v14 = vadd.f32 %v1895_v38, %v1837_v12  ;;  %v1983_v57 = vsel %vm1974_vm6, %v24505_v6, %v24504_v60  ;;  %v24508_v38 = vld [vmem:[#allocation79_spill] sm:$0xff]  ;;  %v24509_v46 = vld [vmem:[#allocation62_spill] sm:$0xff]  ;;  %v24513_v63 = vld [vmem:[#allocation53_spill] sm:$0xff] }
 0x414   : > { %24493 = vst [vmem:[#allocation141_spill] sm:$0xff] %v21322_v16  ;;  %v2003_v42 = vadd.f32 %v1977_v2, %v1917_v10  ;;  %v24506_v16 = vld [vmem:[#allocation51_spill] sm:$0xff]  ;;  %v2172_v24 = vadd.f32 %v2147_v37, %v2086_v29  ;;  %v2006_v61 = vadd.f32 %v1979_v47, %v1920_v15  ;;  %v2319_v12 = vsel %vm2318_vm10, %v24509_v46, %v24508_v38  ;;  %v24514_v60 = vld [vmem:[#allocation37_spill] sm:$0xff]  ;;  %v21399_v46 = vpop.permute.xlu1 %2230 }
 0x415   : > { %v2063_v8 = vsel %vm2060_vm7, %v24507_v21, %v24506_v16  ;;  %v2009_v49 = vadd.f32 %v1981_v55, %v1923_v14  ;;  %v2069_v2 = vsel %vm2060_vm7, %v24511_v28, %v24510_v9  ;;  %v24512_v10 = vld [vmem:[#allocation55_spill] sm:$0xff]  ;;  %v2067_v21 = vsel %vm2060_vm7, %v24515_v25, %v24514_v60  ;;  %v24516_v29 = vld [vmem:[#allocation89_spill] sm:$0xff]  ;;  %24518 = vst [vmem:[#allocation33_spill] sm:$0xff] %v21399_v46  ;;  %v24526_v60 = vld [vmem:[#allocation86_spill] sm:$0xff] }
 0x416   : > { %v2065_v6 = vsel %vm2060_vm7, %v24513_v63, %v24512_v10  ;;  %v2258_v37 = vadd.f32 %v2233_v48, %v2172_v24  ;;  %v2012_v47 = vadd.f32 %v1983_v57, %v1926_v41  ;;  %v2089_v55 = vadd.f32 %v2063_v8, %v2003_v42  ;;  %v24517_v15 = vld [vmem:[#allocation87_spill] sm:$0xff]  ;;  %v24520_v28 = vld [vmem:[#allocation61_spill] sm:$0xff]  ;;  %v24525_v41 = vld [vmem:[#allocation48_spill] sm:$0xff] }
 0x417   : > { %v2405_v14 = vsel %vm2404_vm11, %v24517_v15, %v24516_v29  ;;  %v24521_v9 = vld [vmem:[#allocation59_spill] sm:$0xff]  ;;  %v24524_v48 = vld [vmem:[#allocation65_spill] sm:$0xff]  ;;  %v2092_v24 = vadd.f32 %v2065_v6, %v2006_v61  ;;  %v2095_v15 = vadd.f32 %v2067_v21, %v2009_v49  ;;  %v24528_v10 = vld [vmem:[#allocation50_spill] sm:$0xff] }
 0x418   : > { %v2149_v63 = vsel %vm2146_vm8, %v24521_v9, %v24520_v28  ;;  %v24522_v54 = vld [vmem:[#allocation47_spill] sm:$0xff]  ;;  %v2153_v42 = vsel %vm2146_vm8, %v24525_v41, %v24524_v48  ;;  %v2344_v57 = vadd.f32 %v2319_v12, %v2258_v37  ;;  %v2098_v8 = vadd.f32 %v2069_v2, %v2012_v47  ;;  %v24531_v28 = vld [vmem:[#allocation56_spill] sm:$0xff]  ;;  %v24534_v6 = vld [vmem:[#allocation98_spill] sm:$0xff]  ;;  %v21427_v37 = vpop.permute.xlu1 %2292 }
 0x419   : > { %v21348_v52 = vpop.permute.xlu0 %2464  ;;  %v2151_v25 = vsel %vm2146_vm8, %v24523_v3, %v24522_v54  ;;  %v24527_v46 = vld [vmem:[#allocation95_spill] sm:$0xff]  ;;  %v2155_v9 = vsel %vm2146_vm8, %v24529_v1, %v24528_v10  ;;  %v2175_v2 = vadd.f32 %v2149_v63, %v2089_v55  ;;  %v2181_v49 = vadd.f32 %v2153_v42, %v2095_v15  ;;  %24535 = vst [vmem:[#allocation52_spill] sm:$0xff] %v21427_v37  ;;  %v24537_v1 = vld [vmem:[#allocation60_spill] sm:$0xff]  ;;  %v24539_v10 = vld [vmem:[#allocation77_spill] sm:$0xff] }
 0x41a   : > { %24495 = vst [vmem:[#allocation143_spill] sm:$0xff] %v21348_v52  ;;  %v24530_v52 = vld [vmem:[#allocation58_spill] sm:$0xff]  ;;  %v24532_v54 = vld [vmem:[#allocation71_spill] sm:$0xff]  ;;  %v2430_v12 = vadd.f32 %v2405_v14, %v2344_v57  ;;  %v2178_v61 = vadd.f32 %v2151_v25, %v2092_v24  ;;  %v2576_v21 = vsel %vm2575_vm12, %v24534_v6, %v21150_v23  ;;  %v1718_v55 = vsel %vm1716_vm3, %v20783_v51, %v21190_v62  ;;  %v24542_v24 = vld [vmem:[#allocation64_spill] sm:$0xff] }
 0x41b   : > { %v2237_v3 = vsel %vm2232_vm9, %v24531_v28, %v24530_v52  ;;  %v2235_v41 = vsel %vm2232_vm9, %v24533_v13, %v24532_v54  ;;  %v24540_v48 = vld [vmem:[#allocation75_spill] sm:$0xff]  ;;  %v2184_v63 = vadd.f32 %v2155_v9, %v2098_v8  ;;  %v24541_v57 = vld [vmem:[#allocation66_spill] sm:$0xff]  ;;  %v24546_v52 = vld [vmem:[#allocation81_spill] sm:$0xff]  ;;  %v1804_v51 = vsel %vm1802_vm4, %v20796_v59, %v21195_v56 }
 0x41c   : > { %v2241_v13 = vsel %vm2232_vm9, %v24540_v48, %v24539_v10  ;;  %v2264_v25 = vadd.f32 %v2237_v3, %v2178_v61  ;;  %v2261_v42 = vadd.f32 %v2235_v41, %v2175_v2  ;;  %v2321_v15 = vsel %vm2318_vm10, %v24542_v24, %v24541_v57  ;;  %v24543_v6 = vld [vmem:[#allocation70_spill] sm:$0xff]  ;;  %v24547_v41 = vld [vmem:[#allocation20_spill] sm:$0xff]  ;;  %v21456_v2 = vpop.permute.xlu1 %2304  ;;  %v24554_v59 = vld [vmem:[#allocation91_spill] sm:$0xff] }
 0x41d   : > { %v2270_v9 = vadd.f32 %v2241_v13, %v2184_v63  ;;  %v2662_v3 = vsel %vm2661_vm13, %v21174_v32, %v21180_v36  ;;  %24548 = vst [vmem:[#allocation51_spill] sm:$0xff] %v21456_v2  ;;  %v24549_v61 = vld [vmem:[#allocation72_spill] sm:$0xff]  ;;  %v24553_v10 = vld [vmem:[#allocation74_spill] sm:$0xff]  ;;  %v1890_v32 = vsel %vm1888_vm5, %v20916_v5, %v21234_v58  ;;  %v24556_v56 = vld [vmem:[#allocation93_spill] sm:$0xff] }
 0x41e   : > { %v24558_v62 = vld [vmem:[#allocation90_spill] sm:$0xff] }
 0x421   : > { %v21376_v45 = vpop.permute.xlu0 %2476 }
 0x422   : > { %24503 = vst [vmem:[#allocation32_spill] sm:$0xff] %v21376_v45 }
 0x425   : > { %v21401_v45 = vpop.permute.xlu0 %2482 }
 0x426   : > { %24519 = vst [vmem:[#allocation69_spill] sm:$0xff] %v21401_v45  ;;  %v2490_v45 = vsel %vm904_vm1, %v24527_v46, %v24526_v60  ;;  %v24538_v46 = vld [vmem:[#allocation73_spill] sm:$0xff] }
 0x427   : > { %v2239_v28 = vsel %vm2232_vm9, %v24538_v46, %v24537_v1  ;;  %v2515_v14 = vadd.f32 %v2490_v45, %v2430_v12  ;;  %v24545_v1 = vld [vmem:[#allocation83_spill] sm:$0xff]  ;;  %v1743_v12 = vadd.f32 %v1718_v55, %v24547_v41 }
 0x428   : > { %v2323_v48 = vsel %vm2318_vm10, %v24546_v52, %v24545_v1  ;;  %v2267_v8 = vadd.f32 %v2239_v28, %v2181_v49  ;;  %v24551_v52 = vld [vmem:[#allocation78_spill] sm:$0xff]  ;;  %v2407_v49 = vsel %vm2404_vm11, %v24554_v59, %v24553_v10  ;;  %v2347_v28 = vadd.f32 %v2321_v15, %v2261_v42 }
 0x429   : > { %v21429_v47 = vpop.permute.xlu0 %2488  ;;  %v2601_v45 = vadd.f32 %v2576_v21, %v2515_v14  ;;  %v24552_v21 = vld [vmem:[#allocation76_spill] sm:$0xff]  ;;  %v2350_v55 = vadd.f32 %v2323_v48, %v2264_v25  ;;  %v1829_v63 = vadd.f32 %v1804_v51, %v1743_v12  ;;  %v1976_v59 = vsel %vm1974_vm6, %v20959_v43, %v21265_v39  ;;  %v24562_v48 = vld [vmem:[#allocation97_spill] sm:$0xff]  ;;  %v24564_v12 = vld [vmem:[#allocation94_spill] sm:$0xff] }
 0x42a   : > { %24536 = vst [vmem:[#allocation35_spill] sm:$0xff] %v21429_v47  ;;  %v24544_v47 = vld [vmem:[#allocation68_spill] sm:$0xff]  ;;  %v2409_v14 = vsel %vm2404_vm11, %v24552_v21, %v24551_v52  ;;  %v24559_v21 = vld [vmem:[#allocation99_spill] sm:$0xff]  ;;  %v2433_v25 = vadd.f32 %v2407_v49, %v2347_v28  ;;  %v2062_v43 = vsel %vm2060_vm7, %v21000_v4, %v21279_v0  ;;  %v24568_v28 = vld [vmem:[#allocation25_spill] sm:$0xff]  ;;  %v2148_v4 = vsel %vm2146_vm8, %v20987_v26, %v21259_v35 }
 0x42b   : > { %v2325_v46 = vsel %vm2318_vm10, %v24544_v47, %v24543_v6  ;;  %v24550_v47 = vld [vmem:[#allocation85_spill] sm:$0xff]  ;;  %v2494_v6 = vsel %vm904_vm1, %v24559_v21, %v24558_v62  ;;  %v2687_v52 = vadd.f32 %v2662_v3, %v2601_v45  ;;  %v2436_v42 = vadd.f32 %v2409_v14, %v2350_v55  ;;  %v24563_v51 = vld [vmem:[#allocation88_spill] sm:$0xff]  ;;  %v24567_v14 = vld [vmem:[#allocation102_spill] sm:$0xff] }
 0x42c   : > { %v2327_v24 = vsel %vm2318_vm10, %v24550_v47, %v24549_v61  ;;  %v2353_v13 = vadd.f32 %v2325_v46, %v2267_v8  ;;  %v24557_v47 = vld [vmem:[#allocation80_spill] sm:$0xff]  ;;  %v1915_v15 = vadd.f32 %v1890_v32, %v1829_v63  ;;  %v21483_v46 = vpop.permute.xlu1 %2378  ;;  %v2492_v8 = vsel %vm904_vm1, %v24563_v51, %v24562_v48  ;;  %v24569_v63 = vld [vmem:[#allocation101_spill] sm:$0xff] }
 0x42d   : > { %v21470_v41 = vpop.permute.xlu0 %2549  ;;  %v2411_v61 = vsel %vm2404_vm11, %v24557_v47, %v24556_v56  ;;  %v21481_v5 = vadd.f32 %v2327_v24, %v2270_v9  ;;  %24561 = vst [vmem:[#allocation62_spill] sm:$0xff] %v21483_v46  ;;  %v24565_v47 = vld [vmem:[#allocation92_spill] sm:$0xff]  ;;  %v1720_v45 = vsel %vm1716_vm3, %v20800_v11, %v21188_v53  ;;  %v2521_v3 = vadd.f32 %v2494_v6, %v2436_v42 }
 0x42e   : > { %24555 = vst [vmem:[#allocation49_spill] sm:$0xff] %v21470_v41  ;;  %v2496_v21 = vsel %vm904_vm1, %v24565_v47, %v24564_v12  ;;  %v2439_v9 = vadd.f32 %v2411_v61, %v2353_v13  ;;  %v24566_v24 = vld [vmem:[#allocation104_spill] sm:$0xff]  ;;  %v2001_v32 = vadd.f32 %v1976_v59, %v1915_v15  ;;  %v2732_v55 = vadd.f32 %v24568_v28, %v2687_v52  ;;  %v24571_v13 = vld [vmem:[#allocation21_spill] sm:$0xff] }
 0x42f   : > { %24560 = vst [vmem:[#allocation79_spill] sm:$0xff] %v21481_v5  ;;  %v2580_v49 = vsel %vm2575_vm12, %v24567_v14, %v24566_v24  ;;  %v24570_v51 = vld [vmem:[#allocation100_spill] sm:$0xff]  ;;  %v1806_v11 = vsel %vm1802_vm4, %v20876_v17, %v21220_v18  ;;  %v2518_v6 = vadd.f32 %v2492_v8, %v2433_v25  ;;  %v1746_v42 = vadd.f32 %v1720_v45, %v24571_v13  ;;  %v24573_v5 = vld [vmem:[#allocation123_spill] sm:$0xff]  ;;  %v24575_v45 = vld [vmem:[#allocation105_spill] sm:$0xff] }
 0x430   : > { %v2578_v47 = vsel %vm2575_vm12, %v24570_v51, %v24569_v63  ;;  %v21510_v61 = vadd.f32 %v2496_v21, %v2439_v9  ;;  %v2087_v59 = vadd.f32 %v2062_v43, %v2001_v32  ;;  %v21513_v15 = vpop.permute.xlu1 %2396  ;;  %v21517_v14 = vadd.f32 %v2580_v49, %v2521_v3  ;;  %v24572_v51 = vld [vmem:[#allocation112_spill] sm:$0xff]  ;;  %v24574_v21 = vld [vmem:[#allocation107_spill] sm:$0xff]  ;;  %v24576_v32 = vld [vmem:[#allocation114_spill] sm:$0xff] }
 0x431   : > { %v21515_v52 = vpop.permute.xlu0 %2555  ;;  %v1722_v17 = vsel %vm1716_vm3, %v20820_v22, %v24572_v51  ;;  %v1892_v26 = vsel %vm1888_vm5, %v20925_v27, %v24573_v5  ;;  %v2234_v25 = vsel %vm2232_vm9, %v24500_v30, %v21346_v31  ;;  %v2604_v8 = vadd.f32 %v2578_v47, %v2518_v6  ;;  %v24577_v13 = vld [vmem:[#allocation119_spill] sm:$0xff]  ;;  %v24578_v47 = vld [vmem:[#allocation22_spill] sm:$0xff] }
 0x432   : > { %v2664_v43 = vsel %vm2661_vm13, %v24575_v45, %v24574_v21  ;;  %v1832_v9 = vadd.f32 %v1806_v11, %v1746_v42  ;;  %v2173_v3 = vadd.f32 %v2148_v4, %v2087_v59  ;;  %v21531_v49 = vmul.f32 %v2732_v55, %v2732_v55  ;;  %v24579_v31 = vld [vmem:[#allocation115_spill] sm:$0xff]  ;;  %v24582_v45 = vld [vmem:[#allocation125_spill] sm:$0xff] }
 0x433   : > { %v1808_v22 = vsel %vm1802_vm4, %v20813_v20, %v24576_v32  ;;  %v1978_v27 = vsel %vm1974_vm6, %v20898_v40, %v24577_v13  ;;  %v2320_v30 = vsel %vm2318_vm10, %v24508_v38, %v21427_v37  ;;  %v1749_v6 = vadd.f32 %v1722_v17, %v24578_v47  ;;  %v24585_v47 = vld [vmem:[#allocation138_spill] sm:$0xff]  ;;  %v24586_v37 = vld [vmem:[#allocation61_spill] sm:$0xff] }
 0x434   : > { %v1724_v11 = vsel %vm1716_vm3, %v20837_v34, %v24579_v31  ;;  %v1918_v55 = vadd.f32 %v1892_v26, %v1832_v9  ;;  %v2259_v4 = vadd.f32 %v2234_v25, %v2173_v3  ;;  %v21546_v42 = vpop.permute.xlu1 %2470  ;;  %v2690_v20 = vadd.f32 %v2664_v43, %v2604_v8  ;;  %v24583_v26 = vld [vmem:[#allocation120_spill] sm:$0xff]  ;;  %v24584_v8 = vld [vmem:[#allocation23_spill] sm:$0xff] }
 0x435   : > { %24580 = vst [vmem:[#allocation40_spill] sm:$0xff] %v21546_v42  ;;  %v1894_v40 = vsel %vm1888_vm5, %v20937_v19, %v24582_v45  ;;  %v2064_v38 = vsel %vm2060_vm7, %v24506_v16, %v21283_v44  ;;  %v2406_v17 = vsel %vm2404_vm11, %v24516_v29, %v21483_v46  ;;  %v1835_v34 = vadd.f32 %v1808_v22, %v1749_v6  ;;  %v24587_v44 = vld [vmem:[#allocation143_spill] sm:$0xff]  ;;  %v24588_v6 = vld [vmem:[#allocation126_spill] sm:$0xff]  ;;  %v24589_v46 = vld [vmem:[#allocation36_spill] sm:$0xff] }
 0x436   : > { %v1810_v25 = vsel %vm1802_vm4, %v20895_v33, %v24583_v26  ;;  %v2004_v9 = vadd.f32 %v1978_v27, %v1918_v55  ;;  %v2345_v3 = vadd.f32 %v2320_v30, %v2259_v4  ;;  %v1752_v43 = vadd.f32 %v1724_v11, %v24584_v8  ;;  %v24592_v4 = vld [vmem:[#allocation137_spill] sm:$0xff]  ;;  %v24593_v8 = vld [vmem:[#allocation55_spill] sm:$0xff] }
 0x437   : > { %v1980_v19 = vsel %vm1974_vm6, %v24496_v50, %v21269_v7  ;;  %v2150_v16 = vsel %vm2146_vm8, %v24586_v37, %v24585_v47  ;;  %v2491_v29 = vsel %vm904_vm1, %v24526_v60, %v24587_v44  ;;  %v1921_v22 = vadd.f32 %v1894_v40, %v1835_v34  ;;  %v24594_v47 = vld [vmem:[#allocation44_spill] sm:$0xff] }
 0x438   : > { %v1896_v33 = vsel %vm1888_vm5, %v24589_v46, %v24588_v6  ;;  %v2090_v27 = vadd.f32 %v2064_v38, %v2004_v9  ;;  %v2431_v30 = vadd.f32 %v2406_v17, %v2345_v3  ;;  %v21575_v11 = vpop.permute.xlu1 %2561  ;;  %v1838_v50 = vadd.f32 %v1810_v25, %v1752_v43  ;;  %v24595_v38 = vld [vmem:[#allocation121_spill] sm:$0xff]  ;;  %v24596_v17 = vld [vmem:[#allocation34_spill] sm:$0xff]  ;;  %v24597_v25 = vld [vmem:[#allocation28_spill] sm:$0xff] }
 0x439   : > { %v21548_v59 = vpop.permute.xlu0 %2567  ;;  %24590 = vst [vmem:[#allocation57_spill] sm:$0xff] %v21575_v11  ;;  %v2066_v37 = vsel %vm2060_vm7, %v24593_v8, %v24592_v4  ;;  %v2236_v60 = vsel %vm2232_vm9, %v24532_v54, %v24594_v47  ;;  %v2577_v40 = vsel %vm2575_vm12, %v21150_v23, %v21470_v41  ;;  %v2007_v46 = vadd.f32 %v1980_v19, %v1921_v22  ;;  %v24598_v8 = vld [vmem:[#allocation127_spill] sm:$0xff]  ;;  %v24600_v54 = vld [vmem:[#allocation132_spill] sm:$0xff]  ;;  %v24601_v19 = vld [vmem:[#allocation122_spill] sm:$0xff] }
 0x43a   : > { %24581 = vst [vmem:[#allocation53_spill] sm:$0xff] %v21548_v59  ;;  %v1982_v34 = vsel %vm1974_vm6, %v24596_v17, %v24595_v38  ;;  %v2176_v9 = vadd.f32 %v2150_v16, %v2090_v27  ;;  %v2516_v3 = vadd.f32 %v2491_v29, %v2431_v30  ;;  %v21592_v43 = vadd.f32 %v24597_v25, %v2690_v20  ;;  %v24602_v22 = vld [vmem:[#allocation37_spill] sm:$0xff]  ;;  %v24605_v30 = vld [vmem:[#allocation58_spill] sm:$0xff] }
 0x43b   : > { %v1924_v44 = vadd.f32 %v1896_v33, %v1838_v50  ;;  %v2322_v47 = vsel %vm2318_vm10, %v24541_v57, %v24600_v54  ;;  %v2093_v23 = vadd.f32 %v2066_v37, %v2007_v46  ;;  %v2068_v41 = vsel %vm2060_vm7, %v24602_v22, %v24601_v19  ;;  %v24604_v27 = vld [vmem:[#allocation129_spill] sm:$0xff]  ;;  %v24606_v50 = vld [vmem:[#allocation136_spill] sm:$0xff] }
 0x43c   : > { %v2262_v17 = vadd.f32 %v2236_v60, %v2176_v9  ;;  %v2602_v16 = vadd.f32 %v2577_v40, %v2516_v3  ;;  %v2408_v57 = vsel %vm2404_vm11, %v24553_v10, %v24606_v50  ;;  %v24607_v60 = vld [vmem:[#allocation140_spill] sm:$0xff]  ;;  %v24608_v40 = vld [vmem:[#allocation65_spill] sm:$0xff]  ;;  %v2324_v10 = vsel %vm2318_vm10, %v24545_v1, %v21456_v2  ;;  %v24612_v50 = vld [vmem:[#allocation30_spill] sm:$0xff] }
 0x43d   : > { %v21577_v55 = vpop.permute.xlu0 %2484  ;;  %v2010_v33 = vadd.f32 %v1982_v34, %v1924_v44  ;;  %v2154_v9 = vsel %vm2146_vm8, %v24608_v40, %v24607_v60  ;;  %v24609_v44 = vld [vmem:[#allocation108_spill] sm:$0xff]  ;;  %v24610_v34 = vld [vmem:[#allocation110_spill] sm:$0xff]  ;;  %v24613_v40 = vld [vmem:[#allocation131_spill] sm:$0xff] }
 0x43e   : > { %24591 = vst [vmem:[#allocation89_spill] sm:$0xff] %v21577_v55  ;;  %v24599_v55 = vld [vmem:[#allocation47_spill] sm:$0xff]  ;;  %v2348_v3 = vadd.f32 %v2322_v47, %v2262_v17  ;;  %v2666_v19 = vsel %vm2661_vm13, %v24610_v34, %v24609_v44  ;;  %v24614_v34 = vld [vmem:[#allocation60_spill] sm:$0xff]  ;;  %v24616_v60 = vld [vmem:[#allocation78_spill] sm:$0xff] }
 0x43f   : > { %v2152_v4 = vsel %vm2146_vm8, %v24599_v55, %v24598_v8  ;;  %v2238_v55 = vsel %vm2232_vm9, %v24605_v30, %v24604_v27  ;;  %v2096_v30 = vadd.f32 %v2068_v41, %v2010_v33  ;;  %v2240_v1 = vsel %vm2232_vm9, %v24614_v34, %v24613_v40  ;;  %v24615_v2 = vld [vmem:[#allocation139_spill] sm:$0xff]  ;;  %v24620_v40 = vld [vmem:[#allocation32_spill] sm:$0xff] }
 0x440   : > { %v2179_v46 = vadd.f32 %v2152_v4, %v2093_v23  ;;  %v2794_v4 = vld [vmem:[#allocation4 + $0x100] sm:$0xff]  ;;  %v2795_v23 = vld [vmem:[#allocation4 + $0x108] sm:$0xff]  ;;  %v2797_v27 = vld [vmem:[#allocation4 + $0x118] sm:$0xff] }
 0x441   : > { %v21603_v29 = vpop.permute.xlu0 %2571  ;;  %v21605_v20 = vpop.permute.xlu1 %2635  ;;  %v2182_v33 = vadd.f32 %v2154_v9, %v2096_v30  ;;  %v24618_v30 = vld [vmem:[#allocation133_spill] sm:$0xff]  ;;  %v24621_v54 = vld [vmem:[#allocation116_spill] sm:$0xff] }
 0x442   : > { %24603 = vst [vmem:[#allocation87_spill] sm:$0xff] %v21605_v20  ;;  %v2663_v37 = vsel %vm2661_vm13, %v21180_v36, %v21605_v20  ;;  %v2493_v36 = vsel %vm904_vm1, %v24562_v48, %v21546_v42  ;;  %v24611_v20 = vld [vmem:[#allocation117_spill] sm:$0xff]  ;;  %v2265_v17 = vadd.f32 %v2238_v55, %v2179_v46  ;;  %v2410_v48 = vsel %vm2404_vm11, %v24616_v60, %v24615_v2  ;;  %v2796_v2 = vld [vmem:[#allocation4 + $0x110] sm:$0xff] }
 0x443   : > { %v2688_v22 = vadd.f32 %v2663_v37, %v2602_v16  ;;  %v1726_v47 = vsel %vm1716_vm3, %v24612_v50, %v24611_v20  ;;  %v2434_v16 = vadd.f32 %v2408_v57, %v2348_v3  ;;  %v2579_v42 = vsel %vm2575_vm12, %v24569_v63, %v21515_v52  ;;  %v24622_v63 = vld [vmem:[#allocation29_spill] sm:$0xff] }
 0x444   : > { %v2351_v50 = vadd.f32 %v2324_v10, %v2265_v17  ;;  %v18618_v46 = vpack.c.bf16 %v2795_v23, %v2794_v4  ;;  %v2693_v3 = vadd.f32 %v2666_v19, %v21517_v14  ;;  %v2495_v60 = vsel %vm904_vm1, %v24558_v62, %v24620_v40  ;;  %v24623_v19 = vld [vmem:[#allocation118_spill] sm:$0xff] }
 0x445   : > { %v21631_v37 = vpop.permute.xlu0 %2569  ;;  %v2733_v41 = vadd.f32 %v24568_v28, %v2688_v22  ;;  %v2519_v55 = vadd.f32 %v2493_v36, %v2434_v16  ;;  %v24617_v22 = vld [vmem:[#allocation24_spill] sm:$0xff]  ;;  %v24619_v28 = vld [vmem:[#allocation70_spill] sm:$0xff]  ;;  %v1812_v10 = vsel %vm1802_vm4, %v24622_v63, %v24621_v54  ;;  %v2268_v36 = vadd.f32 %v2240_v1, %v2182_v33  ;;  %v24628_v63 = vld [vmem:[#allocation69_spill] sm:$0xff] }
 0x446   : > { %v1755_v9 = vadd.f32 %v1726_v47, %v24617_v22  ;;  %v2326_v34 = vsel %vm2318_vm10, %v24619_v28, %v24618_v30  ;;  %v2437_v4 = vadd.f32 %v2410_v48, %v2351_v50  ;;  %v24624_v47 = vld [vmem:[#allocation31_spill] sm:$0xff]  ;;  %v2412_v62 = vsel %vm2404_vm11, %v24556_v56, %v21513_v15  ;;  %v24625_v48 = vld [vmem:[#allocation26_spill] sm:$0xff] }
 0x447   : > { %v2748_v57 = vmul.f32 %v2733_v41, %v2733_v41  ;;  %v2605_v23 = vadd.f32 %v2579_v42, %v2519_v55  ;;  %v1898_v28 = vsel %vm1888_vm5, %v24624_v47, %v24623_v19  ;;  %v2581_v17 = vsel %vm2575_vm12, %v24566_v24, %v21575_v11  ;;  %v24626_v55 = vld [vmem:[#allocation38_spill] sm:$0xff] }
 0x448   : > { %v2354_v42 = vadd.f32 %v2326_v34, %v2268_v36  ;;  %v2522_v41 = vadd.f32 %v2495_v60, %v2437_v4  ;;  %v18621_v1 = vpack.c.bf16 %v2797_v27, %v2796_v2  ;;  %v2738_v50 = vadd.f32 %v24625_v48, %v2693_v3  ;;  %v2799_v11 = vld [vmem:[#allocation4 + $0x128] sm:$0xff] }
 0x449   : > { %2884 = vmatprep.mubr.f32.mxu0 %v2748_v57  ;;  %v21654_v14 = vpop.permute.xlu0 %2641  ;;  %v24627_v57 = vld [vmem:[#allocation111_spill] sm:$0xff]  ;;  %v1841_v22 = vadd.f32 %v1812_v10, %v1755_v9  ;;  %v2497_v24 = vsel %vm904_vm1, %v24564_v12, %v24628_v63  ;;  %v24629_v47 = vmov 0.0|0.0   ;;  %v24631_v34 = vld [vmem:[#allocation46_spill] sm:$0xff]  ;;  %v24632_v9 = vld [vmem:[#allocation124_spill] sm:$0xff] }
 0x44a   : > { %v2665_v16 = vsel %vm2661_vm13, %v24574_v21, %v21654_v14  ;;  %2885 = vmatmul.mubr.f32.vlgmr.msra.gmra.mrb[8].mxu0 %v21531_v49  ;;  %v1744_v56 = vadd.f32 %v24627_v57, %v24626_v55  ;;  %v2798_v21 = vld [vmem:[#allocation4 + $0x120] sm:$0xff]  ;;  %v24630_v49 = vld [vmem:[#allocation130_spill] sm:$0xff]  ;;  %v2608_v2 = vadd.f32 %v2581_v17, %v2522_v41  ;;  %v24634_v12 = vld [vmem:[#allocation103_spill] sm:$0xff] }
 0x44b   : > { %v2691_v33 = vadd.f32 %v2665_v16, %v2605_v23  ;;  %18619 = vmatpush3.bf16.msra.mxu0 %v18618_v46  ;;  %v1984_v60 = vsel %vm1974_vm6, %v24631_v34, %v24630_v49  ;;  %v2440_v46 = vadd.f32 %v2412_v62, %v2354_v42  ;;  %v1927_v36 = vadd.f32 %v1898_v28, %v1841_v22  ;;  %v24633_v10 = vld [vmem:[#allocation42_spill] sm:$0xff]  ;;  %v24636_v57 = vld [vmem:[#allocation113_spill] sm:$0xff] }
 0x44c   : > { %18620 = vmatprep.subr.bf16.mxu0 %v24629_v47  ;;  %v2070_v4 = vsel %vm2060_vm7, %v24633_v10, %v24632_v9  ;;  %v2583_v23 = vsel %vm2575_vm12, %v24634_v12, %v21548_v59  ;;  %v18624_v42 = vpack.c.bf16 %v2799_v11, %v2798_v21  ;;  %v24635_v41 = vld [vmem:[#allocation106_spill] sm:$0xff]  ;;  %v1830_v22 = vadd.f32 %v24636_v57, %v1744_v56  ;;  %v2801_v59 = vld [vmem:[#allocation4 + $0x138] sm:$0xff]  ;;  %v24643_v57 = vld [vmem:[#allocation41_spill] sm:$0xff] }
 0x44d   : > { %v21679_v27 = vpop.permute.xlu0 %2647  ;;  %v2736_v3 = vadd.f32 %v24597_v25, %v2691_v33  ;;  %v2525_v55 = vadd.f32 %v2497_v24, %v2440_v46  ;;  %v2582_v28 = vsel %vm2575_vm12, %v24635_v41, %v24634_v12  ;;  %v2750_v33 = vmul.f32 %v21592_v43, %v21592_v43  ;;  %v2800_v10 = vld [vmem:[#allocation4 + $0x130] sm:$0xff]  ;;  %v24637_v24 = vld [vmem:[#allocation128_spill] sm:$0xff] }
 0x44e   : > { %v2667_v16 = vsel %vm2661_vm13, %v24609_v44, %v21679_v27  ;;  %v2013_v34 = vadd.f32 %v1984_v60, %v1927_v36  ;;  %v2753_v44 = vmul.f32 %v2738_v50, %v2738_v50  ;;  %v24638_v46 = vld [vmem:[#allocation50_spill] sm:$0xff]  ;;  %v1916_v56 = vadd.f32 %v21234_v58, %v1830_v22  ;;  %v24640_v36 = vld [vmem:[#allocation109_spill] sm:$0xff] }
 0x44f   : > { %v2694_v62 = vadd.f32 %v2667_v16, %v2608_v2  ;;  %v2751_v17 = vmul.f32 %v2736_v3, %v2736_v3  ;;  %18622 = vmatpush3.bf16.msra.mxu0 %v18621_v1  ;;  %v2156_v1 = vsel %vm2146_vm8, %v24638_v46, %v24637_v24  ;;  %v2611_v11 = vadd.f32 %v2583_v23, %v2525_v55  ;;  %v24639_v3 = vld [vmem:[#allocation39_spill] sm:$0xff]  ;;  %v24641_v16 = vld [vmem:[#allocation33_spill] sm:$0xff]  ;;  %v24644_v46 = vld [vmem:[#allocation84_spill] sm:$0xff] }
 0x450   : > { %18623 = vmatprep.subr.bf16.mxu0 %v24629_v47  ;;  %v1747_v43 = vadd.f32 %v21188_v53, %v24639_v3  ;;  %v2099_v60 = vadd.f32 %v2070_v4, %v2013_v34  ;;  %v24642_v23 = vld [vmem:[#allocation77_spill] sm:$0xff]  ;;  %v1750_v53 = vadd.f32 %v24572_v51, %v24643_v57  ;;  %v2002_v4 = vadd.f32 %v21265_v39, %v1916_v56  ;;  %v24645_v3 = vld [vmem:[#allocation82_spill] sm:$0xff]  ;;  %v24648_v51 = vld [vmem:[#allocation27_spill] sm:$0xff] }
 0x451   : > { %2889 = vmatprep.mubr.f32.mxu0 %v2751_v17  ;;  %v21701_v21 = vpop.permute.xlu0 %2653  ;;  %v2739_v2 = vadd.f32 %v24625_v48, %v2694_v62  ;;  %v2242_v55 = vsel %vm2232_vm9, %v24642_v23, %v24641_v16  ;;  %v18627_v62 = vpack.c.bf16 %v2801_v59, %v2800_v10  ;;  %v2802_v34 = vld [vmem:[#allocation4 + $0x140] sm:$0xff]  ;;  %v2413_v23 = vsel %vm2404_vm11, %v24645_v3, %v24644_v46 }
 0x452   : > { %v2669_v50 = vsel %vm2661_vm13, %v24640_v36, %v21701_v21  ;;  %v21710_v12 = vpop.permute.xlu1 %2729  ;;  %2890 = vmatmul.mubr.f32.gmra.mrb[10].mxu0 %v2750_v33  ;;  %v1833_v58 = vadd.f32 %v21220_v18, %v1747_v43  ;;  %v2185_v22 = vadd.f32 %v2156_v1, %v2099_v60  ;;  %v2803_v33 = vld [vmem:[#allocation4 + $0x148] sm:$0xff]  ;;  %v24647_v59 = vld [vmem:[#allocation72_spill] sm:$0xff]  ;;  %v1836_v39 = vadd.f32 %v24576_v32, %v1750_v53 }
 0x453   : > { %v2697_v17 = vadd.f32 %v2669_v50, %v2611_v11  ;;  %v2754_v41 = vmul.f32 %v2739_v2, %v2739_v2  ;;  %18625 = vmatpush3.bf16.msra.mxu0 %v18624_v42  ;;  %v2610_v11 = vadd.f32 %v2582_v28, %v21510_v61  ;;  %v24646_v42 = vld [vmem:[#allocation135_spill] sm:$0xff]  ;;  %v2088_v2 = vadd.f32 %v21279_v0, %v2002_v4  ;;  %v24649_v60 = vld [vmem:[#allocation141_spill] sm:$0xff]  ;;  %v24653_v4 = vld [vmem:[#allocation96_spill] sm:$0xff] }
 0x454   : > { %18626 = vmatprep.subr.bf16.mxu0 %v24629_v47  ;;  %v2328_v10 = vsel %vm2318_vm10, %v24647_v59, %v24646_v42  ;;  %v1919_v1 = vadd.f32 %v24573_v5, %v1833_v58  ;;  %v2271_v43 = vadd.f32 %v2242_v55, %v2185_v22  ;;  %v2414_v61 = vsel %vm2404_vm11, %v24644_v46, %v24649_v60  ;;  %v24650_v0 = vld [vmem:[#allocation43_spill] sm:$0xff]  ;;  %v24651_v55 = vld [vmem:[#allocation45_spill] sm:$0xff]  ;;  %v24656_v59 = vld [vmem:[#allocation138_spill] sm:$0xff] }
 0x455   : > { %2894 = vmatprep.mubr.f32.mxu0 %v2754_v41  ;;  %v2742_v18 = vadd.f32 %v24648_v51, %v2697_v17  ;;  %v18630_v41 = vpack.c.bf16 %v2803_v33, %v2802_v34  ;;  %v2174_v32 = vadd.f32 %v21259_v35, %v2088_v2  ;;  %v1756_v53 = vadd.f32 %v24611_v20, %v24651_v55  ;;  %v24655_v35 = vld [vmem:[#allocation142_spill] sm:$0xff] }
 0x456   : > { %v2650_v56 = vpop.permute.xlu1 %2649  ;;  %2895 = vmatmul.mubr.f32.gmra.mrb[12].mxu0 %v2753_v44  ;;  %v2005_v17 = vadd.f32 %v24577_v13, %v1919_v1  ;;  %v2357_v5 = vadd.f32 %v2328_v10, %v2271_v43  ;;  %v1753_v44 = vadd.f32 %v24579_v31, %v24650_v0  ;;  %v1922_v58 = vadd.f32 %v24582_v45, %v1836_v39  ;;  %v24654_v13 = vld [vmem:[#allocation134_spill] sm:$0xff] }
 0x457   : > { %v2668_v28 = vsel %vm2661_vm13, %v2650_v56, %v24640_v36  ;;  %v2757_v50 = vmul.f32 %v2742_v18, %v2742_v18  ;;  %18628 = vmatpush3.bf16.msra.mxu0 %v18627_v62  ;;  %v24652_v36 = vld [vmem:[#allocation35_spill] sm:$0xff]  ;;  %v2260_v34 = vadd.f32 %v24655_v35, %v2174_v32  ;;  %v1842_v20 = vadd.f32 %v24621_v54, %v1756_v53  ;;  %v24657_v18 = vld [vmem:[#allocation52_spill] sm:$0xff]  ;;  %v24660_v54 = vld [vmem:[#allocation137_spill] sm:$0xff] }
 0x458   : > { %v2696_v57 = vadd.f32 %v2668_v28, %v2610_v11  ;;  %18629 = vmatprep.subr.bf16.mxu0 %v24629_v47  ;;  %v2499_v62 = vsel %vm904_vm1, %v24653_v4, %v24652_v36  ;;  %v2091_v22 = vadd.f32 %v24654_v13, %v2005_v17  ;;  %v2443_v33 = vadd.f32 %v2414_v61, %v2357_v5  ;;  %v24659_v56 = vld [vmem:[#allocation79_spill] sm:$0xff]  ;;  %v24662_v17 = vld [vmem:[#allocation44_spill] sm:$0xff]  ;;  %v24663_v5 = vld [vmem:[#allocation62_spill] sm:$0xff] }
 0x459   : > { %2899 = vmatprep.mubr.f32.mxu0 %v2757_v50  ;;  %v1839_v31 = vadd.f32 %v24583_v26, %v1753_v44  ;;  %v2008_v45 = vadd.f32 %v21269_v7, %v1922_v58  ;;  %v2346_v39 = vadd.f32 %v24657_v18, %v2260_v34  ;;  %v24658_v43 = vmov 0.0   ;;  %v24661_v7 = vld [vmem:[#allocation89_spill] sm:$0xff]  ;;  %v2660_v44 = vpop.permute.xlu0 %2659  ;;  %v24670_v18 = vld [vmem:[#allocation140_spill] sm:$0xff] }
 0x45a   : > { %v2741_v46 = vadd.f32 %v24648_v51, %v2696_v57  ;;  %v21750_v3 = vpop.permute.xlu1 %2573  ;;  %v2177_v10 = vadd.f32 %v24656_v59, %v2091_v22  ;;  %v2528_v1 = vadd.f32 %v2499_v62, %v2443_v33  ;;  %v2442_v61 = vadd.f32 %v2413_v23, %v24659_v56  ;;  %v24665_v62 = vld [vmem:[#allocation143_spill] sm:$0xff]  ;;  %v24666_v33 = vld [vmem:[#allocation122_spill] sm:$0xff]  ;;  %v24672_v56 = vld [vmem:[#allocation40_spill] sm:$0xff] }
 0x45b   : > { %v2585_v11 = vsel %vm2575_vm12, %v21603_v29, %v21750_v3  ;;  %18631 = vmatpush3.bf16.msra.mxu0 %v18630_v41  ;;  %v1925_v26 = vadd.f32 %v24588_v6, %v1839_v31  ;;  %v2094_v28 = vadd.f32 %v24660_v54, %v2008_v45  ;;  %v2498_v50 = vsel %vm904_vm1, %v24661_v7, %v24653_v4  ;;  %v24664_v4 = vld [vmem:[#allocation132_spill] sm:$0xff]  ;;  %v24667_v31 = vld [vmem:[#allocation129_spill] sm:$0xff] }
 0x45c   : > { %v2756_v2 = vmul.f32 %v2741_v46, %v2741_v46  ;;  %16738 = vmatprep.subr.bf16.mxu0 %v24658_v43  ;;  %v1928_v41 = vadd.f32 %v24623_v19, %v1842_v20  ;;  %v2263_v32 = vadd.f32 %v24662_v17, %v2177_v10  ;;  %v2432_v57 = vadd.f32 %v24663_v5, %v2346_v39  ;;  %v24668_v20 = vld [vmem:[#allocation136_spill] sm:$0xff]  ;;  %v24669_v45 = vld [vmem:[#allocation49_spill] sm:$0xff] }
 0x45d   : > { %v2614_v0 = vadd.f32 %v2585_v11, %v2528_v1  ;;  %v2011_v23 = vadd.f32 %v24595_v38, %v1925_v26  ;;  %v2180_v6 = vadd.f32 %v24598_v8, %v2094_v28  ;;  %v2584_v53 = vsel %vm2575_vm12, %v21631_v37, %v21603_v29  ;;  %v24671_v1 = vld [vmem:[#allocation51_spill] sm:$0xff] }
 0x45e   : > { %v2658_v55 = vpop.permute.xlu1 %2657  ;;  %2900 = vmatmul.mubr.f32.gmra.mrb[14].mxu0 %v2756_v2  ;;  %v2349_v19 = vadd.f32 %v24664_v4, %v2263_v32  ;;  %v2517_v13 = vadd.f32 %v24665_v62, %v2432_v57  ;;  %v2527_v22 = vadd.f32 %v2498_v50, %v2442_v61  ;;  %v2014_v34 = vadd.f32 %v24630_v49, %v1928_v41  ;;  %v24673_v26 = vld [vmem:[#allocation87_spill] sm:$0xff]  ;;  %v24677_v62 = vld [vmem:[#allocation57_spill] sm:$0xff] }
 0x45f   : > { %v2671_v58 = vsel %vm2661_vm13, %v2658_v55, %v2660_v44  ;;  %v2097_v46 = vadd.f32 %v24666_v33, %v2011_v23  ;;  %v2266_v38 = vadd.f32 %v24667_v31, %v2180_v6  ;;  %v24674_v41 = vld [vmem:[#allocation131_spill] sm:$0xff]  ;;  %v24676_v6 = vld [vmem:[#allocation25_spill] sm:$0xff] }
 0x460   : > { %v2700_v35 = vadd.f32 %v2671_v58, %v2614_v0  ;;  %v2435_v8 = vadd.f32 %v24668_v20, %v2349_v19  ;;  %v2603_v11 = vadd.f32 %v24669_v45, %v2517_v13  ;;  %v2613_v59 = vadd.f32 %v2584_v53, %v2527_v22  ;;  %v24675_v32 = vld [vmem:[#allocation139_spill] sm:$0xff]  ;;  %v24678_v22 = vld [vmem:[#allocation53_spill] sm:$0xff] }
 0x461   : > { %v2100_v10 = vadd.f32 %v24632_v9, %v2014_v34  ;;  %v2183_v39 = vadd.f32 %v24670_v18, %v2097_v46  ;;  %v2352_v2 = vadd.f32 %v24671_v1, %v2266_v38  ;;  %v19171_v46 = vld [vmem:[#allocation6 + $0x60] sm:$0xff]   ;;  %v19172_v31 = vld [vmem:[#allocation6 + $0x68] sm:$0xff]   ;;  %v19173_v38 = vld [vmem:[#allocation6 + $0x70] sm:$0xff]  }
 0x462   : > { %v2656_v29 = vpop.permute.xlu1 %2655  ;;  %v2745_v37 = vadd.f32 %v21710_v12, %v2700_v35  ;;  %v2520_v61 = vadd.f32 %v24672_v56, %v2435_v8  ;;  %v2689_v54 = vadd.f32 %v24673_v26, %v2603_v11  ;;  %v19174_v20 = vld [vmem:[#allocation6 + $0x78] sm:$0xff]  }
 0x463   : > { %v2670_v49 = vsel %vm2661_vm13, %v2656_v29, %v2658_v55  ;;  %v2186_v50 = vadd.f32 %v24637_v24, %v2100_v10  ;;  %v2269_v17 = vadd.f32 %v24674_v41, %v2183_v39  ;;  %v2438_v5 = vadd.f32 %v24675_v32, %v2352_v2 }
 0x464   : > { %v2699_v28 = vadd.f32 %v2670_v49, %v2613_v59  ;;  %v2760_v7 = vmul.f32 %v2745_v37, %v2745_v37  ;;  %v2606_v9 = vadd.f32 %v21515_v52, %v2520_v61  ;;  %v2734_v53 = vadd.f32 %v24676_v6, %v2689_v54 }
 0x465   : > { %v2272_v0 = vadd.f32 %v24641_v16, %v2186_v50  ;;  %v2355_v55 = vadd.f32 %v24618_v30, %v2269_v17  ;;  %v2523_v23 = vadd.f32 %v24620_v40, %v2438_v5 }
 0x466   : > { %v2744_v57 = vadd.f32 %v21710_v12, %v2699_v28  ;;  %2904 = vmatprep.mubr.f32.mxu0 %v2760_v7  ;;  %v2692_v58 = vadd.f32 %v21654_v14, %v2606_v9  ;;  %v2749_v30 = vmul.f32 %v2734_v53, %v2734_v53 }
 0x467   : > { %v2358_v4 = vadd.f32 %v24646_v42, %v2272_v0  ;;  %v2441_v19 = vadd.f32 %v21513_v15, %v2355_v55  ;;  %v2609_v52 = vadd.f32 %v24677_v62, %v2523_v23  ;;  %v19175_v62 = vld [vmem:[#allocation6] sm:$0xff]  }
 0x468   : > { %v2759_v24 = vmul.f32 %v2744_v57, %v2744_v57  ;;  %v2737_v16 = vadd.f32 %v24597_v25, %v2692_v58 }
 0x469   : > { %v2444_v13 = vadd.f32 %v24649_v60, %v2358_v4  ;;  %v2526_v40 = vadd.f32 %v24628_v63, %v2441_v19  ;;  %v2695_v14 = vadd.f32 %v21679_v27, %v2609_v52 }
 0x46a   : > { %2905 = vmatmul.mubr.f32.gmra.mrb[16].mxu0 %v2759_v24  ;;  %v2752_v60 = vmul.f32 %v2737_v16, %v2737_v16  ;;  %v19179_v16 = vld [vmem:[#allocation6 + $0x20] sm:$0xff]  }
 0x46b   : > { %16723 = vmatprep.mubr.msk.f32.mxu0 %vm20214_vm2, %v24658_v43  ;;  %v2529_v42 = vadd.f32 %v24652_v36, %v2444_v13  ;;  %v2612_v15 = vadd.f32 %v24678_v22, %v2526_v40  ;;  %v2740_v35 = vadd.f32 %v24625_v48, %v2695_v14  ;;  %v19176_v13 = vld [vmem:[#allocation6 + $0x8] sm:$0xff]   ;;  %v19177_v40 = vld [vmem:[#allocation6 + $0x10] sm:$0xff]   ;;  %v19182_v22 = vld [vmem:[#allocation6 + $0x38] sm:$0xff]  }
 0x46c   : > { %v19180_v14 = vld [vmem:[#allocation6 + $0x28] sm:$0xff]  }
 0x46d   : > { %v2698_v34 = vadd.f32 %v21701_v21, %v2612_v15  ;;  %v2615_v63 = vadd.f32 %v21750_v3, %v2529_v42  ;;  %v2755_v25 = vmul.f32 %v2740_v35, %v2740_v35  ;;  %v19168_v3 = vld [vmem:[#allocation6 + $0x48] sm:$0xff]   ;;  %v19181_v42 = vld [vmem:[#allocation6 + $0x30] sm:$0xff]   ;;  %v19183_v15 = vld [vmem:[#allocation6 + $0x80] sm:$0xff]  }
 0x46e   : > { %16724 = vmatmul.mubr.msk.f32.vlgmr.msra.gmra.mrb[18].mxu0 %vm2804_vm14, %v2749_v30  ;;  %v19178_v30 = vld [vmem:[#allocation6 + $0x18] sm:$0xff]   ;;  %v19185_v35 = vld [vmem:[#allocation6 + $0x90] sm:$0xff]  }
 0x46f   : > { %16726 = vmatprep.mubr.msk.f32.mxu0 %vm20214_vm2, %v24658_v43  ;;  %v2743_v27 = vadd.f32 %v24648_v51, %v2698_v34  ;;  %v2701_v36 = vadd.f32 %v2660_v44, %v2615_v63  ;;  %v19167_v51 = vld [vmem:[#allocation6 + $0x40] sm:$0xff]   ;;  %v19170_v44 = vld [vmem:[#allocation6 + $0x58] sm:$0xff]  }
 0x470   : > { %16739 = vmatpush3.bf16.msra.mxu0 %v19167_v51  ;;  %v19186_v34 = vld [vmem:[#allocation6 + $0x98] sm:$0xff]   ;;  %v19187_v63 = vld [vmem:[#allocation6 + $0xa0] sm:$0xff]   ;;  %v19193_v51 = vld [vmem:[#allocation6 + $0xd0] sm:$0xff]  }
 0x471   : > { %v2758_v33 = vmul.f32 %v2743_v27, %v2743_v27  ;;  %v2746_v48 = vadd.f32 %v21710_v12, %v2701_v36  ;;  %16740 = vmatprep.subr.bf16.mxu0 %v24658_v43  ;;  %v19169_v12 = vld [vmem:[#allocation6 + $0x50] sm:$0xff]   ;;  %v19190_v36 = vld [vmem:[#allocation6 + $0xb8] sm:$0xff]  }
 0x472   : > { %16727 = vmatmul.mubr.msk.f32.gmra.mrb[20].mxu0 %vm2804_vm14, %v2752_v60  ;;  %v19184_v60 = vld [vmem:[#allocation6 + $0x88] sm:$0xff]   ;;  %v19189_v27 = vld [vmem:[#allocation6 + $0xb0] sm:$0xff]  }
 0x473   : > { %16729 = vmatprep.mubr.msk.f32.mxu0 %vm20214_vm2, %v24658_v43  ;;  %v2761_v21 = vmul.f32 %v2746_v48, %v2746_v48 }
 0x474   : > { %16741 = vmatpush3.bf16.msra.mxu0 %v19168_v3  ;;  %v19194_v3 = vld [vmem:[#allocation6 + $0xd8] sm:$0xff]  }
 0x475   : > { %16742 = vmatprep.subr.bf16.mxu0 %v24658_v43 }
 0x476   : > { %16730 = vmatmul.mubr.msk.f32.gmra.mrb[22].mxu0 %vm2804_vm14, %v2755_v25  ;;  %v19188_v25 = vld [vmem:[#allocation6 + $0xa8] sm:$0xff]  }
 0x477   : > { %16732 = vmatprep.mubr.msk.f32.mxu0 %vm20214_vm2, %v24658_v43 }
 0x478   : > { %16743 = vmatpush3.bf16.msra.mxu0 %v19169_v12  ;;  %v19195_v12 = vld [vmem:[#allocation6 + $0xe0] sm:$0xff]  }
 0x479   : > { %16744 = vmatprep.subr.bf16.mxu0 %v24658_v43 }
 0x47a   : > { %16733 = vmatmul.mubr.msk.f32.gmra.mrb[24].mxu0 %vm2804_vm14, %v2758_v33  ;;  %v19191_v33 = vld [vmem:[#allocation6 + $0xc0] sm:$0xff]  }
 0x47b   : > { %16735 = vmatprep.mubr.msk.f32.mxu0 %vm20214_vm2, %v24658_v43 }
 0x47c   : > { %16745 = vmatpush3.bf16.msra.mxu0 %v19170_v44  ;;  %v19196_v44 = vld [vmem:[#allocation6 + $0xe8] sm:$0xff]  }
 0x47d   : > { %16746 = vmatprep.subr.bf16.mxu0 %v24658_v43 }
 0x47e   : > { %16736 = vmatmul.mubr.msk.f32.gmra.mrb[26].mxu0 %vm2804_vm14, %v2761_v21  ;;  %v19192_v21 = vld [vmem:[#allocation6 + $0xc8] sm:$0xff]  }
 0x47f   : > { %16754 = vmatprep.mubr.msk.bf16.mxu0 %vm20214_vm2, %v24658_v43 }
 0x480   : > { %16747 = vmatpush3.bf16.msra.mxu0 %v19171_v46  ;;  %v19197_v46 = vld [vmem:[#allocation6 + $0xf0] sm:$0xff]  }
 0x481   : > { %16748 = vmatprep.subr.bf16.mxu0 %v24658_v43 }
 0x484   : > { %16749 = vmatpush3.bf16.msra.mxu0 %v19172_v31  ;;  %v19198_v31 = vld [vmem:[#allocation6 + $0xf8] sm:$0xff]  }
 0x485   : > { %16750 = vmatprep.subr.bf16.mxu0 %v24658_v43 }
 0x488   : > { %16751 = vmatpush3.bf16.msra.mxu0 %v19173_v38  ;;  %v19199_v38 = vld [vmem:[#allocation6 + $0x100] sm:$0xff]  }
 0x489   : > { %16752 = vmatprep.subr.bf16.mxu0 %v24658_v43 }
 0x48c   : > { %16753 = vmatpush3.bf16.msra.mxu0 %v19174_v20 }
 0x48d   : > { %16758 = vmatprep.subr.bf16.mxu0 %v24658_v43 }
 0x51d   : > { %v15674_v8 = vpop.f32.mrb[8].mxu0 }
 0x51e   : > { %v15675_v45 = vpop.f32.mrb[9].mxu0 }
 0x51f   : > { %v15676_v11 = vadd.f32 %v15675_v45, %v15674_v8  ;;  %v19200_v8 = vld [vmem:[#allocation6 + $0x108] sm:$0xff]   ;;  %v19201_v45 = vld [vmem:[#allocation6 + $0x110] sm:$0xff]  }
 0x525   : > { %v15677_v59 = vpop.f32.mrb[10].mxu0 }
 0x526   : > { %v15678_v29 = vpop.f32.mrb[11].mxu0 }
 0x527   : > { %v15679_v37 = vadd.f32 %v15678_v29, %v15677_v59  ;;  %v19203_v59 = vld [vmem:[#allocation6 + $0x120] sm:$0xff]   ;;  %v19204_v29 = vld [vmem:[#allocation6 + $0x128] sm:$0xff]  }
 0x529   : > { %v15680_v10 = vpop.f32.mrb[12].mxu0 }
 0x52a   : > { %v15681_v18 = vpop.f32.mrb[13].mxu0 }
 0x52b   : > { %v15682_v39 = vadd.f32 %v15681_v18, %v15680_v10  ;;  %v19206_v10 = vld [vmem:[#allocation6 + $0x138] sm:$0xff]   ;;  %v19207_v18 = vld [vmem:[#allocation6 + $0x140] sm:$0xff]  }
 0x531   : > { %v15683_v1 = vpop.f32.mrb[14].mxu0 }
 0x532   : > { %v15684_v2 = vpop.f32.mrb[15].mxu0 }
 0x533   : > { %v15685_v49 = vadd.f32 %v15684_v2, %v15683_v1  ;;  %v19208_v1 = vld [vmem:[#allocation6 + $0x148] sm:$0xff]   ;;  %v19209_v2 = vld [vmem:[#allocation6 + $0x150] sm:$0xff]  }
 0x53d   : > { %v15686_v56 = vpop.f32.mrb[16].mxu0 }
 0x53e   : > { %v15687_v61 = vpop.f32.mrb[17].mxu0 }
 0x53f   : > { %v15688_v26 = vadd.f32 %v15687_v61, %v15686_v56  ;;  %v19211_v56 = vld [vmem:[#allocation6 + $0x160] sm:$0xff]   ;;  %v19212_v61 = vld [vmem:[#allocation6 + $0x168] sm:$0xff]  }
 0x541   : > { %v2976_v54 = vpop.f32.mrb[18].mxu0 }
 0x542   : > { %v2977_v28 = vadd.f32 %v15676_v11, %v2976_v54  ;;  %v16725_v7 = vpop.f32.mrb[19].mxu0  ;;  %v19202_v11 = vld [vmem:[#allocation6 + $0x118] sm:$0xff]  }
 0x543   : > { %v19214_v54 = vld [vmem:[#allocation6 + $0x178] sm:$0xff]  }
 0x544   : > { %v3000_v50 = vmax.f32 %v2977_v28, 1e-06  ;;  %v19215_v28 = vld [vmem:[#allocation6 + $0x180] sm:$0xff]  }
 0x545   : > { %v2981_v41 = vpop.f32.mrb[20].mxu0 }
 0x546   : > { %19895 = vlog2.f32 %v3000_v50  ;;  %v21839_v17 = vadd.f32 %v15679_v37, %v2981_v41  ;;  %v16728_v32 = vpop.f32.mrb[21].mxu0  ;;  %v19205_v37 = vld [vmem:[#allocation6 + $0x130] sm:$0xff]   ;;  %v19216_v50 = vld [vmem:[#allocation6 + $0x188] sm:$0xff]  }
 0x547   : > { %v19217_v41 = vld [vmem:[#allocation6 + $0x190] sm:$0xff]   ;;  %v19218_v32 = vld [vmem:[#allocation6 + $0x198] sm:$0xff]  }
 0x549   : > { %v2986_v5 = vpop.f32.mrb[22].mxu0 }
 0x54a   : > { %v21841_v9 = vadd.f32 %v15682_v39, %v2986_v5  ;;  %v16731_v57 = vpop.f32.mrb[23].mxu0  ;;  %v19219_v5 = vld [vmem:[#allocation6 + $0x1a0] sm:$0xff]  }
 0x54b   : > { %v19220_v57 = vld [vmem:[#allocation6 + $0x1a8] sm:$0xff]  }
 0x54d   : > { %v2991_v0 = vpop.f32.mrb[24].mxu0 }
 0x54e   : > { %v21843_v55 = vadd.f32 %v15685_v49, %v2991_v0  ;;  %v16734_v23 = vpop.f32.mrb[25].mxu0  ;;  %v19210_v49 = vld [vmem:[#allocation6 + $0x158] sm:$0xff]   ;;  %v19221_v0 = vld [vmem:[#allocation6 + $0x1b0] sm:$0xff]  }
 0x54f   : > { %v19222_v23 = vld [vmem:[#allocation6 + $0x1b8] sm:$0xff]  }
 0x550   : > { %v19896_v6 = vpop.eup %19895 }
 0x551   : > { %v3006_v53 = vmul.f32 0.6931472, %v19896_v6  ;;  %v2996_v58 = vpop.f32.mrb[26].mxu0  ;;  %v19223_v6 = vld [vmem:[#allocation6 + $0x1c0] sm:$0xff]  }
 0x552   : > { %v21845_v24 = vadd.f32 %v15688_v26, %v2996_v58  ;;  %v16737_v4 = vpop.f32.mrb[27].mxu0  ;;  %v19213_v26 = vld [vmem:[#allocation6 + $0x170] sm:$0xff]   ;;  %v19224_v58 = vld [vmem:[#allocation6 + $0x1c8] sm:$0xff]  }
 0x553   : > { %v21847_v19 = vpack.c.bf16 %v3006_v53, %v3006_v53  ;;  %v19225_v4 = vld [vmem:[#allocation6 + $0x1d0] sm:$0xff]  }
 0x555   : > { %v21850_v52 = vshrl.u32 %v21847_v19, 16  ;;  %v3247_v48 = vrot.slane %v21847_v19, 1  ;;  %v3463_v39 = vrot.slane %v21847_v19, 2  ;;  %v3679_v53 = vrot.slane %v21847_v19, 3 }
 0x557   : > { %16755 = vmatmul.mubr.bf16.vlgmr.msra.gmra.mrb[28].mxu0 %v21850_v52  ;;  %v3355_v20 = vrot.slane %v21850_v52, 1  ;;  %v3571_v7 = vrot.slane %v21850_v52, 2 }
 0x558   : > { %16759 = vmatpush3.bf16.msra.mxu0 %v19175_v62  ;;  %16774 = vmatprep.mubr.msk.bf16.mxu0 %vm20214_vm2, %v24658_v43  ;;  %v19226_v62 = vld [vmem:[#allocation6 + $0x1d8] sm:$0xff]  }
 0x559   : > { %16760 = vmatprep.subr.bf16.mxu0 %v24658_v43 }
 0x55c   : > { %16761 = vmatpush3.bf16.msra.mxu0 %v19176_v13  ;;  %v19228_v13 = vld [vmem:[#allocation6 + $0x1e8] sm:$0xff]  }
 0x55d   : > { %16762 = vmatprep.subr.bf16.mxu0 %v24658_v43 }
 0x560   : > { %16763 = vmatpush3.bf16.msra.mxu0 %v19177_v40  ;;  %v19229_v40 = vld [vmem:[#allocation6 + $0x1f0] sm:$0xff]  }
 0x561   : > { %16764 = vmatprep.subr.bf16.mxu0 %v24658_v43 }
 0x564   : > { %16765 = vmatpush3.bf16.msra.mxu0 %v19178_v30  ;;  %v19230_v30 = vld [vmem:[#allocation6 + $0x1f8] sm:$0xff]  }
 0x565   : > { %16766 = vmatprep.subr.bf16.mxu0 %v24658_v43 }
 0x568   : > { %16767 = vmatpush3.bf16.msra.mxu0 %v19179_v16  ;;  %v19231_v16 = vld [vmem:[#allocation6 + $0x200] sm:$0xff]  }
 0x569   : > { %16768 = vmatprep.subr.bf16.mxu0 %v24658_v43 }
 0x56c   : > { %16769 = vmatpush3.bf16.msra.mxu0 %v19180_v14  ;;  %v3787_v14 = vrot.slane %v21850_v52, 3  ;;  %v19235_v52 = vld [vmem:[#allocation6 + $0x220] sm:$0xff]  }
 0x56d   : > { %16770 = vmatprep.subr.bf16.mxu0 %v24658_v43 }
 0x570   : > { %16771 = vmatpush3.bf16.msra.mxu0 %v19181_v42  ;;  %v19232_v42 = vld [vmem:[#allocation6 + $0x208] sm:$0xff]  }
 0x571   : > { %16772 = vmatprep.subr.bf16.mxu0 %v24658_v43 }
 0x574   : > { %16773 = vmatpush3.bf16.msra.mxu0 %v19182_v22  ;;  %v19233_v22 = vld [vmem:[#allocation6 + $0x210] sm:$0xff]  }
 0x575   : > { %16778 = vmatprep.subr.bf16.mxu0 %v24658_v43 }
 0x577   : > { %16775 = vmatmul.mubr.bf16.vlgmr.msra.gmra.mrb[28].mxu0 %v21847_v19  ;;  %v19227_v19 = vld [vmem:[#allocation6 + $0x1e0] sm:$0xff]  }
 0x578   : > { %16779 = vmatpush3.bf16.msra.mxu0 %v19183_v15  ;;  %16794 = vmatprep.mubr.msk.bf16.mxu0 %vm20214_vm2, %v24658_v43  ;;  %v3001_v15 = vmax.f32 %v21839_v17, 1e-06  ;;  %v19238_v17 = vld [vmem:[#allocation6 + $0x238] sm:$0xff]  }
 0x579   : > { %16780 = vmatprep.subr.bf16.mxu0 %v24658_v43 }
 0x57a   : > { %19897 = vlog2.f32 %v3001_v15  ;;  %v19284_v15 = vld [vmem:[#allocation6 + $0x3a8] sm:$0xff]  }
 0x57c   : > { %16781 = vmatpush3.bf16.msra.mxu0 %v19184_v60  ;;  %v19234_v60 = vld [vmem:[#allocation6 + $0x218] sm:$0xff]  }
 0x57d   : > { %16782 = vmatprep.subr.bf16.mxu0 %v24658_v43 }
 0x580   : > { %16783 = vmatpush3.bf16.msra.mxu0 %v19185_v35  ;;  %v19236_v35 = vld [vmem:[#allocation6 + $0x228] sm:$0xff]  }
 0x581   : > { %16784 = vmatprep.subr.bf16.mxu0 %v24658_v43 }
 0x584   : > { %16785 = vmatpush3.bf16.msra.mxu0 %v19186_v34  ;;  %v19237_v34 = vld [vmem:[#allocation6 + $0x230] sm:$0xff]  }
 0x585   : > { %16786 = vmatprep.subr.bf16.mxu0 %v24658_v43 }
 0x588   : > { %16787 = vmatpush3.bf16.msra.mxu0 %v19187_v63  ;;  %v19898_v63 = vpop.eup %19897 }
 0x589   : > { %16788 = vmatprep.subr.bf16.mxu0 %v24658_v43 }
 0x58c   : > { %16789 = vmatpush3.bf16.msra.mxu0 %v19188_v25  ;;  %v3008_v25 = vmul.f32 0.6931472, %v19898_v63  ;;  %v19288_v63 = vld [vmem:[#allocation6 + $0x3c8] sm:$0xff]  }
 0x58d   : > { %16790 = vmatprep.subr.bf16.mxu0 %v24658_v43 }
 0x590   : > { %16791 = vmatpush3.bf16.msra.mxu0 %v19189_v27  ;;  %v19239_v27 = vld [vmem:[#allocation6 + $0x240] sm:$0xff]  }
 0x591   : > { %16792 = vmatprep.subr.bf16.mxu0 %v24658_v43 }
 0x594   : > { %16793 = vmatpush3.bf16.msra.mxu0 %v19190_v36  ;;  %v21940_v36 = vpack.c.bf16 %v3008_v25, %v3008_v25  ;;  %v19290_v25 = vld [vmem:[#allocation6 + $0x3d8] sm:$0xff]  }
 0x595   : > { %16798 = vmatprep.subr.bf16.mxu0 %v24658_v43 }
 0x597   : > { %16795 = vmatmul.mubr.bf16.vlgmr.msra.gmra.mrb[28].mxu0 %v3247_v48  ;;  %v19241_v48 = vld [vmem:[#allocation6 + $0x250] sm:$0xff]  }
 0x598   : > { %16799 = vmatpush3.bf16.msra.mxu0 %v19191_v33  ;;  %16814 = vmatprep.mubr.msk.bf16.mxu0 %vm20214_vm2, %v24658_v43  ;;  %v19240_v33 = vld [vmem:[#allocation6 + $0x248] sm:$0xff]  }
 0x599   : > { %16800 = vmatprep.subr.bf16.mxu0 %v24658_v43 }
 0x59c   : > { %16801 = vmatpush3.bf16.msra.mxu0 %v19192_v21  ;;  %v19242_v21 = vld [vmem:[#allocation6 + $0x258] sm:$0xff]  }
 0x59d   : > { %16802 = vmatprep.subr.bf16.mxu0 %v24658_v43 }
 0x5a0   : > { %16803 = vmatpush3.bf16.msra.mxu0 %v19193_v51  ;;  %v19243_v51 = vld [vmem:[#allocation6 + $0x260] sm:$0xff]  }
 0x5a1   : > { %16804 = vmatprep.subr.bf16.mxu0 %v24658_v43 }
 0x5a4   : > { %16805 = vmatpush3.bf16.msra.mxu0 %v19194_v3  ;;  %v19244_v3 = vld [vmem:[#allocation6 + $0x268] sm:$0xff]  }
 0x5a5   : > { %16806 = vmatprep.subr.bf16.mxu0 %v24658_v43 }
 0x5a8   : > { %16807 = vmatpush3.bf16.msra.mxu0 %v19195_v12  ;;  %v19245_v12 = vld [vmem:[#allocation6 + $0x270] sm:$0xff]  }
 0x5a9   : > { %16808 = vmatprep.subr.bf16.mxu0 %v24658_v43 }
 0x5ac   : > { %16809 = vmatpush3.bf16.msra.mxu0 %v19196_v44  ;;  %v19246_v44 = vld [vmem:[#allocation6 + $0x278] sm:$0xff]  }
 0x5ad   : > { %16810 = vmatprep.subr.bf16.mxu0 %v24658_v43 }
 0x5b0   : > { %16811 = vmatpush3.bf16.msra.mxu0 %v19197_v46  ;;  %v19247_v46 = vld [vmem:[#allocation6 + $0x280] sm:$0xff]  }
 0x5b1   : > { %16812 = vmatprep.subr.bf16.mxu0 %v24658_v43 }
 0x5b4   : > { %16813 = vmatpush3.bf16.msra.mxu0 %v19198_v31  ;;  %v21954_v31 = vshrl.u32 %v21940_v36, 16 }
 0x5b5   : > { %16818 = vmatprep.subr.bf16.mxu0 %v24658_v43 }
 0x5b7   : > { %16815 = vmatmul.mubr.bf16.vlgmr.msra.gmra.mrb[28].mxu0 %v3355_v20  ;;  %v19249_v20 = vld [vmem:[#allocation6 + $0x290] sm:$0xff]  }
 0x5b8   : > { %16819 = vmatpush3.bf16.msra.mxu0 %v19199_v38  ;;  %16834 = vmatprep.mubr.msk.bf16.mxu0 %vm20214_vm2, %v24658_v43  ;;  %v19248_v38 = vld [vmem:[#allocation6 + $0x288] sm:$0xff]  }
 0x5b9   : > { %16820 = vmatprep.subr.bf16.mxu0 %v24658_v43 }
 0x5bc   : > { %16821 = vmatpush3.bf16.msra.mxu0 %v19200_v8  ;;  %v19250_v8 = vld [vmem:[#allocation6 + $0x298] sm:$0xff]  }
 0x5bd   : > { %16822 = vmatprep.subr.bf16.mxu0 %v24658_v43 }
 0x5c0   : > { %16823 = vmatpush3.bf16.msra.mxu0 %v19201_v45  ;;  %v19251_v45 = vld [vmem:[#allocation6 + $0x2a0] sm:$0xff]  }
 0x5c1   : > { %16824 = vmatprep.subr.bf16.mxu0 %v24658_v43 }
 0x5c4   : > { %16825 = vmatpush3.bf16.msra.mxu0 %v19202_v11  ;;  %v19252_v11 = vld [vmem:[#allocation6 + $0x2a8] sm:$0xff]  }
 0x5c5   : > { %16826 = vmatprep.subr.bf16.mxu0 %v24658_v43 }
 0x5c8   : > { %16827 = vmatpush3.bf16.msra.mxu0 %v19203_v59  ;;  %v19253_v59 = vld [vmem:[#allocation6 + $0x2b0] sm:$0xff]  }
 0x5c9   : > { %16828 = vmatprep.subr.bf16.mxu0 %v24658_v43 }
 0x5cc   : > { %16829 = vmatpush3.bf16.msra.mxu0 %v19204_v29  ;;  %v19254_v29 = vld [vmem:[#allocation6 + $0x2b8] sm:$0xff]  }
 0x5cd   : > { %16830 = vmatprep.subr.bf16.mxu0 %v24658_v43 }
 0x5d0   : > { %16831 = vmatpush3.bf16.msra.mxu0 %v19205_v37  ;;  %v19255_v37 = vld [vmem:[#allocation6 + $0x2c0] sm:$0xff]  }
 0x5d1   : > { %16832 = vmatprep.subr.bf16.mxu0 %v24658_v43 }
 0x5d4   : > { %16833 = vmatpush3.bf16.msra.mxu0 %v19206_v10  ;;  %v4113_v10 = vrot.slane %v21940_v36, 1 }
 0x5d5   : > { %16838 = vmatprep.subr.bf16.mxu0 %v24658_v43 }
 0x5d7   : > { %16835 = vmatmul.mubr.bf16.vlgmr.msra.gmra.mrb[28].mxu0 %v3463_v39  ;;  %v19257_v39 = vld [vmem:[#allocation6 + $0x2d0] sm:$0xff]  }
 0x5d8   : > { %16839 = vmatpush3.bf16.msra.mxu0 %v19207_v18  ;;  %16854 = vmatprep.mubr.msk.bf16.mxu0 %vm20214_vm2, %v24658_v43  ;;  %v19256_v18 = vld [vmem:[#allocation6 + $0x2c8] sm:$0xff]  }
 0x5d9   : > { %16840 = vmatprep.subr.bf16.mxu0 %v24658_v43 }
 0x5dc   : > { %16841 = vmatpush3.bf16.msra.mxu0 %v19208_v1  ;;  %v19258_v1 = vld [vmem:[#allocation6 + $0x2d8] sm:$0xff]  }
 0x5dd   : > { %16842 = vmatprep.subr.bf16.mxu0 %v24658_v43 }
 0x5e0   : > { %16843 = vmatpush3.bf16.msra.mxu0 %v19209_v2  ;;  %v19259_v2 = vld [vmem:[#allocation6 + $0x2e0] sm:$0xff]  }
 0x5e1   : > { %16844 = vmatprep.subr.bf16.mxu0 %v24658_v43 }
 0x5e4   : > { %16845 = vmatpush3.bf16.msra.mxu0 %v19210_v49  ;;  %v19260_v49 = vld [vmem:[#allocation6 + $0x2e8] sm:$0xff]  }
 0x5e5   : > { %16846 = vmatprep.subr.bf16.mxu0 %v24658_v43 }
 0x5e8   : > { %16847 = vmatpush3.bf16.msra.mxu0 %v19211_v56  ;;  %v19261_v56 = vld [vmem:[#allocation6 + $0x2f0] sm:$0xff]  }
 0x5e9   : > { %16848 = vmatprep.subr.bf16.mxu0 %v24658_v43 }
 0x5ec   : > { %16849 = vmatpush3.bf16.msra.mxu0 %v19212_v61  ;;  %v19262_v61 = vld [vmem:[#allocation6 + $0x2f8] sm:$0xff]  }
 0x5ed   : > { %16850 = vmatprep.subr.bf16.mxu0 %v24658_v43 }
 0x5f0   : > { %16851 = vmatpush3.bf16.msra.mxu0 %v19213_v26  ;;  %v19263_v26 = vld [vmem:[#allocation6 + $0x300] sm:$0xff]  }
 0x5f1   : > { %16852 = vmatprep.subr.bf16.mxu0 %v24658_v43 }
 0x5f4   : > { %16853 = vmatpush3.bf16.msra.mxu0 %v19214_v54  ;;  %v4221_v54 = vrot.slane %v21954_v31, 1 }
 0x5f5   : > { %16858 = vmatprep.subr.bf16.mxu0 %v24658_v43 }
 0x5f7   : > { %16855 = vmatmul.mubr.bf16.vlgmr.msra.gmra.mrb[28].mxu0 %v3571_v7  ;;  %v19265_v7 = vld [vmem:[#allocation6 + $0x310] sm:$0xff]  }
 0x5f8   : > { %16859 = vmatpush3.bf16.msra.mxu0 %v19215_v28  ;;  %16874 = vmatprep.mubr.msk.bf16.mxu0 %vm20214_vm2, %v24658_v43  ;;  %v19264_v28 = vld [vmem:[#allocation6 + $0x308] sm:$0xff]  }
 0x5f9   : > { %16860 = vmatprep.subr.bf16.mxu0 %v24658_v43 }
 0x5fc   : > { %16861 = vmatpush3.bf16.msra.mxu0 %v19216_v50  ;;  %v19266_v50 = vld [vmem:[#allocation6 + $0x318] sm:$0xff]  }
 0x5fd   : > { %16862 = vmatprep.subr.bf16.mxu0 %v24658_v43 }
 0x600   : > { %16863 = vmatpush3.bf16.msra.mxu0 %v19217_v41  ;;  %v19267_v41 = vld [vmem:[#allocation6 + $0x320] sm:$0xff]  }
 0x601   : > { %16864 = vmatprep.subr.bf16.mxu0 %v24658_v43 }
 0x604   : > { %16865 = vmatpush3.bf16.msra.mxu0 %v19218_v32  ;;  %v19268_v32 = vld [vmem:[#allocation6 + $0x328] sm:$0xff]  }
 0x605   : > { %16866 = vmatprep.subr.bf16.mxu0 %v24658_v43 }
 0x608   : > { %16867 = vmatpush3.bf16.msra.mxu0 %v19219_v5  ;;  %v19269_v5 = vld [vmem:[#allocation6 + $0x330] sm:$0xff]  }
 0x609   : > { %16868 = vmatprep.subr.bf16.mxu0 %v24658_v43 }
 0x60c   : > { %16869 = vmatpush3.bf16.msra.mxu0 %v19220_v57  ;;  %v19270_v57 = vld [vmem:[#allocation6 + $0x338] sm:$0xff]  }
 0x60d   : > { %16870 = vmatprep.subr.bf16.mxu0 %v24658_v43 }
 0x610   : > { %16871 = vmatpush3.bf16.msra.mxu0 %v19221_v0  ;;  %v19271_v0 = vld [vmem:[#allocation6 + $0x340] sm:$0xff]  }
 0x611   : > { %16872 = vmatprep.subr.bf16.mxu0 %v24658_v43 }
 0x614   : > { %16873 = vmatpush3.bf16.msra.mxu0 %v19222_v23  ;;  %v4329_v23 = vrot.slane %v21940_v36, 2 }
 0x615   : > { %16878 = vmatprep.subr.bf16.mxu0 %v24658_v43 }
 0x617   : > { %16875 = vmatmul.mubr.bf16.vlgmr.msra.gmra.mrb[28].mxu0 %v3679_v53  ;;  %v19273_v53 = vld [vmem:[#allocation6 + $0x350] sm:$0xff]  }
 0x618   : > { %16879 = vmatpush3.bf16.msra.mxu0 %v19223_v6  ;;  %16894 = vmatprep.mubr.msk.bf16.mxu0 %vm20214_vm2, %v24658_v43  ;;  %v19272_v6 = vld [vmem:[#allocation6 + $0x348] sm:$0xff]  }
 0x619   : > { %16880 = vmatprep.subr.bf16.mxu0 %v24658_v43 }
 0x61c   : > { %16881 = vmatpush3.bf16.msra.mxu0 %v19224_v58  ;;  %v19274_v58 = vld [vmem:[#allocation6 + $0x358] sm:$0xff]  }
 0x61d   : > { %16882 = vmatprep.subr.bf16.mxu0 %v24658_v43 }
 0x620   : > { %16883 = vmatpush3.bf16.msra.mxu0 %v19225_v4  ;;  %v19275_v4 = vld [vmem:[#allocation6 + $0x360] sm:$0xff]  }
 0x621   : > { %16884 = vmatprep.subr.bf16.mxu0 %v24658_v43 }
 0x624   : > { %16885 = vmatpush3.bf16.msra.mxu0 %v19226_v62  ;;  %v19276_v62 = vld [vmem:[#allocation6 + $0x368] sm:$0xff]  }
 0x625   : > { %16886 = vmatprep.subr.bf16.mxu0 %v24658_v43 }
 0x628   : > { %16887 = vmatpush3.bf16.msra.mxu0 %v19227_v19  ;;  %v19277_v19 = vld [vmem:[#allocation6 + $0x370] sm:$0xff]  }
 0x629   : > { %16888 = vmatprep.subr.bf16.mxu0 %v24658_v43 }
 0x62c   : > { %16889 = vmatpush3.bf16.msra.mxu0 %v19228_v13  ;;  %v19278_v13 = vld [vmem:[#allocation6 + $0x378] sm:$0xff]  }
 0x62d   : > { %16890 = vmatprep.subr.bf16.mxu0 %v24658_v43 }
 0x630   : > { %16891 = vmatpush3.bf16.msra.mxu0 %v19229_v40  ;;  %v19279_v40 = vld [vmem:[#allocation6 + $0x380] sm:$0xff]  }
 0x631   : > { %16892 = vmatprep.subr.bf16.mxu0 %v24658_v43 }
 0x634   : > { %16893 = vmatpush3.bf16.msra.mxu0 %v19230_v30  ;;  %v4437_v30 = vrot.slane %v21954_v31, 2 }
 0x635   : > { %16898 = vmatprep.subr.bf16.mxu0 %v24658_v43 }
 0x637   : > { %16895 = vmatmul.mubr.bf16.vlgmr.msra.gmra.mrb[28].mxu0 %v3787_v14  ;;  %v19281_v14 = vld [vmem:[#allocation6 + $0x390] sm:$0xff]  }
 0x638   : > { %16899 = vmatpush3.bf16.msra.mxu0 %v19231_v16  ;;  %16914 = vmatprep.mubr.msk.bf16.mxu0 %vm20214_vm2, %v24658_v43  ;;  %v19280_v16 = vld [vmem:[#allocation6 + $0x388] sm:$0xff]  }
 0x639   : > { %16900 = vmatprep.subr.bf16.mxu0 %v24658_v43 }
 0x63c   : > { %16901 = vmatpush3.bf16.msra.mxu0 %v19232_v42  ;;  %v19282_v42 = vld [vmem:[#allocation6 + $0x398] sm:$0xff]  }
 0x63d   : > { %16902 = vmatprep.subr.bf16.mxu0 %v24658_v43 }
 0x640   : > { %16903 = vmatpush3.bf16.msra.mxu0 %v19233_v22  ;;  %v19283_v22 = vld [vmem:[#allocation6 + $0x3a0] sm:$0xff]  }
 0x641   : > { %16904 = vmatprep.subr.bf16.mxu0 %v24658_v43 }
 0x644   : > { %16905 = vmatpush3.bf16.msra.mxu0 %v19234_v60  ;;  %v19285_v60 = vld [vmem:[#allocation6 + $0x3b0] sm:$0xff]  }
 0x645   : > { %16906 = vmatprep.subr.bf16.mxu0 %v24658_v43 }
 0x648   : > { %16907 = vmatpush3.bf16.msra.mxu0 %v19235_v52  ;;  %v19286_v52 = vld [vmem:[#allocation6 + $0x3b8] sm:$0xff]  }
 0x649   : > { %16908 = vmatprep.subr.bf16.mxu0 %v24658_v43 }
 0x64c   : > { %16909 = vmatpush3.bf16.msra.mxu0 %v19236_v35  ;;  %v19287_v35 = vld [vmem:[#allocation6 + $0x3c0] sm:$0xff]  }
 0x64d   : > { %16910 = vmatprep.subr.bf16.mxu0 %v24658_v43 }
 0x650   : > { %16911 = vmatpush3.bf16.msra.mxu0 %v19237_v34  ;;  %v4545_v34 = vrot.slane %v21940_v36, 3 }
 0x651   : > { %16912 = vmatprep.subr.bf16.mxu0 %v24658_v43 }
 0x654   : > { %16913 = vmatpush3.bf16.msra.mxu0 %v19238_v17  ;;  %v19289_v17 = vld [vmem:[#allocation6 + $0x3d0] sm:$0xff]  }
 0x655   : > { %16918 = vmatprep.subr.bf16.mxu0 %v24658_v43 }
 0x657   : > { %16915 = vmatmul.mubr.bf16.vlgmr.msra.gmra.mrb[28].mxu0 %v21940_v36  ;;  %v19292_v36 = vld [vmem:[#allocation6 + $0x3e8] sm:$0xff]  }
 0x658   : > { %16919 = vmatpush3.bf16.msra.mxu0 %v19239_v27  ;;  %16934 = vmatprep.mubr.msk.bf16.mxu0 %vm20214_vm2, %v24658_v43  ;;  %v19291_v27 = vld [vmem:[#allocation6 + $0x3e0] sm:$0xff]  }
 0x659   : > { %16920 = vmatprep.subr.bf16.mxu0 %v24658_v43 }
 0x65c   : > { %16921 = vmatpush3.bf16.msra.mxu0 %v19240_v33  ;;  %v19293_v33 = vld [vmem:[#allocation6 + $0x3f0] sm:$0xff]  }
 0x65d   : > { %16922 = vmatprep.subr.bf16.mxu0 %v24658_v43 }
 0x660   : > { %16923 = vmatpush3.bf16.msra.mxu0 %v19241_v48  ;;  %v19294_v48 = vld [vmem:[#allocation6 + $0x3f8] sm:$0xff]  }
 0x661   : > { %16924 = vmatprep.subr.bf16.mxu0 %v24658_v43 }
 0x664   : > { %16925 = vmatpush3.bf16.msra.mxu0 %v19242_v21  ;;  %v19295_v21 = vld [vmem:[#allocation6 + $0x400] sm:$0xff]  }
 0x665   : > { %16926 = vmatprep.subr.bf16.mxu0 %v24658_v43 }
 0x668   : > { %16927 = vmatpush3.bf16.msra.mxu0 %v19243_v51  ;;  %v4653_v51 = vrot.slane %v21954_v31, 3 }
 0x669   : > { %16928 = vmatprep.subr.bf16.mxu0 %v24658_v43 }
 0x66c   : > { %16929 = vmatpush3.bf16.msra.mxu0 %v19244_v3  ;;  %v19296_v3 = vld [vmem:[#allocation6 + $0x408] sm:$0xff]  }
 0x66d   : > { %16930 = vmatprep.subr.bf16.mxu0 %v24658_v43 }
 0x670   : > { %16931 = vmatpush3.bf16.msra.mxu0 %v19245_v12  ;;  %v19297_v12 = vld [vmem:[#allocation6 + $0x410] sm:$0xff]  }
 0x671   : > { %16932 = vmatprep.subr.bf16.mxu0 %v24658_v43 }
 0x674   : > { %16933 = vmatpush3.bf16.msra.mxu0 %v19246_v44  ;;  %v3002_v44 = vmax.f32 %v21841_v9, 1e-06  ;;  %v19302_v9 = vld [vmem:[#allocation6 + $0x438] sm:$0xff]  }
 0x675   : > { %16938 = vmatprep.subr.bf16.mxu0 %v24658_v43 }
 0x676   : > { %19899 = vlog2.f32 %v3002_v44  ;;  %v19349_v44 = vld [vmem:[#allocation6 + $0x5b0] sm:$0xff]  }
 0x677   : > { %16935 = vmatmul.mubr.bf16.vlgmr.msra.gmra.mrb[28].mxu0 %v21954_v31  ;;  %v19299_v31 = vld [vmem:[#allocation6 + $0x420] sm:$0xff]  }
 0x678   : > { %16939 = vmatpush3.bf16.msra.mxu0 %v19247_v46  ;;  %16954 = vmatprep.mubr.msk.bf16.mxu0 %vm20214_vm2, %v24658_v43  ;;  %v19298_v46 = vld [vmem:[#allocation6 + $0x418] sm:$0xff]  }
 0x679   : > { %16940 = vmatprep.subr.bf16.mxu0 %v24658_v43 }
 0x67c   : > { %16941 = vmatpush3.bf16.msra.mxu0 %v19248_v38  ;;  %v19300_v38 = vld [vmem:[#allocation6 + $0x428] sm:$0xff]  }
 0x67d   : > { %16942 = vmatprep.subr.bf16.mxu0 %v24658_v43 }
 0x680   : > { %16943 = vmatpush3.bf16.msra.mxu0 %v19249_v20  ;;  %v19301_v20 = vld [vmem:[#allocation6 + $0x430] sm:$0xff]  }
 0x681   : > { %16944 = vmatprep.subr.bf16.mxu0 %v24658_v43 }
 0x684   : > { %16945 = vmatpush3.bf16.msra.mxu0 %v19250_v8  ;;  %v19900_v8 = vpop.eup %19899 }
 0x685   : > { %16946 = vmatprep.subr.bf16.mxu0 %v24658_v43 }
 0x688   : > { %16947 = vmatpush3.bf16.msra.mxu0 %v19251_v45  ;;  %v3010_v45 = vmul.f32 0.6931472, %v19900_v8  ;;  %v19353_v8 = vld [vmem:[#allocation6 + $0x5d0] sm:$0xff]  }
 0x689   : > { %16948 = vmatprep.subr.bf16.mxu0 %v24658_v43 }
 0x68c   : > { %16949 = vmatpush3.bf16.msra.mxu0 %v19252_v11  ;;  %v19303_v11 = vld [vmem:[#allocation6 + $0x440] sm:$0xff]  }
 0x68d   : > { %16950 = vmatprep.subr.bf16.mxu0 %v24658_v43 }
 0x690   : > { %16951 = vmatpush3.bf16.msra.mxu0 %v19253_v59  ;;  %v22034_v59 = vpack.c.bf16 %v3010_v45, %v3010_v45  ;;  %v19355_v45 = vld [vmem:[#allocation6 + $0x5e0] sm:$0xff]  }
 0x691   : > { %16952 = vmatprep.subr.bf16.mxu0 %v24658_v43 }
 0x694   : > { %16953 = vmatpush3.bf16.msra.mxu0 %v19254_v29  ;;  %v19304_v29 = vld [vmem:[#allocation6 + $0x448] sm:$0xff]  }
 0x695   : > { %16958 = vmatprep.subr.bf16.mxu0 %v24658_v43 }
 0x697   : > { %16955 = vmatmul.mubr.bf16.vlgmr.msra.gmra.mrb[28].mxu0 %v4113_v10  ;;  %v19306_v10 = vld [vmem:[#allocation6 + $0x458] sm:$0xff]  }
 0x698   : > { %16959 = vmatpush3.bf16.msra.mxu0 %v19255_v37  ;;  %16974 = vmatprep.mubr.msk.bf16.mxu0 %vm20214_vm2, %v24658_v43  ;;  %v19305_v37 = vld [vmem:[#allocation6 + $0x450] sm:$0xff]  }
 0x699   : > { %16960 = vmatprep.subr.bf16.mxu0 %v24658_v43 }
 0x69c   : > { %16961 = vmatpush3.bf16.msra.mxu0 %v19256_v18  ;;  %v19307_v18 = vld [vmem:[#allocation6 + $0x460] sm:$0xff]  }
 0x69d   : > { %16962 = vmatprep.subr.bf16.mxu0 %v24658_v43 }
 0x6a0   : > { %16963 = vmatpush3.bf16.msra.mxu0 %v19257_v39  ;;  %v19308_v39 = vld [vmem:[#allocation6 + $0x468] sm:$0xff]  }
 0x6a1   : > { %16964 = vmatprep.subr.bf16.mxu0 %v24658_v43 }
 0x6a4   : > { %16965 = vmatpush3.bf16.msra.mxu0 %v19258_v1  ;;  %v19309_v1 = vld [vmem:[#allocation6 + $0x470] sm:$0xff]  }
 0x6a5   : > { %16966 = vmatprep.subr.bf16.mxu0 %v24658_v43 }
 0x6a8   : > { %16967 = vmatpush3.bf16.msra.mxu0 %v19259_v2  ;;  %v19310_v2 = vld [vmem:[#allocation6 + $0x478] sm:$0xff]  }
 0x6a9   : > { %16968 = vmatprep.subr.bf16.mxu0 %v24658_v43 }
 0x6ac   : > { %16969 = vmatpush3.bf16.msra.mxu0 %v19260_v49  ;;  %v19311_v49 = vld [vmem:[#allocation6 + $0x480] sm:$0xff]  }
 0x6ad   : > { %16970 = vmatprep.subr.bf16.mxu0 %v24658_v43 }
 0x6b0   : > { %16971 = vmatpush3.bf16.msra.mxu0 %v19261_v56  ;;  %v22048_v56 = vshrl.u32 %v22034_v59, 16 }
 0x6b1   : > { %16972 = vmatprep.subr.bf16.mxu0 %v24658_v43 }
 0x6b4   : > { %16973 = vmatpush3.bf16.msra.mxu0 %v19262_v61  ;;  %v19312_v61 = vld [vmem:[#allocation6 + $0x488] sm:$0xff]  }
 0x6b5   : > { %16978 = vmatprep.subr.bf16.mxu0 %v24658_v43 }
 0x6b7   : > { %16975 = vmatmul.mubr.bf16.vlgmr.msra.gmra.mrb[28].mxu0 %v4221_v54  ;;  %v19314_v54 = vld [vmem:[#allocation6 + $0x498] sm:$0xff]  }
 0x6b8   : > { %16979 = vmatpush3.bf16.msra.mxu0 %v19263_v26  ;;  %16994 = vmatprep.mubr.msk.bf16.mxu0 %vm20214_vm2, %v24658_v43  ;;  %v19313_v26 = vld [vmem:[#allocation6 + $0x490] sm:$0xff]  }
 0x6b9   : > { %16980 = vmatprep.subr.bf16.mxu0 %v24658_v43 }
 0x6bc   : > { %16981 = vmatpush3.bf16.msra.mxu0 %v19264_v28  ;;  %v19315_v28 = vld [vmem:[#allocation6 + $0x4a0] sm:$0xff]  }
 0x6bd   : > { %16982 = vmatprep.subr.bf16.mxu0 %v24658_v43 }
 0x6c0   : > { %16983 = vmatpush3.bf16.msra.mxu0 %v19265_v7  ;;  %v19316_v7 = vld [vmem:[#allocation6 + $0x4a8] sm:$0xff]  }
 0x6c1   : > { %16984 = vmatprep.subr.bf16.mxu0 %v24658_v43 }
 0x6c4   : > { %16985 = vmatpush3.bf16.msra.mxu0 %v19266_v50  ;;  %v19317_v50 = vld [vmem:[#allocation6 + $0x4b0] sm:$0xff]  }
 0x6c5   : > { %16986 = vmatprep.subr.bf16.mxu0 %v24658_v43 }
 0x6c8   : > { %16987 = vmatpush3.bf16.msra.mxu0 %v19267_v41  ;;  %v19318_v41 = vld [vmem:[#allocation6 + $0x4b8] sm:$0xff]  }
 0x6c9   : > { %16988 = vmatprep.subr.bf16.mxu0 %v24658_v43 }
 0x6cc   : > { %16989 = vmatpush3.bf16.msra.mxu0 %v19268_v32  ;;  %v19319_v32 = vld [vmem:[#allocation6 + $0x4c0] sm:$0xff]  }
 0x6cd   : > { %16990 = vmatprep.subr.bf16.mxu0 %v24658_v43 }
 0x6d0   : > { %16991 = vmatpush3.bf16.msra.mxu0 %v19269_v5  ;;  %v4979_v5 = vrot.slane %v22034_v59, 1 }
 0x6d1   : > { %16992 = vmatprep.subr.bf16.mxu0 %v24658_v43 }
 0x6d4   : > { %16993 = vmatpush3.bf16.msra.mxu0 %v19270_v57  ;;  %v19320_v57 = vld [vmem:[#allocation6 + $0x4c8] sm:$0xff]  }
 0x6d5   : > { %16998 = vmatprep.subr.bf16.mxu0 %v24658_v43 }
 0x6d7   : > { %16995 = vmatmul.mubr.bf16.vlgmr.msra.gmra.mrb[28].mxu0 %v4329_v23  ;;  %v19322_v23 = vld [vmem:[#allocation6 + $0x4d8] sm:$0xff]  }
 0x6d8   : > { %16999 = vmatpush3.bf16.msra.mxu0 %v19271_v0  ;;  %17014 = vmatprep.mubr.msk.bf16.mxu0 %vm20214_vm2, %v24658_v43  ;;  %v19321_v0 = vld [vmem:[#allocation6 + $0x4d0] sm:$0xff]  }
 0x6d9   : > { %17000 = vmatprep.subr.bf16.mxu0 %v24658_v43 }
 0x6dc   : > { %17001 = vmatpush3.bf16.msra.mxu0 %v19272_v6  ;;  %v19323_v6 = vld [vmem:[#allocation6 + $0x4e0] sm:$0xff]  }
 0x6dd   : > { %17002 = vmatprep.subr.bf16.mxu0 %v24658_v43 }
 0x6e0   : > { %17003 = vmatpush3.bf16.msra.mxu0 %v19273_v53  ;;  %v19324_v53 = vld [vmem:[#allocation6 + $0x4e8] sm:$0xff]  }
 0x6e1   : > { %17004 = vmatprep.subr.bf16.mxu0 %v24658_v43 }
 0x6e4   : > { %17005 = vmatpush3.bf16.msra.mxu0 %v19274_v58  ;;  %v19325_v58 = vld [vmem:[#allocation6 + $0x4f0] sm:$0xff]  }
 0x6e5   : > { %17006 = vmatprep.subr.bf16.mxu0 %v24658_v43 }
 0x6e8   : > { %17007 = vmatpush3.bf16.msra.mxu0 %v19275_v4  ;;  %v19326_v4 = vld [vmem:[#allocation6 + $0x4f8] sm:$0xff]  }
 0x6e9   : > { %17008 = vmatprep.subr.bf16.mxu0 %v24658_v43 }
 0x6ec   : > { %17009 = vmatpush3.bf16.msra.mxu0 %v19276_v62  ;;  %v19327_v62 = vld [vmem:[#allocation6 + $0x500] sm:$0xff]  }
 0x6ed   : > { %17010 = vmatprep.subr.bf16.mxu0 %v24658_v43 }
 0x6f0   : > { %17011 = vmatpush3.bf16.msra.mxu0 %v19277_v19  ;;  %v5087_v19 = vrot.slane %v22048_v56, 1 }
 0x6f1   : > { %17012 = vmatprep.subr.bf16.mxu0 %v24658_v43 }
 0x6f4   : > { %17013 = vmatpush3.bf16.msra.mxu0 %v19278_v13  ;;  %v19328_v13 = vld [vmem:[#allocation6 + $0x508] sm:$0xff]  }
 0x6f5   : > { %17018 = vmatprep.subr.bf16.mxu0 %v24658_v43 }
 0x6f7   : > { %17015 = vmatmul.mubr.bf16.vlgmr.msra.gmra.mrb[28].mxu0 %v4437_v30  ;;  %v19330_v30 = vld [vmem:[#allocation6 + $0x518] sm:$0xff]  }
 0x6f8   : > { %17019 = vmatpush3.bf16.msra.mxu0 %v19279_v40  ;;  %17034 = vmatprep.mubr.msk.bf16.mxu0 %vm20214_vm2, %v24658_v43  ;;  %v19329_v40 = vld [vmem:[#allocation6 + $0x510] sm:$0xff]  }
 0x6f9   : > { %17020 = vmatprep.subr.bf16.mxu0 %v24658_v43 }
 0x6fc   : > { %17021 = vmatpush3.bf16.msra.mxu0 %v19280_v16  ;;  %v19331_v16 = vld [vmem:[#allocation6 + $0x520] sm:$0xff]  }
 0x6fd   : > { %17022 = vmatprep.subr.bf16.mxu0 %v24658_v43 }
 0x700   : > { %17023 = vmatpush3.bf16.msra.mxu0 %v19281_v14  ;;  %v19332_v14 = vld [vmem:[#allocation6 + $0x528] sm:$0xff]  }
 0x701   : > { %17024 = vmatprep.subr.bf16.mxu0 %v24658_v43 }
 0x704   : > { %17025 = vmatpush3.bf16.msra.mxu0 %v19282_v42  ;;  %v19333_v42 = vld [vmem:[#allocation6 + $0x530] sm:$0xff]  }
 0x705   : > { %17026 = vmatprep.subr.bf16.mxu0 %v24658_v43 }
 0x708   : > { %17027 = vmatpush3.bf16.msra.mxu0 %v19283_v22  ;;  %v19334_v22 = vld [vmem:[#allocation6 + $0x538] sm:$0xff]  }
 0x709   : > { %17028 = vmatprep.subr.bf16.mxu0 %v24658_v43 }
 0x70c   : > { %17029 = vmatpush3.bf16.msra.mxu0 %v19284_v15  ;;  %v19335_v15 = vld [vmem:[#allocation6 + $0x540] sm:$0xff]  }
 0x70d   : > { %17030 = vmatprep.subr.bf16.mxu0 %v24658_v43 }
 0x710   : > { %17031 = vmatpush3.bf16.msra.mxu0 %v19285_v60  ;;  %v5195_v60 = vrot.slane %v22034_v59, 2 }
 0x711   : > { %17032 = vmatprep.subr.bf16.mxu0 %v24658_v43 }
 0x714   : > { %17033 = vmatpush3.bf16.msra.mxu0 %v19286_v52  ;;  %v19336_v52 = vld [vmem:[#allocation6 + $0x548] sm:$0xff]  }
 0x715   : > { %17038 = vmatprep.subr.bf16.mxu0 %v24658_v43 }
 0x717   : > { %17035 = vmatmul.mubr.bf16.vlgmr.msra.gmra.mrb[28].mxu0 %v4545_v34  ;;  %v19338_v34 = vld [vmem:[#allocation6 + $0x558] sm:$0xff]  }
 0x718   : > { %17039 = vmatpush3.bf16.msra.mxu0 %v19287_v35  ;;  %17054 = vmatprep.mubr.msk.bf16.mxu0 %vm20214_vm2, %v24658_v43  ;;  %v19337_v35 = vld [vmem:[#allocation6 + $0x550] sm:$0xff]  }
 0x719   : > { %17040 = vmatprep.subr.bf16.mxu0 %v24658_v43 }
 0x71c   : > { %17041 = vmatpush3.bf16.msra.mxu0 %v19288_v63  ;;  %v19339_v63 = vld [vmem:[#allocation6 + $0x560] sm:$0xff]  }
 0x71d   : > { %17042 = vmatprep.subr.bf16.mxu0 %v24658_v43 }
 0x720   : > { %17043 = vmatpush3.bf16.msra.mxu0 %v19289_v17  ;;  %v19340_v17 = vld [vmem:[#allocation6 + $0x568] sm:$0xff]  }
 0x721   : > { %17044 = vmatprep.subr.bf16.mxu0 %v24658_v43 }
 0x724   : > { %17045 = vmatpush3.bf16.msra.mxu0 %v19290_v25  ;;  %v19341_v25 = vld [vmem:[#allocation6 + $0x570] sm:$0xff]  }
 0x725   : > { %17046 = vmatprep.subr.bf16.mxu0 %v24658_v43 }
 0x728   : > { %17047 = vmatpush3.bf16.msra.mxu0 %v19291_v27  ;;  %v19342_v27 = vld [vmem:[#allocation6 + $0x578] sm:$0xff]  }
 0x729   : > { %17048 = vmatprep.subr.bf16.mxu0 %v24658_v43 }
 0x72c   : > { %17049 = vmatpush3.bf16.msra.mxu0 %v19292_v36  ;;  %v19343_v36 = vld [vmem:[#allocation6 + $0x580] sm:$0xff]  }
 0x72d   : > { %17050 = vmatprep.subr.bf16.mxu0 %v24658_v43 }
 0x730   : > { %17051 = vmatpush3.bf16.msra.mxu0 %v19293_v33  ;;  %v5303_v33 = vrot.slane %v22048_v56, 2 }
 0x731   : > { %17052 = vmatprep.subr.bf16.mxu0 %v24658_v43 }
 0x734   : > { %17053 = vmatpush3.bf16.msra.mxu0 %v19294_v48  ;;  %v19344_v48 = vld [vmem:[#allocation6 + $0x588] sm:$0xff]  }
 0x735   : > { %17058 = vmatprep.subr.bf16.mxu0 %v24658_v43 }
 0x737   : > { %17055 = vmatmul.mubr.bf16.vlgmr.msra.gmra.mrb[28].mxu0 %v4653_v51  ;;  %v19346_v51 = vld [vmem:[#allocation6 + $0x598] sm:$0xff]  }
 0x738   : > { %17059 = vmatpush3.bf16.msra.mxu0 %v19295_v21  ;;  %17074 = vmatprep.mubr.msk.bf16.mxu0 %vm20214_vm2, %v24658_v43  ;;  %v19345_v21 = vld [vmem:[#allocation6 + $0x590] sm:$0xff]  }
 0x739   : > { %17060 = vmatprep.subr.bf16.mxu0 %v24658_v43 }
 0x73c   : > { %17061 = vmatpush3.bf16.msra.mxu0 %v19296_v3  ;;  %v19347_v3 = vld [vmem:[#allocation6 + $0x5a0] sm:$0xff]  }
 0x73d   : > { %17062 = vmatprep.subr.bf16.mxu0 %v24658_v43 }
 0x740   : > { %17063 = vmatpush3.bf16.msra.mxu0 %v19297_v12  ;;  %v19348_v12 = vld [vmem:[#allocation6 + $0x5a8] sm:$0xff]  }
 0x741   : > { %17064 = vmatprep.subr.bf16.mxu0 %v24658_v43 }
 0x744   : > { %17065 = vmatpush3.bf16.msra.mxu0 %v19298_v46  ;;  %v19350_v46 = vld [vmem:[#allocation6 + $0x5b8] sm:$0xff]  }
 0x745   : > { %17066 = vmatprep.subr.bf16.mxu0 %v24658_v43 }
 0x748   : > { %17067 = vmatpush3.bf16.msra.mxu0 %v19299_v31  ;;  %v19351_v31 = vld [vmem:[#allocation6 + $0x5c0] sm:$0xff]  }
 0x749   : > { %17068 = vmatprep.subr.bf16.mxu0 %v24658_v43 }
 0x74c   : > { %17069 = vmatpush3.bf16.msra.mxu0 %v19300_v38  ;;  %v5411_v38 = vrot.slane %v22034_v59, 3 }
 0x74d   : > { %17070 = vmatprep.subr.bf16.mxu0 %v24658_v43 }
 0x750   : > { %17071 = vmatpush3.bf16.msra.mxu0 %v19301_v20  ;;  %v19352_v20 = vld [vmem:[#allocation6 + $0x5c8] sm:$0xff]  }
 0x751   : > { %17072 = vmatprep.subr.bf16.mxu0 %v24658_v43 }
 0x754   : > { %17073 = vmatpush3.bf16.msra.mxu0 %v19302_v9  ;;  %v19354_v9 = vld [vmem:[#allocation6 + $0x5d8] sm:$0xff]  }
 0x755   : > { %17078 = vmatprep.subr.bf16.mxu0 %v24658_v43 }
 0x757   : > { %17075 = vmatmul.mubr.bf16.vlgmr.msra.gmra.mrb[28].mxu0 %v22034_v59  ;;  %v19357_v59 = vld [vmem:[#allocation6 + $0x5f0] sm:$0xff]  }
 0x758   : > { %17079 = vmatpush3.bf16.msra.mxu0 %v19303_v11  ;;  %17094 = vmatprep.mubr.msk.bf16.mxu0 %vm20214_vm2, %v24658_v43  ;;  %v19356_v11 = vld [vmem:[#allocation6 + $0x5e8] sm:$0xff]  }
 0x759   : > { %17080 = vmatprep.subr.bf16.mxu0 %v24658_v43 }
 0x75c   : > { %17081 = vmatpush3.bf16.msra.mxu0 %v19304_v29  ;;  %v19358_v29 = vld [vmem:[#allocation6 + $0x5f8] sm:$0xff]  }
 0x75d   : > { %17082 = vmatprep.subr.bf16.mxu0 %v24658_v43 }
 0x760   : > { %17083 = vmatpush3.bf16.msra.mxu0 %v19305_v37  ;;  %v19359_v37 = vld [vmem:[#allocation6 + $0x600] sm:$0xff]  }
 0x761   : > { %17084 = vmatprep.subr.bf16.mxu0 %v24658_v43 }
 0x764   : > { %17085 = vmatpush3.bf16.msra.mxu0 %v19306_v10  ;;  %v5519_v10 = vrot.slane %v22048_v56, 3 }
 0x765   : > { %17086 = vmatprep.subr.bf16.mxu0 %v24658_v43 }
 0x768   : > { %17087 = vmatpush3.bf16.msra.mxu0 %v19307_v18  ;;  %v19360_v18 = vld [vmem:[#allocation6 + $0x608] sm:$0xff]  }
 0x769   : > { %17088 = vmatprep.subr.bf16.mxu0 %v24658_v43 }
 0x76c   : > { %17089 = vmatpush3.bf16.msra.mxu0 %v19308_v39  ;;  %v19361_v39 = vld [vmem:[#allocation6 + $0x610] sm:$0xff]  }
 0x76d   : > { %17090 = vmatprep.subr.bf16.mxu0 %v24658_v43 }
 0x770   : > { %17091 = vmatpush3.bf16.msra.mxu0 %v19309_v1  ;;  %v3003_v1 = vmax.f32 %v21843_v55, 1e-06  ;;  %v19366_v55 = vld [vmem:[#allocation6 + $0x638] sm:$0xff]  }
 0x771   : > { %17092 = vmatprep.subr.bf16.mxu0 %v24658_v43 }
 0x772   : > { %19901 = vlog2.f32 %v3003_v1  ;;  %v19414_v1 = vld [vmem:[#allocation6 + $0x7b8] sm:$0xff]  }
 0x774   : > { %17093 = vmatpush3.bf16.msra.mxu0 %v19310_v2  ;;  %v19362_v2 = vld [vmem:[#allocation6 + $0x618] sm:$0xff]  }
 0x775   : > { %17098 = vmatprep.subr.bf16.mxu0 %v24658_v43 }
 0x777   : > { %17095 = vmatmul.mubr.bf16.vlgmr.msra.gmra.mrb[28].mxu0 %v22048_v56  ;;  %v19364_v56 = vld [vmem:[#allocation6 + $0x628] sm:$0xff]  }
 0x778   : > { %17099 = vmatpush3.bf16.msra.mxu0 %v19311_v49  ;;  %17114 = vmatprep.mubr.msk.bf16.mxu0 %vm20214_vm2, %v24658_v43  ;;  %v19363_v49 = vld [vmem:[#allocation6 + $0x620] sm:$0xff]  }
 0x779   : > { %17100 = vmatprep.subr.bf16.mxu0 %v24658_v43 }
 0x77c   : > { %17101 = vmatpush3.bf16.msra.mxu0 %v19312_v61  ;;  %v19365_v61 = vld [vmem:[#allocation6 + $0x630] sm:$0xff]  }
 0x77d   : > { %17102 = vmatprep.subr.bf16.mxu0 %v24658_v43 }
 0x780   : > { %17103 = vmatpush3.bf16.msra.mxu0 %v19313_v26  ;;  %v19902_v26 = vpop.eup %19901 }
 0x781   : > { %17104 = vmatprep.subr.bf16.mxu0 %v24658_v43 }
 0x784   : > { %17105 = vmatpush3.bf16.msra.mxu0 %v19314_v54  ;;  %v3012_v54 = vmul.f32 0.6931472, %v19902_v26  ;;  %v19418_v26 = vld [vmem:[#allocation6 + $0x7d8] sm:$0xff]  }
 0x785   : > { %17106 = vmatprep.subr.bf16.mxu0 %v24658_v43 }
 0x788   : > { %17107 = vmatpush3.bf16.msra.mxu0 %v19315_v28  ;;  %v19367_v28 = vld [vmem:[#allocation6 + $0x640] sm:$0xff]  }
 0x789   : > { %17108 = vmatprep.subr.bf16.mxu0 %v24658_v43 }
 0x78c   : > { %17109 = vmatpush3.bf16.msra.mxu0 %v19316_v7  ;;  %v22128_v7 = vpack.c.bf16 %v3012_v54, %v3012_v54  ;;  %v19420_v54 = vld [vmem:[#allocation6 + $0x7e8] sm:$0xff]  }
 0x78d   : > { %17110 = vmatprep.subr.bf16.mxu0 %v24658_v43 }
 0x790   : > { %17111 = vmatpush3.bf16.msra.mxu0 %v19317_v50  ;;  %v19368_v50 = vld [vmem:[#allocation6 + $0x648] sm:$0xff]  }
 0x791   : > { %17112 = vmatprep.subr.bf16.mxu0 %v24658_v43 }
 0x794   : > { %17113 = vmatpush3.bf16.msra.mxu0 %v19318_v41  ;;  %v19369_v41 = vld [vmem:[#allocation6 + $0x650] sm:$0xff]  }
 0x795   : > { %17118 = vmatprep.subr.bf16.mxu0 %v24658_v43 }
 0x797   : > { %17115 = vmatmul.mubr.bf16.vlgmr.msra.gmra.mrb[28].mxu0 %v4979_v5  ;;  %v19371_v5 = vld [vmem:[#allocation6 + $0x660] sm:$0xff]  }
 0x798   : > { %17119 = vmatpush3.bf16.msra.mxu0 %v19319_v32  ;;  %17134 = vmatprep.mubr.msk.bf16.mxu0 %vm20214_vm2, %v24658_v43  ;;  %v19370_v32 = vld [vmem:[#allocation6 + $0x658] sm:$0xff]  }
 0x799   : > { %17120 = vmatprep.subr.bf16.mxu0 %v24658_v43 }
 0x79c   : > { %17121 = vmatpush3.bf16.msra.mxu0 %v19320_v57  ;;  %v19372_v57 = vld [vmem:[#allocation6 + $0x668] sm:$0xff]  }
 0x79d   : > { %17122 = vmatprep.subr.bf16.mxu0 %v24658_v43 }
 0x7a0   : > { %17123 = vmatpush3.bf16.msra.mxu0 %v19321_v0  ;;  %v19373_v0 = vld [vmem:[#allocation6 + $0x670] sm:$0xff]  }
 0x7a1   : > { %17124 = vmatprep.subr.bf16.mxu0 %v24658_v43 }
 0x7a4   : > { %17125 = vmatpush3.bf16.msra.mxu0 %v19322_v23  ;;  %v19374_v23 = vld [vmem:[#allocation6 + $0x678] sm:$0xff]  }
 0x7a5   : > { %17126 = vmatprep.subr.bf16.mxu0 %v24658_v43 }
 0x7a8   : > { %17127 = vmatpush3.bf16.msra.mxu0 %v19323_v6  ;;  %v19375_v6 = vld [vmem:[#allocation6 + $0x680] sm:$0xff]  }
 0x7a9   : > { %17128 = vmatprep.subr.bf16.mxu0 %v24658_v43 }
 0x7ac   : > { %17129 = vmatpush3.bf16.msra.mxu0 %v19324_v53  ;;  %v22142_v53 = vshrl.u32 %v22128_v7, 16 }
 0x7ad   : > { %17130 = vmatprep.subr.bf16.mxu0 %v24658_v43 }
 0x7b0   : > { %17131 = vmatpush3.bf16.msra.mxu0 %v19325_v58  ;;  %v19376_v58 = vld [vmem:[#allocation6 + $0x688] sm:$0xff]  }
 0x7b1   : > { %17132 = vmatprep.subr.bf16.mxu0 %v24658_v43 }
 0x7b4   : > { %17133 = vmatpush3.bf16.msra.mxu0 %v19326_v4  ;;  %v19377_v4 = vld [vmem:[#allocation6 + $0x690] sm:$0xff]  }
 0x7b5   : > { %17138 = vmatprep.subr.bf16.mxu0 %v24658_v43 }
 0x7b7   : > { %17135 = vmatmul.mubr.bf16.vlgmr.msra.gmra.mrb[28].mxu0 %v5087_v19  ;;  %v19379_v19 = vld [vmem:[#allocation6 + $0x6a0] sm:$0xff]  }
 0x7b8   : > { %17139 = vmatpush3.bf16.msra.mxu0 %v19327_v62  ;;  %17154 = vmatprep.mubr.msk.bf16.mxu0 %vm20214_vm2, %v24658_v43  ;;  %v19378_v62 = vld [vmem:[#allocation6 + $0x698] sm:$0xff]  }
 0x7b9   : > { %17140 = vmatprep.subr.bf16.mxu0 %v24658_v43 }
 0x7bc   : > { %17141 = vmatpush3.bf16.msra.mxu0 %v19328_v13  ;;  %v19380_v13 = vld [vmem:[#allocation6 + $0x6a8] sm:$0xff]  }
 0x7bd   : > { %17142 = vmatprep.subr.bf16.mxu0 %v24658_v43 }
 0x7c0   : > { %17143 = vmatpush3.bf16.msra.mxu0 %v19329_v40  ;;  %v19381_v40 = vld [vmem:[#allocation6 + $0x6b0] sm:$0xff]  }
 0x7c1   : > { %17144 = vmatprep.subr.bf16.mxu0 %v24658_v43 }
 0x7c4   : > { %17145 = vmatpush3.bf16.msra.mxu0 %v19330_v30  ;;  %v19382_v30 = vld [vmem:[#allocation6 + $0x6b8] sm:$0xff]  }
 0x7c5   : > { %17146 = vmatprep.subr.bf16.mxu0 %v24658_v43 }
 0x7c8   : > { %17147 = vmatpush3.bf16.msra.mxu0 %v19331_v16  ;;  %v19383_v16 = vld [vmem:[#allocation6 + $0x6c0] sm:$0xff]  }
 0x7c9   : > { %17148 = vmatprep.subr.bf16.mxu0 %v24658_v43 }
 0x7cc   : > { %17149 = vmatpush3.bf16.msra.mxu0 %v19332_v14  ;;  %v5845_v14 = vrot.slane %v22128_v7, 1 }
 0x7cd   : > { %17150 = vmatprep.subr.bf16.mxu0 %v24658_v43 }
 0x7d0   : > { %17151 = vmatpush3.bf16.msra.mxu0 %v19333_v42  ;;  %v19384_v42 = vld [vmem:[#allocation6 + $0x6c8] sm:$0xff]  }
 0x7d1   : > { %17152 = vmatprep.subr.bf16.mxu0 %v24658_v43 }
 0x7d4   : > { %17153 = vmatpush3.bf16.msra.mxu0 %v19334_v22  ;;  %v19385_v22 = vld [vmem:[#allocation6 + $0x6d0] sm:$0xff]  }
 0x7d5   : > { %17158 = vmatprep.subr.bf16.mxu0 %v24658_v43 }
 0x7d7   : > { %17155 = vmatmul.mubr.bf16.vlgmr.msra.gmra.mrb[28].mxu0 %v5195_v60  ;;  %v19387_v60 = vld [vmem:[#allocation6 + $0x6e0] sm:$0xff]  }
 0x7d8   : > { %17159 = vmatpush3.bf16.msra.mxu0 %v19335_v15  ;;  %17174 = vmatprep.mubr.msk.bf16.mxu0 %vm20214_vm2, %v24658_v43  ;;  %v19386_v15 = vld [vmem:[#allocation6 + $0x6d8] sm:$0xff]  }
 0x7d9   : > { %17160 = vmatprep.subr.bf16.mxu0 %v24658_v43 }
 0x7dc   : > { %17161 = vmatpush3.bf16.msra.mxu0 %v19336_v52  ;;  %v19388_v52 = vld [vmem:[#allocation6 + $0x6e8] sm:$0xff]  }
 0x7dd   : > { %17162 = vmatprep.subr.bf16.mxu0 %v24658_v43 }
 0x7e0   : > { %17163 = vmatpush3.bf16.msra.mxu0 %v19337_v35  ;;  %v19389_v35 = vld [vmem:[#allocation6 + $0x6f0] sm:$0xff]  }
 0x7e1   : > { %17164 = vmatprep.subr.bf16.mxu0 %v24658_v43 }
 0x7e4   : > { %17165 = vmatpush3.bf16.msra.mxu0 %v19338_v34  ;;  %v19390_v34 = vld [vmem:[#allocation6 + $0x6f8] sm:$0xff]  }
 0x7e5   : > { %17166 = vmatprep.subr.bf16.mxu0 %v24658_v43 }
 0x7e8   : > { %17167 = vmatpush3.bf16.msra.mxu0 %v19339_v63  ;;  %v19391_v63 = vld [vmem:[#allocation6 + $0x700] sm:$0xff]  }
 0x7e9   : > { %17168 = vmatprep.subr.bf16.mxu0 %v24658_v43 }
 0x7ec   : > { %17169 = vmatpush3.bf16.msra.mxu0 %v19340_v17  ;;  %v5953_v17 = vrot.slane %v22142_v53, 1 }
 0x7ed   : > { %17170 = vmatprep.subr.bf16.mxu0 %v24658_v43 }
 0x7f0   : > { %17171 = vmatpush3.bf16.msra.mxu0 %v19341_v25  ;;  %v19392_v25 = vld [vmem:[#allocation6 + $0x708] sm:$0xff]  }
 0x7f1   : > { %17172 = vmatprep.subr.bf16.mxu0 %v24658_v43 }
 0x7f4   : > { %17173 = vmatpush3.bf16.msra.mxu0 %v19342_v27  ;;  %v19393_v27 = vld [vmem:[#allocation6 + $0x710] sm:$0xff]  }
 0x7f5   : > { %17178 = vmatprep.subr.bf16.mxu0 %v24658_v43 }
 0x7f7   : > { %17175 = vmatmul.mubr.bf16.vlgmr.msra.gmra.mrb[28].mxu0 %v5303_v33  ;;  %v19395_v33 = vld [vmem:[#allocation6 + $0x720] sm:$0xff]  }
 0x7f8   : > { %17179 = vmatpush3.bf16.msra.mxu0 %v19343_v36  ;;  %17194 = vmatprep.mubr.msk.bf16.mxu0 %vm20214_vm2, %v24658_v43  ;;  %v19394_v36 = vld [vmem:[#allocation6 + $0x718] sm:$0xff]  }
 0x7f9   : > { %17180 = vmatprep.subr.bf16.mxu0 %v24658_v43 }
 0x7fc   : > { %17181 = vmatpush3.bf16.msra.mxu0 %v19344_v48  ;;  %v19396_v48 = vld [vmem:[#allocation6 + $0x728] sm:$0xff]  }
 0x7fd   : > { %17182 = vmatprep.subr.bf16.mxu0 %v24658_v43 }
 0x800   : > { %17183 = vmatpush3.bf16.msra.mxu0 %v19345_v21  ;;  %v19397_v21 = vld [vmem:[#allocation6 + $0x730] sm:$0xff]  }
 0x801   : > { %17184 = vmatprep.subr.bf16.mxu0 %v24658_v43 }
 0x804   : > { %17185 = vmatpush3.bf16.msra.mxu0 %v19346_v51  ;;  %v19398_v51 = vld [vmem:[#allocation6 + $0x738] sm:$0xff]  }
 0x805   : > { %17186 = vmatprep.subr.bf16.mxu0 %v24658_v43 }
 0x808   : > { %17187 = vmatpush3.bf16.msra.mxu0 %v19347_v3  ;;  %v19399_v3 = vld [vmem:[#allocation6 + $0x740] sm:$0xff]  }
 0x809   : > { %17188 = vmatprep.subr.bf16.mxu0 %v24658_v43 }
 0x80c   : > { %17189 = vmatpush3.bf16.msra.mxu0 %v19348_v12  ;;  %v6061_v12 = vrot.slane %v22128_v7, 2 }
 0x80d   : > { %17190 = vmatprep.subr.bf16.mxu0 %v24658_v43 }
 0x810   : > { %17191 = vmatpush3.bf16.msra.mxu0 %v19349_v44  ;;  %v19400_v44 = vld [vmem:[#allocation6 + $0x748] sm:$0xff]  }
 0x811   : > { %17192 = vmatprep.subr.bf16.mxu0 %v24658_v43 }
 0x814   : > { %17193 = vmatpush3.bf16.msra.mxu0 %v19350_v46  ;;  %v19401_v46 = vld [vmem:[#allocation6 + $0x750] sm:$0xff]  }
 0x815   : > { %17198 = vmatprep.subr.bf16.mxu0 %v24658_v43 }
 0x817   : > { %17195 = vmatmul.mubr.bf16.vlgmr.msra.gmra.mrb[28].mxu0 %v5411_v38  ;;  %v19403_v38 = vld [vmem:[#allocation6 + $0x760] sm:$0xff]  }
 0x818   : > { %17199 = vmatpush3.bf16.msra.mxu0 %v19351_v31  ;;  %17214 = vmatprep.mubr.msk.bf16.mxu0 %vm20214_vm2, %v24658_v43  ;;  %v19402_v31 = vld [vmem:[#allocation6 + $0x758] sm:$0xff]  }
 0x819   : > { %17200 = vmatprep.subr.bf16.mxu0 %v24658_v43 }
 0x81c   : > { %17201 = vmatpush3.bf16.msra.mxu0 %v19352_v20  ;;  %v19404_v20 = vld [vmem:[#allocation6 + $0x768] sm:$0xff]  }
 0x81d   : > { %17202 = vmatprep.subr.bf16.mxu0 %v24658_v43 }
 0x820   : > { %17203 = vmatpush3.bf16.msra.mxu0 %v19353_v8  ;;  %v19405_v8 = vld [vmem:[#allocation6 + $0x770] sm:$0xff]  }
 0x821   : > { %17204 = vmatprep.subr.bf16.mxu0 %v24658_v43 }
 0x824   : > { %17205 = vmatpush3.bf16.msra.mxu0 %v19354_v9  ;;  %v19406_v9 = vld [vmem:[#allocation6 + $0x778] sm:$0xff]  }
 0x825   : > { %17206 = vmatprep.subr.bf16.mxu0 %v24658_v43 }
 0x828   : > { %17207 = vmatpush3.bf16.msra.mxu0 %v19355_v45  ;;  %v19407_v45 = vld [vmem:[#allocation6 + $0x780] sm:$0xff]  }
 0x829   : > { %17208 = vmatprep.subr.bf16.mxu0 %v24658_v43 }
 0x82c   : > { %17209 = vmatpush3.bf16.msra.mxu0 %v19356_v11  ;;  %v6169_v11 = vrot.slane %v22142_v53, 2 }
 0x82d   : > { %17210 = vmatprep.subr.bf16.mxu0 %v24658_v43 }
 0x830   : > { %17211 = vmatpush3.bf16.msra.mxu0 %v19357_v59  ;;  %v19408_v59 = vld [vmem:[#allocation6 + $0x788] sm:$0xff]  }
 0x831   : > { %17212 = vmatprep.subr.bf16.mxu0 %v24658_v43 }
 0x834   : > { %17213 = vmatpush3.bf16.msra.mxu0 %v19358_v29  ;;  %v19409_v29 = vld [vmem:[#allocation6 + $0x790] sm:$0xff]  }
 0x835   : > { %17218 = vmatprep.subr.bf16.mxu0 %v24658_v43 }
 0x837   : > { %17215 = vmatmul.mubr.bf16.vlgmr.msra.gmra.mrb[28].mxu0 %v5519_v10  ;;  %v19411_v10 = vld [vmem:[#allocation6 + $0x7a0] sm:$0xff]  }
 0x838   : > { %17219 = vmatpush3.bf16.msra.mxu0 %v19359_v37  ;;  %17234 = vmatprep.mubr.msk.bf16.mxu0 %vm20214_vm2, %v24658_v43  ;;  %v19410_v37 = vld [vmem:[#allocation6 + $0x798] sm:$0xff]  }
 0x839   : > { %17220 = vmatprep.subr.bf16.mxu0 %v24658_v43 }
 0x83c   : > { %17221 = vmatpush3.bf16.msra.mxu0 %v19360_v18  ;;  %v19412_v18 = vld [vmem:[#allocation6 + $0x7a8] sm:$0xff]  }
 0x83d   : > { %17222 = vmatprep.subr.bf16.mxu0 %v24658_v43 }
 0x840   : > { %17223 = vmatpush3.bf16.msra.mxu0 %v19361_v39  ;;  %v19413_v39 = vld [vmem:[#allocation6 + $0x7b0] sm:$0xff]  }
 0x841   : > { %17224 = vmatprep.subr.bf16.mxu0 %v24658_v43 }
 0x844   : > { %17225 = vmatpush3.bf16.msra.mxu0 %v19362_v2  ;;  %v19415_v2 = vld [vmem:[#allocation6 + $0x7c0] sm:$0xff]  }
 0x845   : > { %17226 = vmatprep.subr.bf16.mxu0 %v24658_v43 }
 0x848   : > { %17227 = vmatpush3.bf16.msra.mxu0 %v19363_v49  ;;  %v6277_v49 = vrot.slane %v22128_v7, 3 }
 0x849   : > { %17228 = vmatprep.subr.bf16.mxu0 %v24658_v43 }
 0x84c   : > { %17229 = vmatpush3.bf16.msra.mxu0 %v19364_v56  ;;  %v19416_v56 = vld [vmem:[#allocation6 + $0x7c8] sm:$0xff]  }
 0x84d   : > { %17230 = vmatprep.subr.bf16.mxu0 %v24658_v43 }
 0x850   : > { %17231 = vmatpush3.bf16.msra.mxu0 %v19365_v61  ;;  %v19417_v61 = vld [vmem:[#allocation6 + $0x7d0] sm:$0xff]  }
 0x851   : > { %17232 = vmatprep.subr.bf16.mxu0 %v24658_v43 }
 0x854   : > { %17233 = vmatpush3.bf16.msra.mxu0 %v19366_v55  ;;  %v19419_v55 = vld [vmem:[#allocation6 + $0x7e0] sm:$0xff]  }
 0x855   : > { %17238 = vmatprep.subr.bf16.mxu0 %v24658_v43 }
 0x857   : > { %17235 = vmatmul.mubr.bf16.vlgmr.msra.gmra.mrb[28].mxu0 %v22128_v7  ;;  %v19422_v7 = vld [vmem:[#allocation6 + $0x7f8] sm:$0xff]  }
 0x858   : > { %17239 = vmatpush3.bf16.msra.mxu0 %v19367_v28  ;;  %17254 = vmatprep.mubr.msk.bf16.mxu0 %vm20214_vm2, %v24658_v43  ;;  %v19421_v28 = vld [vmem:[#allocation6 + $0x7f0] sm:$0xff]  }
 0x859   : > { %17240 = vmatprep.subr.bf16.mxu0 %v24658_v43 }
 0x85c   : > { %17241 = vmatpush3.bf16.msra.mxu0 %v19368_v50  ;;  %v19423_v50 = vld [vmem:[#allocation6 + $0x800] sm:$0xff]  }
 0x85d   : > { %17242 = vmatprep.subr.bf16.mxu0 %v24658_v43 }
 0x860   : > { %17243 = vmatpush3.bf16.msra.mxu0 %v19369_v41  ;;  %v6385_v41 = vrot.slane %v22142_v53, 3 }
 0x861   : > { %17244 = vmatprep.subr.bf16.mxu0 %v24658_v43 }
 0x864   : > { %17245 = vmatpush3.bf16.msra.mxu0 %v19370_v32  ;;  %v19424_v32 = vld [vmem:[#allocation6 + $0x808] sm:$0xff]  }
 0x865   : > { %17246 = vmatprep.subr.bf16.mxu0 %v24658_v43 }
 0x868   : > { %17247 = vmatpush3.bf16.msra.mxu0 %v19371_v5  ;;  %v19425_v5 = vld [vmem:[#allocation6 + $0x810] sm:$0xff]  }
 0x869   : > { %17248 = vmatprep.subr.bf16.mxu0 %v24658_v43 }
 0x86c   : > { %17249 = vmatpush3.bf16.msra.mxu0 %v19372_v57  ;;  %v3004_v57 = vmax.f32 %v21845_v24, 1e-06  ;;  %v19430_v24 = vld [vmem:[#allocation6 + $0x838] sm:$0xff]  }
 0x86d   : > { %17250 = vmatprep.subr.bf16.mxu0 %v24658_v43 }
 0x86e   : > { %19903 = vlog2.f32 %v3004_v57  ;;  %v19473_v57 = vld [vmem:[#allocation6 + $0x990] sm:$0xff]  }
 0x870   : > { %17251 = vmatpush3.bf16.msra.mxu0 %v19373_v0  ;;  %v19426_v0 = vld [vmem:[#allocation6 + $0x818] sm:$0xff]  }
 0x871   : > { %17252 = vmatprep.subr.bf16.mxu0 %v24658_v43 }
 0x874   : > { %17253 = vmatpush3.bf16.msra.mxu0 %v19374_v23  ;;  %v19427_v23 = vld [vmem:[#allocation6 + $0x820] sm:$0xff]  }
 0x875   : > { %17258 = vmatprep.subr.bf16.mxu0 %v24658_v43 }
 0x877   : > { %17255 = vmatmul.mubr.bf16.vlgmr.msra.gmra.mrb[28].mxu0 %v22142_v53  ;;  %v19429_v53 = vld [vmem:[#allocation6 + $0x830] sm:$0xff]  }
 0x878   : > { %17259 = vmatpush3.bf16.msra.mxu0 %v19375_v6  ;;  %17274 = vmatprep.mubr.msk.bf16.mxu0 %vm20214_vm2, %v24658_v43  ;;  %v19428_v6 = vld [vmem:[#allocation6 + $0x828] sm:$0xff]  }
 0x879   : > { %17260 = vmatprep.subr.bf16.mxu0 %v24658_v43 }
 0x87c   : > { %17261 = vmatpush3.bf16.msra.mxu0 %v19376_v58  ;;  %v19904_v58 = vpop.eup %19903 }
 0x87d   : > { %17262 = vmatprep.subr.bf16.mxu0 %v24658_v43 }
 0x880   : > { %17263 = vmatpush3.bf16.msra.mxu0 %v19377_v4  ;;  %v3014_v4 = vmul.f32 0.6931472, %v19904_v58  ;;  %v19478_v58 = vld [vmem:[#allocation6 + $0x9b8] sm:$0xff]  }
 0x881   : > { %17264 = vmatprep.subr.bf16.mxu0 %v24658_v43 }
 0x884   : > { %17265 = vmatpush3.bf16.msra.mxu0 %v19378_v62  ;;  %v19431_v62 = vld [vmem:[#allocation6 + $0x840] sm:$0xff]  }
 0x885   : > { %17266 = vmatprep.subr.bf16.mxu0 %v24658_v43 }
 0x888   : > { %17267 = vmatpush3.bf16.msra.mxu0 %v19379_v19  ;;  %v22222_v19 = vpack.c.bf16 %v3014_v4, %v3014_v4 }
 0x889   : > { %17268 = vmatprep.subr.bf16.mxu0 %v24658_v43 }
 0x88a   : > { %v7143_v4 = vrot.slane %v22222_v19, 3 }
 0x88c   : > { %17269 = vmatpush3.bf16.msra.mxu0 %v19380_v13  ;;  %v19432_v13 = vld [vmem:[#allocation6 + $0x848] sm:$0xff]  }
 0x88d   : > { %17270 = vmatprep.subr.bf16.mxu0 %v24658_v43 }
 0x890   : > { %17271 = vmatpush3.bf16.msra.mxu0 %v19381_v40  ;;  %v19433_v40 = vld [vmem:[#allocation6 + $0x850] sm:$0xff]  }
 0x891   : > { %17272 = vmatprep.subr.bf16.mxu0 %v24658_v43 }
 0x894   : > { %17273 = vmatpush3.bf16.msra.mxu0 %v19382_v30  ;;  %v19434_v30 = vld [vmem:[#allocation6 + $0x858] sm:$0xff]  }
 0x895   : > { %17278 = vmatprep.subr.bf16.mxu0 %v24658_v43 }
 0x897   : > { %17275 = vmatmul.mubr.bf16.vlgmr.msra.gmra.mrb[28].mxu0 %v5845_v14  ;;  %v19436_v14 = vld [vmem:[#allocation6 + $0x868] sm:$0xff]  }
 0x898   : > { %17279 = vmatpush3.bf16.msra.mxu0 %v19383_v16  ;;  %17294 = vmatprep.mubr.msk.bf16.mxu0 %vm20214_vm2, %v24658_v43  ;;  %v19435_v16 = vld [vmem:[#allocation6 + $0x860] sm:$0xff]  }
 0x899   : > { %17280 = vmatprep.subr.bf16.mxu0 %v24658_v43 }
 0x89c   : > { %17281 = vmatpush3.bf16.msra.mxu0 %v19384_v42  ;;  %v19437_v42 = vld [vmem:[#allocation6 + $0x870] sm:$0xff]  }
 0x89d   : > { %17282 = vmatprep.subr.bf16.mxu0 %v24658_v43 }
 0x8a0   : > { %17283 = vmatpush3.bf16.msra.mxu0 %v19385_v22  ;;  %v19438_v22 = vld [vmem:[#allocation6 + $0x878] sm:$0xff]  }
 0x8a1   : > { %17284 = vmatprep.subr.bf16.mxu0 %v24658_v43 }
 0x8a4   : > { %17285 = vmatpush3.bf16.msra.mxu0 %v19386_v15  ;;  %v19439_v15 = vld [vmem:[#allocation6 + $0x880] sm:$0xff]  }
 0x8a5   : > { %17286 = vmatprep.subr.bf16.mxu0 %v24658_v43 }
 0x8a8   : > { %17287 = vmatpush3.bf16.msra.mxu0 %v19387_v60  ;;  %v22236_v60 = vshrl.u32 %v22222_v19, 16 }
 0x8a9   : > { %17288 = vmatprep.subr.bf16.mxu0 %v24658_v43 }
 0x8ac   : > { %17289 = vmatpush3.bf16.msra.mxu0 %v19388_v52  ;;  %v19440_v52 = vld [vmem:[#allocation6 + $0x888] sm:$0xff]  }
 0x8ad   : > { %17290 = vmatprep.subr.bf16.mxu0 %v24658_v43 }
 0x8b0   : > { %17291 = vmatpush3.bf16.msra.mxu0 %v19389_v35  ;;  %v19441_v35 = vld [vmem:[#allocation6 + $0x890] sm:$0xff]  }
 0x8b1   : > { %17292 = vmatprep.subr.bf16.mxu0 %v24658_v43 }
 0x8b4   : > { %17293 = vmatpush3.bf16.msra.mxu0 %v19390_v34  ;;  %v19442_v34 = vld [vmem:[#allocation6 + $0x898] sm:$0xff]  }
 0x8b5   : > { %17298 = vmatprep.subr.bf16.mxu0 %v24658_v43 }
 0x8b7   : > { %17295 = vmatmul.mubr.bf16.vlgmr.msra.gmra.mrb[28].mxu0 %v5953_v17  ;;  %v19444_v17 = vld [vmem:[#allocation6 + $0x8a8] sm:$0xff]  }
 0x8b8   : > { %17299 = vmatpush3.bf16.msra.mxu0 %v19391_v63  ;;  %17314 = vmatprep.mubr.msk.bf16.mxu0 %vm20214_vm2, %v24658_v43  ;;  %v19443_v63 = vld [vmem:[#allocation6 + $0x8a0] sm:$0xff]  }
 0x8b9   : > { %17300 = vmatprep.subr.bf16.mxu0 %v24658_v43 }
 0x8bc   : > { %17301 = vmatpush3.bf16.msra.mxu0 %v19392_v25  ;;  %v19445_v25 = vld [vmem:[#allocation6 + $0x8b0] sm:$0xff]  }
 0x8bd   : > { %17302 = vmatprep.subr.bf16.mxu0 %v24658_v43 }
 0x8c0   : > { %17303 = vmatpush3.bf16.msra.mxu0 %v19393_v27  ;;  %v19446_v27 = vld [vmem:[#allocation6 + $0x8b8] sm:$0xff]  }
 0x8c1   : > { %17304 = vmatprep.subr.bf16.mxu0 %v24658_v43 }
 0x8c4   : > { %17305 = vmatpush3.bf16.msra.mxu0 %v19394_v36  ;;  %v19447_v36 = vld [vmem:[#allocation6 + $0x8c0] sm:$0xff]  }
 0x8c5   : > { %17306 = vmatprep.subr.bf16.mxu0 %v24658_v43 }
 0x8c8   : > { %17307 = vmatpush3.bf16.msra.mxu0 %v19395_v33  ;;  %v6711_v33 = vrot.slane %v22222_v19, 1 }
 0x8c9   : > { %17308 = vmatprep.subr.bf16.mxu0 %v24658_v43 }
 0x8cc   : > { %17309 = vmatpush3.bf16.msra.mxu0 %v19396_v48  ;;  %v19448_v48 = vld [vmem:[#allocation6 + $0x8c8] sm:$0xff]  }
 0x8cd   : > { %17310 = vmatprep.subr.bf16.mxu0 %v24658_v43 }
 0x8d0   : > { %17311 = vmatpush3.bf16.msra.mxu0 %v19397_v21  ;;  %v19449_v21 = vld [vmem:[#allocation6 + $0x8d0] sm:$0xff]  }
 0x8d1   : > { %17312 = vmatprep.subr.bf16.mxu0 %v24658_v43 }
 0x8d4   : > { %17313 = vmatpush3.bf16.msra.mxu0 %v19398_v51  ;;  %v19450_v51 = vld [vmem:[#allocation6 + $0x8d8] sm:$0xff]  }
 0x8d5   : > { %17318 = vmatprep.subr.bf16.mxu0 %v24658_v43 }
 0x8d7   : > { %17315 = vmatmul.mubr.bf16.vlgmr.msra.gmra.mrb[28].mxu0 %v6061_v12  ;;  %v19452_v12 = vld [vmem:[#allocation6 + $0x8e8] sm:$0xff]  }
 0x8d8   : > { %17319 = vmatpush3.bf16.msra.mxu0 %v19399_v3  ;;  %17334 = vmatprep.mubr.msk.bf16.mxu0 %vm20214_vm2, %v24658_v43  ;;  %v19451_v3 = vld [vmem:[#allocation6 + $0x8e0] sm:$0xff]  }
 0x8d9   : > { %17320 = vmatprep.subr.bf16.mxu0 %v24658_v43 }
 0x8dc   : > { %17321 = vmatpush3.bf16.msra.mxu0 %v19400_v44  ;;  %v19453_v44 = vld [vmem:[#allocation6 + $0x8f0] sm:$0xff]  }
 0x8dd   : > { %17322 = vmatprep.subr.bf16.mxu0 %v24658_v43 }
 0x8e0   : > { %17323 = vmatpush3.bf16.msra.mxu0 %v19401_v46  ;;  %v19454_v46 = vld [vmem:[#allocation6 + $0x8f8] sm:$0xff]  }
 0x8e1   : > { %17324 = vmatprep.subr.bf16.mxu0 %v24658_v43 }
 0x8e4   : > { %17325 = vmatpush3.bf16.msra.mxu0 %v19402_v31  ;;  %v19455_v31 = vld [vmem:[#allocation6 + $0x900] sm:$0xff]  }
 0x8e5   : > { %17326 = vmatprep.subr.bf16.mxu0 %v24658_v43 }
 0x8e8   : > { %17327 = vmatpush3.bf16.msra.mxu0 %v19403_v38  ;;  %v6819_v38 = vrot.slane %v22236_v60, 1 }
 0x8e9   : > { %17328 = vmatprep.subr.bf16.mxu0 %v24658_v43 }
 0x8ec   : > { %17329 = vmatpush3.bf16.msra.mxu0 %v19404_v20  ;;  %v19487_v20 = vld [vmem:[%s24209_s7] sm:$0xff]  }
 0x8ed   : > { %17330 = vmatprep.subr.bf16.mxu0 %v24658_v43  ;;  %17539 = vmatpush3.bf16.msra.mxu1 %v19487_v20 }
 0x8ee   : > { %17540 = vmatprep.subr.bf16.mxu1 %v24658_v43 }
 0x8f0   : > { %17331 = vmatpush3.bf16.msra.mxu0 %v19405_v8  ;;  %v19456_v8 = vld [vmem:[#allocation6 + $0x908] sm:$0xff]  }
 0x8f1   : > { %17332 = vmatprep.subr.bf16.mxu0 %v24658_v43 }
 0x8f4   : > { %17333 = vmatpush3.bf16.msra.mxu0 %v19406_v9  ;;  %v19488_v9 = vld [vmem:[%s24209_s7 + $0x8] sm:$0xff]  }
 0x8f5   : > { %17338 = vmatprep.subr.bf16.mxu0 %v24658_v43  ;;  %17541 = vmatpush3.bf16.msra.mxu1 %v19488_v9 }
 0x8f6   : > { %17542 = vmatprep.subr.bf16.mxu1 %v24658_v43 }
 0x8f7   : > { %17335 = vmatmul.mubr.bf16.vlgmr.msra.gmra.mrb[28].mxu0 %v6169_v11  ;;  %v19489_v11 = vld [vmem:[%s24209_s7 + $0x10] sm:$0xff]  }
 0x8f8   : > { %17339 = vmatpush3.bf16.msra.mxu0 %v19407_v45  ;;  %17354 = vmatprep.mubr.msk.bf16.mxu0 %vm20214_vm2, %v24658_v43  ;;  %v19457_v45 = vld [vmem:[#allocation6 + $0x910] sm:$0xff]  }
 0x8f9   : > { %17340 = vmatprep.subr.bf16.mxu0 %v24658_v43  ;;  %17543 = vmatpush3.bf16.msra.mxu1 %v19489_v11 }
 0x8fa   : > { %17544 = vmatprep.subr.bf16.mxu1 %v24658_v43 }
 0x8fc   : > { %17341 = vmatpush3.bf16.msra.mxu0 %v19408_v59  ;;  %v19458_v59 = vld [vmem:[#allocation6 + $0x918] sm:$0xff]  }
 0x8fd   : > { %17342 = vmatprep.subr.bf16.mxu0 %v24658_v43 }
 0x900   : > { %17343 = vmatpush3.bf16.msra.mxu0 %v19409_v29  ;;  %v19490_v29 = vld [vmem:[%s24209_s7 + $0x18] sm:$0xff]  }
 0x901   : > { %17344 = vmatprep.subr.bf16.mxu0 %v24658_v43  ;;  %17545 = vmatpush3.bf16.msra.mxu1 %v19490_v29  ;;  %v19502_v29 = vld [vmem:[%s20529_s24 + $0xcc] ss:$12 sps:$4 sm:$0xff]  }
 0x902   : > { %17546 = vmatprep.subr.bf16.mxu1 %v24658_v43 }
 0x904   : > { %17345 = vmatpush3.bf16.msra.mxu0 %v19410_v37  ;;  %v19459_v37 = vld [vmem:[#allocation6 + $0x920] sm:$0xff]  }
 0x905   : > { %17346 = vmatprep.subr.bf16.mxu0 %v24658_v43 }
 0x908   : > { %17347 = vmatpush3.bf16.msra.mxu0 %v19411_v10  ;;  %v19491_v10 = vld [vmem:[%s24209_s7 + $0x20] sm:$0xff]  }
 0x909   : > { %17348 = vmatprep.subr.bf16.mxu0 %v24658_v43  ;;  %17547 = vmatpush3.bf16.msra.mxu1 %v19491_v10  ;;  %v19507_v10 = vld [vmem:[%s20529_s24 + $0xe8] ss:$12 sps:$4 sm:$0xff]  }
 0x90a   : > { %17548 = vmatprep.subr.bf16.mxu1 %v24658_v43 }
 0x90c   : > { %17349 = vmatpush3.bf16.msra.mxu0 %v19412_v18  ;;  %v19460_v18 = vld [vmem:[#allocation6 + $0x928] sm:$0xff]  }
 0x90d   : > { %17350 = vmatprep.subr.bf16.mxu0 %v24658_v43 }
 0x910   : > { %17351 = vmatpush3.bf16.msra.mxu0 %v19413_v39  ;;  %v19492_v39 = vld [vmem:[%s24209_s7 + $0x28] sm:$0xff]  }
 0x911   : > { %17352 = vmatprep.subr.bf16.mxu0 %v24658_v43  ;;  %17549 = vmatpush3.bf16.msra.mxu1 %v19492_v39  ;;  %v19510_v39 = vld [vmem:[%s20529_s24 + $0x100] ss:$12 sps:$4 sm:$0xff]  }
 0x912   : > { %17550 = vmatprep.subr.bf16.mxu1 %v24658_v43 }
 0x914   : > { %17353 = vmatpush3.bf16.msra.mxu0 %v19414_v1  ;;  %v19461_v1 = vld [vmem:[#allocation6 + $0x930] sm:$0xff]  }
 0x915   : > { %17358 = vmatprep.subr.bf16.mxu0 %v24658_v43 }
 0x917   : > { %17355 = vmatmul.mubr.bf16.vlgmr.msra.gmra.mrb[28].mxu0 %v6277_v49  ;;  %v19463_v49 = vld [vmem:[#allocation6 + $0x940] sm:$0xff]  }
 0x918   : > { %17359 = vmatpush3.bf16.msra.mxu0 %v19415_v2  ;;  %17374 = vmatprep.mubr.msk.bf16.mxu0 %vm20214_vm2, %v24658_v43  ;;  %v19462_v2 = vld [vmem:[#allocation6 + $0x938] sm:$0xff]  }
 0x919   : > { %17360 = vmatprep.subr.bf16.mxu0 %v24658_v43 }
 0x91c   : > { %17361 = vmatpush3.bf16.msra.mxu0 %v19416_v56  ;;  %v6927_v56 = vrot.slane %v22222_v19, 2 }
 0x91d   : > { %17362 = vmatprep.subr.bf16.mxu0 %v24658_v43 }
 0x920   : > { %17363 = vmatpush3.bf16.msra.mxu0 %v19417_v61  ;;  %v19464_v61 = vld [vmem:[#allocation6 + $0x948] sm:$0xff]  }
 0x921   : > { %17364 = vmatprep.subr.bf16.mxu0 %v24658_v43 }
 0x924   : > { %17365 = vmatpush3.bf16.msra.mxu0 %v19418_v26  ;;  %v19465_v26 = vld [vmem:[#allocation6 + $0x950] sm:$0xff]  }
 0x925   : > { %17366 = vmatprep.subr.bf16.mxu0 %v24658_v43 }
 0x928   : > { %17367 = vmatpush3.bf16.msra.mxu0 %v19419_v55  ;;  %v19466_v55 = vld [vmem:[#allocation6 + $0x958] sm:$0xff]  }
 0x929   : > { %17368 = vmatprep.subr.bf16.mxu0 %v24658_v43 }
 0x92c   : > { %17369 = vmatpush3.bf16.msra.mxu0 %v19420_v54  ;;  %v19467_v54 = vld [vmem:[#allocation6 + $0x960] sm:$0xff]  }
 0x92d   : > { %17370 = vmatprep.subr.bf16.mxu0 %v24658_v43 }
 0x930   : > { %17371 = vmatpush3.bf16.msra.mxu0 %v19421_v28  ;;  %v19468_v28 = vld [vmem:[#allocation6 + $0x968] sm:$0xff]  }
 0x931   : > { %17372 = vmatprep.subr.bf16.mxu0 %v24658_v43 }
 0x934   : > { %17373 = vmatpush3.bf16.msra.mxu0 %v19422_v7  ;;  %v19469_v7 = vld [vmem:[#allocation6 + $0x970] sm:$0xff]  }
 0x935   : > { %17378 = vmatprep.subr.bf16.mxu0 %v24658_v43 }
 0x937   : > { %17375 = vmatmul.mubr.bf16.vlgmr.msra.gmra.mrb[28].mxu0 %v6385_v41  ;;  %v19471_v41 = vld [vmem:[#allocation6 + $0x980] sm:$0xff]  }
 0x938   : > { %17379 = vmatpush3.bf16.msra.mxu0 %v19423_v50  ;;  %17394 = vmatprep.mubr.msk.bf16.mxu0 %vm20214_vm2, %v24658_v43  ;;  %v19470_v50 = vld [vmem:[#allocation6 + $0x978] sm:$0xff]  }
 0x939   : > { %17380 = vmatprep.subr.bf16.mxu0 %v24658_v43 }
 0x93c   : > { %17381 = vmatpush3.bf16.msra.mxu0 %v19424_v32  ;;  %v7035_v32 = vrot.slane %v22236_v60, 2 }
 0x93d   : > { %17382 = vmatprep.subr.bf16.mxu0 %v24658_v43 }
 0x940   : > { %17383 = vmatpush3.bf16.msra.mxu0 %v19425_v5  ;;  %v19472_v5 = vld [vmem:[#allocation6 + $0x988] sm:$0xff]  }
 0x941   : > { %17384 = vmatprep.subr.bf16.mxu0 %v24658_v43 }
 0x944   : > { %17385 = vmatpush3.bf16.msra.mxu0 %v19426_v0  ;;  %v19474_v0 = vld [vmem:[#allocation6 + $0x998] sm:$0xff]  }
 0x945   : > { %17386 = vmatprep.subr.bf16.mxu0 %v24658_v43 }
 0x948   : > { %17387 = vmatpush3.bf16.msra.mxu0 %v19427_v23  ;;  %v19475_v23 = vld [vmem:[#allocation6 + $0x9a0] sm:$0xff]  }
 0x949   : > { %17388 = vmatprep.subr.bf16.mxu0 %v24658_v43 }
 0x94c   : > { %17389 = vmatpush3.bf16.msra.mxu0 %v19428_v6  ;;  %v19476_v6 = vld [vmem:[#allocation6 + $0x9a8] sm:$0xff]  }
 0x94d   : > { %17390 = vmatprep.subr.bf16.mxu0 %v24658_v43 }
 0x950   : > { %17391 = vmatpush3.bf16.msra.mxu0 %v19429_v53  ;;  %v19477_v53 = vld [vmem:[#allocation6 + $0x9b0] sm:$0xff]  }
 0x951   : > { %17392 = vmatprep.subr.bf16.mxu0 %v24658_v43 }
 0x954   : > { %17393 = vmatpush3.bf16.msra.mxu0 %v19430_v24  ;;  %v19479_v24 = vld [vmem:[#allocation6 + $0x9c0] sm:$0xff]  }
 0x955   : > { %17398 = vmatprep.subr.bf16.mxu0 %v24658_v43 }
 0x957   : > { %17395 = vmatmul.mubr.bf16.vlgmr.msra.gmra.mrb[28].mxu0 %v22222_v19  ;;  %v19483_v19 = vld [vmem:[#allocation6 + $0x9e0] sm:$0xff]  }
 0x958   : > { %17399 = vmatpush3.bf16.msra.mxu0 %v19431_v62  ;;  %17414 = vmatprep.mubr.msk.bf16.mxu0 %vm20214_vm2, %v24658_v43  ;;  %v19480_v62 = vld [vmem:[#allocation6 + $0x9c8] sm:$0xff]  }
 0x959   : > { %17400 = vmatprep.subr.bf16.mxu0 %v24658_v43 }
 0x95c   : > { %17401 = vmatpush3.bf16.msra.mxu0 %v19432_v13  ;;  %v19481_v13 = vld [vmem:[#allocation6 + $0x9d0] sm:$0xff]  }
 0x95d   : > { %17402 = vmatprep.subr.bf16.mxu0 %v24658_v43 }
 0x960   : > { %17403 = vmatpush3.bf16.msra.mxu0 %v19433_v40  ;;  %v19482_v40 = vld [vmem:[#allocation6 + $0x9d8] sm:$0xff]  }
 0x961   : > { %17404 = vmatprep.subr.bf16.mxu0 %v24658_v43 }
 0x964   : > { %17405 = vmatpush3.bf16.msra.mxu0 %v19434_v30  ;;  %v19484_v30 = vld [vmem:[#allocation6 + $0x9e8] sm:$0xff]  }
 0x965   : > { %17406 = vmatprep.subr.bf16.mxu0 %v24658_v43 }
 0x968   : > { %17407 = vmatpush3.bf16.msra.mxu0 %v19435_v16  ;;  %v19485_v16 = vld [vmem:[#allocation6 + $0x9f0] sm:$0xff]  }
 0x969   : > { %17408 = vmatprep.subr.bf16.mxu0 %v24658_v43 }
 0x96c   : > { %17409 = vmatpush3.bf16.msra.mxu0 %v19436_v14  ;;  %v19486_v14 = vld [vmem:[#allocation6 + $0x9f8] sm:$0xff]  }
 0x96d   : > { %17410 = vmatprep.subr.bf16.mxu0 %v24658_v43 }
 0x970   : > { %17411 = vmatpush3.bf16.msra.mxu0 %v19437_v42  ;;  %v7251_v42 = vrot.slane %v22236_v60, 3 }
 0x971   : > { %17412 = vmatprep.subr.bf16.mxu0 %v24658_v43 }
 0x974   : > { %17413 = vmatpush3.bf16.msra.mxu0 %v19438_v22  ;;  %v19493_v22 = vld [vmem:[%s24209_s7 + $0x30] sm:$0xff]  }
 0x975   : > { %17418 = vmatprep.subr.bf16.mxu0 %v24658_v43  ;;  %17551 = vmatpush3.bf16.msra.mxu1 %v19493_v22  ;;  %v22451_v22 = vld [vmem:[#allocation2 + $0x60] sm:$0xff]  }
 0x976   : > { %17552 = vmatprep.subr.bf16.mxu1 %v24658_v43 }
 0x977   : > { %17415 = vmatmul.mubr.bf16.vlgmr.msra.gmra.mrb[28].mxu0 %v22236_v60  ;;  %v7342_v60 = vld [vmem:[#allocation7] sm:$0x1] }
 0x978   : > { %17419 = vmatpush3.bf16.msra.mxu0 %v19439_v15  ;;  %17434 = vmatprep.mubr.msk.bf16.mxu0 %vm20214_vm2, %v24658_v43  ;;  %v19494_v15 = vld [vmem:[%s24209_s7 + $0x38] sm:$0xff]  }
 0x979   : > { %17420 = vmatprep.subr.bf16.mxu0 %v24658_v43  ;;  %17553 = vmatpush3.bf16.msra.mxu1 %v19494_v15  ;;  %v22456_v15 = vld [vmem:[#allocation2 + $0x68] sm:$0xff]  }
 0x97a   : > { %17558 = vmatprep.subr.bf16.mxu1 %v24658_v43 }
 0x97c   : > { %17421 = vmatpush3.bf16.msra.mxu0 %v19440_v52 }
 0x97d   : > { %17422 = vmatprep.subr.bf16.mxu0 %v24658_v43 }
 0x980   : > { %17423 = vmatpush3.bf16.msra.mxu0 %v19441_v35  ;;  %v7344_v35 = vld [vmem:[#allocation9] sm:$0x1] }
 0x981   : > { %17424 = vmatprep.subr.bf16.mxu0 %v24658_v43 }
 0x984   : > { %17425 = vmatpush3.bf16.msra.mxu0 %v19442_v34 }
 0x985   : > { %17426 = vmatprep.subr.bf16.mxu0 %v24658_v43 }
 0x988   : > { %17427 = vmatpush3.bf16.msra.mxu0 %v19443_v63 }
 0x989   : > { %17428 = vmatprep.subr.bf16.mxu0 %v24658_v43 }
 0x98c   : > { %17429 = vmatpush3.bf16.msra.mxu0 %v19444_v17 }
 0x98d   : > { %17430 = vmatprep.subr.bf16.mxu0 %v24658_v43 }
 0x990   : > { %17431 = vmatpush3.bf16.msra.mxu0 %v19445_v25 }
 0x991   : > { %17432 = vmatprep.subr.bf16.mxu0 %v24658_v43 }
 0x994   : > { %17433 = vmatpush3.bf16.msra.mxu0 %v19446_v27 }
 0x995   : > { %17438 = vmatprep.subr.bf16.mxu0 %v24658_v43 }
 0x997   : > { %17435 = vmatmul.mubr.bf16.vlgmr.msra.gmra.mrb[28].mxu0 %v6711_v33 }
 0x998   : > { %17439 = vmatpush3.bf16.msra.mxu0 %v19447_v36  ;;  %17454 = vmatprep.mubr.msk.bf16.mxu0 %vm20214_vm2, %v24658_v43  ;;  %v19495_v36 = vld [vmem:[%s24679_s27] sm:$0xff]  }
 0x999   : > { %17440 = vmatprep.subr.bf16.mxu0 %v24658_v43 }
 0x99c   : > { %17441 = vmatpush3.bf16.msra.mxu0 %v19448_v48  ;;  %v19496_v48 = vld [vmem:[%s24679_s27 + $0x8] sm:$0xff]  }
 0x99d   : > { %17442 = vmatprep.subr.bf16.mxu0 %v24658_v43 }
 0x9a0   : > { %17443 = vmatpush3.bf16.msra.mxu0 %v19449_v21  ;;  %v19497_v21 = vld [vmem:[%s24679_s27 + $0x10] sm:$0xff]  }
 0x9a1   : > { %17444 = vmatprep.subr.bf16.mxu0 %v24658_v43 }
 0x9a4   : > { %17445 = vmatpush3.bf16.msra.mxu0 %v19450_v51  ;;  %v19498_v51 = vld [vmem:[%s24679_s27 + $0x18] sm:$0xff]  }
 0x9a5   : > { %17446 = vmatprep.subr.bf16.mxu0 %v24658_v43 }
 0x9a8   : > { %17447 = vmatpush3.bf16.msra.mxu0 %v19451_v3  ;;  %v19501_v3 = vld [vmem:[%s20529_s24 + $0xb8] ss:$12 sps:$4 sm:$0xff]  }
 0x9a9   : > { %17448 = vmatprep.subr.bf16.mxu0 %v24658_v43 }
 0x9ac   : > { %17449 = vmatpush3.bf16.msra.mxu0 %v19452_v12  ;;  %v7451_v12 = vld [vmem:[#allocation10] sm:$0x1] }
 0x9ad   : > { %17450 = vmatprep.subr.bf16.mxu0 %v24658_v43 }
 0x9b0   : > { %17451 = vmatpush3.bf16.msra.mxu0 %v19453_v44 }
 0x9b1   : > { %17452 = vmatprep.subr.bf16.mxu0 %v24658_v43 }
 0x9b4   : > { %17453 = vmatpush3.bf16.msra.mxu0 %v19454_v46  ;;  %v7453_v46 = vld [vmem:[#allocation12] sm:$0x1] }
 0x9b5   : > { %17458 = vmatprep.subr.bf16.mxu0 %v24658_v43 }
 0x9b7   : > { %17455 = vmatmul.mubr.bf16.vlgmr.msra.gmra.mrb[28].mxu0 %v6819_v38 }
 0x9b8   : > { %17459 = vmatpush3.bf16.msra.mxu0 %v19455_v31  ;;  %17474 = vmatprep.mubr.msk.bf16.mxu0 %vm20214_vm2, %v24658_v43 }
 0x9b9   : > { %17460 = vmatprep.subr.bf16.mxu0 %v24658_v43 }
 0x9bc   : > { %17461 = vmatpush3.bf16.msra.mxu0 %v19456_v8 }
 0x9bd   : > { %17462 = vmatprep.subr.bf16.mxu0 %v24658_v43 }
 0x9c0   : > { %17463 = vmatpush3.bf16.msra.mxu0 %v19457_v45  ;;  %v19499_v45 = vld [vmem:[%s20529_s24 + $0xb4] ss:$12 sps:$4 sm:$0xff]  }
 0x9c1   : > { %17464 = vmatprep.subr.bf16.mxu0 %v24658_v43 }
 0x9c4   : > { %17465 = vmatpush3.bf16.msra.mxu0 %v19458_v59  ;;  %v19504_v59 = vld [vmem:[%s20529_s24 + $0xd0] ss:$12 sps:$4 sm:$0xff]  }
 0x9c5   : > { %17466 = vmatprep.subr.bf16.mxu0 %v24658_v43 }
 0x9c8   : > { %17467 = vmatpush3.bf16.msra.mxu0 %v19459_v37  ;;  %v24680_v37 = vmov 0  }
 0x9c9   : > { %17468 = vmatprep.subr.bf16.mxu0 %v24658_v43 }
 0x9cc   : > { %17469 = vmatpush3.bf16.msra.mxu0 %v19460_v18  ;;  %v19505_v18 = vld [vmem:[%s20529_s24 + $0xe4] ss:$12 sps:$4 sm:$0xff]  }
 0x9cd   : > { %17470 = vmatprep.subr.bf16.mxu0 %v24658_v43 }
 0x9d0   : > { %17471 = vmatpush3.bf16.msra.mxu0 %v19461_v1  ;;  %v19508_v1 = vld [vmem:[%s20529_s24 + $0xfc] ss:$12 sps:$4 sm:$0xff]  }
 0x9d1   : > { %17472 = vmatprep.subr.bf16.mxu0 %v24658_v43 }
 0x9d4   : > { %17473 = vmatpush3.bf16.msra.mxu0 %v19462_v2  ;;  %v19513_v2 = vld [vmem:[%s20529_s24 + $0x118] ss:$12 sps:$4 sm:$0xff]  }
 0x9d5   : > { %17478 = vmatprep.subr.bf16.mxu0 %v24658_v43 }
 0x9d7   : > { %17475 = vmatmul.mubr.bf16.vlgmr.msra.gmra.mrb[28].mxu0 %v6927_v56  ;;  %v19516_v56 = vld [vmem:[%s20529_s24 + $0x130] ss:$12 sps:$4 sm:$0xff]  }
 0x9d8   : > { %17479 = vmatpush3.bf16.msra.mxu0 %v19463_v49  ;;  %17494 = vmatprep.mubr.msk.bf16.mxu0 %vm20214_vm2, %v24658_v43  ;;  %v19511_v49 = vld [vmem:[%s20529_s24 + $0x114] ss:$12 sps:$4 sm:$0xff]  }
 0x9d9   : > { %17480 = vmatprep.subr.bf16.mxu0 %v24658_v43 }
 0x9dc   : > { %17481 = vmatpush3.bf16.msra.mxu0 %v19464_v61  ;;  %v19514_v61 = vld [vmem:[%s20529_s24 + $0x12c] ss:$12 sps:$4 sm:$0xff]  }
 0x9dd   : > { %17482 = vmatprep.subr.bf16.mxu0 %v24658_v43 }
 0x9e0   : > { %17483 = vmatpush3.bf16.msra.mxu0 %v19465_v26  ;;  %v19519_v26 = vld [vmem:[%s20529_s24 + $0x148] ss:$12 sps:$4 sm:$0xff]  }
 0x9e1   : > { %17484 = vmatprep.subr.bf16.mxu0 %v24658_v43 }
 0x9e4   : > { %17485 = vmatpush3.bf16.msra.mxu0 %v19466_v55  ;;  %v15134_v55 = vld [vmem:[%s20529_s24 + $0x15c] sm:$0x77] }
 0x9e5   : > { %17486 = vmatprep.subr.bf16.mxu0 %v24658_v43 }
 0x9e8   : > { %17487 = vmatpush3.bf16.msra.mxu0 %v19467_v54  ;;  %v19517_v54 = vld [vmem:[%s20529_s24 + $0x144] ss:$12 sps:$4 sm:$0xff]  }
 0x9e9   : > { %17488 = vmatprep.subr.bf16.mxu0 %v24658_v43 }
 0x9ec   : > { %17489 = vmatpush3.bf16.msra.mxu0 %v19468_v28  ;;  %v15191_v28 = vcombine.high %v15134_v55, %v15134_v55 }
 0x9ed   : > { %17490 = vmatprep.subr.bf16.mxu0 %v24658_v43 }
 0x9f0   : > { %17491 = vmatpush3.bf16.msra.mxu0 %v19469_v7  ;;  %v15190_v7 = vcombine.low %v15134_v55, %v15134_v55 }
 0x9f1   : > { %17492 = vmatprep.subr.bf16.mxu0 %v24658_v43 }
 0x9f4   : > { %17493 = vmatpush3.bf16.msra.mxu0 %v19470_v50  ;;  %v8014_v50 = vsel %vm1004_vm0, %v15190_v7, 0  ;;  %v22573_v7 = vld [vmem:[#allocation2 + $0xf0] sm:$0xff]  }
 0x9f5   : > { %17498 = vmatprep.subr.bf16.mxu0 %v24658_v43 }
 0x9f7   : > { %17495 = vmatmul.mubr.bf16.vlgmr.msra.gmra.mrb[28].mxu0 %v7035_v32  ;;  %v19523_v32 = vld [vmem:[%s20529_s24 + $0xbc] ss:$12 sps:$4 sm:$0xff]  }
 0x9f8   : > { %17499 = vmatpush3.bf16.msra.mxu0 %v19471_v41  ;;  %17514 = vmatprep.mubr.msk.bf16.mxu0 %vm20214_vm2, %v24658_v43  ;;  %v22376_v41 = vld [vmem:[#allocation2] sm:$0xff]  }
 0x9f9   : > { %17500 = vmatprep.subr.bf16.mxu0 %v24658_v43 }
 0x9fc   : > { %17501 = vmatpush3.bf16.msra.mxu0 %v19472_v5  ;;  %v19528_v5 = vld [vmem:[%s20529_s24 + $0xd4] ss:$12 sps:$4 sm:$0xff]  }
 0x9fd   : > { %17502 = vmatprep.subr.bf16.mxu0 %v24658_v43 }
 0xa00   : > { %17503 = vmatpush3.bf16.msra.mxu0 %v19473_v57  ;;  %v22385_v57 = vld [vmem:[#allocation2 + $0x8] sm:$0xff]  }
 0xa01   : > { %17504 = vmatprep.subr.bf16.mxu0 %v24658_v43 }
 0xa04   : > { %17505 = vmatpush3.bf16.msra.mxu0 %v19474_v0  ;;  %v19533_v0 = vld [vmem:[%s20529_s24 + $0xec] ss:$12 sps:$4 sm:$0xff]  }
 0xa05   : > { %17506 = vmatprep.subr.bf16.mxu0 %v24658_v43 }
 0xa08   : > { %17507 = vmatpush3.bf16.msra.mxu0 %v19475_v23  ;;  %v19538_v23 = vld [vmem:[%s20529_s24 + $0x104] ss:$12 sps:$4 sm:$0xff]  }
 0xa09   : > { %17508 = vmatprep.subr.bf16.mxu0 %v24658_v43 }
 0xa0c   : > { %17509 = vmatpush3.bf16.msra.mxu0 %v19476_v6  ;;  %v22394_v6 = vld [vmem:[#allocation2 + $0x10] sm:$0xff]  }
 0xa0d   : > { %17510 = vmatprep.subr.bf16.mxu0 %v24658_v43 }
 0xa10   : > { %17511 = vmatpush3.bf16.msra.mxu0 %v19477_v53  ;;  %v19543_v53 = vld [vmem:[%s20529_s24 + $0x11c] ss:$12 sps:$4 sm:$0xff]  }
 0xa11   : > { %17512 = vmatprep.subr.bf16.mxu0 %v24658_v43 }
 0xa14   : > { %17513 = vmatpush3.bf16.msra.mxu0 %v19478_v58  ;;  %v22402_v58 = vld [vmem:[#allocation2 + $0x18] sm:$0xff]  }
 0xa15   : > { %17518 = vmatprep.subr.bf16.mxu0 %v24658_v43 }
 0xa17   : > { %17515 = vmatmul.mubr.bf16.vlgmr.msra.gmra.mrb[28].mxu0 %v7143_v4  ;;  %v19548_v4 = vld [vmem:[%s20529_s24 + $0x134] ss:$12 sps:$4 sm:$0xff]  }
 0xa18   : > { %17519 = vmatpush3.bf16.msra.mxu0 %v19479_v24  ;;  %17534 = vmatprep.mubr.msk.bf16.mxu0 %vm20214_vm2, %v24658_v43  ;;  %v22407_v24 = vld [vmem:[#allocation2 + $0x20] sm:$0xff]  }
 0xa19   : > { %17520 = vmatprep.subr.bf16.mxu0 %v24658_v43 }
 0xa1c   : > { %17521 = vmatpush3.bf16.msra.mxu0 %v19480_v62  ;;  %v22414_v62 = vld [vmem:[#allocation2 + $0x28] sm:$0xff]  }
 0xa1d   : > { %17522 = vmatprep.subr.bf16.mxu0 %v24658_v43 }
 0xa20   : > { %17523 = vmatpush3.bf16.msra.mxu0 %v19481_v13  ;;  %v22419_v13 = vld [vmem:[#allocation2 + $0x30] sm:$0xff]  }
 0xa21   : > { %17524 = vmatprep.subr.bf16.mxu0 %v24658_v43 }
 0xa24   : > { %17525 = vmatpush3.bf16.msra.mxu0 %v19482_v40  ;;  %v22424_v40 = vld [vmem:[#allocation2 + $0x38] sm:$0xff]  }
 0xa25   : > { %17526 = vmatprep.subr.bf16.mxu0 %v24658_v43 }
 0xa28   : > { %17527 = vmatpush3.bf16.msra.mxu0 %v19483_v19  ;;  %v22429_v19 = vld [vmem:[#allocation2 + $0x40] sm:$0xff]  }
 0xa29   : > { %17528 = vmatprep.subr.bf16.mxu0 %v24658_v43 }
 0xa2c   : > { %17529 = vmatpush3.bf16.msra.mxu0 %v19484_v30  ;;  %v19553_v30 = vld [vmem:[%s20529_s24 + $0x14c] ss:$12 sps:$4 sm:$0xff]  }
 0xa2d   : > { %17530 = vmatprep.subr.bf16.mxu0 %v24658_v43 }
 0xa30   : > { %17531 = vmatpush3.bf16.msra.mxu0 %v19485_v16  ;;  %v22435_v16 = vld [vmem:[#allocation2 + $0x48] sm:$0xff]  }
 0xa31   : > { %17532 = vmatprep.subr.bf16.mxu0 %v24658_v43 }
 0xa34   : > { %17533 = vmatpush3.bf16.msra.mxu0 %v19486_v14  ;;  %v22441_v14 = vld [vmem:[#allocation2 + $0x50] sm:$0xff]  }
 0xa35   : > { %18553 = vmatprep.subr.bf16.mxu0 %v24658_v43 }
 0xa37   : > { %17535 = vmatmul.mubr.bf16.vlgmr.msra.gmra.mrb[28].mxu0 %v7251_v42  ;;  %v22446_v42 = vld [vmem:[#allocation2 + $0x58] sm:$0xff]  }
 0xa38   : > { %18569 = vmatprep.mubr.msk.bf16.mxu0 %vm20214_vm2, %v24658_v43 }
 0xb0a   : > { %v7335_v52 = vpop.f32.mrb[28].mxu0 }
 0xb0b   : > { %v7343_v34 = vmul.f32 %v7342_v60, %v7335_v52  ;;  %v17536_v63 = vpop.f32.mrb[29].mxu0  ;;  %v19559_v60 = vld [vmem:[%s20529_s24 + $0x164] ss:$0 sps:$4 sm:$0x77]  }
 0xb0c   : > { %v7338_v17 = vpop.f32.mrb[30].mxu0  ;;  %v8020_v52 = vsel %vm1004_vm0, %v19559_v60, 0  ;;  %v22473_v63 = vld [vmem:[#allocation2 + $0x80] sm:$0xff]  }
 0xb0d   : > { %v7345_v25 = vadd.f32 %v7344_v35, %v7343_v34  ;;  %v17537_v27 = vpop.f32.mrb[31].mxu0  ;;  %v22463_v35 = vld [vmem:[#allocation2 + $0x70] sm:$0xff]   ;;  %v22468_v34 = vld [vmem:[#allocation2 + $0x78] sm:$0xff]   ;;  %v22478_v17 = vld [vmem:[#allocation2 + $0x88] sm:$0xff]  }
 0xb0e   : > { %v22488_v27 = vld [vmem:[#allocation2 + $0x98] sm:$0xff]  }
 0xb0f   : > { %v7346_v33 = vpack.c.bf16 %v7345_v25, %v7345_v25  ;;  %v22483_v25 = vld [vmem:[#allocation2 + $0x90] sm:$0xff]  }
 0xb11   : > { %17555 = vmatmul.mubr.bf16.vlgmr.msra.gmra.mrb[0].mxu1 %v7346_v33  ;;  %v22498_v33 = vld [vmem:[#allocation2 + $0xa8] sm:$0xff]  }
 0xb12   : > { %17559 = vmatpush3.bf16.msra.mxu1 %v19495_v36  ;;  %17566 = vmatprep.mubr.msk.bf16.mxu1 %vm20214_vm2, %v24658_v43  ;;  %v22493_v36 = vld [vmem:[#allocation2 + $0xa0] sm:$0xff]  }
 0xb13   : > { %17560 = vmatprep.subr.bf16.mxu1 %v24658_v43 }
 0xb16   : > { %17561 = vmatpush3.bf16.msra.mxu1 %v19496_v48  ;;  %v22503_v48 = vld [vmem:[#allocation2 + $0xb0] sm:$0xff]  }
 0xb17   : > { %17562 = vmatprep.subr.bf16.mxu1 %v24658_v43 }
 0xb1a   : > { %17563 = vmatpush3.bf16.msra.mxu1 %v19497_v21  ;;  %v7464_v21 = vld [vmem:[#allocation13] sm:$0x1] }
 0xb1b   : > { %17564 = vmatprep.subr.bf16.mxu1 %v24658_v43 }
 0xb1e   : > { %17565 = vmatpush3.bf16.msra.mxu1 %v19498_v51 }
 0xb1f   : > { %8022 = vmatprep.subr.bf16.mxu1 %v19501_v3 }
 0xbe4   : > { %v7445_v44 = vpop.f32.mrb[0].mxu1 }
 0xbe5   : > { %v7452_v31 = vmul.f32 %v7451_v12, %v7445_v44  ;;  %v17556_v38 = vpop.f32.mrb[1].mxu1  ;;  %v22514_v44 = vld [vmem:[#allocation2 + $0xb8] sm:$0xff]  }
 0xbe6   : > { %v7448_v20 = vpop.f32.mrb[2].mxu1  ;;  %v22521_v38 = vld [vmem:[#allocation2 + $0xc0] sm:$0xff]  }
 0xbe7   : > { %v7454_v8 = vadd.f32 %v7453_v46, %v7452_v31  ;;  %v17557_v9 = vpop.f32.mrb[3].mxu1  ;;  %v22526_v20 = vld [vmem:[#allocation2 + $0xc8] sm:$0xff]  }
 0xbe9   : > { %v7455_v11 = vpack.c.bf16 %v7454_v8, %v7454_v8  ;;  %v22531_v8 = vld [vmem:[#allocation2 + $0xd0] sm:$0xff]  }
 0xbeb   : > { %17567 = vmatmul.mubr.msk.bf16.vlgmr.msra.gmra.mrb[4].mxu1 %vm7489_vm15, %v7455_v11  ;;  %v22540_v11 = vld [vmem:[#allocation2 + $0xd8] sm:$0xff]  }
 0xbec   : > { %8023 = vmatpush1.bf16.msra.mxu1 %v19499_v45  ;;  %8054 = vmatprep.mubr.bf16.mxu1 %v24680_v37 }
 0xbed   : > { %8024 = vmatprep.subr.bf16.mxu1 %v19504_v59 }
 0xbf0   : > { %8025 = vmatpush1.bf16.msra.mxu1 %v19502_v29 }
 0xbf1   : > { %8026 = vmatprep.subr.bf16.mxu1 %v19507_v10 }
 0xbf4   : > { %8027 = vmatpush1.bf16.msra.mxu1 %v19505_v18 }
 0xbf5   : > { %8028 = vmatprep.subr.bf16.mxu1 %v19510_v39  ;;  %v22553_v39 = vld [vmem:[#allocation2 + $0xe0] sm:$0xff]  }
 0xbf8   : > { %8029 = vmatpush1.bf16.msra.mxu1 %v19508_v1 }
 0xbf9   : > { %8030 = vmatprep.subr.bf16.mxu1 %v19513_v2 }
 0xbfc   : > { %8031 = vmatpush1.bf16.msra.mxu1 %v19511_v49 }
 0xbfd   : > { %8032 = vmatprep.subr.bf16.mxu1 %v19516_v56 }
 0xc00   : > { %8033 = vmatpush1.bf16.msra.mxu1 %v19514_v61  ;;  %v22566_v61 = vld [vmem:[#allocation2 + $0xe8] sm:$0xff]  }
 0xc01   : > { %8034 = vmatprep.subr.bf16.mxu1 %v19519_v26 }
 0xc04   : > { %8035 = vmatpush1.bf16.msra.mxu1 %v19517_v54 }
 0xc05   : > { %15193 = vmatprep.subr.msk.bf16.mxu1 %vm1004_vm0, %v15191_v28  ;;  %vm7533_vm0 = vcmask 8192  }
 0xc08   : > { %8037 = vmatpush1.bf16.msra.mxu1 %v8014_v50 }
 0xc09   : > { %17570 = vmatprep.subr.bf16.mxu1 %v24658_v43 }
 0xc0b   : > { %15194 = vmatmul.mubr.msk.bf16.vlgmr.msra.gmra.mrb[8].mxu1 %vm904_vm1, %v22376_v41 }
 0xc0c   : > { %17571 = vmatpush3.bf16.msra.mxu1 %v19523_v32  ;;  %8064 = vmatprep.mubr.bf16.mxu1 %v24680_v37 }
 0xc0d   : > { %17572 = vmatprep.subr.bf16.mxu1 %v24658_v43 }
 0xc10   : > { %17573 = vmatpush3.bf16.msra.mxu1 %v19528_v5 }
 0xc11   : > { %17574 = vmatprep.subr.bf16.mxu1 %v24658_v43 }
 0xc13   : > { %15195 = vmatmul.mubr.msk.bf16.gmra.mrb[12].mxu1 %vm904_vm1, %v22385_v57 }
 0xc14   : > { %8074 = vmatprep.mubr.bf16.mxu1 %v24680_v37  ;;  %17575 = vmatpush3.bf16.msra.mxu1 %v19533_v0 }
 0xc15   : > { %17576 = vmatprep.subr.bf16.mxu1 %v24658_v43 }
 0xc18   : > { %17577 = vmatpush3.bf16.msra.mxu1 %v19538_v23  ;;  %v22580_v23 = vld [vmem:[#allocation2 + $0xf8] sm:$0xff]  }
 0xc19   : > { %17578 = vmatprep.subr.bf16.mxu1 %v24658_v43 }
 0xc1b   : > { %15196 = vmatmul.mubr.msk.bf16.gmra.mrb[16].mxu1 %vm904_vm1, %v22394_v6 }
 0xc1c   : > { %8084 = vmatprep.mubr.bf16.mxu1 %v24680_v37  ;;  %17579 = vmatpush3.bf16.msra.mxu1 %v19543_v53 }
 0xc1d   : > { %17580 = vmatprep.subr.bf16.mxu1 %v24658_v43 }
 0xc20   : > { %17581 = vmatpush3.bf16.msra.mxu1 %v19548_v4 }
 0xc21   : > { %17582 = vmatprep.subr.bf16.mxu1 %v24658_v43 }
 0xc23   : > { %15197 = vmatmul.mubr.msk.bf16.gmra.mrb[20].mxu1 %vm904_vm1, %v22402_v58 }
 0xc24   : > { %8094 = vmatprep.mubr.bf16.mxu1 %v24680_v37  ;;  %17583 = vmatpush3.bf16.msra.mxu1 %v19553_v30 }
 0xc25   : > { %17584 = vmatprep.subr.bf16.mxu1 %v24658_v43 }
 0xc28   : > { %17585 = vmatpush3.bf16.msra.mxu1 %v8020_v52  ;;  %v22588_v52 = vld [vmem:[#allocation2 + $0x100] ss:$0 sps:$4 sm:$0xff]  }
 0xc2b   : > { %15198 = vmatmul.mubr.msk.bf16.gmra.mrb[24].mxu1 %vm904_vm1, %v22407_v24 }
 0xc2c   : > { %8104 = vmatprep.mubr.bf16.mxu1 %v24680_v37 }
 0xc33   : > { %15199 = vmatmul.mubr.msk.bf16.gmra.mrb[28].mxu1 %vm904_vm1, %v22414_v62 }
 0xc34   : > { %8114 = vmatprep.mubr.bf16.mxu1 %v24680_v37 }
 0xc3b   : > { %15200 = vmatmul.mubr.msk.bf16.gmra.mrb[32].mxu1 %vm904_vm1, %v22419_v13 }
 0xc3c   : > { %8124 = vmatprep.mubr.bf16.mxu1 %v24680_v37 }
 0xc43   : > { %15201 = vmatmul.mubr.msk.bf16.gmra.mrb[36].mxu1 %vm904_vm1, %v22424_v40 }
 0xc44   : > { %8134 = vmatprep.mubr.bf16.mxu1 %v24680_v37 }
 0xc4b   : > { %15202 = vmatmul.mubr.msk.bf16.gmra.mrb[40].mxu1 %vm904_vm1, %v22429_v19 }
 0xc4c   : > { %8144 = vmatprep.mubr.bf16.mxu1 %v24680_v37 }
 0xc53   : > { %15203 = vmatmul.mubr.msk.bf16.gmra.mrb[44].mxu1 %vm904_vm1, %v22435_v16 }
 0xc54   : > { %8154 = vmatprep.mubr.bf16.mxu1 %v24680_v37 }
 0xc5b   : > { %15204 = vmatmul.mubr.msk.bf16.gmra.mrb[48].mxu1 %vm904_vm1, %v22441_v14 }
 0xc5c   : > { %8164 = vmatprep.mubr.bf16.mxu1 %v24680_v37 }
 0xc63   : > { %15205 = vmatmul.mubr.msk.bf16.gmra.mrb[52].mxu1 %vm904_vm1, %v22446_v42 }
 0xc64   : > { %8174 = vmatprep.mubr.bf16.mxu1 %v24680_v37 }
 0xc6b   : > { %15206 = vmatmul.mubr.msk.bf16.gmra.mrb[56].mxu1 %vm904_vm1, %v22451_v22 }
 0xc6c   : > { %8184 = vmatprep.mubr.bf16.mxu1 %v24680_v37 }
 0xc73   : > { %15207 = vmatmul.mubr.msk.bf16.gmra.mrb[60].mxu1 %vm904_vm1, %v22456_v15 }
 0xc74   : > { %8194 = vmatprep.mubr.bf16.mxu1 %v24680_v37 }
 0xc7b   : > { %15208 = vmatmul.mubr.msk.bf16.gmra.mrb[64].mxu1 %vm904_vm1, %v22463_v35 }
 0xc7c   : > { %8204 = vmatprep.mubr.bf16.mxu1 %v24680_v37 }
 0xc83   : > { %15209 = vmatmul.mubr.msk.bf16.gmra.mrb[68].mxu1 %vm904_vm1, %v22468_v34 }
 0xc84   : > { %8214 = vmatprep.mubr.bf16.mxu1 %v24680_v37 }
 0xc8b   : > { %15210 = vmatmul.mubr.msk.bf16.gmra.mrb[72].mxu1 %vm904_vm1, %v22473_v63 }
 0xc8c   : > { %8224 = vmatprep.mubr.bf16.mxu1 %v24680_v37 }
 0xc93   : > { %15211 = vmatmul.mubr.msk.bf16.gmra.mrb[76].mxu1 %vm904_vm1, %v22478_v17 }
 0xc94   : > { %8234 = vmatprep.mubr.bf16.mxu1 %v24680_v37 }
 0xc9b   : > { %15212 = vmatmul.mubr.msk.bf16.gmra.mrb[80].mxu1 %vm904_vm1, %v22483_v25 }
 0xc9c   : > { %8244 = vmatprep.mubr.bf16.mxu1 %v24680_v37 }
 0xca3   : > { %15213 = vmatmul.mubr.msk.bf16.gmra.mrb[84].mxu1 %vm904_vm1, %v22488_v27 }
 0xca4   : > { %8254 = vmatprep.mubr.bf16.mxu1 %v24680_v37 }
 0xcab   : > { %15214 = vmatmul.mubr.msk.bf16.gmra.mrb[88].mxu1 %vm904_vm1, %v22493_v36 }
 0xcac   : > { %8264 = vmatprep.mubr.bf16.mxu1 %v24680_v37 }
 0xcb3   : > { %15215 = vmatmul.mubr.msk.bf16.gmra.mrb[92].mxu1 %vm904_vm1, %v22498_v33 }
 0xcb4   : > { %8274 = vmatprep.mubr.bf16.mxu1 %v24680_v37 }
 0xcbb   : > { %15216 = vmatmul.mubr.msk.bf16.gmra.mrb[96].mxu1 %vm904_vm1, %v22503_v48 }
 0xcbc   : > { %8284 = vmatprep.mubr.bf16.mxu1 %v24680_v37 }
 0xcbe   : > { %v7527_v51 = vpop.f32.mrb[4].mxu1 }
 0xcbf   : > { %v7528_v3 = vadd.f32 %v7527_v51, %v7464_v21  ;;  %v17568_v12 = vpop.f32.mrb[5].mxu1 }
 0xcc0   : > { %v7530_v46 = vpop.f32.mrb[6].mxu1 }
 0xcc1   : > { %7534 = vst.msk [vmem:[%s22512_s3] sm:$0x1] %vm7533_vm0, %v7528_v3  ;;  %v17569_v31 = vpop.f32.mrb[7].mxu1 }
 0xcc3   : > { %15217 = vmatmul.mubr.msk.bf16.gmra.mrb[100].mxu1 %vm904_vm1, %v22514_v44 }
 0xcc4   : > { %8294 = vmatprep.mubr.bf16.mxu1 %v24680_v37 }
 0xccb   : > { %15218 = vmatmul.mubr.msk.bf16.gmra.mrb[104].mxu1 %vm904_vm1, %v22521_v38 }
 0xccc   : > { %8304 = vmatprep.mubr.bf16.mxu1 %v24680_v37 }
 0xcd3   : > { %15219 = vmatmul.mubr.msk.bf16.gmra.mrb[108].mxu1 %vm904_vm1, %v22526_v20 }
 0xcd4   : > { %8314 = vmatprep.mubr.bf16.mxu1 %v24680_v37 }
 0xcdb   : > { %15220 = vmatmul.mubr.msk.bf16.gmra.mrb[112].mxu1 %vm904_vm1, %v22531_v8 }
 0xcdc   : > { %8324 = vmatprep.mubr.bf16.mxu1 %v24680_v37 }
 0xcde   : > { %v22536_v9 = vpop.f32.mrb[8].mxu1 }
 0xcdf   : > { %v22538_v45 = vpop.f32.mrb[9].mxu1 }
 0xce0   : > { %24682 = vst [vmem:[#allocation59_spill] sm:$0xff] %v22538_v45  ;;  %v22542_v59 = vpop.f32.mrb[10].mxu1 }
 0xce1   : > { %v22544_v29 = vpop.f32.mrb[11].mxu1 }
 0xce2   : > { %24683 = vst [vmem:[#allocation63_spill] sm:$0xff] %v22544_v29 }
 0xce3   : > { %15221 = vmatmul.mubr.msk.bf16.gmra.mrb[116].mxu1 %vm904_vm1, %v22540_v11 }
 0xce4   : > { %8334 = vmatprep.mubr.bf16.mxu1 %v24680_v37 }
 0xce6   : > { %v22549_v10 = vpop.f32.mrb[12].mxu1 }
 0xce7   : > { %24684 = vst [vmem:[#allocation48_spill] sm:$0xff] %v22549_v10  ;;  %v22551_v18 = vpop.f32.mrb[13].mxu1  ;;  %v9776_v10 = vld [vmem:[#allocation4 + $0x88] sm:$0xff] }
 0xce8   : > { %24685 = vst [vmem:[#allocation86_spill] sm:$0xff] %v22551_v18  ;;  %v22555_v1 = vpop.f32.mrb[14].mxu1 }
 0xce9   : > { %v22557_v2 = vpop.f32.mrb[15].mxu1 }
 0xcea   : > { %24686 = vst [vmem:[#allocation95_spill] sm:$0xff] %v22557_v2 }
 0xceb   : > { %15222 = vmatmul.mubr.msk.bf16.gmra.mrb[120].mxu1 %vm904_vm1, %v22553_v39 }
 0xcec   : > { %8344 = vmatprep.mubr.bf16.mxu1 %v24680_v37 }
 0xcee   : > { %v22562_v49 = vpop.f32.mrb[16].mxu1 }
 0xcef   : > { %24687 = vst [vmem:[#allocation67_spill] sm:$0xff] %v22562_v49  ;;  %v22564_v56 = vpop.f32.mrb[17].mxu1 }
 0xcf0   : > { %24688 = vst [vmem:[#allocation56_spill] sm:$0xff] %v22564_v56  ;;  %v8080_v26 = vpop.f32.mrb[18].mxu1 }
 0xcf1   : > { %8694 = vrot.lane.b32.xlu0 %v8080_v26, %s20215_s10  ;;  %v8082_v55 = vpop.f32.mrb[19].mxu1 }
 0xcf3   : > { %15223 = vmatmul.mubr.msk.bf16.gmra.mrb[124].mxu1 %vm904_vm1, %v22566_v61 }
 0xcf4   : > { %8354 = vmatprep.mubr.bf16.mxu1 %v24680_v37 }
 0xcf5   : > { %8696 = vrot.lane.b32.xlu0 %v8082_v55, %s20215_s10 }
 0xcf6   : > { %v8086_v54 = vpop.f32.mrb[20].mxu1 }
 0xcf7   : > { %v8088_v28 = vpop.f32.mrb[21].mxu1 }
 0xcf8   : > { %v8090_v50 = vpop.f32.mrb[22].mxu1 }
 0xcf9   : > { %8700 = vrot.lane.b32.xlu0 %v8086_v54, %s20215_s10  ;;  %v8092_v32 = vpop.f32.mrb[23].mxu1 }
 0xcfb   : > { %15224 = vmatmul.mubr.msk.bf16.gmra.mrb[128].mxu1 %vm904_vm1, %v22573_v7 }
 0xcfc   : > { %8364 = vmatprep.mubr.bf16.mxu1 %v24680_v37 }
 0xcfd   : > { %8702 = vrot.lane.b32.xlu0 %v8088_v28, %s20215_s10 }
 0xcfe   : > { %v8096_v5 = vpop.f32.mrb[24].mxu1 }
 0xcff   : > { %v8098_v0 = vpop.f32.mrb[25].mxu1 }
 0xd00   : > { %v8100_v53 = vpop.f32.mrb[26].mxu1 }
 0xd01   : > { %8706 = vrot.lane.b32.xlu0 %v8090_v50, %s20215_s10  ;;  %v8102_v4 = vpop.f32.mrb[27].mxu1 }
 0xd03   : > { %15225 = vmatmul.mubr.msk.bf16.gmra.mrb[132].mxu1 %vm904_vm1, %v22580_v23 }
 0xd04   : > { %8374 = vmatprep.mubr.bf16.mxu1 %v24680_v37 }
 0xd05   : > { %8708 = vrot.lane.b32.xlu0 %v8092_v32, %s20215_s10 }
 0xd06   : > { %v8106_v30 = vpop.f32.mrb[28].mxu1 }
 0xd07   : > { %8779 = vrot.lane.b32.xlu1 %v8106_v30, %s20216_s16  ;;  %v8108_v60 = vpop.f32.mrb[29].mxu1 }
 0xd08   : > { %v8110_v21 = vpop.f32.mrb[30].mxu1 }
 0xd09   : > { %8712 = vrot.lane.b32.xlu0 %v8096_v5, %s20215_s10  ;;  %v8112_v51 = vpop.f32.mrb[31].mxu1 }
 0xd0b   : > { %15226 = vmatmul.mubr.msk.bf16.gmra.mrb[136].mxu1 %vm904_vm1, %v22588_v52  ;;  %8781 = vrot.lane.b32.xlu1 %v8108_v60, %s20216_s16 }
 0xd0c   : > { %17586 = vmatprep.mubr.msk.bf16.mxu1 %vm20214_vm2, %v24658_v43 }
 0xd0d   : > { %8714 = vrot.lane.b32.xlu0 %v8098_v0, %s20215_s10 }
 0xd0e   : > { %v8116_v37 = vpop.f32.mrb[32].mxu1 }
 0xd0f   : > { %8791 = vrot.lane.b32.xlu1 %v8116_v37, %s20216_s16  ;;  %v8118_v3 = vpop.f32.mrb[33].mxu1 }
 0xd10   : > { %v8120_v12 = vpop.f32.mrb[34].mxu1 }
 0xd11   : > { %8718 = vrot.lane.b32.xlu0 %v8100_v53, %s20215_s10  ;;  %v8122_v46 = vpop.f32.mrb[35].mxu1 }
 0xd13   : > { %17587 = vmatmul.mubr.msk.bf16.vlgmr.msra.gmra.mrb[140].mxu1 %vm904_vm1, %v22376_v41  ;;  %8793 = vrot.lane.b32.xlu1 %v8118_v3, %s20216_s16 }
 0xd14   : > { %17590 = vmatprep.mubr.msk.bf16.mxu1 %vm20214_vm2, %v24658_v43 }
 0xd15   : > { %8720 = vrot.lane.b32.xlu0 %v8102_v4, %s20215_s10 }
 0xd16   : > { %v8126_v31 = vpop.f32.mrb[36].mxu1 }
 0xd17   : > { %v8128_v26 = vpop.f32.mrb[37].mxu1 }
 0xd18   : > { %8805 = vrot.lane.b32.xlu1 %v8128_v26, %s20216_s16  ;;  %v8130_v55 = vpop.f32.mrb[38].mxu1 }
 0xd19   : > { %8785 = vrot.lane.b32.xlu0 %v8110_v21, %s20216_s16  ;;  %v8132_v54 = vpop.f32.mrb[39].mxu1 }
 0xd1b   : > { %17591 = vmatmul.mubr.msk.bf16.gmra.mrb[144].mxu1 %vm904_vm1, %v22385_v57 }
 0xd1c   : > { %8864 = vrot.lane.b32.xlu1 %v8130_v55, %s20217_s17  ;;  %17594 = vmatprep.mubr.msk.bf16.mxu1 %vm20214_vm2, %v24658_v43 }
 0xd1d   : > { %8787 = vrot.lane.b32.xlu0 %v8112_v51, %s20216_s16 }
 0xd1e   : > { %v8136_v41 = vpop.f32.mrb[40].mxu1 }
 0xd1f   : > { %v8138_v28 = vpop.f32.mrb[41].mxu1 }
 0xd20   : > { %8870 = vrot.lane.b32.xlu1 %v8136_v41, %s20217_s17  ;;  %v8140_v50 = vpop.f32.mrb[42].mxu1 }
 0xd21   : > { %8797 = vrot.lane.b32.xlu0 %v8120_v12, %s20216_s16  ;;  %v8142_v32 = vpop.f32.mrb[43].mxu1 }
 0xd23   : > { %17595 = vmatmul.mubr.msk.bf16.gmra.mrb[148].mxu1 %vm904_vm1, %v22394_v6 }
 0xd24   : > { %8876 = vrot.lane.b32.xlu1 %v8140_v50, %s20217_s17  ;;  %17598 = vmatprep.mubr.msk.bf16.mxu1 %vm20214_vm2, %v24658_v43 }
 0xd25   : > { %8799 = vrot.lane.b32.xlu0 %v8122_v46, %s20216_s16 }
 0xd26   : > { %v8146_v57 = vpop.f32.mrb[44].mxu1 }
 0xd27   : > { %v8148_v5 = vpop.f32.mrb[45].mxu1 }
 0xd28   : > { %8882 = vrot.lane.b32.xlu1 %v8146_v57, %s20217_s17  ;;  %v8150_v0 = vpop.f32.mrb[46].mxu1 }
 0xd29   : > { %8803 = vrot.lane.b32.xlu0 %v8126_v31, %s20216_s16  ;;  %v8152_v53 = vpop.f32.mrb[47].mxu1 }
 0xd2b   : > { %17599 = vmatmul.mubr.msk.bf16.gmra.mrb[152].mxu1 %vm904_vm1, %v22402_v58 }
 0xd2c   : > { %8888 = vrot.lane.b32.xlu1 %v8150_v0, %s20217_s17  ;;  %17602 = vmatprep.mubr.msk.bf16.mxu1 %vm20214_vm2, %v24658_v43 }
 0xd2d   : > { %8866 = vrot.lane.b32.xlu0 %v8132_v54, %s20217_s17 }
 0xd2e   : > { %v8156_v6 = vpop.f32.mrb[48].mxu1 }
 0xd2f   : > { %v8158_v4 = vpop.f32.mrb[49].mxu1 }
 0xd30   : > { %8890 = vrot.lane.b32.xlu1 %v8152_v53, %s20217_s17  ;;  %v8160_v30 = vpop.f32.mrb[50].mxu1 }
 0xd31   : > { %8872 = vrot.lane.b32.xlu0 %v8138_v28, %s20217_s17  ;;  %v8162_v60 = vpop.f32.mrb[51].mxu1 }
 0xd33   : > { %17603 = vmatmul.mubr.msk.bf16.gmra.mrb[156].mxu1 %vm904_vm1, %v22407_v24 }
 0xd34   : > { %8949 = vrot.lane.b32.xlu1 %v8156_v6, %s20218_s15  ;;  %17606 = vmatprep.mubr.msk.bf16.mxu1 %vm20214_vm2, %v24658_v43 }
 0xd35   : > { %8878 = vrot.lane.b32.xlu0 %v8142_v32, %s20217_s17 }
 0xd36   : > { %v8166_v58 = vpop.f32.mrb[52].mxu1 }
 0xd37   : > { %v8168_v21 = vpop.f32.mrb[53].mxu1 }
 0xd38   : > { %8957 = vrot.lane.b32.xlu1 %v8162_v60, %s20218_s15  ;;  %v8170_v51 = vpop.f32.mrb[54].mxu1 }
 0xd39   : > { %8884 = vrot.lane.b32.xlu0 %v8148_v5, %s20217_s17  ;;  %v8172_v37 = vpop.f32.mrb[55].mxu1 }
 0xd3b   : > { %17607 = vmatmul.mubr.msk.bf16.gmra.mrb[160].mxu1 %vm904_vm1, %v22414_v62 }
 0xd3c   : > { %8961 = vrot.lane.b32.xlu1 %v8166_v58, %s20218_s15  ;;  %17610 = vmatprep.mubr.msk.bf16.mxu1 %vm20214_vm2, %v24658_v43 }
 0xd3d   : > { %8951 = vrot.lane.b32.xlu0 %v8158_v4, %s20218_s15 }
 0xd3e   : > { %v8176_v24 = vpop.f32.mrb[56].mxu1 }
 0xd3f   : > { %v8178_v3 = vpop.f32.mrb[57].mxu1 }
 0xd40   : > { %8967 = vrot.lane.b32.xlu1 %v8170_v51, %s20218_s15  ;;  %v8180_v12 = vpop.f32.mrb[58].mxu1 }
 0xd41   : > { %8955 = vrot.lane.b32.xlu0 %v8160_v30, %s20218_s15  ;;  %v8182_v46 = vpop.f32.mrb[59].mxu1 }
 0xd43   : > { %17611 = vmatmul.mubr.msk.bf16.gmra.mrb[164].mxu1 %vm904_vm1, %v22419_v13  ;;  %v22659_v13 = vpop.permute.xlu0 %9711 }
 0xd44   : > { %8969 = vrot.lane.b32.xlu1 %v8172_v37, %s20218_s15  ;;  %17614 = vmatprep.mubr.msk.bf16.mxu1 %vm20214_vm2, %v24658_v43  ;;  %24689 = vst [vmem:[#allocation71_spill] sm:$0xff] %v22659_v13 }
 0xd45   : > { %8963 = vrot.lane.b32.xlu0 %v8168_v21, %s20218_s15 }
 0xd46   : > { %v8186_v62 = vpop.f32.mrb[60].mxu1 }
 0xd47   : > { %v8188_v31 = vpop.f32.mrb[61].mxu1  ;;  %v22664_v32 = vpop.permute.xlu0 %9716 }
 0xd48   : > { %8973 = vrot.lane.b32.xlu1 %v8176_v24, %s20218_s15  ;;  %v8190_v26 = vpop.f32.mrb[62].mxu1  ;;  %24690 = vst [vmem:[#allocation54_spill] sm:$0xff] %v22664_v32 }
 0xd49   : > { %8975 = vrot.lane.b32.xlu0 %v8178_v3, %s20218_s15  ;;  %v8192_v55 = vpop.f32.mrb[63].mxu1 }
 0xd4b   : > { %17615 = vmatmul.mubr.msk.bf16.gmra.mrb[168].mxu1 %vm904_vm1, %v22424_v40  ;;  %v22672_v0 = vpop.permute.xlu0 %9721 }
 0xd4c   : > { %17618 = vmatprep.mubr.msk.bf16.mxu1 %vm20214_vm2, %v24658_v43  ;;  %24691 = vst [vmem:[#allocation98_spill] sm:$0xff] %v22672_v0 }
 0xd4d   : > { %9034 = vrot.lane.b32.xlu0 %v8180_v12, %s20219_s18 }
 0xd4e   : > { %v8196_v54 = vpop.f32.mrb[64].mxu1 }
 0xd4f   : > { %v8198_v41 = vpop.f32.mrb[65].mxu1  ;;  %v22681_v6 = vpop.permute.xlu0 %9726 }
 0xd50   : > { %9054 = vrot.lane.b32.xlu1 %v8198_v41, %s20219_s18  ;;  %v8200_v28 = vpop.f32.mrb[66].mxu1  ;;  %24692 = vst [vmem:[#allocation73_spill] sm:$0xff] %v22681_v6 }
 0xd51   : > { %9036 = vrot.lane.b32.xlu0 %v8182_v46, %s20219_s18  ;;  %v8202_v50 = vpop.f32.mrb[67].mxu1 }
 0xd53   : > { %17619 = vmatmul.mubr.msk.bf16.gmra.mrb[172].mxu1 %vm904_vm1, %v22429_v19 }
 0xd54   : > { %17622 = vmatprep.mubr.msk.bf16.mxu1 %vm20214_vm2, %v24658_v43 }
 0xd55   : > { %9040 = vrot.lane.b32.xlu0 %v8186_v62, %s20219_s18 }
 0xd56   : > { %v8206_v40 = vpop.f32.mrb[68].mxu1 }
 0xd57   : > { %9119 = vrot.lane.b32.xlu1 %v8206_v40, %s20220_s19  ;;  %v8208_v57 = vpop.f32.mrb[69].mxu1 }
 0xd58   : > { %v8210_v5 = vpop.f32.mrb[70].mxu1 }
 0xd59   : > { %9042 = vrot.lane.b32.xlu0 %v8188_v31, %s20219_s18  ;;  %v8212_v53 = vpop.f32.mrb[71].mxu1 }
 0xd5b   : > { %17623 = vmatmul.mubr.msk.bf16.gmra.mrb[176].mxu1 %vm904_vm1, %v22435_v16  ;;  %9121 = vrot.lane.b32.xlu1 %v8208_v57, %s20220_s19 }
 0xd5c   : > { %17626 = vmatprep.mubr.msk.bf16.mxu1 %vm20214_vm2, %v24658_v43 }
 0xd5d   : > { %9046 = vrot.lane.b32.xlu0 %v8190_v26, %s20219_s18  ;;  %v22715_v26 = vpop.permute.xlu1 %9706 }
 0xd5e   : > { %v8216_v19 = vpop.f32.mrb[72].mxu1  ;;  %24694 = vst [vmem:[#allocation66_spill] sm:$0xff] %v22715_v26 }
 0xd5f   : > { %v8218_v4 = vpop.f32.mrb[73].mxu1 }
 0xd60   : > { %9133 = vrot.lane.b32.xlu1 %v8218_v4, %s20220_s19  ;;  %v8220_v30 = vpop.f32.mrb[74].mxu1 }
 0xd61   : > { %9048 = vrot.lane.b32.xlu0 %v8192_v55, %s20219_s18  ;;  %v8222_v60 = vpop.f32.mrb[75].mxu1 }
 0xd63   : > { %17627 = vmatmul.mubr.msk.bf16.gmra.mrb[180].mxu1 %vm904_vm1, %v22441_v14  ;;  %v22687_v16 = vpop.permute.xlu0 %8694 }
 0xd64   : > { %17630 = vmatprep.mubr.msk.bf16.mxu1 %vm20214_vm2, %v24658_v43 }
 0xd65   : > { %9052 = vrot.lane.b32.xlu0 %v8196_v54, %s20219_s18 }
 0xd66   : > { %v8226_v58 = vpop.f32.mrb[76].mxu1 }
 0xd67   : > { %v22692_v21 = vpop.permute.xlu0 %8696  ;;  %9143 = vrot.lane.b32.xlu1 %v8226_v58, %s20220_s19  ;;  %v8228_v51 = vpop.f32.mrb[77].mxu1 }
 0xd68   : > { %v8230_v37 = vpop.f32.mrb[78].mxu1 }
 0xd69   : > { %9058 = vrot.lane.b32.xlu0 %v8200_v28, %s20219_s18  ;;  %v8232_v24 = vpop.f32.mrb[79].mxu1 }
 0xd6b   : > { %17631 = vmatmul.mubr.msk.bf16.gmra.mrb[184].mxu1 %vm904_vm1, %v22446_v42  ;;  %v22698_v14 = vpop.permute.xlu0 %8700  ;;  %9204 = vrot.lane.b32.xlu1 %v8230_v37, %s20221_s26 }
 0xd6c   : > { %17634 = vmatprep.mubr.msk.bf16.mxu1 %vm20214_vm2, %v24658_v43 }
 0xd6d   : > { %9060 = vrot.lane.b32.xlu0 %v8202_v50, %s20219_s18 }
 0xd6e   : > { %v8236_v3 = vpop.f32.mrb[80].mxu1 }
 0xd6f   : > { %v22704_v12 = vpop.permute.xlu0 %8702  ;;  %9210 = vrot.lane.b32.xlu1 %v8236_v3, %s20221_s26  ;;  %v8238_v46 = vpop.f32.mrb[81].mxu1 }
 0xd70   : > { %v8240_v62 = vpop.f32.mrb[82].mxu1 }
 0xd71   : > { %9125 = vrot.lane.b32.xlu0 %v8210_v5, %s20220_s19  ;;  %v8242_v31 = vpop.f32.mrb[83].mxu1 }
 0xd73   : > { %17635 = vmatmul.mubr.msk.bf16.gmra.mrb[188].mxu1 %vm904_vm1, %v22451_v22  ;;  %v22710_v42 = vpop.permute.xlu0 %8706  ;;  %9216 = vrot.lane.b32.xlu1 %v8240_v62, %s20221_s26 }
 0xd74   : > { %24693 = vst [vmem:[#allocation75_spill] sm:$0xff] %v22710_v42  ;;  %17638 = vmatprep.mubr.msk.bf16.mxu1 %vm20214_vm2, %v24658_v43  ;;  %v9760_v42 = vld [vmem:[#allocation4 + $0x8] sm:$0xff] }
 0xd75   : > { %9127 = vrot.lane.b32.xlu0 %v8212_v53, %s20220_s19 }
 0xd76   : > { %v8246_v55 = vpop.f32.mrb[84].mxu1 }
 0xd77   : > { %v22718_v54 = vpop.permute.xlu0 %8708  ;;  %9218 = vrot.lane.b32.xlu1 %v8242_v31, %s20221_s26  ;;  %v8248_v41 = vpop.f32.mrb[85].mxu1 }
 0xd78   : > { %v8250_v28 = vpop.f32.mrb[86].mxu1 }
 0xd79   : > { %v22721_v50 = vpop.permute.xlu1 %8779  ;;  %9131 = vrot.lane.b32.xlu0 %v8216_v19, %s20220_s19  ;;  %v8252_v22 = vpop.f32.mrb[87].mxu1 }
 0xd7b   : > { %17639 = vmatmul.mubr.msk.bf16.gmra.mrb[192].mxu1 %vm904_vm1, %v22456_v15  ;;  %v22726_v40 = vpop.permute.xlu0 %8712  ;;  %9222 = vrot.lane.b32.xlu1 %v8246_v55, %s20221_s26 }
 0xd7c   : > { %17642 = vmatprep.mubr.msk.bf16.mxu1 %vm20214_vm2, %v24658_v43 }
 0xd7d   : > { %v22731_v57 = vpop.permute.xlu1 %8781  ;;  %9137 = vrot.lane.b32.xlu0 %v8220_v30, %s20220_s19 }
 0xd7e   : > { %v8256_v5 = vpop.f32.mrb[88].mxu1 }
 0xd7f   : > { %v22734_v53 = vpop.permute.xlu0 %8714  ;;  %9228 = vrot.lane.b32.xlu1 %v8250_v28, %s20221_s26  ;;  %v8258_v19 = vpop.f32.mrb[89].mxu1 }
 0xd80   : > { %24695 = vst [vmem:[#allocation64_spill] sm:$0xff] %v22734_v53  ;;  %v8260_v4 = vpop.f32.mrb[90].mxu1 }
 0xd81   : > { %v22737_v58 = vpop.permute.xlu1 %8791  ;;  %9139 = vrot.lane.b32.xlu0 %v8222_v60, %s20220_s19  ;;  %v8262_v15 = vpop.f32.mrb[91].mxu1 }
 0xd82   : > { %24696 = vst [vmem:[#allocation68_spill] sm:$0xff] %v22737_v58  ;;  %v9759_v58 = vld [vmem:[#allocation4] sm:$0xff] }
 0xd83   : > { %17643 = vmatmul.mubr.msk.bf16.gmra.mrb[196].mxu1 %vm904_vm1, %v22463_v35  ;;  %v22742_v37 = vpop.permute.xlu0 %8718  ;;  %9230 = vrot.lane.b32.xlu1 %v8252_v22, %s20221_s26 }
 0xd84   : > { %24697 = vst [vmem:[#allocation83_spill] sm:$0xff] %v22742_v37  ;;  %17646 = vmatprep.mubr.msk.bf16.mxu1 %vm20214_vm2, %v24658_v43 }
 0xd85   : > { %v22747_v30 = vpop.permute.xlu1 %8793  ;;  %9145 = vrot.lane.b32.xlu0 %v8228_v51, %s20220_s19 }
 0xd86   : > { %24698 = vst [vmem:[#allocation81_spill] sm:$0xff] %v22747_v30  ;;  %v8266_v3 = vpop.f32.mrb[92].mxu1 }
 0xd87   : > { %v22750_v62 = vpop.permute.xlu0 %8720  ;;  %9289 = vrot.lane.b32.xlu1 %v8256_v5, %s20222_s22  ;;  %v8268_v60 = vpop.f32.mrb[93].mxu1 }
 0xd88   : > { %24699 = vst [vmem:[#allocation20_spill] sm:$0xff] %v22750_v62  ;;  %v8270_v31 = vpop.f32.mrb[94].mxu1 }
 0xd89   : > { %9206 = vrot.lane.b32.xlu0 %v8232_v24, %s20221_s26  ;;  %v8272_v35 = vpop.f32.mrb[95].mxu1 }
 0xd8a   : > { %v22754_v55 = vpop.permute.xlu1 %8805 }
 0xd8b   : > { %24700 = vst [vmem:[#allocation85_spill] sm:$0xff] %v22754_v55  ;;  %17647 = vmatmul.mubr.msk.bf16.gmra.mrb[200].mxu1 %vm904_vm1, %v22468_v34  ;;  %v22758_v28 = vpop.permute.xlu0 %8785  ;;  %9295 = vrot.lane.b32.xlu1 %v8260_v4, %s20222_s22 }
 0xd8c   : > { %17650 = vmatprep.mubr.msk.bf16.mxu1 %vm20214_vm2, %v24658_v43 }
 0xd8d   : > { %9212 = vrot.lane.b32.xlu0 %v8238_v46, %s20221_s26 }
 0xd8e   : > { %v22764_v51 = vpop.permute.xlu1 %8864  ;;  %v8276_v22 = vpop.f32.mrb[96].mxu1 }
 0xd8f   : > { %v22766_v5 = vpop.permute.xlu0 %8787  ;;  %9297 = vrot.lane.b32.xlu1 %v8262_v15, %s20222_s22  ;;  %v8278_v24 = vpop.f32.mrb[97].mxu1 }
 0xd90   : > { %v8280_v6 = vpop.f32.mrb[98].mxu1 }
 0xd91   : > { %9224 = vrot.lane.b32.xlu0 %v8248_v41, %s20221_s26  ;;  %v8282_v34 = vpop.f32.mrb[99].mxu1 }
 0xd92   : > { %v22770_v0 = vpop.permute.xlu1 %8870 }
 0xd93   : > { %17651 = vmatmul.mubr.msk.bf16.gmra.mrb[204].mxu1 %vm904_vm1, %v22473_v63  ;;  %v22774_v4 = vpop.permute.xlu0 %8797  ;;  %9301 = vrot.lane.b32.xlu1 %v8266_v3, %s20222_s22 }
 0xd94   : > { %17654 = vmatprep.mubr.msk.bf16.mxu1 %vm20214_vm2, %v24658_v43 }
 0xd95   : > { %9291 = vrot.lane.b32.xlu0 %v8258_v19, %s20222_s22 }
 0xd96   : > { %v22780_v46 = vpop.permute.xlu1 %8876  ;;  %v8286_v15 = vpop.f32.mrb[100].mxu1 }
 0xd97   : > { %24701 = vst [vmem:[#allocation76_spill] sm:$0xff] %v22780_v46  ;;  %v22782_v32 = vpop.permute.xlu0 %8799  ;;  %9313 = vrot.lane.b32.xlu1 %v8276_v22, %s20222_s22  ;;  %v8288_v41 = vpop.f32.mrb[101].mxu1 }
 0xd98   : > { %24702 = vst [vmem:[#allocation74_spill] sm:$0xff] %v22782_v32  ;;  %v8290_v13 = vpop.f32.mrb[102].mxu1 }
 0xd99   : > { %9303 = vrot.lane.b32.xlu0 %v8268_v60, %s20222_s22  ;;  %v8292_v63 = vpop.f32.mrb[103].mxu1 }
 0xd9a   : > { %v22786_v26 = vpop.permute.xlu1 %8882 }
 0xd9b   : > { %17655 = vmatmul.mubr.msk.bf16.gmra.mrb[208].mxu1 %vm904_vm1, %v22478_v17  ;;  %v22790_v3 = vpop.permute.xlu0 %8803  ;;  %9382 = vrot.lane.b32.xlu1 %v8288_v41, %s20223_s25 }
 0xd9c   : > { %24703 = vst [vmem:[#allocation91_spill] sm:$0xff] %v22790_v3  ;;  %17658 = vmatprep.mubr.msk.bf16.mxu1 %vm20214_vm2, %v24658_v43 }
 0xd9d   : > { %9307 = vrot.lane.b32.xlu0 %v8270_v31, %s20222_s22 }
 0xd9e   : > { %v22796_v19 = vpop.permute.xlu1 %8888  ;;  %v8296_v22 = vpop.f32.mrb[104].mxu1 }
 0xd9f   : > { %24704 = vst [vmem:[#allocation93_spill] sm:$0xff] %v22796_v19  ;;  %v22798_v47 = vpop.permute.xlu0 %8866  ;;  %v8298_v60 = vpop.f32.mrb[105].mxu1 }
 0xda0   : > { %9394 = vrot.lane.b32.xlu1 %v8298_v60, %s20223_s25  ;;  %v8300_v56 = vpop.f32.mrb[106].mxu1 }
 0xda1   : > { %9309 = vrot.lane.b32.xlu0 %v8272_v35, %s20222_s22  ;;  %v8302_v17 = vpop.f32.mrb[107].mxu1 }
 0xda2   : > { %v22802_v2 = vpop.permute.xlu1 %8890 }
 0xda3   : > { %24705 = vst [vmem:[#allocation80_spill] sm:$0xff] %v22802_v2  ;;  %17659 = vmatmul.mubr.msk.bf16.gmra.mrb[212].mxu1 %vm904_vm1, %v22483_v25  ;;  %v22806_v41 = vpop.permute.xlu0 %8872 }
 0xda4   : > { %17662 = vmatprep.mubr.msk.bf16.mxu1 %vm20214_vm2, %v24658_v43 }
 0xda5   : > { %9315 = vrot.lane.b32.xlu0 %v8278_v24, %s20222_s22 }
 0xda6   : > { %v22811_v31 = vpop.permute.xlu1 %8949  ;;  %v8306_v18 = vpop.f32.mrb[108].mxu1 }
 0xda7   : > { %v22813_v60 = vpop.permute.xlu0 %8878  ;;  %v8308_v29 = vpop.f32.mrb[109].mxu1 }
 0xda8   : > { %24706 = vst [vmem:[#allocation90_spill] sm:$0xff] %v22813_v60  ;;  %9461 = vrot.lane.b32.xlu1 %v8308_v29, %s20224_s14  ;;  %v22816_v35 = vpop.f32.mrb[110].mxu1  ;;  %v9775_v60 = vld [vmem:[#allocation4 + $0x80] sm:$0xff] }
 0xda9   : > { %9374 = vrot.lane.b32.xlu0 %v8280_v6, %s20223_s25  ;;  %v22819_v25 = vpop.f32.mrb[111].mxu1  ;;  %v18632_v30 = vpack.c.bf16 %v9776_v10, %v9775_v60 }
 0xdaa   : > { %v22821_v45 = vpop.permute.xlu1 %8957 }
 0xdab   : > { %17663 = vmatmul.mubr.msk.bf16.gmra.mrb[216].mxu1 %vm904_vm1, %v22488_v27  ;;  %v22825_v24 = vpop.permute.xlu0 %8884  ;;  %18633 = vmatprep.subr.bf16.mxu1 %v18632_v30 }
 0xdac   : > { %17666 = vmatprep.mubr.msk.bf16.mxu1 %vm20214_vm2, %v24658_v43 }
 0xdad   : > { %9376 = vrot.lane.b32.xlu0 %v8282_v34, %s20223_s25 }
 0xdae   : > { %v22830_v19 = vpop.permute.xlu1 %8961  ;;  %v8316_v29 = vpop.f32.mrb[112].mxu1 }
 0xdaf   : > { %24707 = vst [vmem:[#allocation99_spill] sm:$0xff] %v22830_v19  ;;  %v22832_v2 = vpop.permute.xlu0 %8951  ;;  %v22834_v6 = vpop.f32.mrb[113].mxu1  ;;  %9471 = vrot.lane.b32.xlu1 %v8316_v29, %s20224_s14 }
 0xdb0   : > { %v22837_v49 = vpop.f32.mrb[114].mxu1 }
 0xdb1   : > { %9380 = vrot.lane.b32.xlu0 %v8286_v15, %s20223_s25  ;;  %v22840_v27 = vpop.f32.mrb[115].mxu1 }
 0xdb2   : > { %v22848_v34 = vpop.permute.xlu1 %8967 }
 0xdb3   : > { %17667 = vmatmul.mubr.msk.bf16.gmra.mrb[220].mxu1 %vm904_vm1, %v22493_v36  ;;  %v22844_v3 = vpop.permute.xlu0 %8955 }
 0xdb4   : > { %17670 = vmatprep.mubr.msk.bf16.mxu1 %vm20214_vm2, %v24658_v43 }
 0xdb5   : > { %9386 = vrot.lane.b32.xlu0 %v8290_v13, %s20223_s25 }
 0xdb6   : > { %v8326_v55 = vpop.f32.mrb[116].mxu1  ;;  %v22857_v62 = vpop.permute.xlu1 %8969 }
 0xdb7   : > { %v22851_v29 = vpop.permute.xlu0 %8963  ;;  %9483 = vrot.lane.b32.xlu1 %v8326_v55, %s20224_s14  ;;  %v22854_v15 = vpop.f32.mrb[117].mxu1 }
 0xdb8   : > { %24708 = vst [vmem:[#allocation97_spill] sm:$0xff] %v22851_v29  ;;  %v8330_v37 = vpop.f32.mrb[118].mxu1 }
 0xdb9   : > { %9388 = vrot.lane.b32.xlu0 %v8292_v63, %s20223_s25  ;;  %v8332_v36 = vpop.f32.mrb[119].mxu1 }
 0xdba   : > { %v22872_v46 = vpop.permute.xlu1 %8973 }
 0xdbb   : > { %17671 = vmatmul.mubr.msk.bf16.gmra.mrb[224].mxu1 %vm904_vm1, %v22498_v33  ;;  %v22861_v19 = vpop.permute.xlu0 %8975  ;;  %9544 = vrot.lane.b32.xlu1 %v8330_v37, %s24710_s29  ;;  %24711 = vst [vmem:[#allocation94_spill] sm:$0xff] %v22872_v46 }
 0xdbc   : > { %24709 = vst [vmem:[#allocation88_spill] sm:$0xff] %v22861_v19  ;;  %17674 = vmatprep.mubr.msk.bf16.mxu1 %vm20214_vm2, %v24658_v43 }
 0xdbd   : > { %9392 = vrot.lane.b32.xlu0 %v8296_v22, %s20223_s25 }
 0xdbe   : > { %v8336_v13 = vpop.f32.mrb[120].mxu1 }
 0xdbf   : > { %v22867_v55 = vpop.permute.xlu0 %9034  ;;  %9546 = vrot.lane.b32.xlu1 %v8332_v36, %s24710_s29  ;;  %v22870_v63 = vpop.f32.mrb[121].mxu1 }
 0xdc0   : > { %v8340_v29 = vpop.f32.mrb[122].mxu1 }
 0xdc1   : > { %9398 = vrot.lane.b32.xlu0 %v8300_v56, %s20223_s25  ;;  %v8342_v33 = vpop.f32.mrb[123].mxu1 }
 0xdc2   : > { %v22882_v22 = vpop.permute.xlu1 %9054 }
 0xdc3   : > { %17675 = vmatmul.mubr.msk.bf16.gmra.mrb[228].mxu1 %vm904_vm1, %v22503_v48  ;;  %v22877_v37 = vpop.permute.xlu0 %9036  ;;  %9550 = vrot.lane.b32.xlu1 %v8336_v13, %s24710_s29 }
 0xdc4   : > { %17678 = vmatprep.mubr.msk.bf16.mxu1 %vm20214_vm2, %v24658_v43 }
 0xdc5   : > { %9400 = vrot.lane.b32.xlu0 %v8302_v17, %s20223_s25 }
 0xdc6   : > { %v8346_v36 = vpop.f32.mrb[124].mxu1 }
 0xdc7   : > { %v22885_v19 = vpop.permute.xlu0 %9040  ;;  %9556 = vrot.lane.b32.xlu1 %v8340_v29, %s24710_s29  ;;  %v8348_v56 = vpop.f32.mrb[125].mxu1  ;;  %v18634_v29 = vpack.c.bf16 %v9760_v42, %v9759_v58 }
 0xdc8   : > { %v22888_v46 = vpop.f32.mrb[126].mxu1 }
 0xdc9   : > { %24712 = vst [vmem:[#allocation92_spill] sm:$0xff] %v22888_v46  ;;  %v22890_v48 = vpop.permute.xlu1 %9119  ;;  %9459 = vrot.lane.b32.xlu0 %v8306_v18, %s20224_s14  ;;  %v22893_v13 = vpop.f32.mrb[127].mxu1  ;;  %18635 = vmatpush3.bf16.msra.mxu1 %v18634_v29 }
 0xdca   : > { %24713 = vst [vmem:[#allocation104_spill] sm:$0xff] %v22893_v13 }
 0xdcb   : > { %17679 = vmatmul.mubr.msk.bf16.gmra.mrb[232].mxu1 %vm904_vm1, %v22514_v44  ;;  %v22897_v17 = vpop.permute.xlu0 %9042  ;;  %9558 = vrot.lane.b32.xlu1 %v8342_v33, %s24710_s29 }
 0xdcc   : > { %17682 = vmatprep.mubr.msk.bf16.mxu1 %vm20214_vm2, %v24658_v43 }
 0xdcd   : > { %9465 = vrot.lane.b32.xlu0 %v22816_v35, %s20224_s14  ;;  %v22904_v18 = vpop.permute.xlu1 %9121 }
 0xdce   : > { %v8356_v10 = vpop.f32.mrb[128].mxu1 }
 0xdcf   : > { %v22906_v60 = vpop.permute.xlu0 %9046  ;;  %9562 = vrot.lane.b32.xlu1 %v8346_v36, %s24710_s29  ;;  %v8358_v44 = vpop.f32.mrb[129].mxu1 }
 0xdd0   : > { %24714 = vst [vmem:[#allocation102_spill] sm:$0xff] %v22906_v60  ;;  %v8360_v46 = vpop.f32.mrb[130].mxu1  ;;  %v9762_v60 = vld [vmem:[#allocation4 + $0x18] sm:$0xff] }
 0xdd1   : > { %9467 = vrot.lane.b32.xlu0 %v22819_v25, %s20224_s14  ;;  %v8362_v42 = vpop.f32.mrb[131].mxu1 }
 0xdd2   : > { %v22918_v30 = vpop.permute.xlu1 %9133 }
 0xdd3   : > { %17683 = vmatmul.mubr.msk.bf16.gmra.mrb[236].mxu1 %vm904_vm1, %v22521_v38  ;;  %v22913_v58 = vpop.permute.xlu0 %9048  ;;  %9629 = vrot.lane.b32.xlu1 %v8356_v10, %s24716_s23  ;;  %24717 = vst [vmem:[#allocation100_spill] sm:$0xff] %v22918_v30  ;;  %v9761_v30 = vld [vmem:[#allocation4 + $0x10] sm:$0xff] }
 0xdd4   : > { %24715 = vst [vmem:[#allocation101_spill] sm:$0xff] %v22913_v58  ;;  %17686 = vmatprep.mubr.msk.bf16.mxu1 %vm20214_vm2, %v24658_v43  ;;  %v18638_v58 = vpack.c.bf16 %v9762_v60, %v9761_v30 }
 0xdd5   : > { %9473 = vrot.lane.b32.xlu0 %v22834_v6, %s20224_s14 }
 0xdd6   : > { %v8366_v35 = vpop.f32.mrb[132].mxu1 }
 0xdd7   : > { %v22922_v33 = vpop.permute.xlu0 %9052  ;;  %v8368_v25 = vpop.f32.mrb[133].mxu1  ;;  %9641 = vrot.lane.b32.xlu1 %v8366_v35, %s24716_s23 }
 0xdd8   : > { %v22925_v36 = vpop.f32.mrb[134].mxu1 }
 0xdd9   : > { %24718 = vst [vmem:[#allocation21_spill] sm:$0xff] %v22925_v36  ;;  %v22927_v38 = vpop.permute.xlu1 %9143  ;;  %9477 = vrot.lane.b32.xlu0 %v22837_v49, %s20224_s14  ;;  %v8372_v29 = vpop.f32.mrb[135].mxu1 }
 0xdda   : > { %24719 = vst [vmem:[#allocation112_spill] sm:$0xff] %v22927_v38 }
 0xddb   : > { %17687 = vmatmul.mubr.msk.bf16.gmra.mrb[240].mxu1 %vm904_vm1, %v22526_v20  ;;  %v22933_v10 = vpop.permute.xlu0 %9058 }
 0xddc   : > { %24720 = vst [vmem:[#allocation123_spill] sm:$0xff] %v22933_v10  ;;  %17690 = vmatprep.mubr.msk.bf16.mxu1 %vm20214_vm2, %v24658_v43 }
 0xddd   : > { %v22937_v6 = vpop.permute.xlu1 %9204  ;;  %9479 = vrot.lane.b32.xlu0 %v22840_v27, %s20224_s14 }
 0xdde   : > { %v22941_v35 = vpop.f32.mrb[136].mxu1 }
 0xddf   : > { %24721 = vst [vmem:[#allocation107_spill] sm:$0xff] %v22941_v35  ;;  %v22943_v36 = vpop.permute.xlu0 %9060  ;;  %v22945_v13 = vpop.f32.mrb[137].mxu1 }
 0xde0   : > { %24722 = vst [vmem:[#allocation105_spill] sm:$0xff] %v22943_v36  ;;  %24723 = vst [vmem:[#allocation114_spill] sm:$0xff] %v22945_v13  ;;  %v8380_v49 = vpop.f32.mrb[138].mxu1 }
 0xde1   : > { %v22947_v38 = vpop.permute.xlu1 %9210  ;;  %9485 = vrot.lane.b32.xlu0 %v22854_v15, %s20224_s14  ;;  %v8381_v20 = vpop.f32.mrb[139].mxu1 }
 0xde3   : > { %17691 = vmatmul.mubr.msk.bf16.gmra.mrb[244].mxu1 %vm904_vm1, %v22531_v8  ;;  %v22953_v10 = vpop.permute.xlu0 %9125 }
 0xde4   : > { %17694 = vmatprep.mubr.msk.bf16.mxu1 %vm20214_vm2, %v24658_v43 }
 0xde5   : > { %v22957_v27 = vpop.permute.xlu1 %9216  ;;  %9552 = vrot.lane.b32.xlu0 %v22870_v63, %s24710_s29 }
 0xde6   : > { %24724 = vst [vmem:[#allocation119_spill] sm:$0xff] %v22957_v27  ;;  %v22961_v49 = vpop.f32.mrb[140].mxu1 }
 0xde7   : > { %24725 = vst [vmem:[#allocation22_spill] sm:$0xff] %v22961_v49  ;;  %v22963_v35 = vpop.permute.xlu0 %9127  ;;  %v17588_v13 = vpop.f32.mrb[141].mxu1  ;;  %v9778_v49 = vld [vmem:[#allocation4 + $0x98] sm:$0xff] }
 0xde8   : > { %v22965_v15 = vpop.f32.mrb[142].mxu1  ;;  %v9777_v13 = vld [vmem:[#allocation4 + $0x90] sm:$0xff] }
 0xde9   : > { %24726 = vst [vmem:[#allocation115_spill] sm:$0xff] %v22965_v15  ;;  %v22967_v20 = vpop.permute.xlu1 %9218  ;;  %9564 = vrot.lane.b32.xlu0 %v8348_v56, %s24710_s29  ;;  %v17589_v8 = vpop.f32.mrb[143].mxu1  ;;  %v18636_v27 = vpack.c.bf16 %v9778_v49, %v9777_v13 }
 0xdea   : > { %24727 = vst [vmem:[#allocation125_spill] sm:$0xff] %v22967_v20 }
 0xdeb   : > { %17695 = vmatmul.mubr.msk.bf16.gmra.mrb[248].mxu1 %vm904_vm1, %v22540_v11  ;;  %v22972_v36 = vpop.permute.xlu0 %9131  ;;  %18637 = vmatprep.subr.bf16.mxu1 %v18636_v27 }
 0xdec   : > { %24728 = vst [vmem:[#allocation120_spill] sm:$0xff] %v22972_v36  ;;  %17698 = vmatprep.mubr.msk.bf16.mxu1 %vm20214_vm2, %v24658_v43  ;;  %18639 = vmatpush3.bf16.msra.mxu1 %v18638_v58 }
 0xded   : > { %v22976_v63 = vpop.permute.xlu1 %9222  ;;  %9631 = vrot.lane.b32.xlu0 %v8358_v44, %s24716_s23 }
 0xdee   : > { %v22979_v15 = vpop.f32.mrb[144].mxu1 }
 0xdef   : > { %24729 = vst [vmem:[#allocation23_spill] sm:$0xff] %v22979_v15  ;;  %v22981_v20 = vpop.permute.xlu0 %9137  ;;  %v17592_v56 = vpop.f32.mrb[145].mxu1  ;;  %v8985_v15 = vsel %vm1974_vm6, %v22848_v34, %v22857_v62  ;;  %v9780_v34 = vld [vmem:[#allocation4 + $0xa8] sm:$0xff] }
 0xdf0   : > { %v22983_v8 = vpop.f32.mrb[146].mxu1 }
 0xdf1   : > { %24730 = vst [vmem:[#allocation61_spill] sm:$0xff] %v22983_v8  ;;  %v22985_v11 = vpop.permute.xlu1 %9228  ;;  %9635 = vrot.lane.b32.xlu0 %v8360_v46, %s24716_s23  ;;  %v17593_v36 = vpop.f32.mrb[147].mxu1 }
 0xdf3   : > { %17699 = vmatmul.mubr.msk.bf16.gmra.mrb[252].mxu1 %vm904_vm1, %v22553_v39  ;;  %v22990_v44 = vpop.permute.xlu0 %9139 }
 0xdf4   : > { %17702 = vmatprep.mubr.msk.bf16.mxu1 %vm20214_vm2, %v24658_v43 }
 0xdf5   : > { %v22994_v49 = vpop.permute.xlu1 %9230  ;;  %9637 = vrot.lane.b32.xlu0 %v8362_v42, %s24716_s23 }
 0xdf6   : > { %24731 = vst [vmem:[#allocation126_spill] sm:$0xff] %v22994_v49  ;;  %v22997_v27 = vpop.f32.mrb[148].mxu1 }
 0xdf7   : > { %24732 = vst [vmem:[#allocation36_spill] sm:$0xff] %v22997_v27  ;;  %v22999_v46 = vpop.permute.xlu0 %9145  ;;  %v17596_v36 = vpop.f32.mrb[149].mxu1 }
 0xdf8   : > { %v8436_v13 = vpop.f32.mrb[150].mxu1 }
 0xdf9   : > { %v23001_v60 = vpop.permute.xlu1 %9289  ;;  %9643 = vrot.lane.b32.xlu0 %v8368_v25, %s24716_s23  ;;  %8698 = vrot.lane.b32.xlu1 %v8436_v13, %s20215_s10  ;;  %v17597_v39 = vpop.f32.mrb[151].mxu1 }
 0xdfb   : > { %17703 = vmatmul.mubr.msk.bf16.gmra.mrb[0].mxu1 %vm904_vm1, %v22566_v61  ;;  %v23007_v58 = vpop.permute.xlu0 %9206 }
 0xdfc   : > { %17706 = vmatprep.mubr.msk.bf16.mxu1 %vm20214_vm2, %v24658_v43 }
 0xdfd   : > { %9649 = vrot.lane.b32.xlu0 %v8372_v29, %s24716_s23  ;;  %v23012_v42 = vpop.permute.xlu1 %9295  ;;  %v8730_v29 = vsel %vm1716_vm3, %v22726_v40, %v22734_v53  ;;  %v8900_v40 = vsel %vm1888_vm5, %v22786_v26, %v22825_v24  ;;  %v9070_v26 = vsel %vm2060_vm7, %v22922_v33, %v22882_v22 }
 0xdfe   : > { %v8441_v30 = vpop.f32.mrb[152].mxu1 }
 0xdff   : > { %v23014_v56 = vpop.permute.xlu0 %9212  ;;  %8704 = vrot.lane.b32.xlu1 %v8441_v30, %s20215_s10  ;;  %v17600_v25 = vpop.f32.mrb[153].mxu1  ;;  %v8815_v30 = vsel %vm1802_vm4, %v22774_v4, %v22782_v32 }
 0xe00   : > { %v8444_v36 = vpop.f32.mrb[154].mxu1 }
 0xe01   : > { %v17601_v13 = vpop.f32.mrb[155].mxu1  ;;  %v23025_v39 = vpop.permute.xlu1 %9297 }
 0xe02   : > { %24733 = vst [vmem:[#allocation55_spill] sm:$0xff] %v23025_v39 }
 0xe03   : > { %17707 = vmatmul.mubr.msk.bf16.gmra.mrb[4].mxu1 %vm904_vm1, %v22573_v7  ;;  %v23019_v61 = vpop.permute.xlu0 %9224  ;;  %8710 = vrot.lane.b32.xlu1 %v8444_v36, %s20215_s10  ;;  %v8758_v7 = vadd.f32 %v8730_v29, %v22555_v1  ;;  %v9779_v29 = vld [vmem:[#allocation4 + $0xa0] sm:$0xff] }
 0xe04   : > { %17710 = vmatprep.mubr.msk.bf16.mxu1 %vm20214_vm2, %v24658_v43 }
 0xe05   : > { %v8843_v8 = vadd.f32 %v8815_v30, %v8758_v7  ;;  %v23042_v4 = vpop.permute.xlu1 %9301  ;;  %v9763_v30 = vld [vmem:[#allocation4 + $0x20] sm:$0xff]  ;;  %v9764_v7 = vld [vmem:[#allocation4 + $0x28] sm:$0xff] }
 0xe06   : > { %v8449_v25 = vpop.f32.mrb[156].mxu1 }
 0xe07   : > { %v23033_v13 = vpop.permute.xlu0 %9291  ;;  %8716 = vrot.lane.b32.xlu1 %v8449_v25, %s20215_s10  ;;  %v17604_v36 = vpop.f32.mrb[157].mxu1  ;;  %v8928_v32 = vadd.f32 %v8900_v40, %v8843_v8  ;;  %v8724_v8 = vsel %vm1716_vm3, %v22687_v16, %v22692_v21  ;;  %v18640_v25 = vpack.c.bf16 %v9780_v34, %v9779_v29  ;;  %v8809_v16 = vsel %vm1802_vm4, %v22721_v50, %v22731_v57 }
 0xe08   : > { %v8452_v27 = vpop.f32.mrb[158].mxu1  ;;  %v8894_v50 = vsel %vm1888_vm5, %v22764_v51, %v22798_v47 }
 0xe09   : > { %v17605_v53 = vpop.f32.mrb[159].mxu1  ;;  %v23070_v29 = vpop.permute.xlu1 %9313  ;;  %18641 = vmatprep.subr.bf16.mxu1 %v18640_v25 }
 0xe0a   : > { %v9013_v53 = vadd.f32 %v8985_v15, %v8928_v32  ;;  %v18642_v32 = vpack.c.bf16 %v9764_v7, %v9763_v30  ;;  %v8726_v15 = vsel %vm1716_vm3, %v22698_v14, %v22704_v12  ;;  %v8811_v14 = vsel %vm1802_vm4, %v22758_v28, %v22766_v5 }
 0xe0b   : > { %17711 = vmatmul.mubr.msk.bf16.gmra.mrb[8].mxu1 %vm904_vm1, %v22580_v23  ;;  %v23046_v1 = vpop.permute.xlu0 %9303  ;;  %8722 = vrot.lane.b32.xlu1 %v8452_v27, %s20215_s10  ;;  %v9155_v23 = vsel %vm2146_vm8, %v22981_v20, %v22990_v44  ;;  %v9240_v20 = vsel %vm2232_vm9, %v22976_v63, %v23019_v61  ;;  %v8752_v63 = vadd.f32 %v8726_v15, %v22542_v59 }
 0xe0c   : > { %24734 = vst [vmem:[#allocation121_spill] sm:$0xff] %v23046_v1  ;;  %17714 = vmatprep.mubr.msk.bf16.mxu1 %vm20214_vm2, %v24658_v43  ;;  %v9098_v36 = vadd.f32 %v9070_v26, %v9013_v53  ;;  %v8749_v53 = vadd.f32 %v8724_v8, %v22536_v9  ;;  %18643 = vmatpush3.bf16.msra.mxu1 %v18642_v32 }
 0xe0d   : > { %v8896_v8 = vsel %vm1888_vm5, %v22770_v0, %v22806_v41  ;;  %v8979_v28 = vsel %vm1974_vm6, %v22811_v31, %v22832_v2  ;;  %v23101_v0 = vpop.permute.xlu1 %9382 }
 0xe0e   : > { %v8457_v27 = vpop.f32.mrb[160].mxu1  ;;  %v9183_v34 = vadd.f32 %v9155_v23, %v9098_v36  ;;  %v8837_v23 = vadd.f32 %v8811_v14, %v8752_v63  ;;  %v9064_v36 = vsel %vm2060_vm7, %v22867_v55, %v22877_v37  ;;  %24736 = vst [vmem:[#allocation28_spill] sm:$0xff] %v23101_v0  ;;  %v9149_v55 = vsel %vm2146_vm8, %v22890_v48, %v22904_v18  ;;  %v24739_v14 = vld [vmem:[#allocation81_spill] sm:$0xff] }
 0xe0f   : > { %v9308_v33 = vpop.permute.xlu0 %9307  ;;  %8783 = vrot.lane.b32.xlu0 %v8457_v27, %s20216_s16  ;;  %v17608_v40 = vpop.f32.mrb[161].mxu1  ;;  %v8834_v27 = vadd.f32 %v8809_v16, %v8749_v53  ;;  %v24738_v16 = vld [vmem:[#allocation75_spill] sm:$0xff] }
 0xe10   : > { %v8460_v26 = vpop.f32.mrb[162].mxu1  ;;  %v9268_v7 = vadd.f32 %v9240_v20, %v9183_v34  ;;  %v8922_v32 = vadd.f32 %v8896_v8, %v8837_v23  ;;  %v8728_v20 = vsel %vm1716_vm3, %v24738_v16, %v22718_v54  ;;  %v24742_v23 = vld [vmem:[#allocation90_spill] sm:$0xff]  ;;  %v24746_v16 = vld [vmem:[#allocation99_spill] sm:$0xff] }
 0xe11   : > { %8789 = vrot.lane.b32.xlu1 %v8460_v26, %s20216_s16  ;;  %v17609_v30 = vpop.f32.mrb[163].mxu1  ;;  %v8919_v59 = vadd.f32 %v8894_v50, %v8834_v27  ;;  %v24740_v50 = vld [vmem:[#allocation68_spill] sm:$0xff]  ;;  %v9151_v27 = vsel %vm2146_vm8, %v22953_v10, %v22963_v35  ;;  %v9319_v10 = vsel %vm2318_vm10, %v23001_v60, %v23033_v13  ;;  %v24748_v60 = vld [vmem:[#allocation102_spill] sm:$0xff] }
 0xe12   : > { %v8813_v63 = vsel %vm1802_vm4, %v24740_v50, %v24739_v14 }
 0xe13   : > { %17715 = vmatmul.mubr.msk.bf16.gmra.mrb[12].mxu1 %vm904_vm1, %v22588_v52  ;;  %v23083_v9 = vpop.permute.xlu0 %9309  ;;  %v8981_v52 = vsel %vm1974_vm6, %v22844_v3, %v22821_v45  ;;  %v9004_v31 = vadd.f32 %v8979_v28, %v8919_v59  ;;  %v9066_v3 = vsel %vm2060_vm7, %v22885_v19, %v22897_v17  ;;  %v9234_v19 = vsel %vm2232_vm9, %v22937_v6, %v23007_v58  ;;  %v24743_v59 = vld [vmem:[#allocation76_spill] sm:$0xff] }
 0xe14   : > { %24735 = vst [vmem:[#allocation34_spill] sm:$0xff] %v23083_v9  ;;  %v9325_v51 = vsel %vm2318_vm10, %v9308_v33, %v23083_v9  ;;  %v9007_v53 = vadd.f32 %v8981_v52, %v8922_v32  ;;  %v8898_v52 = vsel %vm1888_vm5, %v24743_v59, %v24742_v23  ;;  %v24749_v59 = vld [vmem:[#allocation100_spill] sm:$0xff] }
 0xe15   : > { %v23093_v25 = vadd.f32 %v9325_v51, %v9268_v7  ;;  %v9089_v34 = vadd.f32 %v9064_v36, %v9004_v31  ;;  %v24741_v7 = vld [vmem:[#allocation48_spill] sm:$0xff]  ;;  %v9236_v36 = vsel %vm2232_vm9, %v22947_v38, %v23014_v56  ;;  %v23135_v31 = vpop.permute.xlu1 %9394 }
 0xe16   : > { %v8465_v40 = vpop.f32.mrb[164].mxu1  ;;  %v8755_v48 = vadd.f32 %v8728_v20, %v24741_v7  ;;  %v9092_v8 = vadd.f32 %v9066_v3, %v9007_v53  ;;  %24744 = vst [vmem:[#allocation47_spill] sm:$0xff] %v23135_v31 }
 0xe17   : > { %v23103_v15 = vpop.permute.xlu0 %9315  ;;  %8795 = vrot.lane.b32.xlu0 %v8465_v40, %s20216_s16  ;;  %v17612_v33 = vpop.f32.mrb[165].mxu1  ;;  %v9174_v28 = vadd.f32 %v9149_v55, %v9089_v34 }
 0xe18   : > { %24737 = vst [vmem:[#allocation127_spill] sm:$0xff] %v23103_v15  ;;  %v8468_v26 = vpop.f32.mrb[166].mxu1  ;;  %v8840_v40 = vadd.f32 %v8813_v63, %v8755_v48  ;;  %v9177_v32 = vadd.f32 %v9151_v27, %v9092_v8  ;;  %v24745_v33 = vld [vmem:[#allocation97_spill] sm:$0xff]  ;;  %v9321_v63 = vsel %vm2318_vm10, %v23012_v42, %v23025_v39  ;;  %v24751_v42 = vld [vmem:[#allocation20_spill] sm:$0xff] }
 0xe19   : > { %8801 = vrot.lane.b32.xlu1 %v8468_v26, %s20216_s16  ;;  %v17613_v30 = vpop.f32.mrb[167].mxu1  ;;  %v9259_v6 = vadd.f32 %v9234_v19, %v9174_v28  ;;  %v8983_v20 = vsel %vm1974_vm6, %v24746_v16, %v24745_v33 }
 0xe1a   : > { %v8925_v55 = vadd.f32 %v8898_v52, %v8840_v40  ;;  %v9262_v26 = vadd.f32 %v9236_v36, %v9177_v32  ;;  %v24747_v30 = vld [vmem:[#allocation101_spill] sm:$0xff]  ;;  %v23151_v48 = vpop.permute.xlu1 %9461  ;;  %v24750_v52 = vld [vmem:[#allocation120_spill] sm:$0xff] }
 0xe1b   : > { %v9375_v51 = vpop.permute.xlu0 %9374  ;;  %v9344_v53 = vadd.f32 %v9319_v10, %v9259_v6  ;;  %v9068_v50 = vsel %vm2060_vm7, %v24748_v60, %v24747_v30  ;;  %v9153_v36 = vsel %vm2146_vm8, %v24750_v52, %v24749_v59  ;;  %v24752_v6 = vld [vmem:[#allocation83_spill] sm:$0xff] }
 0xe1c   : > { %v9010_v7 = vadd.f32 %v8983_v20, %v8925_v55  ;;  %v9347_v40 = vadd.f32 %v9321_v63, %v9262_v26 }
 0xe1e   : > { %v8473_v3 = vpop.f32.mrb[168].mxu1  ;;  %v9095_v10 = vadd.f32 %v9068_v50, %v9010_v7  ;;  %v24755_v50 = vld [vmem:[#allocation67_spill] sm:$0xff]  ;;  %v24756_v7 = vld [vmem:[#allocation80_spill] sm:$0xff] }
 0xe1f   : > { %v23140_v34 = vpop.permute.xlu0 %9376  ;;  %8807 = vrot.lane.b32.xlu0 %v8473_v3, %s20216_s16  ;;  %v17616_v38 = vpop.f32.mrb[169].mxu1 }
 0xe20   : > { %v9404_v27 = vsel %vm2404_vm11, %v9375_v51, %v23140_v34  ;;  %v8476_v19 = vpop.f32.mrb[170].mxu1  ;;  %v8732_v51 = vsel %vm1716_vm3, %v24752_v6, %v24751_v42  ;;  %v9180_v20 = vadd.f32 %v9153_v36, %v9095_v10  ;;  %v24754_v38 = vld [vmem:[#allocation91_spill] sm:$0xff]  ;;  %v24758_v36 = vld [vmem:[#allocation125_spill] sm:$0xff] }
 0xe21   : > { %v23153_v8 = vadd.f32 %v9404_v27, %v9344_v53  ;;  %8868 = vrot.lane.b32.xlu1 %v8476_v19, %s20217_s17  ;;  %v17617_v28 = vpop.f32.mrb[171].mxu1  ;;  %v23164_v3 = vpop.permute.xlu1 %9471  ;;  %v24753_v53 = vld [vmem:[#allocation85_spill] sm:$0xff]  ;;  %v8761_v26 = vadd.f32 %v8732_v51, %v24755_v50  ;;  %v24759_v10 = vld [vmem:[#allocation119_spill] sm:$0xff] }
 0xe22   : > { %v8817_v60 = vsel %vm1802_vm4, %v24754_v38, %v24753_v53  ;;  %v24757_v28 = vld [vmem:[#allocation93_spill] sm:$0xff] }
 0xe23   : > { %v9381_v32 = vpop.permute.xlu0 %9380  ;;  %v8902_v52 = vsel %vm1888_vm5, %v24757_v28, %v24756_v7 }
 0xe24   : > { %v9406_v16 = vsel %vm2404_vm11, %v9381_v32, %v23101_v0  ;;  %v9323_v32 = vsel %vm2318_vm10, %v23042_v4, %v23046_v1  ;;  %v24765_v1 = vld [vmem:[#allocation112_spill] sm:$0xff] }
 0xe25   : > { %v23166_v55 = vadd.f32 %v9406_v16, %v9347_v40  ;;  %v9238_v40 = vsel %vm2232_vm9, %v24759_v10, %v24758_v36  ;;  %v8846_v16 = vadd.f32 %v8817_v60, %v8761_v26  ;;  %v24763_v10 = vld [vmem:[#allocation105_spill] sm:$0xff]  ;;  %v24764_v36 = vld [vmem:[#allocation123_spill] sm:$0xff] }
 0xe26   : > { %v8481_v27 = vpop.f32.mrb[172].mxu1  ;;  %v9265_v38 = vadd.f32 %v9238_v40, %v9180_v20  ;;  %v9072_v4 = vsel %vm2060_vm7, %v24764_v36, %v24763_v10  ;;  %v9781_v40 = vld [vmem:[#allocation4 + $0xb0] sm:$0xff] }
 0xe27   : > { %v9387_v63 = vpop.permute.xlu0 %9386  ;;  %8874 = vrot.lane.b32.xlu1 %v8481_v27, %s20217_s17  ;;  %v17620_v19 = vpop.f32.mrb[173].mxu1  ;;  %v24761_v27 = vld [vmem:[#allocation88_spill] sm:$0xff]  ;;  %v8931_v9 = vadd.f32 %v8902_v52, %v8846_v16  ;;  %v9157_v52 = vsel %vm2146_vm8, %v24765_v1, %v22999_v46 }
 0xe28   : > { %v8484_v6 = vpop.f32.mrb[174].mxu1  ;;  %v24762_v19 = vld [vmem:[#allocation94_spill] sm:$0xff]  ;;  %v9350_v28 = vadd.f32 %v9323_v32, %v9265_v38 }
 0xe29   : > { %v23182_v51 = vpop.permute.xlu1 %9483  ;;  %v17621_v50 = vpop.f32.mrb[175].mxu1  ;;  %v8987_v43 = vsel %vm1974_vm6, %v24762_v19, %v24761_v27  ;;  %v9766_v19 = vld [vmem:[#allocation4 + $0x38] sm:$0xff] }
 0xe2a   : > { %24760 = vst [vmem:[#allocation37_spill] sm:$0xff] %v23182_v51  ;;  %v9016_v60 = vadd.f32 %v8987_v43, %v8931_v9  ;;  %v9782_v50 = vld [vmem:[#allocation4 + $0xb8] sm:$0xff] }
 0xe2b   : > { %v23187_v0 = vpop.permute.xlu0 %9388  ;;  %8880 = vrot.lane.b32.xlu1 %v8484_v6, %s20217_s17  ;;  %v18644_v38 = vpack.c.bf16 %v9782_v50, %v9781_v40  ;;  %v9765_v6 = vld [vmem:[#allocation4 + $0x30] sm:$0xff] }
 0xe2c   : > { %v9408_v20 = vsel %vm2404_vm11, %v9387_v63, %v23187_v0  ;;  %v9101_v51 = vadd.f32 %v9072_v4, %v9016_v60  ;;  %v18646_v63 = vpack.c.bf16 %v9766_v19, %v9765_v6  ;;  %v9242_v4 = vsel %vm2232_vm9, %v22985_v11, %v22994_v49 }
 0xe2d   : > { %v9435_v26 = vadd.f32 %v9408_v20, %v9350_v28  ;;  %v23198_v32 = vpop.permute.xlu1 %9544  ;;  %18645 = vmatprep.subr.bf16.mxu1 %v18644_v38  ;;  %v9327_v60 = vsel %vm2318_vm10, %v23070_v29, %v23103_v15  ;;  %v9768_v15 = vld [vmem:[#allocation4 + $0x48] sm:$0xff] }
 0xe2e   : > { %v8489_v16 = vpop.f32.mrb[176].mxu1  ;;  %v9186_v28 = vadd.f32 %v9157_v52, %v9101_v51  ;;  %18647 = vmatpush3.bf16.msra.mxu1 %v18646_v63 }
 0xe2f   : > { %v9393_v39 = vpop.permute.xlu0 %9392  ;;  %8886 = vrot.lane.b32.xlu1 %v8489_v16, %s20217_s17  ;;  %v17624_v36 = vpop.f32.mrb[177].mxu1 }
 0xe30   : > { %v9410_v43 = vsel %vm2404_vm11, %v9393_v39, %v23135_v31  ;;  %v8492_v9 = vpop.f32.mrb[178].mxu1  ;;  %v9271_v39 = vadd.f32 %v9242_v4, %v9186_v28 }
 0xe31   : > { %v9438_v1 = vadd.f32 %v9410_v43, %v23093_v25  ;;  %8892 = vrot.lane.b32.xlu0 %v8492_v9, %s20217_s17  ;;  %v17625_v20 = vpop.f32.mrb[179].mxu1  ;;  %v23211_v50 = vpop.permute.xlu1 %9546 }
 0xe32   : > { %v9356_v51 = vadd.f32 %v9327_v60, %v9271_v39 }
 0xe33   : > { %v9399_v40 = vpop.permute.xlu0 %9398 }
 0xe35   : > { %v23221_v29 = vpop.permute.xlu1 %9550 }
 0xe36   : > { %v8497_v16 = vpop.f32.mrb[180].mxu1 }
 0xe37   : > { %v23213_v52 = vpop.permute.xlu0 %9400  ;;  %8953 = vrot.lane.b32.xlu1 %v8497_v16, %s20218_s15  ;;  %v17628_v25 = vpop.f32.mrb[181].mxu1 }
 0xe38   : > { %24766 = vst [vmem:[#allocation58_spill] sm:$0xff] %v23213_v52  ;;  %v9412_v38 = vsel %vm2404_vm11, %v9399_v40, %v23213_v52  ;;  %v8500_v6 = vpop.f32.mrb[182].mxu1  ;;  %v9767_v52 = vld [vmem:[#allocation4 + $0x40] sm:$0xff] }
 0xe39   : > { %v23218_v19 = vadd.f32 %v9412_v38, %v9356_v51  ;;  %8959 = vrot.lane.b32.xlu0 %v8500_v6, %s20218_s15  ;;  %v17629_v11 = vpop.f32.mrb[183].mxu1  ;;  %v9557_v40 = vpop.permute.xlu1 %9556 }
 0xe3b   : > { %v9460_v36 = vpop.permute.xlu0 %9459 }
 0xe3c   : > { %v9489_v63 = vsel %vm904_vm1, %v9460_v36, %v23151_v48 }
 0xe3d   : > { %v9514_v43 = vadd.f32 %v9489_v63, %v23153_v8  ;;  %v23233_v25 = vpop.permute.xlu1 %9558 }
 0xe3e   : > { %v8505_v9 = vpop.f32.mrb[184].mxu1  ;;  %24767 = vst [vmem:[#allocation65_spill] sm:$0xff] %v23233_v25 }
 0xe3f   : > { %v9466_v28 = vpop.permute.xlu0 %9465  ;;  %8965 = vrot.lane.b32.xlu1 %v8505_v9, %s20218_s15  ;;  %v17632_v20 = vpop.f32.mrb[185].mxu1 }
 0xe40   : > { %v8508_v4 = vpop.f32.mrb[186].mxu1 }
 0xe41   : > { %8971 = vrot.lane.b32.xlu0 %v8508_v4, %s20218_s15  ;;  %v17633_v60 = vpop.f32.mrb[187].mxu1 }
 0xe42   : > { %v9783_v60 = vld [vmem:[#allocation4 + $0xc0] sm:$0xff] }
 0xe43   : > { %v23228_v39 = vpop.permute.xlu0 %9467 }
 0xe44   : > { %v9491_v16 = vsel %vm904_vm1, %v9466_v28, %v23228_v39  ;;  %v9578_v28 = vsel %vm2575_vm12, %v9557_v40, %v23233_v25  ;;  %v18650_v40 = vpack.c.bf16 %v9768_v15, %v9767_v52 }
 0xe45   : > { %v9517_v51 = vadd.f32 %v9491_v16, %v23166_v55  ;;  %v9784_v16 = vld [vmem:[#allocation4 + $0xc8] sm:$0xff] }
 0xe46   : > { %v8513_v8 = vpop.f32.mrb[188].mxu1 }
 0xe47   : > { %v23235_v38 = vpop.permute.xlu0 %9473  ;;  %8977 = vrot.lane.b32.xlu1 %v8513_v8, %s20218_s15  ;;  %v17636_v6 = vpop.f32.mrb[189].mxu1 }
 0xe48   : > { %24768 = vst [vmem:[#allocation108_spill] sm:$0xff] %v23235_v38  ;;  %v9493_v11 = vsel %vm904_vm1, %v23164_v3, %v23235_v38  ;;  %v8516_v36 = vpop.f32.mrb[190].mxu1  ;;  %v18648_v3 = vpack.c.bf16 %v9784_v16, %v9783_v60  ;;  %v9563_v60 = vpop.permute.xlu1 %9562 }
 0xe49   : > { %v9520_v63 = vadd.f32 %v9493_v11, %v9435_v26  ;;  %v17637_v9 = vpop.f32.mrb[191].mxu1 }
 0xe4a   : > { %18649 = vmatprep.subr.bf16.mxu1 %v18648_v3 }
 0xe4b   : > { %v9478_v20 = vpop.permute.xlu0 %9477  ;;  %9038 = vrot.lane.b32.xlu1 %v8516_v36, %s20219_s18  ;;  %v9605_v55 = vadd.f32 %v9578_v28, %v9520_v63  ;;  %18651 = vmatpush3.bf16.msra.mxu1 %v18650_v40 }
 0xe4e   : > { %v8521_v4 = vpop.f32.mrb[192].mxu1 }
 0xe4f   : > { %v23244_v8 = vpop.permute.xlu0 %9479  ;;  %9044 = vrot.lane.b32.xlu1 %v8521_v4, %s20219_s18  ;;  %v17640_v6 = vpop.f32.mrb[193].mxu1 }
 0xe50   : > { %24769 = vst [vmem:[#allocation110_spill] sm:$0xff] %v23244_v8  ;;  %v9495_v26 = vsel %vm904_vm1, %v9478_v20, %v23244_v8  ;;  %v8524_v11 = vpop.f32.mrb[194].mxu1  ;;  %v9630_v6 = vpop.permute.xlu1 %9629  ;;  %v9770_v8 = vld [vmem:[#allocation4 + $0x58] sm:$0xff] }
 0xe51   : > { %v9523_v9 = vadd.f32 %v9495_v26, %v9438_v1  ;;  %v17641_v25 = vpop.f32.mrb[195].mxu1 }
 0xe52   : > { %v9574_v25 = vsel %vm2575_vm12, %v23198_v32, %v23211_v50 }
 0xe53   : > { %v23249_v36 = vpop.permute.xlu0 %9485  ;;  %9050 = vrot.lane.b32.xlu1 %v8524_v11, %s20219_s18  ;;  %v9599_v26 = vadd.f32 %v9574_v25, %v9514_v43 }
 0xe54   : > { %v9642_v43 = vpop.permute.xlu1 %9641 }
 0xe56   : > { %v8529_v63 = vpop.f32.mrb[196].mxu1 }
 0xe57   : > { %v23252_v28 = vpop.permute.xlu0 %9552  ;;  %9056 = vrot.lane.b32.xlu0 %v8529_v63, %s20219_s18  ;;  %v17644_v4 = vpop.f32.mrb[197].mxu1 }
 0xe58   : > { %24770 = vst [vmem:[#allocation117_spill] sm:$0xff] %v23252_v28  ;;  %v8532_v16 = vpop.f32.mrb[198].mxu1  ;;  %v9576_v32 = vsel %vm2575_vm12, %v23221_v29, %v23252_v28 }
 0xe59   : > { %9062 = vrot.lane.b32.xlu1 %v8532_v16, %s20219_s18  ;;  %v17645_v20 = vpop.f32.mrb[199].mxu1 }
 0xe5b   : > { %v23256_v15 = vpop.permute.xlu0 %9564 }
 0xe5c   : > { %24771 = vst [vmem:[#allocation30_spill] sm:$0xff] %v23256_v15  ;;  %v9580_v1 = vsel %vm2575_vm12, %v9563_v60, %v23256_v15 }
 0xe5d   : > { %v23260_v52 = vadd.f32 %v9580_v1, %v9523_v9  ;;  %v9602_v1 = vadd.f32 %v9576_v32, %v9517_v51  ;;  %v24777_v32 = vld [vmem:[#allocation22_spill] sm:$0xff] }
 0xe5e   : > { %v8537_v3 = vpop.f32.mrb[200].mxu1 }
 0xe5f   : > { %24772 = vst [vmem:[#allocation60_spill] sm:$0xff] %v23260_v52  ;;  %v23265_v11 = vpop.permute.xlu0 %9631  ;;  %9123 = vrot.lane.b32.xlu0 %v8537_v3, %s20220_s19  ;;  %v17648_v40 = vpop.f32.mrb[201].mxu1 }
 0xe60   : > { %24773 = vst [vmem:[#allocation78_spill] sm:$0xff] %v23265_v11  ;;  %v9659_v63 = vsel %vm2661_vm13, %v9630_v6, %v23265_v11  ;;  %v8540_v4 = vpop.f32.mrb[202].mxu1 }
 0xe61   : > { %v23270_v16 = vadd.f32 %v9659_v63, %v9599_v26  ;;  %9129 = vrot.lane.b32.xlu1 %v8540_v4, %s20220_s19  ;;  %v17649_v9 = vpop.f32.mrb[203].mxu1 }
 0xe63   : > { %v9636_v60 = vpop.permute.xlu0 %9635 }
 0xe66   : > { %v8545_v20 = vpop.f32.mrb[204].mxu1 }
 0xe67   : > { %v23276_v25 = vpop.permute.xlu0 %9637  ;;  %9135 = vrot.lane.b32.xlu0 %v8545_v20, %s20220_s19  ;;  %v17652_v3 = vpop.f32.mrb[205].mxu1 }
 0xe68   : > { %24774 = vst [vmem:[#allocation24_spill] sm:$0xff] %v23276_v25  ;;  %v9661_v6 = vsel %vm2661_vm13, %v9636_v60, %v23276_v25  ;;  %v8548_v26 = vpop.f32.mrb[206].mxu1  ;;  %v24779_v60 = vld [vmem:[#allocation59_spill] sm:$0xff] }
 0xe69   : > { %v23281_v40 = vadd.f32 %v9661_v6, %v9602_v1  ;;  %9141 = vrot.lane.b32.xlu1 %v8548_v26, %s20220_s19  ;;  %v17653_v63 = vpop.f32.mrb[207].mxu1  ;;  %v9785_v1 = vld [vmem:[#allocation4 + $0xd0] sm:$0xff]  ;;  %v9786_v6 = vld [vmem:[#allocation4 + $0xd8] sm:$0xff] }
 0xe6a   : > { %v9769_v26 = vld [vmem:[#allocation4 + $0x50] sm:$0xff]  ;;  %v18652_v15 = vpack.c.bf16 %v9786_v6, %v9785_v1 }
 0xe6b   : > { %24775 = vst [vmem:[#allocation133_spill] sm:$0xff] %v23281_v40  ;;  %v23284_v4 = vpop.permute.xlu0 %9643  ;;  %v8699_v29 = vpop.permute.xlu1 %8698 }
 0xe6c   : > { %24776 = vst [vmem:[#allocation70_spill] sm:$0xff] %v23284_v4  ;;  %v9663_v51 = vsel %vm2661_vm13, %v9642_v43, %v23284_v4  ;;  %v8725_v9 = vsel %vm1716_vm3, %v22692_v21, %v8699_v29  ;;  %v8751_v20 = vadd.f32 %v8699_v29, %v24777_v32  ;;  %v18654_v43 = vpack.c.bf16 %v9770_v8, %v9769_v26  ;;  %v24780_v29 = vld [vmem:[#allocation115_spill] sm:$0xff] }
 0xe6d   : > { %v23291_v3 = vadd.f32 %v9663_v51, %v9605_v55  ;;  %v23294_v52 = vadd.f32 %v8725_v9, %v24779_v60  ;;  %18653 = vmatprep.subr.bf16.mxu1 %v18652_v15  ;;  %v24781_v9 = vld [vmem:[#allocation63_spill] sm:$0xff]  ;;  %v24783_v15 = vld [vmem:[#allocation86_spill] sm:$0xff] }
 0xe6e   : > { %v8553_v63 = vpop.f32.mrb[208].mxu1  ;;  %18655 = vmatpush3.bf16.msra.mxu1 %v18654_v43 }
 0xe6f   : > { %24778 = vst [vmem:[#allocation32_spill] sm:$0xff] %v23291_v3  ;;  %9147 = vrot.lane.b32.xlu1 %v8553_v63, %s20220_s19  ;;  %v17656_v25 = vpop.f32.mrb[209].mxu1  ;;  %v24789_v3 = vld [vmem:[#allocation56_spill] sm:$0xff] }
 0xe70   : > { %v8556_v4 = vpop.f32.mrb[210].mxu1  ;;  %v24782_v25 = vld [vmem:[#allocation23_spill] sm:$0xff] }
 0xe71   : > { %v8705_v21 = vpop.permute.xlu1 %8704  ;;  %v17657_v31 = vpop.f32.mrb[211].mxu1 }
 0xe72   : > { %v8727_v55 = vsel %vm1716_vm3, %v22704_v12, %v8705_v21  ;;  %v8754_v51 = vadd.f32 %v8705_v21, %v24780_v29  ;;  %v24784_v21 = vld [vmem:[#allocation64_spill] sm:$0xff] }
 0xe73   : > { %v8753_v32 = vadd.f32 %v8727_v55, %v24781_v9  ;;  %9208 = vrot.lane.b32.xlu1 %v8556_v4, %s20221_s26  ;;  %v24785_v55 = vld [vmem:[#allocation61_spill] sm:$0xff] }
 0xe75   : > { %v8711_v60 = vpop.permute.xlu1 %8710 }
 0xe76   : > { %v8729_v1 = vsel %vm1716_vm3, %v22718_v54, %v8711_v60  ;;  %v8757_v8 = vadd.f32 %v8711_v60, %v24782_v25  ;;  %v8561_v6 = vpop.f32.mrb[212].mxu1  ;;  %v24786_v54 = vld [vmem:[#allocation95_spill] sm:$0xff]  ;;  %v23314_v60 = vpop.permute.xlu0 %9649 }
 0xe77   : > { %v23306_v26 = vadd.f32 %v8729_v1, %v24783_v15  ;;  %9214 = vrot.lane.b32.xlu1 %v8561_v6, %s20221_s26  ;;  %v17660_v31 = vpop.f32.mrb[213].mxu1  ;;  %24787 = vst [vmem:[#allocation116_spill] sm:$0xff] %v23314_v60  ;;  %v24788_v6 = vld [vmem:[#allocation36_spill] sm:$0xff] }
 0xe78   : > { %v8564_v12 = vpop.f32.mrb[214].mxu1 }
 0xe79   : > { %v8717_v63 = vpop.permute.xlu1 %8716  ;;  %9220 = vrot.lane.b32.xlu0 %v8564_v12, %s20221_s26  ;;  %v17661_v43 = vpop.f32.mrb[215].mxu1 }
 0xe7a   : > { %v8731_v4 = vsel %vm1716_vm3, %v24784_v21, %v8717_v63  ;;  %v8760_v29 = vadd.f32 %v8717_v63, %v24785_v55 }
 0xe7b   : > { %v8759_v9 = vadd.f32 %v8731_v4, %v24786_v54 }
 0xe7d   : > { %v8723_v25 = vpop.permute.xlu1 %8722 }
 0xe7e   : > { %v8733_v1 = vsel %vm1716_vm3, %v24751_v42, %v8723_v25  ;;  %v8763_v15 = vadd.f32 %v8723_v25, %v24788_v6  ;;  %v8569_v31 = vpop.f32.mrb[216].mxu1 }
 0xe7f   : > { %v23320_v49 = vadd.f32 %v8733_v1, %v24789_v3  ;;  %9226 = vrot.lane.b32.xlu1 %v8569_v31, %s20221_s26  ;;  %v17664_v12 = vpop.f32.mrb[217].mxu1 }
 0xe80   : > { %v8572_v43 = vpop.f32.mrb[218].mxu1 }
 0xe81   : > { %v8784_v21 = vpop.permute.xlu0 %8783  ;;  %9232 = vrot.lane.b32.xlu0 %v8572_v43, %s20221_s26  ;;  %v17665_v63 = vpop.f32.mrb[219].mxu1  ;;  %v24790_v43 = vld [vmem:[#allocation74_spill] sm:$0xff] }
 0xe82   : > { %v8836_v4 = vadd.f32 %v8784_v21, %v8751_v20 }
 0xe83   : > { %v8790_v55 = vpop.permute.xlu1 %8789 }
 0xe84   : > { %v8812_v54 = vsel %vm1802_vm4, %v22766_v5, %v8790_v55  ;;  %v8839_v42 = vadd.f32 %v8790_v55, %v8754_v51  ;;  %v9787_v51 = vld [vmem:[#allocation4 + $0xe0] sm:$0xff] }
 0xe85   : > { %v8838_v60 = vadd.f32 %v8812_v54, %v8753_v32  ;;  %v9788_v32 = vld [vmem:[#allocation4 + $0xe8] sm:$0xff]  ;;  %v9771_v55 = vld [vmem:[#allocation4 + $0x60] sm:$0xff]  ;;  %v8810_v54 = vsel %vm1802_vm4, %v22731_v57, %v8784_v21 }
 0xe86   : > { %v8577_v25 = vpop.f32.mrb[220].mxu1 }
 0xe87   : > { %9293 = vrot.lane.b32.xlu1 %v8577_v25, %s20222_s22  ;;  %v17668_v3 = vpop.f32.mrb[221].mxu1 }
 0xe88   : > { %v8580_v1 = vpop.f32.mrb[222].mxu1  ;;  %v18656_v3 = vpack.c.bf16 %v9788_v32, %v9787_v51 }
 0xe89   : > { %v8796_v6 = vpop.permute.xlu0 %8795  ;;  %9299 = vrot.lane.b32.xlu0 %v8580_v1, %s20222_s22  ;;  %v17669_v31 = vpop.f32.mrb[223].mxu1  ;;  %v9772_v1 = vld [vmem:[#allocation4 + $0x68] sm:$0xff] }
 0xe8a   : > { %v8842_v12 = vadd.f32 %v8796_v6, %v8757_v8  ;;  %v18658_v28 = vpack.c.bf16 %v9772_v1, %v9771_v55  ;;  %18657 = vmatprep.subr.bf16.mxu1 %v18656_v3 }
 0xe8b   : > { %v8802_v38 = vpop.permute.xlu1 %8801 }
 0xe8c   : > { %v8816_v20 = vsel %vm1802_vm4, %v24790_v43, %v8802_v38  ;;  %v8845_v63 = vadd.f32 %v8802_v38, %v8760_v29  ;;  %v8835_v29 = vadd.f32 %v8810_v54, %v23294_v52  ;;  %18659 = vmatpush3.bf16.msra.mxu1 %v18658_v28 }
 0xe8d   : > { %v8844_v40 = vadd.f32 %v8816_v20, %v8759_v9 }
 0xe8e   : > { %v8585_v11 = vpop.f32.mrb[224].mxu1 }
 0xe8f   : > { %9305 = vrot.lane.b32.xlu1 %v8585_v11, %s20222_s22  ;;  %v17672_v5 = vpop.f32.mrb[225].mxu1 }
 0xe90   : > { %v8588_v25 = vpop.f32.mrb[226].mxu1 }
 0xe91   : > { %v23333_v8 = vpop.permute.xlu0 %8807  ;;  %v17673_v31 = vpop.f32.mrb[227].mxu1 }
 0xe92   : > { %v8848_v38 = vadd.f32 %v23333_v8, %v8763_v15  ;;  %v8814_v15 = vsel %vm1802_vm4, %v24739_v14, %v8796_v6 }
 0xe93   : > { %v8869_v11 = vpop.permute.xlu1 %8868  ;;  %9311 = vrot.lane.b32.xlu1 %v8588_v25, %s20222_s22 }
 0xe94   : > { %v8895_v9 = vsel %vm1888_vm5, %v22798_v47, %v8869_v11  ;;  %v8921_v57 = vadd.f32 %v8869_v11, %v8836_v4  ;;  %v8841_v47 = vadd.f32 %v8814_v15, %v23306_v26 }
 0xe95   : > { %v8920_v21 = vadd.f32 %v8895_v9, %v8835_v29 }
 0xe96   : > { %v8593_v43 = vpop.f32.mrb[228].mxu1 }
 0xe97   : > { %9317 = vrot.lane.b32.xlu1 %v8593_v43, %s20222_s22  ;;  %v17676_v20 = vpop.f32.mrb[229].mxu1 }
 0xe98   : > { %v8596_v5 = vpop.f32.mrb[230].mxu1 }
 0xe99   : > { %v8875_v51 = vpop.permute.xlu1 %8874  ;;  %v17677_v32 = vpop.f32.mrb[231].mxu1 }
 0xe9a   : > { %v8897_v52 = vsel %vm1888_vm5, %v22806_v41, %v8875_v51  ;;  %v23345_v55 = vadd.f32 %v8875_v51, %v8839_v42  ;;  %v9789_v32 = vld [vmem:[#allocation4 + $0xf0] sm:$0xff] }
 0xe9b   : > { %v23347_v28 = vadd.f32 %v8897_v52, %v8838_v60  ;;  %9378 = vrot.lane.b32.xlu1 %v8596_v5, %s20223_s25 }
 0xe9d   : > { %v8881_v4 = vpop.permute.xlu1 %8880 }
 0xe9e   : > { %v8899_v54 = vsel %vm1888_vm5, %v24742_v23, %v8881_v4  ;;  %v8927_v25 = vadd.f32 %v8881_v4, %v8842_v12  ;;  %v8601_v3 = vpop.f32.mrb[232].mxu1 }
 0xe9f   : > { %v8926_v1 = vadd.f32 %v8899_v54, %v8841_v47  ;;  %9384 = vrot.lane.b32.xlu0 %v8601_v3, %s20223_s25  ;;  %v17680_v14 = vpop.f32.mrb[233].mxu1 }
 0xea0   : > { %v8604_v6 = vpop.f32.mrb[234].mxu1  ;;  %v8818_v14 = vsel %vm1802_vm4, %v24753_v53, %v23333_v8 }
 0xea1   : > { %v8887_v41 = vpop.permute.xlu1 %8886  ;;  %9390 = vrot.lane.b32.xlu1 %v8604_v6, %s20223_s25  ;;  %v17681_v60 = vpop.f32.mrb[235].mxu1 }
 0xea2   : > { %v8901_v42 = vsel %vm1888_vm5, %v22825_v24, %v8887_v41  ;;  %v23357_v31 = vadd.f32 %v8887_v41, %v8845_v63 }
 0xea3   : > { %v23359_v26 = vadd.f32 %v8901_v42, %v8844_v40  ;;  %v8893_v29 = vpop.permute.xlu0 %8892  ;;  %v8847_v42 = vadd.f32 %v8818_v14, %v23320_v49 }
 0xea4   : > { %v8933_v23 = vadd.f32 %v8893_v29, %v8848_v38  ;;  %v9790_v38 = vld [vmem:[#allocation4 + $0xf8] sm:$0xff]  ;;  %v8903_v41 = vsel %vm1888_vm5, %v24756_v7, %v8893_v29 }
 0xea5   : > { %v18660_v52 = vpack.c.bf16 %v9790_v38, %v9789_v32 }
 0xea6   : > { %v8609_v12 = vpop.f32.mrb[236].mxu1 }
 0xea7   : > { %9396 = vrot.lane.b32.xlu0 %v8609_v12, %s20223_s25  ;;  %v17684_v11 = vpop.f32.mrb[237].mxu1  ;;  %18661 = vmatprep.subr.bf16.mxu1 %v18660_v52  ;;  %v8932_v12 = vadd.f32 %v8903_v41, %v8847_v42  ;;  %v24795_v42 = vld [vmem:[#allocation114_spill] sm:$0xff] }
 0xea8   : > { %v8612_v9 = vpop.f32.mrb[238].mxu1 }
 0xea9   : > { %v8954_v43 = vpop.permute.xlu1 %8953  ;;  %9402 = vrot.lane.b32.xlu1 %v8612_v9, %s20223_s25  ;;  %v17685_v20 = vpop.f32.mrb[239].mxu1 }
 0xeaa   : > { %v8980_v5 = vsel %vm1974_vm6, %v22832_v2, %v8954_v43  ;;  %v9006_v51 = vadd.f32 %v8954_v43, %v8921_v57  ;;  %v9773_v57 = vld [vmem:[#allocation4 + $0x70] sm:$0xff] }
 0xeab   : > { %v9005_v24 = vadd.f32 %v8980_v5, %v8920_v21  ;;  %v9774_v21 = vld [vmem:[#allocation4 + $0x78] sm:$0xff]  ;;  %v8960_v43 = vpop.permute.xlu0 %8959 }
 0xeac   : > { %v18662_v6 = vpack.c.bf16 %v9774_v21, %v9773_v57  ;;  %v8982_v49 = vsel %vm1974_vm6, %v22821_v45, %v8960_v43  ;;  %v24794_v21 = vld [vmem:[#allocation92_spill] sm:$0xff] }
 0xead   : > { %v9008_v38 = vadd.f32 %v8982_v49, %v23347_v28 }
 0xeae   : > { %v8617_v63 = vpop.f32.mrb[240].mxu1  ;;  %18663 = vmatpush3.bf16.msra.mxu1 %v18662_v6 }
 0xeaf   : > { %9463 = vrot.lane.b32.xlu0 %v8617_v63, %s20224_s14  ;;  %v17688_v40 = vpop.f32.mrb[241].mxu1 }
 0xeb0   : > { %v8620_v15 = vpop.f32.mrb[242].mxu1 }
 0xeb1   : > { %v8966_v47 = vpop.permute.xlu1 %8965  ;;  %9469 = vrot.lane.b32.xlu1 %v8620_v15, %s20224_s14  ;;  %v17689_v4 = vpop.f32.mrb[243].mxu1 }
 0xeb2   : > { %v8984_v54 = vsel %vm1974_vm6, %v24745_v33, %v8966_v47  ;;  %v9012_v3 = vadd.f32 %v8966_v47, %v8927_v25  ;;  %v24791_v25 = vmov 0.0|0.0   ;;  %v24793_v4 = vld [vmem:[#allocation21_spill] sm:$0xff] }
 0xeb3   : > { %v9011_v2 = vadd.f32 %v8984_v54, %v8926_v1  ;;  %18664 = vmatprep.subr.bf16.mxu1 %v24791_v25 }
 0xeb6   : > { %v8625_v60 = vpop.f32.mrb[244].mxu1 }
 0xeb7   : > { %9475 = vrot.lane.b32.xlu1 %v8625_v60, %s20224_s14  ;;  %v17692_v33 = vpop.f32.mrb[245].mxu1 }
 0xeb8   : > { %v8628_v1 = vpop.f32.mrb[246].mxu1 }
 0xeb9   : > { %v8978_v11 = vpop.permute.xlu1 %8977  ;;  %v17693_v9 = vpop.f32.mrb[247].mxu1 }
 0xeba   : > { %v8988_v53 = vsel %vm1974_vm6, %v24761_v27, %v8978_v11  ;;  %v9018_v8 = vadd.f32 %v8978_v11, %v8933_v23  ;;  %v9009_v23 = vadd.f32 %v8960_v43, %v23345_v55 }
 0xebb   : > { %v9017_v20 = vadd.f32 %v8988_v53, %v8932_v12  ;;  %9481 = vrot.lane.b32.xlu1 %v8628_v1, %s20224_s14  ;;  %v8972_v12 = vpop.permute.xlu0 %8971 }
 0xebd   : > { %v9039_v7 = vpop.permute.xlu1 %9038 }
 0xebe   : > { %v9065_v29 = vsel %vm2060_vm7, %v22877_v37, %v9039_v7  ;;  %v23384_v5 = vadd.f32 %v9039_v7, %v9006_v51  ;;  %v8633_v63 = vpop.f32.mrb[248].mxu1  ;;  %v8986_v7 = vsel %vm1974_vm6, %v22857_v62, %v8972_v12 }
 0xebf   : > { %v23386_v40 = vadd.f32 %v9065_v29, %v9005_v24  ;;  %9487 = vrot.lane.b32.xlu1 %v8633_v63, %s20224_s14  ;;  %v17696_v27 = vpop.f32.mrb[249].mxu1  ;;  %v24792_v24 = vld [vmem:[#allocation104_spill] sm:$0xff]  ;;  %v9015_v63 = vadd.f32 %v8972_v12, %v23357_v31 }
 0xec0   : > { %v8636_v32 = vpop.f32.mrb[250].mxu1 }
 0xec1   : > { %v9045_v15 = vpop.permute.xlu1 %9044  ;;  %9548 = vrot.lane.b32.xlu0 %v8636_v32, %s24710_s29  ;;  %v17697_v45 = vpop.f32.mrb[251].mxu1 }
 0xec2   : > { %v9067_v37 = vsel %vm2060_vm7, %v22897_v17, %v9045_v15  ;;  %v9094_v51 = vadd.f32 %v9045_v15, %v9009_v23  ;;  %v9014_v23 = vadd.f32 %v8986_v7, %v23359_v26 }
 0xec3   : > { %v9093_v52 = vadd.f32 %v9067_v37, %v9008_v38  ;;  %9570 = vrot.lane.b32.xlu1 %v24792_v24, %s24710_s29 }
 0xec5   : > { %v9051_v47 = vpop.permute.xlu1 %9050  ;;  %9647 = vrot.lane.b32.xlu0 %v24793_v4, %s24716_s23 }
 0xec6   : > { %v9069_v55 = vsel %vm2060_vm7, %v24747_v30, %v9051_v47  ;;  %v23400_v28 = vadd.f32 %v9051_v47, %v9012_v3  ;;  %v8641_v54 = vpop.f32.mrb[252].mxu1 }
 0xec7   : > { %v23402_v57 = vadd.f32 %v9069_v55, %v9011_v2  ;;  %9568 = vrot.lane.b32.xlu1 %v24794_v21, %s24710_s29  ;;  %v17700_v17 = vpop.f32.mrb[253].mxu1 }
 0xec8   : > { %v8644_v14 = vpop.f32.mrb[254].mxu1 }
 0xec9   : > { %9560 = vrot.lane.b32.xlu0 %v8644_v14, %s24710_s29  ;;  %v17701_v6 = vpop.f32.mrb[255].mxu1 }
 0xecb   : > { %v9063_v41 = vpop.permute.xlu1 %9062  ;;  %9554 = vrot.lane.b32.xlu1 %v8641_v54, %s24710_s29 }
 0xecc   : > { %v9073_v60 = vsel %vm2060_vm7, %v24763_v10, %v9063_v41  ;;  %v9103_v30 = vadd.f32 %v9063_v41, %v9018_v8  ;;  %v9057_v10 = vpop.permute.xlu0 %9056 }
 0xecd   : > { %v9102_v3 = vadd.f32 %v9073_v60, %v9017_v20  ;;  %9655 = vrot.lane.b32.xlu0 %v24795_v42, %s24716_s23  ;;  %v24796_v20 = vld [vmem:[#allocation107_spill] sm:$0xff]  ;;  %v9071_v27 = vsel %vm2060_vm7, %v22882_v22, %v9057_v10  ;;  %v9100_v38 = vadd.f32 %v9057_v10, %v9015_v63 }
 0xece   : > { %v8649_v2 = vpop.f32.mrb[0].mxu1  ;;  %v9099_v15 = vadd.f32 %v9071_v27, %v9014_v23 }
 0xecf   : > { %9566 = vrot.lane.b32.xlu1 %v8649_v2, %s24710_s29  ;;  %v17704_v33 = vpop.f32.mrb[1].mxu1 }
 0xed0   : > { %v8652_v1 = vpop.f32.mrb[2].mxu1 }
 0xed1   : > { %9572 = vrot.lane.b32.xlu0 %v8652_v1, %s24710_s29  ;;  %v17705_v11 = vpop.f32.mrb[3].mxu1  ;;  %v9124_v24 = vpop.permute.xlu0 %9123 }
 0xed3   : > { %v9130_v9 = vpop.permute.xlu1 %9129 }
 0xed4   : > { %v9152_v53 = vsel %vm2146_vm8, %v22963_v35, %v9130_v9  ;;  %v9179_v43 = vadd.f32 %v9130_v9, %v9094_v51 }
 0xed5   : > { %v23416_v8 = vadd.f32 %v9152_v53, %v9093_v52  ;;  %9653 = vrot.lane.b32.xlu0 %v24796_v20, %s24716_s23 }
 0xed6   : > { %v8657_v49 = vpop.f32.mrb[4].mxu1 }
 0xed7   : > { %9633 = vrot.lane.b32.xlu1 %v8657_v49, %s24716_s23  ;;  %v17708_v29 = vpop.f32.mrb[5].mxu1 }
 0xed8   : > { %v8660_v35 = vpop.f32.mrb[6].mxu1 }
 0xed9   : > { %v17709_v32 = vpop.f32.mrb[7].mxu1  ;;  %v9136_v1 = vpop.permute.xlu0 %9135 }
 0xeda   : > { %v9182_v9 = vadd.f32 %v9136_v1, %v23400_v28 }
 0xedb   : > { %v9142_v45 = vpop.permute.xlu1 %9141  ;;  %9639 = vrot.lane.b32.xlu1 %v8660_v35, %s24716_s23 }
 0xedc   : > { %v9156_v62 = vsel %vm2146_vm8, %v22990_v44, %v9142_v45  ;;  %v9185_v37 = vadd.f32 %v9142_v45, %v9100_v38  ;;  %v9176_v44 = vadd.f32 %v9124_v24, %v23384_v5 }
 0xedd   : > { %v9184_v51 = vadd.f32 %v9156_v62, %v9099_v15 }
 0xede   : > { %v8665_v52 = vpop.f32.mrb[8].mxu1 }
 0xedf   : > { %9645 = vrot.lane.b32.xlu1 %v8665_v52, %s24716_s23  ;;  %v17712_v31 = vpop.f32.mrb[9].mxu1 }
 0xee0   : > { %v8668_v22 = vpop.f32.mrb[10].mxu1 }
 0xee1   : > { %v9148_v47 = vpop.permute.xlu1 %9147  ;;  %v17713_v4 = vpop.f32.mrb[11].mxu1 }
 0xee2   : > { %v9158_v26 = vsel %vm2146_vm8, %v22999_v46, %v9148_v47  ;;  %v9188_v55 = vadd.f32 %v9148_v47, %v9103_v30 }
 0xee3   : > { %v23433_v54 = vadd.f32 %v9158_v26, %v9102_v3  ;;  %9651 = vrot.lane.b32.xlu1 %v8668_v22, %s24716_s23 }
 0xee5   : > { %v9209_v21 = vpop.permute.xlu1 %9208 }
 0xee6   : > { %v9261_v17 = vadd.f32 %v9209_v21, %v9176_v44  ;;  %v8673_v14 = vpop.f32.mrb[12].mxu1  ;;  %v9235_v44 = vsel %vm2232_vm9, %v23007_v58, %v9209_v21  ;;  %v9154_v58 = vsel %vm2146_vm8, %v24749_v59, %v9136_v1 }
 0xee7   : > { %9657 = vrot.lane.b32.xlu1 %v8673_v14, %s24716_s23  ;;  %v17716_v6 = vpop.f32.mrb[13].mxu1 }
 0xee8   : > { %v8676_v41 = vpop.f32.mrb[14].mxu1 }
 0xee9   : > { %v9215_v60 = vpop.permute.xlu1 %9214  ;;  %v17717_v42 = vpop.f32.mrb[15].mxu1 }
 0xeea   : > { %v23438_v2 = vadd.f32 %v9215_v60, %v9179_v43 }
 0xeeb   : > { %v9221_v11 = vpop.permute.xlu0 %9220 }
 0xeec   : > { %v9267_v53 = vadd.f32 %v9221_v11, %v9182_v9 }
 0xef1   : > { %v9227_v33 = vpop.permute.xlu1 %9226 }
 0xef2   : > { %v9241_v46 = vsel %vm2232_vm9, %v23019_v61, %v9227_v33  ;;  %v9270_v30 = vadd.f32 %v9227_v33, %v9185_v37  ;;  %v9237_v33 = vsel %vm2232_vm9, %v23014_v56, %v9215_v60  ;;  %v24798_v60 = vld [vmem:[#allocation125_spill] sm:$0xff] }
 0xef3   : > { %v23442_v3 = vadd.f32 %v9241_v46, %v9184_v51  ;;  %v23447_v7 = vpop.permute.xlu0 %9232  ;;  %v9263_v46 = vadd.f32 %v9237_v33, %v23416_v8 }
 0xef4   : > { %v9273_v61 = vadd.f32 %v23447_v7, %v9188_v55  ;;  %v9150_v55 = vsel %vm2146_vm8, %v22904_v18, %v9124_v24 }
 0xef9   : > { %v9294_v5 = vpop.permute.xlu1 %9293 }
 0xefa   : > { %v23444_v12 = vadd.f32 %v9294_v5, %v9261_v17  ;;  %v9175_v17 = vadd.f32 %v9150_v55, %v23386_v40  ;;  %v9320_v6 = vsel %vm2318_vm10, %v23033_v13, %v9294_v5  ;;  %v24797_v40 = vld [vmem:[#allocation55_spill] sm:$0xff]  ;;  %v24799_v5 = vld [vmem:[#allocation28_spill] sm:$0xff]  ;;  %v24802_v55 = vld [vmem:[#allocation121_spill] sm:$0xff] }
 0xefb   : > { %v23464_v38 = vpop.permute.xlu0 %9299 }
 0xefc   : > { %v9260_v42 = vadd.f32 %v9235_v44, %v9175_v17  ;;  %v9322_v21 = vsel %vm2318_vm10, %v24797_v40, %v23464_v38  ;;  %v24804_v40 = vld [vmem:[#allocation78_spill] sm:$0xff] }
 0xefe   : > { %v9345_v24 = vadd.f32 %v9320_v6, %v9260_v42 }
 0xf01   : > { %v9306_v10 = vpop.permute.xlu1 %9305 }
 0xf02   : > { %v9352_v20 = vadd.f32 %v9306_v10, %v9267_v53  ;;  %v9181_v53 = vadd.f32 %v9154_v58, %v23402_v57  ;;  %v9324_v44 = vsel %vm2318_vm10, %v24802_v55, %v9306_v10  ;;  %v24803_v58 = vld [vmem:[#allocation117_spill] sm:$0xff]  ;;  %v9793_v55 = vld [vmem:[#allocation4 + $0x110] sm:$0xff] }
 0xf05   : > { %v9312_v43 = vpop.permute.xlu1 %9311 }
 0xf06   : > { %v23449_v49 = vadd.f32 %v9312_v43, %v9270_v30 }
 0xf09   : > { %v23452_v29 = vpop.permute.xlu1 %9317 }
 0xf0a   : > { %v9358_v63 = vadd.f32 %v23452_v29, %v9273_v61 }
 0xf0d   : > { %v23455_v27 = vpop.permute.xlu1 %9378 }
 0xf0e   : > { %v9405_v18 = vsel %vm2404_vm11, %v23140_v34, %v23455_v27  ;;  %v9239_v34 = vsel %vm2232_vm9, %v24798_v60, %v9221_v11  ;;  %v24801_v11 = vld [vmem:[#allocation66_spill] sm:$0xff] }
 0xf0f   : > { %v9430_v30 = vadd.f32 %v9405_v18, %v9345_v24  ;;  %v9266_v17 = vadd.f32 %v9239_v34, %v9181_v53  ;;  %v9791_v18 = vld [vmem:[#allocation4 + $0x100] sm:$0xff]  ;;  %v9792_v24 = vld [vmem:[#allocation4 + $0x108] sm:$0xff] }
 0xf11   : > { %v23468_v45 = vpop.permute.xlu0 %9384 }
 0xf12   : > { %v9407_v59 = vsel %vm2404_vm11, %v24799_v5, %v23468_v45  ;;  %v24807_v5 = vld [vmem:[#allocation71_spill] sm:$0xff] }
 0xf13   : > { %v9391_v35 = vpop.permute.xlu1 %9390 }
 0xf14   : > { %v23457_v23 = vadd.f32 %v9391_v35, %v9352_v20  ;;  %v9348_v20 = vadd.f32 %v9322_v21, %v9263_v46  ;;  %v9351_v21 = vadd.f32 %v9324_v44, %v9266_v17  ;;  %v9794_v44 = vld [vmem:[#allocation4 + $0x118] sm:$0xff] }
 0xf15   : > { %v24810_v17 = vld [vmem:[#allocation47_spill] sm:$0xff] }
 0xf16   : > { %v9433_v6 = vadd.f32 %v9407_v59, %v9348_v20 }
 0xf19   : > { %v23472_v37 = vpop.permute.xlu0 %9396 }
 0xf1b   : > { %v23459_v28 = vpop.permute.xlu1 %9402 }
 0xf1c   : > { %v23462_v32 = vadd.f32 %v23459_v28, %v9358_v63  ;;  %v9729_v63 = vadd.f32 %v24801_v11, %v23270_v16  ;;  %v9409_v16 = vsel %vm2404_vm11, %v23187_v0, %v9391_v35  ;;  %v24808_v0 = vld [vmem:[#allocation108_spill] sm:$0xff] }
 0xf1d   : > { %v9436_v20 = vadd.f32 %v9409_v16, %v9351_v21  ;;  %v24813_v16 = vld [vmem:[#allocation127_spill] sm:$0xff]  ;;  %v24815_v21 = vld [vmem:[#allocation54_spill] sm:$0xff] }
 0xf1e   : > { %v9744_v34 = vmul.f32 %v9729_v63, %v9729_v63 }
 0xf21   : > { %v23476_v52 = vpop.permute.xlu0 %9463 }
 0xf22   : > { %v9490_v13 = vsel %vm904_vm1, %v23151_v48, %v23476_v52  ;;  %v24800_v48 = vld [vmem:[#allocation37_spill] sm:$0xff] }
 0xf23   : > { %v23466_v15 = vpop.permute.xlu1 %9469  ;;  %v9497_v8 = vsel %vm904_vm1, %v24800_v48, %v23249_v36  ;;  %v9515_v61 = vadd.f32 %v9490_v13, %v9430_v30  ;;  %v24805_v13 = vld [vmem:[#allocation34_spill] sm:$0xff]  ;;  %v18665_v48 = vpack.c.bf16 %v9792_v24, %v9791_v18 }
 0xf24   : > { %v23539_v57 = vadd.f32 %v9497_v8, %v23218_v19  ;;  %v9326_v46 = vsel %vm2318_vm10, %v24805_v13, %v9312_v43  ;;  %v24806_v19 = vld [vmem:[#allocation133_spill] sm:$0xff]  ;;  %v24809_v8 = vld [vmem:[#allocation126_spill] sm:$0xff] }
 0xf25   : > { %v9732_v59 = vadd.f32 %v24807_v5, %v24806_v19  ;;  %v9243_v53 = vsel %vm2232_vm9, %v24809_v8, %v23447_v7  ;;  %v24812_v7 = vld [vmem:[#allocation24_spill] sm:$0xff]  ;;  %v18668_v19 = vpack.c.bf16 %v9794_v44, %v9793_v55  ;;  %v24820_v44 = vld [vmem:[#allocation70_spill] sm:$0xff] }
 0xf26   : > { %v24817_v8 = vld [vmem:[#allocation116_spill] sm:$0xff] }
 0xf29   : > { %v23470_v62 = vpop.permute.xlu1 %9475 }
 0xf2a   : > { %v9494_v35 = vsel %vm904_vm1, %v24808_v0, %v23470_v62 }
 0xf2d   : > { %v23474_v51 = vpop.permute.xlu1 %9481 }
 0xf31   : > { %v23478_v31 = vpop.permute.xlu1 %9487 }
 0xf33   : > { %v23480_v22 = vpop.permute.xlu0 %9548 }
 0xf34   : > { %v9575_v1 = vsel %vm2575_vm12, %v23211_v50, %v23480_v22  ;;  %v9492_v50 = vsel %vm904_vm1, %v23228_v39, %v23466_v15 }
 0xf35   : > { %v23482_v47 = vpop.permute.xlu1 %9570  ;;  %v9600_v42 = vadd.f32 %v9575_v1, %v9515_v61  ;;  %v9518_v30 = vadd.f32 %v9492_v50, %v9433_v6  ;;  %v9354_v50 = vadd.f32 %v9326_v46, %v23442_v3  ;;  %v9411_v6 = vsel %vm2404_vm11, %v24810_v17, %v23472_v37  ;;  %v24814_v3 = vld [vmem:[#allocation32_spill] sm:$0xff] }
 0xf36   : > { %v9735_v13 = vadd.f32 %v24815_v21, %v24814_v3  ;;  %v9272_v46 = vadd.f32 %v9243_v53, %v23433_v54  ;;  %v24819_v53 = vld [vmem:[#allocation30_spill] sm:$0xff] }
 0xf37   : > { %v23486_v26 = vpop.permute.xlu0 %9647  ;;  %v9439_v0 = vadd.f32 %v9411_v6, %v9354_v50 }
 0xf38   : > { %v9665_v17 = vsel %vm2661_vm13, %v23486_v26, %v24817_v8 }
 0xf39   : > { %v23484_v4 = vpop.permute.xlu1 %9568 }
 0xf3a   : > { %v9582_v6 = vsel %vm2575_vm12, %v23484_v4, %v23482_v47 }
 0xf3b   : > { %v23497_v41 = vpop.permute.xlu0 %9560 }
 0xf3d   : > { %v23493_v14 = vpop.permute.xlu1 %9554 }
 0xf3e   : > { %v9577_v10 = vsel %vm2575_vm12, %v24803_v58, %v23493_v14  ;;  %v9328_v58 = vsel %vm2318_vm10, %v24813_v16, %v23452_v29  ;;  %v9498_v16 = vsel %vm904_vm1, %v23249_v36, %v23478_v31  ;;  %v9611_v36 = vadd.f32 %v9582_v6, %v23539_v57 }
 0xf3f   : > { %v23523_v9 = vpop.permute.xlu0 %9655  ;;  %v9603_v61 = vadd.f32 %v9577_v10, %v9518_v30  ;;  %v9521_v10 = vadd.f32 %v9494_v35, %v9436_v20  ;;  %v24816_v30 = vld [vmem:[#allocation110_spill] sm:$0xff]  ;;  %v9357_v20 = vadd.f32 %v9328_v58, %v9272_v46  ;;  %v24821_v58 = vld [vmem:[#allocation60_spill] sm:$0xff] }
 0xf41   : > { %v23513_v56 = vpop.permute.xlu1 %9566 }
 0xf43   : > { %v23556_v1 = vpop.permute.xlu0 %9572 }
 0xf44   : > { %v9583_v46 = vsel %vm2575_vm12, %v23482_v47, %v23556_v1  ;;  %v9797_v47 = vld [vmem:[#allocation4 + $0x130] sm:$0xff] }
 0xf47   : > { %v9654_v55 = vpop.permute.xlu0 %9653 }
 0xf48   : > { %v9667_v4 = vsel %vm2661_vm13, %v9654_v55, %v23523_v9 }
 0xf49   : > { %v23536_v33 = vpop.permute.xlu1 %9633 }
 0xf4a   : > { %v9660_v39 = vsel %vm2661_vm13, %v24804_v40, %v23536_v33 }
 0xf4b   : > { %v9685_v60 = vadd.f32 %v9660_v39, %v9600_v42  ;;  %v24811_v42 = vld [vmem:[#allocation65_spill] sm:$0xff] }
 0xf4c   : > { %v9579_v18 = vsel %vm2575_vm12, %v24811_v42, %v23497_v41 }
 0xf4d   : > { %v23561_v43 = vpop.permute.xlu1 %9639  ;;  %v9730_v63 = vadd.f32 %v24801_v11, %v9685_v60  ;;  %v9496_v60 = vsel %vm904_vm1, %v24816_v30, %v23474_v51  ;;  %v9606_v42 = vadd.f32 %v9579_v18, %v9521_v10  ;;  %v9693_v10 = vadd.f32 %v9665_v17, %v24821_v58 }
 0xf4e   : > { %v9662_v24 = vsel %vm2661_vm13, %v24812_v7, %v23561_v43  ;;  %v9524_v50 = vadd.f32 %v9496_v60, %v9439_v0 }
 0xf4f   : > { %v9688_v40 = vadd.f32 %v9662_v24, %v9603_v61  ;;  %v9745_v39 = vmul.f32 %v9730_v63, %v9730_v63  ;;  %v24818_v61 = vld [vmem:[#allocation58_spill] sm:$0xff]  ;;  %v9581_v63 = vsel %vm2575_vm12, %v24819_v53, %v23513_v56  ;;  %v9747_v24 = vmul.f32 %v9732_v59, %v9732_v59 }
 0xf50   : > { %v9413_v54 = vsel %vm2404_vm11, %v24818_v61, %v23459_v28  ;;  %v9750_v28 = vmul.f32 %v9735_v13, %v9735_v13  ;;  %v9609_v3 = vadd.f32 %v9581_v63, %v9524_v50  ;;  %v9431_v13 = vadd.f32 %v23455_v27, %v23444_v12  ;;  %v24822_v27 = vld [vmem:[#allocation98_spill] sm:$0xff]  ;;  %v9798_v61 = vld [vmem:[#allocation4 + $0x138] sm:$0xff]  ;;  %v24823_v50 = vld [vmem:[#allocation73_spill] sm:$0xff] }
 0xf51   : > { %9880 = vmatprep.mubr.f32.mxu1 %v9745_v39  ;;  %v23586_v29 = vpop.permute.xlu1 %9645  ;;  %v9733_v35 = vadd.f32 %v24807_v5, %v9688_v40  ;;  %v9795_v40 = vld [vmem:[#allocation4 + $0x120] sm:$0xff]  ;;  %v9442_v39 = vadd.f32 %v9413_v54, %v9357_v20  ;;  %v9738_v57 = vadd.f32 %v24822_v27, %v9693_v10  ;;  %v9696_v20 = vadd.f32 %v9667_v4, %v9611_v36  ;;  %v19566_v4 = vld [vmem:[#allocation6 + $0x58] sm:$0xff]  }
 0xf52   : > { %v9664_v26 = vsel %vm2661_vm13, %v24820_v44, %v23586_v29  ;;  %9881 = vmatmul.mubr.f32.vlgmr.msra.gmra.mrb[16].mxu1 %v9744_v34  ;;  %v9796_v34 = vld [vmem:[#allocation4 + $0x128] sm:$0xff]  ;;  %v9516_v12 = vadd.f32 %v23476_v52, %v9431_v13  ;;  %v18674_v55 = vpack.c.bf16 %v9798_v61, %v9797_v47  ;;  %v9440_v10 = vadd.f32 %v23472_v37, %v23449_v49  ;;  %v19569_v13 = vld [vmem:[#allocation6 + $0x70] sm:$0xff]  }
 0xf53   : > { %v9691_v18 = vadd.f32 %v9664_v26, %v9606_v42  ;;  %18666 = vmatpush3.bf16.msra.mxu1 %v18665_v48  ;;  %v9748_v7 = vmul.f32 %v9733_v35, %v9733_v35  ;;  %v9527_v60 = vadd.f32 %v9498_v16, %v9442_v39  ;;  %v18671_v42 = vpack.c.bf16 %v9796_v34, %v9795_v40  ;;  %v19564_v39 = vld [vmem:[#allocation6 + $0x48] sm:$0xff]   ;;  %v19570_v36 = vld [vmem:[#allocation6 + $0x78] sm:$0xff]  }
 0xf54   : > { %18667 = vmatprep.subr.bf16.mxu1 %v24791_v25  ;;  %v9349_v35 = vadd.f32 %v23464_v38, %v23438_v2  ;;  %v9601_v63 = vadd.f32 %v23480_v22, %v9516_v12  ;;  %v9753_v26 = vmul.f32 %v9738_v57, %v9738_v57  ;;  %v9741_v6 = vadd.f32 %v24823_v50, %v9696_v20 }
 0xf55   : > { %9885 = vmatprep.mubr.f32.mxu1 %v9748_v7  ;;  %v23608_v48 = vpop.permute.xlu1 %9651  ;;  %v9736_v59 = vadd.f32 %v24815_v21, %v9691_v18  ;;  %v9612_v54 = vadd.f32 %v9583_v46, %v9527_v60  ;;  %v9800_v7 = vld [vmem:[#allocation4 + $0x148] sm:$0xff]  ;;  %v24824_v40 = vmov 0.0   ;;  %v9528_v49 = vadd.f32 %v23478_v31, %v23462_v32 }
 0xf56   : > { %v9666_v30 = vsel %vm2661_vm13, %v24817_v8, %v23608_v48  ;;  %9886 = vmatmul.mubr.f32.gmra.mrb[18].mxu1 %v9747_v24  ;;  %v9686_v18 = vadd.f32 %v23536_v33, %v9601_v63  ;;  %v9756_v16 = vmul.f32 %v9741_v6, %v9741_v6 }
 0xf57   : > { %v9694_v0 = vadd.f32 %v9666_v30, %v9609_v3  ;;  %18669 = vmatpush3.bf16.msra.mxu1 %v18668_v19  ;;  %v9751_v17 = vmul.f32 %v9736_v59, %v9736_v59  ;;  %v9434_v19 = vadd.f32 %v23468_v45, %v9349_v35  ;;  %v9799_v45 = vld [vmem:[#allocation4 + $0x140] sm:$0xff]  ;;  %v19568_v59 = vld [vmem:[#allocation6 + $0x68] sm:$0xff]  }
 0xf58   : > { %18670 = vmatprep.subr.bf16.mxu1 %v24791_v25  ;;  %v9731_v58 = vadd.f32 %v24801_v11, %v9686_v18  ;;  %v19565_v3 = vld [vmem:[#allocation6 + $0x50] sm:$0xff]  }
 0xf59   : > { %9890 = vmatprep.mubr.f32.mxu1 %v9751_v17  ;;  %v9658_v8 = vpop.permute.xlu1 %9657  ;;  %v9739_v53 = vadd.f32 %v24822_v27, %v9694_v0  ;;  %v9519_v44 = vadd.f32 %v23466_v15, %v9434_v19  ;;  %v9522_v15 = vadd.f32 %v23470_v62, %v23457_v23  ;;  %v9525_v23 = vadd.f32 %v23474_v51, %v9440_v10  ;;  %v19573_v10 = vld [vmem:[#allocation6 + $0x10] sm:$0xff]  }
 0xf5a   : > { %v9668_v2 = vsel %vm2661_vm13, %v23523_v9, %v9658_v8  ;;  %9891 = vmatmul.mubr.f32.gmra.mrb[20].mxu1 %v9750_v28  ;;  %v18677_v28 = vpack.c.bf16 %v9800_v7, %v9799_v45  ;;  %v9746_v62 = vmul.f32 %v9731_v58, %v9731_v58 }
 0xf5b   : > { %v9697_v38 = vadd.f32 %v9668_v2, %v9612_v54  ;;  %18672 = vmatpush3.bf16.msra.mxu1 %v18671_v42  ;;  %v9754_v52 = vmul.f32 %v9739_v53, %v9739_v53  ;;  %v9604_v9 = vadd.f32 %v23493_v14, %v9519_v44  ;;  %v9607_v14 = vadd.f32 %v23497_v41, %v9522_v15 }
 0xf5c   : > { %18673 = vmatprep.subr.bf16.mxu1 %v24791_v25 }
 0xf5d   : > { %9895 = vmatprep.mubr.f32.mxu1 %v9754_v52  ;;  %v9742_v22 = vadd.f32 %v24823_v50, %v9697_v38  ;;  %v9689_v33 = vadd.f32 %v23561_v43, %v9604_v9  ;;  %v9692_v43 = vadd.f32 %v23586_v29, %v9607_v14  ;;  %v19574_v14 = vld [vmem:[#allocation6 + $0x18] sm:$0xff]  }
 0xf5e   : > { %9896 = vmatmul.mubr.f32.gmra.mrb[22].mxu1 %v9753_v26 }
 0xf5f   : > { %18675 = vmatpush3.bf16.msra.mxu1 %v18674_v55  ;;  %v9757_v24 = vmul.f32 %v9742_v22, %v9742_v22  ;;  %v9734_v11 = vadd.f32 %v24807_v5, %v9689_v33  ;;  %v9737_v51 = vadd.f32 %v24815_v21, %v9692_v43  ;;  %v9613_v5 = vadd.f32 %v23556_v1, %v9528_v49  ;;  %v19563_v21 = vld [vmem:[#allocation6 + $0x40] sm:$0xff]   ;;  %v19572_v33 = vld [vmem:[#allocation6 + $0x8] sm:$0xff]   ;;  %v19578_v43 = vld [vmem:[#allocation6 + $0x38] sm:$0xff]  }
 0xf60   : > { %18676 = vmatprep.subr.bf16.mxu1 %v24791_v25  ;;  %v9610_v25 = vadd.f32 %v23513_v56, %v9525_v23  ;;  %v19575_v23 = vld [vmem:[#allocation6 + $0x20] sm:$0xff]   ;;  %v19580_v49 = vld [vmem:[#allocation6 + $0x88] sm:$0xff]  }
 0xf61   : > { %9900 = vmatprep.mubr.f32.mxu1 %v9757_v24  ;;  %v9749_v37 = vmul.f32 %v9734_v11, %v9734_v11  ;;  %v9752_v56 = vmul.f32 %v9737_v51, %v9737_v51  ;;  %v9698_v34 = vadd.f32 %v9658_v8, %v9613_v5  ;;  %v19577_v11 = vld [vmem:[#allocation6 + $0x30] sm:$0xff]   ;;  %v19582_v51 = vld [vmem:[#allocation6 + $0x98] sm:$0xff]   ;;  %v19584_v5 = vld [vmem:[#allocation6 + $0xa8] sm:$0xff]  }
 0xf62   : > { %9901 = vmatmul.mubr.f32.gmra.mrb[24].mxu1 %v9756_v16  ;;  %v9695_v41 = vadd.f32 %v23608_v48, %v9610_v25  ;;  %v19567_v48 = vld [vmem:[#allocation6 + $0x60] sm:$0xff]  }
 0xf63   : > { %18678 = vmatpush3.bf16.msra.mxu1 %v18677_v28  ;;  %17738 = vmatprep.mubr.msk.f32.mxu1 %vm20214_vm2, %v24824_v40  ;;  %v9743_v31 = vadd.f32 %v24823_v50, %v9698_v34  ;;  %v19571_v16 = vld [vmem:[#allocation6] sm:$0xff]  }
 0xf64   : > { %17753 = vmatprep.subr.bf16.mxu1 %v24824_v40  ;;  %v9740_v29 = vadd.f32 %v24822_v27, %v9695_v41  ;;  %v19579_v25 = vld [vmem:[#allocation6 + $0x80] sm:$0xff]  }
 0xf65   : > { %v9758_v1 = vmul.f32 %v9743_v31, %v9743_v31  ;;  %v19583_v41 = vld [vmem:[#allocation6 + $0xa0] sm:$0xff]   ;;  %v19588_v31 = vld [vmem:[#allocation6 + $0xc8] sm:$0xff]  }
 0xf66   : > { %17739 = vmatmul.mubr.msk.f32.vlgmr.msra.gmra.mrb[26].mxu1 %vm2804_vm14, %v9746_v62  ;;  %v9755_v32 = vmul.f32 %v9740_v29, %v9740_v29  ;;  %v19576_v62 = vld [vmem:[#allocation6 + $0x28] sm:$0xff]   ;;  %v19586_v29 = vld [vmem:[#allocation6 + $0xb8] sm:$0xff]   ;;  %v19587_v34 = vld [vmem:[#allocation6 + $0xc0] sm:$0xff]  }
 0xf67   : > { %17741 = vmatprep.mubr.msk.f32.mxu1 %vm20214_vm2, %v24824_v40  ;;  %17754 = vmatpush3.bf16.msra.mxu1 %v19563_v21  ;;  %v19590_v21 = vld [vmem:[#allocation6 + $0xd8] sm:$0xff]  }
 0xf68   : > { %17755 = vmatprep.subr.bf16.mxu1 %v24824_v40 }
 0xf6a   : > { %17742 = vmatmul.mubr.msk.f32.gmra.mrb[28].mxu1 %vm2804_vm14, %v9749_v37  ;;  %v19581_v37 = vld [vmem:[#allocation6 + $0x90] sm:$0xff]  }
 0xf6b   : > { %17744 = vmatprep.mubr.msk.f32.mxu1 %vm20214_vm2, %v24824_v40  ;;  %17756 = vmatpush3.bf16.msra.mxu1 %v19564_v39  ;;  %v19591_v39 = vld [vmem:[#allocation6 + $0xe0] sm:$0xff]  }
 0xf6c   : > { %17757 = vmatprep.subr.bf16.mxu1 %v24824_v40 }
 0xf6e   : > { %17745 = vmatmul.mubr.msk.f32.gmra.mrb[30].mxu1 %vm2804_vm14, %v9752_v56  ;;  %v19585_v56 = vld [vmem:[#allocation6 + $0xb0] sm:$0xff]  }
 0xf6f   : > { %17747 = vmatprep.mubr.msk.f32.mxu1 %vm20214_vm2, %v24824_v40  ;;  %17758 = vmatpush3.bf16.msra.mxu1 %v19565_v3  ;;  %v19592_v3 = vld [vmem:[#allocation6 + $0xe8] sm:$0xff]  }
 0xf70   : > { %17759 = vmatprep.subr.bf16.mxu1 %v24824_v40 }
 0xf72   : > { %17748 = vmatmul.mubr.msk.f32.gmra.mrb[32].mxu1 %vm2804_vm14, %v9755_v32 }
 0xf73   : > { %17750 = vmatprep.mubr.msk.f32.mxu1 %vm20214_vm2, %v24824_v40  ;;  %17760 = vmatpush3.bf16.msra.mxu1 %v19566_v4  ;;  %v19593_v4 = vld [vmem:[#allocation6 + $0xf0] sm:$0xff]  }
 0xf74   : > { %17761 = vmatprep.subr.bf16.mxu1 %v24824_v40 }
 0xf76   : > { %17751 = vmatmul.mubr.msk.f32.gmra.mrb[34].mxu1 %vm2804_vm14, %v9758_v1  ;;  %v19589_v1 = vld [vmem:[#allocation6 + $0xd0] sm:$0xff]  }
 0xf77   : > { %17769 = vmatprep.mubr.msk.bf16.mxu1 %vm20214_vm2, %v24824_v40  ;;  %17762 = vmatpush3.bf16.msra.mxu1 %v19567_v48  ;;  %v19594_v48 = vld [vmem:[#allocation6 + $0xf8] sm:$0xff]  }
 0xf78   : > { %17763 = vmatprep.subr.bf16.mxu1 %v24824_v40 }
 0xf7b   : > { %17764 = vmatpush3.bf16.msra.mxu1 %v19568_v59  ;;  %v19595_v59 = vld [vmem:[#allocation6 + $0x100] sm:$0xff]  }
 0xf7c   : > { %17765 = vmatprep.subr.bf16.mxu1 %v24824_v40 }
 0xf7f   : > { %17766 = vmatpush3.bf16.msra.mxu1 %v19569_v13 }
 0xf80   : > { %17767 = vmatprep.subr.bf16.mxu1 %v24824_v40 }
 0xf83   : > { %17768 = vmatpush3.bf16.msra.mxu1 %v19570_v36  ;;  %v19596_v36 = vld [vmem:[#allocation6 + $0x108] sm:$0xff]  }
 0xf84   : > { %17773 = vmatprep.subr.bf16.mxu1 %v24824_v40 }
0x1025   : > { %v16151_v46 = vpop.f32.mrb[16].mxu1 }
0x1026   : > { %v16152_v30 = vpop.f32.mrb[17].mxu1 }
0x1027   : > { %v16153_v60 = vadd.f32 %v16152_v30, %v16151_v46  ;;  %v19597_v46 = vld [vmem:[#allocation6 + $0x110] sm:$0xff]   ;;  %v19598_v30 = vld [vmem:[#allocation6 + $0x118] sm:$0xff]  }
0x1029   : > { %v16154_v0 = vpop.f32.mrb[18].mxu1 }
0x102a   : > { %v16155_v17 = vpop.f32.mrb[19].mxu1 }
0x102b   : > { %v16156_v42 = vadd.f32 %v16155_v17, %v16154_v0  ;;  %v19600_v0 = vld [vmem:[#allocation6 + $0x128] sm:$0xff]   ;;  %v19601_v17 = vld [vmem:[#allocation6 + $0x130] sm:$0xff]  }
0x102d   : > { %v16157_v35 = vpop.f32.mrb[20].mxu1 }
0x102e   : > { %v16158_v12 = vpop.f32.mrb[21].mxu1 }
0x102f   : > { %v16159_v27 = vadd.f32 %v16158_v12, %v16157_v35  ;;  %v19603_v35 = vld [vmem:[#allocation6 + $0x140] sm:$0xff]  }
0x1031   : > { %v16160_v57 = vpop.f32.mrb[22].mxu1 }
0x1032   : > { %v16161_v20 = vpop.f32.mrb[23].mxu1 }
0x1033   : > { %v16162_v47 = vadd.f32 %v16161_v20, %v16160_v57  ;;  %v19605_v57 = vld [vmem:[#allocation6 + $0x150] sm:$0xff]   ;;  %v19606_v20 = vld [vmem:[#allocation6 + $0x158] sm:$0xff]  }
0x1035   : > { %v16163_v61 = vpop.f32.mrb[24].mxu1 }
0x1036   : > { %v16164_v54 = vpop.f32.mrb[25].mxu1 }
0x1037   : > { %v16165_v8 = vadd.f32 %v16164_v54, %v16163_v61  ;;  %v19608_v61 = vld [vmem:[#allocation6 + $0x168] sm:$0xff]   ;;  %v19609_v54 = vld [vmem:[#allocation6 + $0x170] sm:$0xff]  }
0x1039   : > { %v9972_v53 = vpop.f32.mrb[26].mxu1 }
0x103a   : > { %v9973_v19 = vadd.f32 %v16153_v60, %v9972_v53  ;;  %v17740_v63 = vpop.f32.mrb[27].mxu1  ;;  %v19599_v60 = vld [vmem:[#allocation6 + $0x120] sm:$0xff]  }
0x103b   : > { %v19611_v53 = vld [vmem:[#allocation6 + $0x180] sm:$0xff]   ;;  %v19612_v63 = vld [vmem:[#allocation6 + $0x188] sm:$0xff]  }
0x103c   : > { %v9996_v2 = vmax.f32 %v9973_v19, 1e-06 }
0x103d   : > { %v9977_v38 = vpop.f32.mrb[28].mxu1 }
0x103e   : > { %19905 = vlog2.f32 %v9996_v2  ;;  %v23681_v52 = vadd.f32 %v16156_v42, %v9977_v38  ;;  %v17743_v55 = vpop.f32.mrb[29].mxu1  ;;  %v19602_v42 = vld [vmem:[#allocation6 + $0x138] sm:$0xff]   ;;  %v19613_v2 = vld [vmem:[#allocation6 + $0x190] sm:$0xff]  }
0x103f   : > { %v19614_v38 = vld [vmem:[#allocation6 + $0x198] sm:$0xff]   ;;  %v19615_v55 = vld [vmem:[#allocation6 + $0x1a0] sm:$0xff]  }
0x1041   : > { %v9982_v44 = vpop.f32.mrb[30].mxu1 }
0x1042   : > { %v23683_v26 = vadd.f32 %v16159_v27, %v9982_v44  ;;  %v17746_v50 = vpop.f32.mrb[31].mxu1  ;;  %v19604_v27 = vld [vmem:[#allocation6 + $0x148] sm:$0xff]  }
0x1043   : > { %v19616_v44 = vld [vmem:[#allocation6 + $0x1a8] sm:$0xff]   ;;  %v19617_v50 = vld [vmem:[#allocation6 + $0x1b0] sm:$0xff]  }
0x1045   : > { %v9987_v6 = vpop.f32.mrb[32].mxu1 }
0x1046   : > { %v23685_v18 = vadd.f32 %v16162_v47, %v9987_v6  ;;  %v17749_v45 = vpop.f32.mrb[33].mxu1  ;;  %v19607_v47 = vld [vmem:[#allocation6 + $0x160] sm:$0xff]   ;;  %v19618_v6 = vld [vmem:[#allocation6 + $0x1b8] sm:$0xff]  }
0x1047   : > { %v19619_v45 = vld [vmem:[#allocation6 + $0x1c0] sm:$0xff]  }
0x1048   : > { %v19906_v7 = vpop.eup %19905 }
0x1049   : > { %v10002_v22 = vmul.f32 0.6931472, %v19906_v7  ;;  %v9992_v9 = vpop.f32.mrb[34].mxu1 }
0x104a   : > { %v23687_v24 = vadd.f32 %v16165_v8, %v9992_v9  ;;  %v17752_v28 = vpop.f32.mrb[35].mxu1  ;;  %v19610_v8 = vld [vmem:[#allocation6 + $0x178] sm:$0xff]   ;;  %v19621_v9 = vld [vmem:[#allocation6 + $0x1d0] sm:$0xff]  }
0x104b   : > { %v23689_v15 = vpack.c.bf16 %v10002_v22, %v10002_v22  ;;  %v19620_v22 = vld [vmem:[#allocation6 + $0x1c8] sm:$0xff]   ;;  %v19622_v28 = vld [vmem:[#allocation6 + $0x1d8] sm:$0xff]  }
0x104d   : > { %v23692_v58 = vshrl.u32 %v23689_v15, 16  ;;  %v10241_v32 = vrot.slane %v23689_v15, 1  ;;  %v10455_v12 = vrot.slane %v23689_v15, 2  ;;  %v10669_v7 = vrot.slane %v23689_v15, 3 }
0x104f   : > { %17770 = vmatmul.mubr.bf16.vlgmr.msra.gmra.mrb[36].mxu1 %v23692_v58  ;;  %v10348_v13 = vrot.slane %v23692_v58, 1  ;;  %v10562_v19 = vrot.slane %v23692_v58, 2 }
0x1050   : > { %17774 = vmatpush3.bf16.msra.mxu1 %v19571_v16  ;;  %17789 = vmatprep.mubr.msk.bf16.mxu1 %vm20214_vm2, %v24824_v40  ;;  %v19624_v16 = vld [vmem:[#allocation6 + $0x1e8] sm:$0xff]  }
0x1051   : > { %17775 = vmatprep.subr.bf16.mxu1 %v24824_v40 }
0x1054   : > { %17776 = vmatpush3.bf16.msra.mxu1 %v19572_v33  ;;  %v19625_v33 = vld [vmem:[#allocation6 + $0x1f0] sm:$0xff]  }
0x1055   : > { %17777 = vmatprep.subr.bf16.mxu1 %v24824_v40 }
0x1058   : > { %17778 = vmatpush3.bf16.msra.mxu1 %v19573_v10  ;;  %v19626_v10 = vld [vmem:[#allocation6 + $0x1f8] sm:$0xff]  }
0x1059   : > { %17779 = vmatprep.subr.bf16.mxu1 %v24824_v40 }
0x105c   : > { %17780 = vmatpush3.bf16.msra.mxu1 %v19574_v14  ;;  %v19627_v14 = vld [vmem:[#allocation6 + $0x200] sm:$0xff]  }
0x105d   : > { %17781 = vmatprep.subr.bf16.mxu1 %v24824_v40 }
0x1060   : > { %17782 = vmatpush3.bf16.msra.mxu1 %v19575_v23  ;;  %v10776_v23 = vrot.slane %v23692_v58, 3  ;;  %v19631_v58 = vld [vmem:[#allocation6 + $0x220] sm:$0xff]  }
0x1061   : > { %17783 = vmatprep.subr.bf16.mxu1 %v24824_v40 }
0x1064   : > { %17784 = vmatpush3.bf16.msra.mxu1 %v19576_v62  ;;  %v19628_v62 = vld [vmem:[#allocation6 + $0x208] sm:$0xff]  }
0x1065   : > { %17785 = vmatprep.subr.bf16.mxu1 %v24824_v40 }
0x1068   : > { %17786 = vmatpush3.bf16.msra.mxu1 %v19577_v11  ;;  %v19629_v11 = vld [vmem:[#allocation6 + $0x210] sm:$0xff]  }
0x1069   : > { %17787 = vmatprep.subr.bf16.mxu1 %v24824_v40 }
0x106c   : > { %17788 = vmatpush3.bf16.msra.mxu1 %v19578_v43  ;;  %v9997_v43 = vmax.f32 %v23681_v52, 1e-06  ;;  %v19634_v52 = vld [vmem:[#allocation6 + $0x238] sm:$0xff]  }
0x106d   : > { %17793 = vmatprep.subr.bf16.mxu1 %v24824_v40 }
0x106e   : > { %19907 = vlog2.f32 %v9997_v43  ;;  %v19681_v43 = vld [vmem:[#allocation6 + $0x3b0] sm:$0xff]  }
0x106f   : > { %17790 = vmatmul.mubr.bf16.vlgmr.msra.gmra.mrb[36].mxu1 %v23689_v15  ;;  %v19623_v15 = vld [vmem:[#allocation6 + $0x1e0] sm:$0xff]  }
0x1070   : > { %17794 = vmatpush3.bf16.msra.mxu1 %v19579_v25  ;;  %17809 = vmatprep.mubr.msk.bf16.mxu1 %vm20214_vm2, %v24824_v40  ;;  %v19630_v25 = vld [vmem:[#allocation6 + $0x218] sm:$0xff]  }
0x1071   : > { %17795 = vmatprep.subr.bf16.mxu1 %v24824_v40 }
0x1074   : > { %17796 = vmatpush3.bf16.msra.mxu1 %v19580_v49  ;;  %v19632_v49 = vld [vmem:[#allocation6 + $0x228] sm:$0xff]  }
0x1075   : > { %17797 = vmatprep.subr.bf16.mxu1 %v24824_v40 }
0x1078   : > { %17798 = vmatpush3.bf16.msra.mxu1 %v19581_v37  ;;  %v19633_v37 = vld [vmem:[#allocation6 + $0x230] sm:$0xff]  }
0x1079   : > { %17799 = vmatprep.subr.bf16.mxu1 %v24824_v40 }
0x107c   : > { %17800 = vmatpush3.bf16.msra.mxu1 %v19582_v51  ;;  %v19908_v51 = vpop.eup %19907 }
0x107d   : > { %17801 = vmatprep.subr.bf16.mxu1 %v24824_v40 }
0x1080   : > { %17802 = vmatpush3.bf16.msra.mxu1 %v19583_v41  ;;  %v10004_v41 = vmul.f32 0.6931472, %v19908_v51  ;;  %v19685_v51 = vld [vmem:[#allocation6 + $0x3d0] sm:$0xff]  }
0x1081   : > { %17803 = vmatprep.subr.bf16.mxu1 %v24824_v40 }
0x1084   : > { %17804 = vmatpush3.bf16.msra.mxu1 %v19584_v5  ;;  %v19635_v5 = vld [vmem:[#allocation6 + $0x240] sm:$0xff]  }
0x1085   : > { %17805 = vmatprep.subr.bf16.mxu1 %v24824_v40 }
0x1088   : > { %17806 = vmatpush3.bf16.msra.mxu1 %v19585_v56  ;;  %v23782_v56 = vpack.c.bf16 %v10004_v41, %v10004_v41  ;;  %v19687_v41 = vld [vmem:[#allocation6 + $0x3e0] sm:$0xff]  }
0x1089   : > { %17807 = vmatprep.subr.bf16.mxu1 %v24824_v40 }
0x108c   : > { %17808 = vmatpush3.bf16.msra.mxu1 %v19586_v29  ;;  %v19636_v29 = vld [vmem:[#allocation6 + $0x248] sm:$0xff]  }
0x108d   : > { %17813 = vmatprep.subr.bf16.mxu1 %v24824_v40 }
0x108f   : > { %17810 = vmatmul.mubr.bf16.vlgmr.msra.gmra.mrb[36].mxu1 %v10241_v32  ;;  %v19638_v32 = vld [vmem:[#allocation6 + $0x258] sm:$0xff]  }
0x1090   : > { %17814 = vmatpush3.bf16.msra.mxu1 %v19587_v34  ;;  %17829 = vmatprep.mubr.msk.bf16.mxu1 %vm20214_vm2, %v24824_v40  ;;  %v19637_v34 = vld [vmem:[#allocation6 + $0x250] sm:$0xff]  }
0x1091   : > { %17815 = vmatprep.subr.bf16.mxu1 %v24824_v40 }
0x1094   : > { %17816 = vmatpush3.bf16.msra.mxu1 %v19588_v31  ;;  %v19639_v31 = vld [vmem:[#allocation6 + $0x260] sm:$0xff]  }
0x1095   : > { %17817 = vmatprep.subr.bf16.mxu1 %v24824_v40 }
0x1098   : > { %17818 = vmatpush3.bf16.msra.mxu1 %v19589_v1  ;;  %v19640_v1 = vld [vmem:[#allocation6 + $0x268] sm:$0xff]  }
0x1099   : > { %17819 = vmatprep.subr.bf16.mxu1 %v24824_v40 }
0x109c   : > { %17820 = vmatpush3.bf16.msra.mxu1 %v19590_v21  ;;  %v19641_v21 = vld [vmem:[#allocation6 + $0x270] sm:$0xff]  }
0x109d   : > { %17821 = vmatprep.subr.bf16.mxu1 %v24824_v40 }
0x10a0   : > { %17822 = vmatpush3.bf16.msra.mxu1 %v19591_v39  ;;  %v19642_v39 = vld [vmem:[#allocation6 + $0x278] sm:$0xff]  }
0x10a1   : > { %17823 = vmatprep.subr.bf16.mxu1 %v24824_v40 }
0x10a4   : > { %17824 = vmatpush3.bf16.msra.mxu1 %v19592_v3  ;;  %v19643_v3 = vld [vmem:[#allocation6 + $0x280] sm:$0xff]  }
0x10a5   : > { %17825 = vmatprep.subr.bf16.mxu1 %v24824_v40 }
0x10a8   : > { %17826 = vmatpush3.bf16.msra.mxu1 %v19593_v4  ;;  %v23796_v4 = vshrl.u32 %v23782_v56, 16 }
0x10a9   : > { %17827 = vmatprep.subr.bf16.mxu1 %v24824_v40 }
0x10ac   : > { %17828 = vmatpush3.bf16.msra.mxu1 %v19594_v48  ;;  %v19644_v48 = vld [vmem:[#allocation6 + $0x288] sm:$0xff]  }
0x10ad   : > { %17833 = vmatprep.subr.bf16.mxu1 %v24824_v40 }
0x10af   : > { %17830 = vmatmul.mubr.bf16.vlgmr.msra.gmra.mrb[36].mxu1 %v10348_v13  ;;  %v19646_v13 = vld [vmem:[#allocation6 + $0x298] sm:$0xff]  }
0x10b0   : > { %17834 = vmatpush3.bf16.msra.mxu1 %v19595_v59  ;;  %17849 = vmatprep.mubr.msk.bf16.mxu1 %vm20214_vm2, %v24824_v40  ;;  %v19645_v59 = vld [vmem:[#allocation6 + $0x290] sm:$0xff]  }
0x10b1   : > { %17835 = vmatprep.subr.bf16.mxu1 %v24824_v40 }
0x10b4   : > { %17836 = vmatpush3.bf16.msra.mxu1 %v19596_v36  ;;  %v19647_v36 = vld [vmem:[#allocation6 + $0x2a0] sm:$0xff]  }
0x10b5   : > { %17837 = vmatprep.subr.bf16.mxu1 %v24824_v40 }
0x10b8   : > { %17838 = vmatpush3.bf16.msra.mxu1 %v19597_v46  ;;  %v19648_v46 = vld [vmem:[#allocation6 + $0x2a8] sm:$0xff]  }
0x10b9   : > { %17839 = vmatprep.subr.bf16.mxu1 %v24824_v40 }
0x10bc   : > { %17840 = vmatpush3.bf16.msra.mxu1 %v19598_v30  ;;  %v19649_v30 = vld [vmem:[#allocation6 + $0x2b0] sm:$0xff]  }
0x10bd   : > { %17841 = vmatprep.subr.bf16.mxu1 %v24824_v40 }
0x10c0   : > { %17842 = vmatpush3.bf16.msra.mxu1 %v19599_v60  ;;  %v19650_v60 = vld [vmem:[#allocation6 + $0x2b8] sm:$0xff]  }
0x10c1   : > { %17843 = vmatprep.subr.bf16.mxu1 %v24824_v40 }
0x10c4   : > { %17844 = vmatpush3.bf16.msra.mxu1 %v19600_v0  ;;  %v19651_v0 = vld [vmem:[#allocation6 + $0x2c0] sm:$0xff]  }
0x10c5   : > { %17845 = vmatprep.subr.bf16.mxu1 %v24824_v40 }
0x10c8   : > { %17846 = vmatpush3.bf16.msra.mxu1 %v19601_v17  ;;  %v11099_v17 = vrot.slane %v23782_v56, 1 }
0x10c9   : > { %17847 = vmatprep.subr.bf16.mxu1 %v24824_v40 }
0x10cc   : > { %17848 = vmatpush3.bf16.msra.mxu1 %v19602_v42  ;;  %v19652_v42 = vld [vmem:[#allocation6 + $0x2c8] sm:$0xff]  }
0x10cd   : > { %17853 = vmatprep.subr.bf16.mxu1 %v24824_v40 }
0x10cf   : > { %17850 = vmatmul.mubr.bf16.vlgmr.msra.gmra.mrb[36].mxu1 %v10455_v12  ;;  %v19654_v12 = vld [vmem:[#allocation6 + $0x2d8] sm:$0xff]  }
0x10d0   : > { %17854 = vmatpush3.bf16.msra.mxu1 %v19603_v35  ;;  %17869 = vmatprep.mubr.msk.bf16.mxu1 %vm20214_vm2, %v24824_v40  ;;  %v19653_v35 = vld [vmem:[#allocation6 + $0x2d0] sm:$0xff]  }
0x10d1   : > { %17855 = vmatprep.subr.bf16.mxu1 %v24824_v40 }
0x10d4   : > { %17856 = vmatpush3.bf16.msra.mxu1 %v19604_v27  ;;  %v19655_v27 = vld [vmem:[#allocation6 + $0x2e0] sm:$0xff]  }
0x10d5   : > { %17857 = vmatprep.subr.bf16.mxu1 %v24824_v40 }
0x10d8   : > { %17858 = vmatpush3.bf16.msra.mxu1 %v19605_v57  ;;  %v19656_v57 = vld [vmem:[#allocation6 + $0x2e8] sm:$0xff]  }
0x10d9   : > { %17859 = vmatprep.subr.bf16.mxu1 %v24824_v40 }
0x10dc   : > { %17860 = vmatpush3.bf16.msra.mxu1 %v19606_v20  ;;  %v19657_v20 = vld [vmem:[#allocation6 + $0x2f0] sm:$0xff]  }
0x10dd   : > { %17861 = vmatprep.subr.bf16.mxu1 %v24824_v40 }
0x10e0   : > { %17862 = vmatpush3.bf16.msra.mxu1 %v19607_v47  ;;  %v19658_v47 = vld [vmem:[#allocation6 + $0x2f8] sm:$0xff]  }
0x10e1   : > { %17863 = vmatprep.subr.bf16.mxu1 %v24824_v40 }
0x10e4   : > { %17864 = vmatpush3.bf16.msra.mxu1 %v19608_v61  ;;  %v19659_v61 = vld [vmem:[#allocation6 + $0x300] sm:$0xff]  }
0x10e5   : > { %17865 = vmatprep.subr.bf16.mxu1 %v24824_v40 }
0x10e8   : > { %17866 = vmatpush3.bf16.msra.mxu1 %v19609_v54  ;;  %v11206_v54 = vrot.slane %v23796_v4, 1 }
0x10e9   : > { %17867 = vmatprep.subr.bf16.mxu1 %v24824_v40 }
0x10ec   : > { %17868 = vmatpush3.bf16.msra.mxu1 %v19610_v8  ;;  %v19660_v8 = vld [vmem:[#allocation6 + $0x308] sm:$0xff]  }
0x10ed   : > { %17873 = vmatprep.subr.bf16.mxu1 %v24824_v40 }
0x10ef   : > { %17870 = vmatmul.mubr.bf16.vlgmr.msra.gmra.mrb[36].mxu1 %v10562_v19  ;;  %v19662_v19 = vld [vmem:[#allocation6 + $0x318] sm:$0xff]  }
0x10f0   : > { %17874 = vmatpush3.bf16.msra.mxu1 %v19611_v53  ;;  %17889 = vmatprep.mubr.msk.bf16.mxu1 %vm20214_vm2, %v24824_v40  ;;  %v19661_v53 = vld [vmem:[#allocation6 + $0x310] sm:$0xff]  }
0x10f1   : > { %17875 = vmatprep.subr.bf16.mxu1 %v24824_v40 }
0x10f4   : > { %17876 = vmatpush3.bf16.msra.mxu1 %v19612_v63  ;;  %v19663_v63 = vld [vmem:[#allocation6 + $0x320] sm:$0xff]  }
0x10f5   : > { %17877 = vmatprep.subr.bf16.mxu1 %v24824_v40 }
0x10f8   : > { %17878 = vmatpush3.bf16.msra.mxu1 %v19613_v2  ;;  %v19664_v2 = vld [vmem:[#allocation6 + $0x328] sm:$0xff]  }
0x10f9   : > { %17879 = vmatprep.subr.bf16.mxu1 %v24824_v40 }
0x10fc   : > { %17880 = vmatpush3.bf16.msra.mxu1 %v19614_v38  ;;  %v19665_v38 = vld [vmem:[#allocation6 + $0x330] sm:$0xff]  }
0x10fd   : > { %17881 = vmatprep.subr.bf16.mxu1 %v24824_v40 }
0x1100   : > { %17882 = vmatpush3.bf16.msra.mxu1 %v19615_v55  ;;  %v19666_v55 = vld [vmem:[#allocation6 + $0x338] sm:$0xff]  }
0x1101   : > { %17883 = vmatprep.subr.bf16.mxu1 %v24824_v40 }
0x1104   : > { %17884 = vmatpush3.bf16.msra.mxu1 %v19616_v44  ;;  %v19667_v44 = vld [vmem:[#allocation6 + $0x340] sm:$0xff]  }
0x1105   : > { %17885 = vmatprep.subr.bf16.mxu1 %v24824_v40 }
0x1108   : > { %17886 = vmatpush3.bf16.msra.mxu1 %v19617_v50  ;;  %v11313_v50 = vrot.slane %v23782_v56, 2 }
0x1109   : > { %17887 = vmatprep.subr.bf16.mxu1 %v24824_v40 }
0x110c   : > { %17888 = vmatpush3.bf16.msra.mxu1 %v19618_v6  ;;  %v19668_v6 = vld [vmem:[#allocation6 + $0x348] sm:$0xff]  }
0x110d   : > { %17893 = vmatprep.subr.bf16.mxu1 %v24824_v40 }
0x110f   : > { %17890 = vmatmul.mubr.bf16.vlgmr.msra.gmra.mrb[36].mxu1 %v10669_v7  ;;  %v19670_v7 = vld [vmem:[#allocation6 + $0x358] sm:$0xff]  }
0x1110   : > { %17894 = vmatpush3.bf16.msra.mxu1 %v19619_v45  ;;  %17909 = vmatprep.mubr.msk.bf16.mxu1 %vm20214_vm2, %v24824_v40  ;;  %v19669_v45 = vld [vmem:[#allocation6 + $0x350] sm:$0xff]  }
0x1111   : > { %17895 = vmatprep.subr.bf16.mxu1 %v24824_v40 }
0x1114   : > { %17896 = vmatpush3.bf16.msra.mxu1 %v19620_v22  ;;  %v19671_v22 = vld [vmem:[#allocation6 + $0x360] sm:$0xff]  }
0x1115   : > { %17897 = vmatprep.subr.bf16.mxu1 %v24824_v40 }
0x1118   : > { %17898 = vmatpush3.bf16.msra.mxu1 %v19621_v9  ;;  %v19672_v9 = vld [vmem:[#allocation6 + $0x368] sm:$0xff]  }
0x1119   : > { %17899 = vmatprep.subr.bf16.mxu1 %v24824_v40 }
0x111c   : > { %17900 = vmatpush3.bf16.msra.mxu1 %v19622_v28  ;;  %v19673_v28 = vld [vmem:[#allocation6 + $0x370] sm:$0xff]  }
0x111d   : > { %17901 = vmatprep.subr.bf16.mxu1 %v24824_v40 }
0x1120   : > { %17902 = vmatpush3.bf16.msra.mxu1 %v19623_v15  ;;  %v19674_v15 = vld [vmem:[#allocation6 + $0x378] sm:$0xff]  }
0x1121   : > { %17903 = vmatprep.subr.bf16.mxu1 %v24824_v40 }
0x1124   : > { %17904 = vmatpush3.bf16.msra.mxu1 %v19624_v16  ;;  %v19675_v16 = vld [vmem:[#allocation6 + $0x380] sm:$0xff]  }
0x1125   : > { %17905 = vmatprep.subr.bf16.mxu1 %v24824_v40 }
0x1128   : > { %17906 = vmatpush3.bf16.msra.mxu1 %v19625_v33  ;;  %v11420_v33 = vrot.slane %v23796_v4, 2 }
0x1129   : > { %17907 = vmatprep.subr.bf16.mxu1 %v24824_v40 }
0x112c   : > { %17908 = vmatpush3.bf16.msra.mxu1 %v19626_v10  ;;  %v19676_v10 = vld [vmem:[#allocation6 + $0x388] sm:$0xff]  }
0x112d   : > { %17913 = vmatprep.subr.bf16.mxu1 %v24824_v40 }
0x112f   : > { %17910 = vmatmul.mubr.bf16.vlgmr.msra.gmra.mrb[36].mxu1 %v10776_v23  ;;  %v19678_v23 = vld [vmem:[#allocation6 + $0x398] sm:$0xff]  }
0x1130   : > { %17914 = vmatpush3.bf16.msra.mxu1 %v19627_v14  ;;  %17929 = vmatprep.mubr.msk.bf16.mxu1 %vm20214_vm2, %v24824_v40  ;;  %v19677_v14 = vld [vmem:[#allocation6 + $0x390] sm:$0xff]  }
0x1131   : > { %17915 = vmatprep.subr.bf16.mxu1 %v24824_v40 }
0x1134   : > { %17916 = vmatpush3.bf16.msra.mxu1 %v19628_v62  ;;  %v19679_v62 = vld [vmem:[#allocation6 + $0x3a0] sm:$0xff]  }
0x1135   : > { %17917 = vmatprep.subr.bf16.mxu1 %v24824_v40 }
0x1138   : > { %17918 = vmatpush3.bf16.msra.mxu1 %v19629_v11  ;;  %v19680_v11 = vld [vmem:[#allocation6 + $0x3a8] sm:$0xff]  }
0x1139   : > { %17919 = vmatprep.subr.bf16.mxu1 %v24824_v40 }
0x113c   : > { %17920 = vmatpush3.bf16.msra.mxu1 %v19630_v25  ;;  %v19682_v25 = vld [vmem:[#allocation6 + $0x3b8] sm:$0xff]  }
0x113d   : > { %17921 = vmatprep.subr.bf16.mxu1 %v24824_v40 }
0x1140   : > { %17922 = vmatpush3.bf16.msra.mxu1 %v19631_v58  ;;  %v19683_v58 = vld [vmem:[#allocation6 + $0x3c0] sm:$0xff]  }
0x1141   : > { %17923 = vmatprep.subr.bf16.mxu1 %v24824_v40 }
0x1144   : > { %17924 = vmatpush3.bf16.msra.mxu1 %v19632_v49  ;;  %v11527_v49 = vrot.slane %v23782_v56, 3 }
0x1145   : > { %17925 = vmatprep.subr.bf16.mxu1 %v24824_v40 }
0x1148   : > { %17926 = vmatpush3.bf16.msra.mxu1 %v19633_v37  ;;  %v19684_v37 = vld [vmem:[#allocation6 + $0x3c8] sm:$0xff]  }
0x1149   : > { %17927 = vmatprep.subr.bf16.mxu1 %v24824_v40 }
0x114c   : > { %17928 = vmatpush3.bf16.msra.mxu1 %v19634_v52  ;;  %v19686_v52 = vld [vmem:[#allocation6 + $0x3d8] sm:$0xff]  }
0x114d   : > { %17933 = vmatprep.subr.bf16.mxu1 %v24824_v40 }
0x114f   : > { %17930 = vmatmul.mubr.bf16.vlgmr.msra.gmra.mrb[36].mxu1 %v23782_v56  ;;  %v19689_v56 = vld [vmem:[#allocation6 + $0x3f0] sm:$0xff]  }
0x1150   : > { %17934 = vmatpush3.bf16.msra.mxu1 %v19635_v5  ;;  %17949 = vmatprep.mubr.msk.bf16.mxu1 %vm20214_vm2, %v24824_v40  ;;  %v19688_v5 = vld [vmem:[#allocation6 + $0x3e8] sm:$0xff]  }
0x1151   : > { %17935 = vmatprep.subr.bf16.mxu1 %v24824_v40 }
0x1154   : > { %17936 = vmatpush3.bf16.msra.mxu1 %v19636_v29  ;;  %v19690_v29 = vld [vmem:[#allocation6 + $0x3f8] sm:$0xff]  }
0x1155   : > { %17937 = vmatprep.subr.bf16.mxu1 %v24824_v40 }
0x1158   : > { %17938 = vmatpush3.bf16.msra.mxu1 %v19637_v34  ;;  %v19691_v34 = vld [vmem:[#allocation6 + $0x400] sm:$0xff]  }
0x1159   : > { %17939 = vmatprep.subr.bf16.mxu1 %v24824_v40 }
0x115c   : > { %17940 = vmatpush3.bf16.msra.mxu1 %v19638_v32  ;;  %v11634_v32 = vrot.slane %v23796_v4, 3 }
0x115d   : > { %17941 = vmatprep.subr.bf16.mxu1 %v24824_v40 }
0x1160   : > { %17942 = vmatpush3.bf16.msra.mxu1 %v19639_v31  ;;  %v19692_v31 = vld [vmem:[#allocation6 + $0x408] sm:$0xff]  }
0x1161   : > { %17943 = vmatprep.subr.bf16.mxu1 %v24824_v40 }
0x1164   : > { %17944 = vmatpush3.bf16.msra.mxu1 %v19640_v1  ;;  %v19693_v1 = vld [vmem:[#allocation6 + $0x410] sm:$0xff]  }
0x1165   : > { %17945 = vmatprep.subr.bf16.mxu1 %v24824_v40 }
0x1168   : > { %17946 = vmatpush3.bf16.msra.mxu1 %v19641_v21  ;;  %v9998_v21 = vmax.f32 %v23683_v26, 1e-06  ;;  %v19698_v26 = vld [vmem:[#allocation6 + $0x438] sm:$0xff]  }
0x1169   : > { %17947 = vmatprep.subr.bf16.mxu1 %v24824_v40 }
0x116a   : > { %19909 = vlog2.f32 %v9998_v21  ;;  %v19746_v21 = vld [vmem:[#allocation6 + $0x5b8] sm:$0xff]  }
0x116c   : > { %17948 = vmatpush3.bf16.msra.mxu1 %v19642_v39  ;;  %v19694_v39 = vld [vmem:[#allocation6 + $0x418] sm:$0xff]  }
0x116d   : > { %17953 = vmatprep.subr.bf16.mxu1 %v24824_v40 }
0x116f   : > { %17950 = vmatmul.mubr.bf16.vlgmr.msra.gmra.mrb[36].mxu1 %v23796_v4  ;;  %v19696_v4 = vld [vmem:[#allocation6 + $0x428] sm:$0xff]  }
0x1170   : > { %17954 = vmatpush3.bf16.msra.mxu1 %v19643_v3  ;;  %17969 = vmatprep.mubr.msk.bf16.mxu1 %vm20214_vm2, %v24824_v40  ;;  %v19695_v3 = vld [vmem:[#allocation6 + $0x420] sm:$0xff]  }
0x1171   : > { %17955 = vmatprep.subr.bf16.mxu1 %v24824_v40 }
0x1174   : > { %17956 = vmatpush3.bf16.msra.mxu1 %v19644_v48  ;;  %v19697_v48 = vld [vmem:[#allocation6 + $0x430] sm:$0xff]  }
0x1175   : > { %17957 = vmatprep.subr.bf16.mxu1 %v24824_v40 }
0x1178   : > { %17958 = vmatpush3.bf16.msra.mxu1 %v19645_v59  ;;  %v19910_v59 = vpop.eup %19909 }
0x1179   : > { %17959 = vmatprep.subr.bf16.mxu1 %v24824_v40 }
0x117c   : > { %17960 = vmatpush3.bf16.msra.mxu1 %v19646_v13  ;;  %v10006_v13 = vmul.f32 0.6931472, %v19910_v59  ;;  %v19750_v59 = vld [vmem:[#allocation6 + $0x5d8] sm:$0xff]  }
0x117d   : > { %17961 = vmatprep.subr.bf16.mxu1 %v24824_v40 }
0x1180   : > { %17962 = vmatpush3.bf16.msra.mxu1 %v19647_v36  ;;  %v19699_v36 = vld [vmem:[#allocation6 + $0x440] sm:$0xff]  }
0x1181   : > { %17963 = vmatprep.subr.bf16.mxu1 %v24824_v40 }
0x1184   : > { %17964 = vmatpush3.bf16.msra.mxu1 %v19648_v46  ;;  %v23876_v46 = vpack.c.bf16 %v10006_v13, %v10006_v13  ;;  %v19752_v13 = vld [vmem:[#allocation6 + $0x5e8] sm:$0xff]  }
0x1185   : > { %17965 = vmatprep.subr.bf16.mxu1 %v24824_v40 }
0x1188   : > { %17966 = vmatpush3.bf16.msra.mxu1 %v19649_v30  ;;  %v19700_v30 = vld [vmem:[#allocation6 + $0x448] sm:$0xff]  }
0x1189   : > { %17967 = vmatprep.subr.bf16.mxu1 %v24824_v40 }
0x118c   : > { %17968 = vmatpush3.bf16.msra.mxu1 %v19650_v60  ;;  %v19701_v60 = vld [vmem:[#allocation6 + $0x450] sm:$0xff]  }
0x118d   : > { %17973 = vmatprep.subr.bf16.mxu1 %v24824_v40 }
0x118f   : > { %17970 = vmatmul.mubr.bf16.vlgmr.msra.gmra.mrb[36].mxu1 %v11099_v17  ;;  %v19703_v17 = vld [vmem:[#allocation6 + $0x460] sm:$0xff]  }
0x1190   : > { %17974 = vmatpush3.bf16.msra.mxu1 %v19651_v0  ;;  %17989 = vmatprep.mubr.msk.bf16.mxu1 %vm20214_vm2, %v24824_v40  ;;  %v19702_v0 = vld [vmem:[#allocation6 + $0x458] sm:$0xff]  }
0x1191   : > { %17975 = vmatprep.subr.bf16.mxu1 %v24824_v40 }
0x1194   : > { %17976 = vmatpush3.bf16.msra.mxu1 %v19652_v42  ;;  %v19704_v42 = vld [vmem:[#allocation6 + $0x468] sm:$0xff]  }
0x1195   : > { %17977 = vmatprep.subr.bf16.mxu1 %v24824_v40 }
0x1198   : > { %17978 = vmatpush3.bf16.msra.mxu1 %v19653_v35  ;;  %v19705_v35 = vld [vmem:[#allocation6 + $0x470] sm:$0xff]  }
0x1199   : > { %17979 = vmatprep.subr.bf16.mxu1 %v24824_v40 }
0x119c   : > { %17980 = vmatpush3.bf16.msra.mxu1 %v19654_v12  ;;  %v19706_v12 = vld [vmem:[#allocation6 + $0x478] sm:$0xff]  }
0x119d   : > { %17981 = vmatprep.subr.bf16.mxu1 %v24824_v40 }
0x11a0   : > { %17982 = vmatpush3.bf16.msra.mxu1 %v19655_v27  ;;  %v19707_v27 = vld [vmem:[#allocation6 + $0x480] sm:$0xff]  }
0x11a1   : > { %17983 = vmatprep.subr.bf16.mxu1 %v24824_v40 }
0x11a4   : > { %17984 = vmatpush3.bf16.msra.mxu1 %v19656_v57  ;;  %v23890_v57 = vshrl.u32 %v23876_v46, 16 }
0x11a5   : > { %17985 = vmatprep.subr.bf16.mxu1 %v24824_v40 }
0x11a8   : > { %17986 = vmatpush3.bf16.msra.mxu1 %v19657_v20  ;;  %v19708_v20 = vld [vmem:[#allocation6 + $0x488] sm:$0xff]  }
0x11a9   : > { %17987 = vmatprep.subr.bf16.mxu1 %v24824_v40 }
0x11ac   : > { %17988 = vmatpush3.bf16.msra.mxu1 %v19658_v47  ;;  %v19709_v47 = vld [vmem:[#allocation6 + $0x490] sm:$0xff]  }
0x11ad   : > { %17993 = vmatprep.subr.bf16.mxu1 %v24824_v40 }
0x11af   : > { %17990 = vmatmul.mubr.bf16.vlgmr.msra.gmra.mrb[36].mxu1 %v11206_v54  ;;  %v19711_v54 = vld [vmem:[#allocation6 + $0x4a0] sm:$0xff]  }
0x11b0   : > { %17994 = vmatpush3.bf16.msra.mxu1 %v19659_v61  ;;  %18009 = vmatprep.mubr.msk.bf16.mxu1 %vm20214_vm2, %v24824_v40  ;;  %v19710_v61 = vld [vmem:[#allocation6 + $0x498] sm:$0xff]  }
0x11b1   : > { %17995 = vmatprep.subr.bf16.mxu1 %v24824_v40 }
0x11b4   : > { %17996 = vmatpush3.bf16.msra.mxu1 %v19660_v8  ;;  %v19712_v8 = vld [vmem:[#allocation6 + $0x4a8] sm:$0xff]  }
0x11b5   : > { %17997 = vmatprep.subr.bf16.mxu1 %v24824_v40 }
0x11b8   : > { %17998 = vmatpush3.bf16.msra.mxu1 %v19661_v53  ;;  %v19713_v53 = vld [vmem:[#allocation6 + $0x4b0] sm:$0xff]  }
0x11b9   : > { %17999 = vmatprep.subr.bf16.mxu1 %v24824_v40 }
0x11bc   : > { %18000 = vmatpush3.bf16.msra.mxu1 %v19662_v19  ;;  %v19714_v19 = vld [vmem:[#allocation6 + $0x4b8] sm:$0xff]  }
0x11bd   : > { %18001 = vmatprep.subr.bf16.mxu1 %v24824_v40 }
0x11c0   : > { %18002 = vmatpush3.bf16.msra.mxu1 %v19663_v63  ;;  %v19715_v63 = vld [vmem:[#allocation6 + $0x4c0] sm:$0xff]  }
0x11c1   : > { %18003 = vmatprep.subr.bf16.mxu1 %v24824_v40 }
0x11c4   : > { %18004 = vmatpush3.bf16.msra.mxu1 %v19664_v2  ;;  %v11957_v2 = vrot.slane %v23876_v46, 1 }
0x11c5   : > { %18005 = vmatprep.subr.bf16.mxu1 %v24824_v40 }
0x11c8   : > { %18006 = vmatpush3.bf16.msra.mxu1 %v19665_v38  ;;  %v19716_v38 = vld [vmem:[#allocation6 + $0x4c8] sm:$0xff]  }
0x11c9   : > { %18007 = vmatprep.subr.bf16.mxu1 %v24824_v40 }
0x11cc   : > { %18008 = vmatpush3.bf16.msra.mxu1 %v19666_v55  ;;  %v19717_v55 = vld [vmem:[#allocation6 + $0x4d0] sm:$0xff]  }
0x11cd   : > { %18013 = vmatprep.subr.bf16.mxu1 %v24824_v40 }
0x11cf   : > { %18010 = vmatmul.mubr.bf16.vlgmr.msra.gmra.mrb[36].mxu1 %v11313_v50  ;;  %v19719_v50 = vld [vmem:[#allocation6 + $0x4e0] sm:$0xff]  }
0x11d0   : > { %18014 = vmatpush3.bf16.msra.mxu1 %v19667_v44  ;;  %18029 = vmatprep.mubr.msk.bf16.mxu1 %vm20214_vm2, %v24824_v40  ;;  %v19718_v44 = vld [vmem:[#allocation6 + $0x4d8] sm:$0xff]  }
0x11d1   : > { %18015 = vmatprep.subr.bf16.mxu1 %v24824_v40 }
0x11d4   : > { %18016 = vmatpush3.bf16.msra.mxu1 %v19668_v6  ;;  %v19720_v6 = vld [vmem:[#allocation6 + $0x4e8] sm:$0xff]  }
0x11d5   : > { %18017 = vmatprep.subr.bf16.mxu1 %v24824_v40 }
0x11d8   : > { %18018 = vmatpush3.bf16.msra.mxu1 %v19669_v45  ;;  %v19721_v45 = vld [vmem:[#allocation6 + $0x4f0] sm:$0xff]  }
0x11d9   : > { %18019 = vmatprep.subr.bf16.mxu1 %v24824_v40 }
0x11dc   : > { %18020 = vmatpush3.bf16.msra.mxu1 %v19670_v7  ;;  %v19722_v7 = vld [vmem:[#allocation6 + $0x4f8] sm:$0xff]  }
0x11dd   : > { %18021 = vmatprep.subr.bf16.mxu1 %v24824_v40 }
0x11e0   : > { %18022 = vmatpush3.bf16.msra.mxu1 %v19671_v22  ;;  %v19723_v22 = vld [vmem:[#allocation6 + $0x500] sm:$0xff]  }
0x11e1   : > { %18023 = vmatprep.subr.bf16.mxu1 %v24824_v40 }
0x11e4   : > { %18024 = vmatpush3.bf16.msra.mxu1 %v19672_v9  ;;  %v12064_v9 = vrot.slane %v23890_v57, 1 }
0x11e5   : > { %18025 = vmatprep.subr.bf16.mxu1 %v24824_v40 }
0x11e8   : > { %18026 = vmatpush3.bf16.msra.mxu1 %v19673_v28  ;;  %v19724_v28 = vld [vmem:[#allocation6 + $0x508] sm:$0xff]  }
0x11e9   : > { %18027 = vmatprep.subr.bf16.mxu1 %v24824_v40 }
0x11ec   : > { %18028 = vmatpush3.bf16.msra.mxu1 %v19674_v15  ;;  %v19725_v15 = vld [vmem:[#allocation6 + $0x510] sm:$0xff]  }
0x11ed   : > { %18033 = vmatprep.subr.bf16.mxu1 %v24824_v40 }
0x11ef   : > { %18030 = vmatmul.mubr.bf16.vlgmr.msra.gmra.mrb[36].mxu1 %v11420_v33  ;;  %v19727_v33 = vld [vmem:[#allocation6 + $0x520] sm:$0xff]  }
0x11f0   : > { %18034 = vmatpush3.bf16.msra.mxu1 %v19675_v16  ;;  %18049 = vmatprep.mubr.msk.bf16.mxu1 %vm20214_vm2, %v24824_v40  ;;  %v19726_v16 = vld [vmem:[#allocation6 + $0x518] sm:$0xff]  }
0x11f1   : > { %18035 = vmatprep.subr.bf16.mxu1 %v24824_v40 }
0x11f4   : > { %18036 = vmatpush3.bf16.msra.mxu1 %v19676_v10  ;;  %v19728_v10 = vld [vmem:[#allocation6 + $0x528] sm:$0xff]  }
0x11f5   : > { %18037 = vmatprep.subr.bf16.mxu1 %v24824_v40 }
0x11f8   : > { %18038 = vmatpush3.bf16.msra.mxu1 %v19677_v14  ;;  %v19729_v14 = vld [vmem:[#allocation6 + $0x530] sm:$0xff]  }
0x11f9   : > { %18039 = vmatprep.subr.bf16.mxu1 %v24824_v40 }
0x11fc   : > { %18040 = vmatpush3.bf16.msra.mxu1 %v19678_v23  ;;  %v19730_v23 = vld [vmem:[#allocation6 + $0x538] sm:$0xff]  }
0x11fd   : > { %18041 = vmatprep.subr.bf16.mxu1 %v24824_v40 }
0x1200   : > { %18042 = vmatpush3.bf16.msra.mxu1 %v19679_v62  ;;  %v19731_v62 = vld [vmem:[#allocation6 + $0x540] sm:$0xff]  }
0x1201   : > { %18043 = vmatprep.subr.bf16.mxu1 %v24824_v40 }
0x1204   : > { %18044 = vmatpush3.bf16.msra.mxu1 %v19680_v11  ;;  %v12171_v11 = vrot.slane %v23876_v46, 2 }
0x1205   : > { %18045 = vmatprep.subr.bf16.mxu1 %v24824_v40 }
0x1208   : > { %18046 = vmatpush3.bf16.msra.mxu1 %v19681_v43  ;;  %v19732_v43 = vld [vmem:[#allocation6 + $0x548] sm:$0xff]  }
0x1209   : > { %18047 = vmatprep.subr.bf16.mxu1 %v24824_v40 }
0x120c   : > { %18048 = vmatpush3.bf16.msra.mxu1 %v19682_v25  ;;  %v19733_v25 = vld [vmem:[#allocation6 + $0x550] sm:$0xff]  }
0x120d   : > { %18053 = vmatprep.subr.bf16.mxu1 %v24824_v40 }
0x120f   : > { %18050 = vmatmul.mubr.bf16.vlgmr.msra.gmra.mrb[36].mxu1 %v11527_v49  ;;  %v19735_v49 = vld [vmem:[#allocation6 + $0x560] sm:$0xff]  }
0x1210   : > { %18054 = vmatpush3.bf16.msra.mxu1 %v19683_v58  ;;  %18069 = vmatprep.mubr.msk.bf16.mxu1 %vm20214_vm2, %v24824_v40  ;;  %v19734_v58 = vld [vmem:[#allocation6 + $0x558] sm:$0xff]  }
0x1211   : > { %18055 = vmatprep.subr.bf16.mxu1 %v24824_v40 }
0x1214   : > { %18056 = vmatpush3.bf16.msra.mxu1 %v19684_v37  ;;  %v19736_v37 = vld [vmem:[#allocation6 + $0x568] sm:$0xff]  }
0x1215   : > { %18057 = vmatprep.subr.bf16.mxu1 %v24824_v40 }
0x1218   : > { %18058 = vmatpush3.bf16.msra.mxu1 %v19685_v51  ;;  %v19737_v51 = vld [vmem:[#allocation6 + $0x570] sm:$0xff]  }
0x1219   : > { %18059 = vmatprep.subr.bf16.mxu1 %v24824_v40 }
0x121c   : > { %18060 = vmatpush3.bf16.msra.mxu1 %v19686_v52  ;;  %v19738_v52 = vld [vmem:[#allocation6 + $0x578] sm:$0xff]  }
0x121d   : > { %18061 = vmatprep.subr.bf16.mxu1 %v24824_v40 }
0x1220   : > { %18062 = vmatpush3.bf16.msra.mxu1 %v19687_v41  ;;  %v19739_v41 = vld [vmem:[#allocation6 + $0x580] sm:$0xff]  }
0x1221   : > { %18063 = vmatprep.subr.bf16.mxu1 %v24824_v40 }
0x1224   : > { %18064 = vmatpush3.bf16.msra.mxu1 %v19688_v5  ;;  %v12278_v5 = vrot.slane %v23890_v57, 2 }
0x1225   : > { %18065 = vmatprep.subr.bf16.mxu1 %v24824_v40 }
0x1228   : > { %18066 = vmatpush3.bf16.msra.mxu1 %v19689_v56  ;;  %v19740_v56 = vld [vmem:[#allocation6 + $0x588] sm:$0xff]  }
0x1229   : > { %18067 = vmatprep.subr.bf16.mxu1 %v24824_v40 }
0x122c   : > { %18068 = vmatpush3.bf16.msra.mxu1 %v19690_v29  ;;  %v19741_v29 = vld [vmem:[#allocation6 + $0x590] sm:$0xff]  }
0x122d   : > { %18073 = vmatprep.subr.bf16.mxu1 %v24824_v40 }
0x122f   : > { %18070 = vmatmul.mubr.bf16.vlgmr.msra.gmra.mrb[36].mxu1 %v11634_v32  ;;  %v19743_v32 = vld [vmem:[#allocation6 + $0x5a0] sm:$0xff]  }
0x1230   : > { %18074 = vmatpush3.bf16.msra.mxu1 %v19691_v34  ;;  %18089 = vmatprep.mubr.msk.bf16.mxu1 %vm20214_vm2, %v24824_v40  ;;  %v19742_v34 = vld [vmem:[#allocation6 + $0x598] sm:$0xff]  }
0x1231   : > { %18075 = vmatprep.subr.bf16.mxu1 %v24824_v40 }
0x1234   : > { %18076 = vmatpush3.bf16.msra.mxu1 %v19692_v31  ;;  %v19744_v31 = vld [vmem:[#allocation6 + $0x5a8] sm:$0xff]  }
0x1235   : > { %18077 = vmatprep.subr.bf16.mxu1 %v24824_v40 }
0x1238   : > { %18078 = vmatpush3.bf16.msra.mxu1 %v19693_v1  ;;  %v19745_v1 = vld [vmem:[#allocation6 + $0x5b0] sm:$0xff]  }
0x1239   : > { %18079 = vmatprep.subr.bf16.mxu1 %v24824_v40 }
0x123c   : > { %18080 = vmatpush3.bf16.msra.mxu1 %v19694_v39  ;;  %v19747_v39 = vld [vmem:[#allocation6 + $0x5c0] sm:$0xff]  }
0x123d   : > { %18081 = vmatprep.subr.bf16.mxu1 %v24824_v40 }
0x1240   : > { %18082 = vmatpush3.bf16.msra.mxu1 %v19695_v3  ;;  %v12385_v3 = vrot.slane %v23876_v46, 3 }
0x1241   : > { %18083 = vmatprep.subr.bf16.mxu1 %v24824_v40 }
0x1244   : > { %18084 = vmatpush3.bf16.msra.mxu1 %v19696_v4  ;;  %v19748_v4 = vld [vmem:[#allocation6 + $0x5c8] sm:$0xff]  }
0x1245   : > { %18085 = vmatprep.subr.bf16.mxu1 %v24824_v40 }
0x1248   : > { %18086 = vmatpush3.bf16.msra.mxu1 %v19697_v48  ;;  %v19749_v48 = vld [vmem:[#allocation6 + $0x5d0] sm:$0xff]  }
0x1249   : > { %18087 = vmatprep.subr.bf16.mxu1 %v24824_v40 }
0x124c   : > { %18088 = vmatpush3.bf16.msra.mxu1 %v19698_v26  ;;  %v19751_v26 = vld [vmem:[#allocation6 + $0x5e0] sm:$0xff]  }
0x124d   : > { %18093 = vmatprep.subr.bf16.mxu1 %v24824_v40 }
0x124f   : > { %18090 = vmatmul.mubr.bf16.vlgmr.msra.gmra.mrb[36].mxu1 %v23876_v46  ;;  %v19754_v46 = vld [vmem:[#allocation6 + $0x5f8] sm:$0xff]  }
0x1250   : > { %18094 = vmatpush3.bf16.msra.mxu1 %v19699_v36  ;;  %18109 = vmatprep.mubr.msk.bf16.mxu1 %vm20214_vm2, %v24824_v40  ;;  %v19753_v36 = vld [vmem:[#allocation6 + $0x5f0] sm:$0xff]  }
0x1251   : > { %18095 = vmatprep.subr.bf16.mxu1 %v24824_v40 }
0x1254   : > { %18096 = vmatpush3.bf16.msra.mxu1 %v19700_v30  ;;  %v19755_v30 = vld [vmem:[#allocation6 + $0x600] sm:$0xff]  }
0x1255   : > { %18097 = vmatprep.subr.bf16.mxu1 %v24824_v40 }
0x1258   : > { %18098 = vmatpush3.bf16.msra.mxu1 %v19701_v60  ;;  %v12492_v60 = vrot.slane %v23890_v57, 3 }
0x1259   : > { %18099 = vmatprep.subr.bf16.mxu1 %v24824_v40 }
0x125c   : > { %18100 = vmatpush3.bf16.msra.mxu1 %v19702_v0  ;;  %v19756_v0 = vld [vmem:[#allocation6 + $0x608] sm:$0xff]  }
0x125d   : > { %18101 = vmatprep.subr.bf16.mxu1 %v24824_v40 }
0x1260   : > { %18102 = vmatpush3.bf16.msra.mxu1 %v19703_v17  ;;  %v19757_v17 = vld [vmem:[#allocation6 + $0x610] sm:$0xff]  }
0x1261   : > { %18103 = vmatprep.subr.bf16.mxu1 %v24824_v40 }
0x1264   : > { %18104 = vmatpush3.bf16.msra.mxu1 %v19704_v42  ;;  %v9999_v42 = vmax.f32 %v23685_v18, 1e-06  ;;  %v19762_v18 = vld [vmem:[#allocation6 + $0x638] sm:$0xff]  }
0x1265   : > { %18105 = vmatprep.subr.bf16.mxu1 %v24824_v40 }
0x1266   : > { %19911 = vlog2.f32 %v9999_v42  ;;  %v19811_v42 = vld [vmem:[#allocation6 + $0x7c0] sm:$0xff]  }
0x1268   : > { %18106 = vmatpush3.bf16.msra.mxu1 %v19705_v35  ;;  %v19758_v35 = vld [vmem:[#allocation6 + $0x618] sm:$0xff]  }
0x1269   : > { %18107 = vmatprep.subr.bf16.mxu1 %v24824_v40 }
0x126c   : > { %18108 = vmatpush3.bf16.msra.mxu1 %v19706_v12  ;;  %v19759_v12 = vld [vmem:[#allocation6 + $0x620] sm:$0xff]  }
0x126d   : > { %18113 = vmatprep.subr.bf16.mxu1 %v24824_v40 }
0x126f   : > { %18110 = vmatmul.mubr.bf16.vlgmr.msra.gmra.mrb[36].mxu1 %v23890_v57  ;;  %v19761_v57 = vld [vmem:[#allocation6 + $0x630] sm:$0xff]  }
0x1270   : > { %18114 = vmatpush3.bf16.msra.mxu1 %v19707_v27  ;;  %18129 = vmatprep.mubr.msk.bf16.mxu1 %vm20214_vm2, %v24824_v40  ;;  %v19760_v27 = vld [vmem:[#allocation6 + $0x628] sm:$0xff]  }
0x1271   : > { %18115 = vmatprep.subr.bf16.mxu1 %v24824_v40 }
0x1274   : > { %18116 = vmatpush3.bf16.msra.mxu1 %v19708_v20  ;;  %v19912_v20 = vpop.eup %19911 }
0x1275   : > { %18117 = vmatprep.subr.bf16.mxu1 %v24824_v40 }
0x1278   : > { %18118 = vmatpush3.bf16.msra.mxu1 %v19709_v47  ;;  %v10008_v47 = vmul.f32 0.6931472, %v19912_v20  ;;  %v19815_v20 = vld [vmem:[#allocation6 + $0x7e0] sm:$0xff]  }
0x1279   : > { %18119 = vmatprep.subr.bf16.mxu1 %v24824_v40 }
0x127c   : > { %18120 = vmatpush3.bf16.msra.mxu1 %v19710_v61  ;;  %v19763_v61 = vld [vmem:[#allocation6 + $0x640] sm:$0xff]  }
0x127d   : > { %18121 = vmatprep.subr.bf16.mxu1 %v24824_v40 }
0x1280   : > { %18122 = vmatpush3.bf16.msra.mxu1 %v19711_v54  ;;  %v23970_v54 = vpack.c.bf16 %v10008_v47, %v10008_v47  ;;  %v19817_v47 = vld [vmem:[#allocation6 + $0x7f0] sm:$0xff]  }
0x1281   : > { %18123 = vmatprep.subr.bf16.mxu1 %v24824_v40 }
0x1284   : > { %18124 = vmatpush3.bf16.msra.mxu1 %v19712_v8  ;;  %v19764_v8 = vld [vmem:[#allocation6 + $0x648] sm:$0xff]  }
0x1285   : > { %18125 = vmatprep.subr.bf16.mxu1 %v24824_v40 }
0x1288   : > { %18126 = vmatpush3.bf16.msra.mxu1 %v19713_v53  ;;  %v19765_v53 = vld [vmem:[#allocation6 + $0x650] sm:$0xff]  }
0x1289   : > { %18127 = vmatprep.subr.bf16.mxu1 %v24824_v40 }
0x128c   : > { %18128 = vmatpush3.bf16.msra.mxu1 %v19714_v19  ;;  %v19766_v19 = vld [vmem:[#allocation6 + $0x658] sm:$0xff]  }
0x128d   : > { %18133 = vmatprep.subr.bf16.mxu1 %v24824_v40 }
0x128f   : > { %18130 = vmatmul.mubr.bf16.vlgmr.msra.gmra.mrb[36].mxu1 %v11957_v2  ;;  %v19768_v2 = vld [vmem:[#allocation6 + $0x668] sm:$0xff]  }
0x1290   : > { %18134 = vmatpush3.bf16.msra.mxu1 %v19715_v63  ;;  %18149 = vmatprep.mubr.msk.bf16.mxu1 %vm20214_vm2, %v24824_v40  ;;  %v19767_v63 = vld [vmem:[#allocation6 + $0x660] sm:$0xff]  }
0x1291   : > { %18135 = vmatprep.subr.bf16.mxu1 %v24824_v40 }
0x1294   : > { %18136 = vmatpush3.bf16.msra.mxu1 %v19716_v38  ;;  %v19769_v38 = vld [vmem:[#allocation6 + $0x670] sm:$0xff]  }
0x1295   : > { %18137 = vmatprep.subr.bf16.mxu1 %v24824_v40 }
0x1298   : > { %18138 = vmatpush3.bf16.msra.mxu1 %v19717_v55  ;;  %v19770_v55 = vld [vmem:[#allocation6 + $0x678] sm:$0xff]  }
0x1299   : > { %18139 = vmatprep.subr.bf16.mxu1 %v24824_v40 }
0x129c   : > { %18140 = vmatpush3.bf16.msra.mxu1 %v19718_v44  ;;  %v19771_v44 = vld [vmem:[#allocation6 + $0x680] sm:$0xff]  }
0x129d   : > { %18141 = vmatprep.subr.bf16.mxu1 %v24824_v40 }
0x12a0   : > { %18142 = vmatpush3.bf16.msra.mxu1 %v19719_v50  ;;  %v23984_v50 = vshrl.u32 %v23970_v54, 16 }
0x12a1   : > { %18143 = vmatprep.subr.bf16.mxu1 %v24824_v40 }
0x12a4   : > { %18144 = vmatpush3.bf16.msra.mxu1 %v19720_v6  ;;  %v19772_v6 = vld [vmem:[#allocation6 + $0x688] sm:$0xff]  }
0x12a5   : > { %18145 = vmatprep.subr.bf16.mxu1 %v24824_v40 }
0x12a8   : > { %18146 = vmatpush3.bf16.msra.mxu1 %v19721_v45  ;;  %v19773_v45 = vld [vmem:[#allocation6 + $0x690] sm:$0xff]  }
0x12a9   : > { %18147 = vmatprep.subr.bf16.mxu1 %v24824_v40 }
0x12ac   : > { %18148 = vmatpush3.bf16.msra.mxu1 %v19722_v7  ;;  %v19774_v7 = vld [vmem:[#allocation6 + $0x698] sm:$0xff]  }
0x12ad   : > { %18153 = vmatprep.subr.bf16.mxu1 %v24824_v40 }
0x12af   : > { %18150 = vmatmul.mubr.bf16.vlgmr.msra.gmra.mrb[36].mxu1 %v12064_v9  ;;  %v19776_v9 = vld [vmem:[#allocation6 + $0x6a8] sm:$0xff]  }
0x12b0   : > { %18154 = vmatpush3.bf16.msra.mxu1 %v19723_v22  ;;  %18169 = vmatprep.mubr.msk.bf16.mxu1 %vm20214_vm2, %v24824_v40  ;;  %v19775_v22 = vld [vmem:[#allocation6 + $0x6a0] sm:$0xff]  }
0x12b1   : > { %18155 = vmatprep.subr.bf16.mxu1 %v24824_v40 }
0x12b4   : > { %18156 = vmatpush3.bf16.msra.mxu1 %v19724_v28  ;;  %v19777_v28 = vld [vmem:[#allocation6 + $0x6b0] sm:$0xff]  }
0x12b5   : > { %18157 = vmatprep.subr.bf16.mxu1 %v24824_v40 }
0x12b8   : > { %18158 = vmatpush3.bf16.msra.mxu1 %v19725_v15  ;;  %v19778_v15 = vld [vmem:[#allocation6 + $0x6b8] sm:$0xff]  }
0x12b9   : > { %18159 = vmatprep.subr.bf16.mxu1 %v24824_v40 }
0x12bc   : > { %18160 = vmatpush3.bf16.msra.mxu1 %v19726_v16  ;;  %v19779_v16 = vld [vmem:[#allocation6 + $0x6c0] sm:$0xff]  }
0x12bd   : > { %18161 = vmatprep.subr.bf16.mxu1 %v24824_v40 }
0x12c0   : > { %18162 = vmatpush3.bf16.msra.mxu1 %v19727_v33  ;;  %v12815_v33 = vrot.slane %v23970_v54, 1 }
0x12c1   : > { %18163 = vmatprep.subr.bf16.mxu1 %v24824_v40 }
0x12c4   : > { %18164 = vmatpush3.bf16.msra.mxu1 %v19728_v10  ;;  %v19780_v10 = vld [vmem:[#allocation6 + $0x6c8] sm:$0xff]  }
0x12c5   : > { %18165 = vmatprep.subr.bf16.mxu1 %v24824_v40 }
0x12c8   : > { %18166 = vmatpush3.bf16.msra.mxu1 %v19729_v14  ;;  %v19781_v14 = vld [vmem:[#allocation6 + $0x6d0] sm:$0xff]  }
0x12c9   : > { %18167 = vmatprep.subr.bf16.mxu1 %v24824_v40 }
0x12cc   : > { %18168 = vmatpush3.bf16.msra.mxu1 %v19730_v23  ;;  %v19782_v23 = vld [vmem:[#allocation6 + $0x6d8] sm:$0xff]  }
0x12cd   : > { %18173 = vmatprep.subr.bf16.mxu1 %v24824_v40 }
0x12cf   : > { %18170 = vmatmul.mubr.bf16.vlgmr.msra.gmra.mrb[36].mxu1 %v12171_v11  ;;  %v19784_v11 = vld [vmem:[#allocation6 + $0x6e8] sm:$0xff]  }
0x12d0   : > { %18174 = vmatpush3.bf16.msra.mxu1 %v19731_v62  ;;  %18189 = vmatprep.mubr.msk.bf16.mxu1 %vm20214_vm2, %v24824_v40  ;;  %v19783_v62 = vld [vmem:[#allocation6 + $0x6e0] sm:$0xff]  }
0x12d1   : > { %18175 = vmatprep.subr.bf16.mxu1 %v24824_v40 }
0x12d4   : > { %18176 = vmatpush3.bf16.msra.mxu1 %v19732_v43  ;;  %v19785_v43 = vld [vmem:[#allocation6 + $0x6f0] sm:$0xff]  }
0x12d5   : > { %18177 = vmatprep.subr.bf16.mxu1 %v24824_v40 }
0x12d8   : > { %18178 = vmatpush3.bf16.msra.mxu1 %v19733_v25  ;;  %v19786_v25 = vld [vmem:[#allocation6 + $0x6f8] sm:$0xff]  }
0x12d9   : > { %18179 = vmatprep.subr.bf16.mxu1 %v24824_v40 }
0x12dc   : > { %18180 = vmatpush3.bf16.msra.mxu1 %v19734_v58  ;;  %v19787_v58 = vld [vmem:[#allocation6 + $0x700] sm:$0xff]  }
0x12dd   : > { %18181 = vmatprep.subr.bf16.mxu1 %v24824_v40 }
0x12e0   : > { %18182 = vmatpush3.bf16.msra.mxu1 %v19735_v49  ;;  %v12922_v49 = vrot.slane %v23984_v50, 1 }
0x12e1   : > { %18183 = vmatprep.subr.bf16.mxu1 %v24824_v40 }
0x12e4   : > { %18184 = vmatpush3.bf16.msra.mxu1 %v19736_v37  ;;  %v19788_v37 = vld [vmem:[#allocation6 + $0x708] sm:$0xff]  }
0x12e5   : > { %18185 = vmatprep.subr.bf16.mxu1 %v24824_v40 }
0x12e8   : > { %18186 = vmatpush3.bf16.msra.mxu1 %v19737_v51  ;;  %v19789_v51 = vld [vmem:[#allocation6 + $0x710] sm:$0xff]  }
0x12e9   : > { %18187 = vmatprep.subr.bf16.mxu1 %v24824_v40 }
0x12ec   : > { %18188 = vmatpush3.bf16.msra.mxu1 %v19738_v52  ;;  %v19790_v52 = vld [vmem:[#allocation6 + $0x718] sm:$0xff]  }
0x12ed   : > { %18193 = vmatprep.subr.bf16.mxu1 %v24824_v40 }
0x12ef   : > { %18190 = vmatmul.mubr.bf16.vlgmr.msra.gmra.mrb[36].mxu1 %v12278_v5  ;;  %v19792_v5 = vld [vmem:[#allocation6 + $0x728] sm:$0xff]  }
0x12f0   : > { %18194 = vmatpush3.bf16.msra.mxu1 %v19739_v41  ;;  %18209 = vmatprep.mubr.msk.bf16.mxu1 %vm20214_vm2, %v24824_v40  ;;  %v19791_v41 = vld [vmem:[#allocation6 + $0x720] sm:$0xff]  }
0x12f1   : > { %18195 = vmatprep.subr.bf16.mxu1 %v24824_v40 }
0x12f4   : > { %18196 = vmatpush3.bf16.msra.mxu1 %v19740_v56  ;;  %v19793_v56 = vld [vmem:[#allocation6 + $0x730] sm:$0xff]  }
0x12f5   : > { %18197 = vmatprep.subr.bf16.mxu1 %v24824_v40 }
0x12f8   : > { %18198 = vmatpush3.bf16.msra.mxu1 %v19741_v29  ;;  %v19794_v29 = vld [vmem:[#allocation6 + $0x738] sm:$0xff]  }
0x12f9   : > { %18199 = vmatprep.subr.bf16.mxu1 %v24824_v40 }
0x12fc   : > { %18200 = vmatpush3.bf16.msra.mxu1 %v19742_v34  ;;  %v19795_v34 = vld [vmem:[#allocation6 + $0x740] sm:$0xff]  }
0x12fd   : > { %18201 = vmatprep.subr.bf16.mxu1 %v24824_v40 }
0x1300   : > { %18202 = vmatpush3.bf16.msra.mxu1 %v19743_v32  ;;  %v13029_v32 = vrot.slane %v23970_v54, 2 }
0x1301   : > { %18203 = vmatprep.subr.bf16.mxu1 %v24824_v40 }
0x1304   : > { %18204 = vmatpush3.bf16.msra.mxu1 %v19744_v31  ;;  %v19796_v31 = vld [vmem:[#allocation6 + $0x748] sm:$0xff]  }
0x1305   : > { %18205 = vmatprep.subr.bf16.mxu1 %v24824_v40 }
0x1308   : > { %18206 = vmatpush3.bf16.msra.mxu1 %v19745_v1  ;;  %v19797_v1 = vld [vmem:[#allocation6 + $0x750] sm:$0xff]  }
0x1309   : > { %18207 = vmatprep.subr.bf16.mxu1 %v24824_v40 }
0x130c   : > { %18208 = vmatpush3.bf16.msra.mxu1 %v19746_v21  ;;  %v19798_v21 = vld [vmem:[#allocation6 + $0x758] sm:$0xff]  }
0x130d   : > { %18213 = vmatprep.subr.bf16.mxu1 %v24824_v40 }
0x130f   : > { %18210 = vmatmul.mubr.bf16.vlgmr.msra.gmra.mrb[36].mxu1 %v12385_v3  ;;  %v19800_v3 = vld [vmem:[#allocation6 + $0x768] sm:$0xff]  }
0x1310   : > { %18214 = vmatpush3.bf16.msra.mxu1 %v19747_v39  ;;  %18229 = vmatprep.mubr.msk.bf16.mxu1 %vm20214_vm2, %v24824_v40  ;;  %v19799_v39 = vld [vmem:[#allocation6 + $0x760] sm:$0xff]  }
0x1311   : > { %18215 = vmatprep.subr.bf16.mxu1 %v24824_v40 }
0x1314   : > { %18216 = vmatpush3.bf16.msra.mxu1 %v19748_v4  ;;  %v19801_v4 = vld [vmem:[#allocation6 + $0x770] sm:$0xff]  }
0x1315   : > { %18217 = vmatprep.subr.bf16.mxu1 %v24824_v40 }
0x1318   : > { %18218 = vmatpush3.bf16.msra.mxu1 %v19749_v48  ;;  %v19802_v48 = vld [vmem:[#allocation6 + $0x778] sm:$0xff]  }
0x1319   : > { %18219 = vmatprep.subr.bf16.mxu1 %v24824_v40 }
0x131c   : > { %18220 = vmatpush3.bf16.msra.mxu1 %v19750_v59  ;;  %v19803_v59 = vld [vmem:[#allocation6 + $0x780] sm:$0xff]  }
0x131d   : > { %18221 = vmatprep.subr.bf16.mxu1 %v24824_v40 }
0x1320   : > { %18222 = vmatpush3.bf16.msra.mxu1 %v19751_v26  ;;  %v13136_v26 = vrot.slane %v23984_v50, 2 }
0x1321   : > { %18223 = vmatprep.subr.bf16.mxu1 %v24824_v40 }
0x1324   : > { %18224 = vmatpush3.bf16.msra.mxu1 %v19752_v13  ;;  %v19804_v13 = vld [vmem:[#allocation6 + $0x788] sm:$0xff]  }
0x1325   : > { %18225 = vmatprep.subr.bf16.mxu1 %v24824_v40 }
0x1328   : > { %18226 = vmatpush3.bf16.msra.mxu1 %v19753_v36  ;;  %v19805_v36 = vld [vmem:[#allocation6 + $0x790] sm:$0xff]  }
0x1329   : > { %18227 = vmatprep.subr.bf16.mxu1 %v24824_v40 }
0x132c   : > { %18228 = vmatpush3.bf16.msra.mxu1 %v19754_v46  ;;  %v19806_v46 = vld [vmem:[#allocation6 + $0x798] sm:$0xff]  }
0x132d   : > { %18233 = vmatprep.subr.bf16.mxu1 %v24824_v40 }
0x132f   : > { %18230 = vmatmul.mubr.bf16.vlgmr.msra.gmra.mrb[36].mxu1 %v12492_v60  ;;  %v19808_v60 = vld [vmem:[#allocation6 + $0x7a8] sm:$0xff]  }
0x1330   : > { %18234 = vmatpush3.bf16.msra.mxu1 %v19755_v30  ;;  %18249 = vmatprep.mubr.msk.bf16.mxu1 %vm20214_vm2, %v24824_v40  ;;  %v19807_v30 = vld [vmem:[#allocation6 + $0x7a0] sm:$0xff]  }
0x1331   : > { %18235 = vmatprep.subr.bf16.mxu1 %v24824_v40 }
0x1334   : > { %18236 = vmatpush3.bf16.msra.mxu1 %v19756_v0  ;;  %v19809_v0 = vld [vmem:[#allocation6 + $0x7b0] sm:$0xff]  }
0x1335   : > { %18237 = vmatprep.subr.bf16.mxu1 %v24824_v40 }
0x1338   : > { %18238 = vmatpush3.bf16.msra.mxu1 %v19757_v17  ;;  %v19810_v17 = vld [vmem:[#allocation6 + $0x7b8] sm:$0xff]  }
0x1339   : > { %18239 = vmatprep.subr.bf16.mxu1 %v24824_v40 }
0x133c   : > { %18240 = vmatpush3.bf16.msra.mxu1 %v19758_v35  ;;  %v13243_v35 = vrot.slane %v23970_v54, 3 }
0x133d   : > { %18241 = vmatprep.subr.bf16.mxu1 %v24824_v40 }
0x1340   : > { %18242 = vmatpush3.bf16.msra.mxu1 %v19759_v12  ;;  %v19812_v12 = vld [vmem:[#allocation6 + $0x7c8] sm:$0xff]  }
0x1341   : > { %18243 = vmatprep.subr.bf16.mxu1 %v24824_v40 }
0x1344   : > { %18244 = vmatpush3.bf16.msra.mxu1 %v19760_v27  ;;  %v19813_v27 = vld [vmem:[#allocation6 + $0x7d0] sm:$0xff]  }
0x1345   : > { %18245 = vmatprep.subr.bf16.mxu1 %v24824_v40 }
0x1348   : > { %18246 = vmatpush3.bf16.msra.mxu1 %v19761_v57  ;;  %v19814_v57 = vld [vmem:[#allocation6 + $0x7d8] sm:$0xff]  }
0x1349   : > { %18247 = vmatprep.subr.bf16.mxu1 %v24824_v40 }
0x134c   : > { %18248 = vmatpush3.bf16.msra.mxu1 %v19762_v18  ;;  %v19816_v18 = vld [vmem:[#allocation6 + $0x7e8] sm:$0xff]  }
0x134d   : > { %18253 = vmatprep.subr.bf16.mxu1 %v24824_v40 }
0x134f   : > { %18250 = vmatmul.mubr.bf16.vlgmr.msra.gmra.mrb[36].mxu1 %v23970_v54  ;;  %v19819_v54 = vld [vmem:[#allocation6 + $0x800] sm:$0xff]  }
0x1350   : > { %18254 = vmatpush3.bf16.msra.mxu1 %v19763_v61  ;;  %18269 = vmatprep.mubr.msk.bf16.mxu1 %vm20214_vm2, %v24824_v40  ;;  %v19818_v61 = vld [vmem:[#allocation6 + $0x7f8] sm:$0xff]  }
0x1351   : > { %18255 = vmatprep.subr.bf16.mxu1 %v24824_v40 }
0x1354   : > { %18256 = vmatpush3.bf16.msra.mxu1 %v19764_v8  ;;  %v13350_v8 = vrot.slane %v23984_v50, 3 }
0x1355   : > { %18257 = vmatprep.subr.bf16.mxu1 %v24824_v40 }
0x1358   : > { %18258 = vmatpush3.bf16.msra.mxu1 %v19765_v53  ;;  %v19820_v53 = vld [vmem:[#allocation6 + $0x808] sm:$0xff]  }
0x1359   : > { %18259 = vmatprep.subr.bf16.mxu1 %v24824_v40 }
0x135c   : > { %18260 = vmatpush3.bf16.msra.mxu1 %v19766_v19  ;;  %v19821_v19 = vld [vmem:[#allocation6 + $0x810] sm:$0xff]  }
0x135d   : > { %18261 = vmatprep.subr.bf16.mxu1 %v24824_v40 }
0x1360   : > { %18262 = vmatpush3.bf16.msra.mxu1 %v19767_v63  ;;  %v10000_v63 = vmax.f32 %v23687_v24, 1e-06  ;;  %v19826_v24 = vld [vmem:[#allocation6 + $0x838] sm:$0xff]  }
0x1361   : > { %18263 = vmatprep.subr.bf16.mxu1 %v24824_v40 }
0x1362   : > { %19913 = vlog2.f32 %v10000_v63  ;;  %v19870_v63 = vld [vmem:[#allocation6 + $0x998] sm:$0xff]  }
0x1364   : > { %18264 = vmatpush3.bf16.msra.mxu1 %v19768_v2  ;;  %v19822_v2 = vld [vmem:[#allocation6 + $0x818] sm:$0xff]  }
0x1365   : > { %18265 = vmatprep.subr.bf16.mxu1 %v24824_v40 }
0x1368   : > { %18266 = vmatpush3.bf16.msra.mxu1 %v19769_v38  ;;  %v19823_v38 = vld [vmem:[#allocation6 + $0x820] sm:$0xff]  }
0x1369   : > { %18267 = vmatprep.subr.bf16.mxu1 %v24824_v40 }
0x136c   : > { %18268 = vmatpush3.bf16.msra.mxu1 %v19770_v55  ;;  %v19824_v55 = vld [vmem:[#allocation6 + $0x828] sm:$0xff]  }
0x136d   : > { %18273 = vmatprep.subr.bf16.mxu1 %v24824_v40 }
0x136f   : > { %18270 = vmatmul.mubr.bf16.vlgmr.msra.gmra.mrb[36].mxu1 %v23984_v50  ;;  %v19914_v50 = vpop.eup %19913 }
0x1370   : > { %18274 = vmatpush3.bf16.msra.mxu1 %v19771_v44  ;;  %18289 = vmatprep.mubr.msk.bf16.mxu1 %vm20214_vm2, %v24824_v40  ;;  %v19825_v44 = vld [vmem:[#allocation6 + $0x830] sm:$0xff]  }
0x1371   : > { %18275 = vmatprep.subr.bf16.mxu1 %v24824_v40 }
0x1374   : > { %18276 = vmatpush3.bf16.msra.mxu1 %v19772_v6  ;;  %v10010_v6 = vmul.f32 0.6931472, %v19914_v50  ;;  %v19875_v50 = vld [vmem:[#allocation6 + $0x9c0] sm:$0xff]  }
0x1375   : > { %18277 = vmatprep.subr.bf16.mxu1 %v24824_v40 }
0x1378   : > { %18278 = vmatpush3.bf16.msra.mxu1 %v19773_v45  ;;  %v19827_v45 = vld [vmem:[#allocation6 + $0x840] sm:$0xff]  }
0x1379   : > { %18279 = vmatprep.subr.bf16.mxu1 %v24824_v40 }
0x137c   : > { %18280 = vmatpush3.bf16.msra.mxu1 %v19774_v7  ;;  %v24064_v7 = vpack.c.bf16 %v10010_v6, %v10010_v6  ;;  %v19876_v6 = vld [vmem:[#allocation6 + $0x9c8] sm:$0xff]  }
0x137d   : > { %18281 = vmatprep.subr.bf16.mxu1 %v24824_v40 }
0x1380   : > { %18282 = vmatpush3.bf16.msra.mxu1 %v19775_v22  ;;  %v19828_v22 = vld [vmem:[#allocation6 + $0x848] sm:$0xff]  }
0x1381   : > { %18283 = vmatprep.subr.bf16.mxu1 %v24824_v40 }
0x1384   : > { %18284 = vmatpush3.bf16.msra.mxu1 %v19776_v9  ;;  %v19829_v9 = vld [vmem:[#allocation6 + $0x850] sm:$0xff]  }
0x1385   : > { %18285 = vmatprep.subr.bf16.mxu1 %v24824_v40 }
0x1388   : > { %18286 = vmatpush3.bf16.msra.mxu1 %v19777_v28  ;;  %v19830_v28 = vld [vmem:[#allocation6 + $0x858] sm:$0xff]  }
0x1389   : > { %18287 = vmatprep.subr.bf16.mxu1 %v24824_v40 }
0x138c   : > { %18288 = vmatpush3.bf16.msra.mxu1 %v19778_v15  ;;  %v19831_v15 = vld [vmem:[#allocation6 + $0x860] sm:$0xff]  }
0x138d   : > { %18293 = vmatprep.subr.bf16.mxu1 %v24824_v40 }
0x138f   : > { %18290 = vmatmul.mubr.bf16.vlgmr.msra.gmra.mrb[36].mxu1 %v12815_v33  ;;  %v19833_v33 = vld [vmem:[#allocation6 + $0x870] sm:$0xff]  }
0x1390   : > { %18294 = vmatpush3.bf16.msra.mxu1 %v19779_v16  ;;  %18309 = vmatprep.mubr.msk.bf16.mxu1 %vm20214_vm2, %v24824_v40  ;;  %v19832_v16 = vld [vmem:[#allocation6 + $0x868] sm:$0xff]  }
0x1391   : > { %18295 = vmatprep.subr.bf16.mxu1 %v24824_v40 }
0x1394   : > { %18296 = vmatpush3.bf16.msra.mxu1 %v19780_v10  ;;  %v19834_v10 = vld [vmem:[#allocation6 + $0x878] sm:$0xff]  }
0x1395   : > { %18297 = vmatprep.subr.bf16.mxu1 %v24824_v40 }
0x1398   : > { %18298 = vmatpush3.bf16.msra.mxu1 %v19781_v14  ;;  %v19835_v14 = vld [vmem:[#allocation6 + $0x880] sm:$0xff]  }
0x1399   : > { %18299 = vmatprep.subr.bf16.mxu1 %v24824_v40 }
0x139c   : > { %18300 = vmatpush3.bf16.msra.mxu1 %v19782_v23  ;;  %v24078_v23 = vshrl.u32 %v24064_v7, 16 }
0x139d   : > { %18301 = vmatprep.subr.bf16.mxu1 %v24824_v40 }
0x13a0   : > { %18302 = vmatpush3.bf16.msra.mxu1 %v19783_v62  ;;  %v19836_v62 = vld [vmem:[#allocation6 + $0x888] sm:$0xff]  }
0x13a1   : > { %18303 = vmatprep.subr.bf16.mxu1 %v24824_v40 }
0x13a4   : > { %18304 = vmatpush3.bf16.msra.mxu1 %v19784_v11  ;;  %v19837_v11 = vld [vmem:[#allocation6 + $0x890] sm:$0xff]  }
0x13a5   : > { %18305 = vmatprep.subr.bf16.mxu1 %v24824_v40 }
0x13a8   : > { %18306 = vmatpush3.bf16.msra.mxu1 %v19785_v43  ;;  %v19838_v43 = vld [vmem:[#allocation6 + $0x898] sm:$0xff]  }
0x13a9   : > { %18307 = vmatprep.subr.bf16.mxu1 %v24824_v40 }
0x13ac   : > { %18308 = vmatpush3.bf16.msra.mxu1 %v19786_v25  ;;  %v19839_v25 = vld [vmem:[#allocation6 + $0x8a0] sm:$0xff]  }
0x13ad   : > { %18313 = vmatprep.subr.bf16.mxu1 %v24824_v40 }
0x13af   : > { %18310 = vmatmul.mubr.bf16.vlgmr.msra.gmra.mrb[36].mxu1 %v12922_v49  ;;  %v19841_v49 = vld [vmem:[#allocation6 + $0x8b0] sm:$0xff]  }
0x13b0   : > { %18314 = vmatpush3.bf16.msra.mxu1 %v19787_v58  ;;  %18329 = vmatprep.mubr.msk.bf16.mxu1 %vm20214_vm2, %v24824_v40  ;;  %v19840_v58 = vld [vmem:[#allocation6 + $0x8a8] sm:$0xff]  }
0x13b1   : > { %18315 = vmatprep.subr.bf16.mxu1 %v24824_v40 }
0x13b4   : > { %18316 = vmatpush3.bf16.msra.mxu1 %v19788_v37  ;;  %v19842_v37 = vld [vmem:[#allocation6 + $0x8b8] sm:$0xff]  }
0x13b5   : > { %18317 = vmatprep.subr.bf16.mxu1 %v24824_v40 }
0x13b8   : > { %18318 = vmatpush3.bf16.msra.mxu1 %v19789_v51  ;;  %v19843_v51 = vld [vmem:[#allocation6 + $0x8c0] sm:$0xff]  }
0x13b9   : > { %18319 = vmatprep.subr.bf16.mxu1 %v24824_v40 }
0x13bc   : > { %18320 = vmatpush3.bf16.msra.mxu1 %v19790_v52  ;;  %v13673_v52 = vrot.slane %v24064_v7, 1 }
0x13bd   : > { %18321 = vmatprep.subr.bf16.mxu1 %v24824_v40 }
0x13c0   : > { %18322 = vmatpush3.bf16.msra.mxu1 %v19791_v41  ;;  %v19844_v41 = vld [vmem:[#allocation6 + $0x8c8] sm:$0xff]  }
0x13c1   : > { %18323 = vmatprep.subr.bf16.mxu1 %v24824_v40 }
0x13c4   : > { %18324 = vmatpush3.bf16.msra.mxu1 %v19792_v5  ;;  %v19845_v5 = vld [vmem:[#allocation6 + $0x8d0] sm:$0xff]  }
0x13c5   : > { %18325 = vmatprep.subr.bf16.mxu1 %v24824_v40 }
0x13c8   : > { %18326 = vmatpush3.bf16.msra.mxu1 %v19793_v56  ;;  %v19846_v56 = vld [vmem:[#allocation6 + $0x8d8] sm:$0xff]  }
0x13c9   : > { %18327 = vmatprep.subr.bf16.mxu1 %v24824_v40 }
0x13cc   : > { %18328 = vmatpush3.bf16.msra.mxu1 %v19794_v29  ;;  %v19847_v29 = vld [vmem:[#allocation6 + $0x8e0] sm:$0xff]  }
0x13cd   : > { %18333 = vmatprep.subr.bf16.mxu1 %v24824_v40 }
0x13cf   : > { %18330 = vmatmul.mubr.bf16.vlgmr.msra.gmra.mrb[36].mxu1 %v13029_v32  ;;  %v19849_v32 = vld [vmem:[#allocation6 + $0x8f0] sm:$0xff]  }
0x13d0   : > { %18334 = vmatpush3.bf16.msra.mxu1 %v19795_v34  ;;  %18349 = vmatprep.mubr.msk.bf16.mxu1 %vm20214_vm2, %v24824_v40  ;;  %v19848_v34 = vld [vmem:[#allocation6 + $0x8e8] sm:$0xff]  }
0x13d1   : > { %18335 = vmatprep.subr.bf16.mxu1 %v24824_v40 }
0x13d4   : > { %18336 = vmatpush3.bf16.msra.mxu1 %v19796_v31  ;;  %v19850_v31 = vld [vmem:[#allocation6 + $0x8f8] sm:$0xff]  }
0x13d5   : > { %18337 = vmatprep.subr.bf16.mxu1 %v24824_v40 }
0x13d8   : > { %18338 = vmatpush3.bf16.msra.mxu1 %v19797_v1  ;;  %v19851_v1 = vld [vmem:[#allocation6 + $0x900] sm:$0xff]  }
0x13d9   : > { %18339 = vmatprep.subr.bf16.mxu1 %v24824_v40 }
0x13dc   : > { %18340 = vmatpush3.bf16.msra.mxu1 %v19798_v21  ;;  %v13780_v21 = vrot.slane %v24078_v23, 1 }
0x13dd   : > { %18341 = vmatprep.subr.bf16.mxu1 %v24824_v40 }
0x13e0   : > { %18342 = vmatpush3.bf16.msra.mxu1 %v19799_v39  ;;  %v19883_v39 = vld [vmem:[%s24209_s7] sm:$0xff]  }
0x13e1   : > { %18343 = vmatprep.subr.bf16.mxu1 %v24824_v40  ;;  %18554 = vmatpush3.bf16.msra.mxu0 %v19883_v39 }
0x13e2   : > { %18555 = vmatprep.subr.bf16.mxu0 %v24824_v40 }
0x13e4   : > { %18344 = vmatpush3.bf16.msra.mxu1 %v19800_v3  ;;  %v19852_v3 = vld [vmem:[#allocation6 + $0x908] sm:$0xff]  }
0x13e5   : > { %18345 = vmatprep.subr.bf16.mxu1 %v24824_v40 }
0x13e8   : > { %18346 = vmatpush3.bf16.msra.mxu1 %v19801_v4  ;;  %v19884_v4 = vld [vmem:[%s24209_s7 + $0x8] sm:$0xff]  }
0x13e9   : > { %18347 = vmatprep.subr.bf16.mxu1 %v24824_v40  ;;  %18556 = vmatpush3.bf16.msra.mxu0 %v19884_v4  ;;  %v14421_v4 = vld [vmem:[#allocation13] sm:$0x1] }
0x13ea   : > { %18557 = vmatprep.subr.bf16.mxu0 %v24824_v40 }
0x13ec   : > { %18348 = vmatpush3.bf16.msra.mxu1 %v19802_v48  ;;  %v19853_v48 = vld [vmem:[#allocation6 + $0x910] sm:$0xff]  }
0x13ed   : > { %18353 = vmatprep.subr.bf16.mxu1 %v24824_v40 }
0x13ef   : > { %18350 = vmatmul.mubr.bf16.vlgmr.msra.gmra.mrb[36].mxu1 %v13136_v26  ;;  %v19854_v26 = vld [vmem:[#allocation6 + $0x918] sm:$0xff]  }
0x13f0   : > { %18354 = vmatpush3.bf16.msra.mxu1 %v19803_v59  ;;  %18369 = vmatprep.mubr.msk.bf16.mxu1 %vm20214_vm2, %v24824_v40  ;;  %v19885_v59 = vld [vmem:[%s24209_s7 + $0x10] sm:$0xff]  }
0x13f1   : > { %18355 = vmatprep.subr.bf16.mxu1 %v24824_v40  ;;  %18558 = vmatpush3.bf16.msra.mxu0 %v19885_v59 }
0x13f2   : > { %18559 = vmatprep.subr.bf16.mxu0 %v24824_v40 }
0x13f4   : > { %18356 = vmatpush3.bf16.msra.mxu1 %v19804_v13  ;;  %v19886_v13 = vld [vmem:[%s24209_s7 + $0x18] sm:$0xff]  }
0x13f5   : > { %18357 = vmatprep.subr.bf16.mxu1 %v24824_v40  ;;  %18560 = vmatpush3.bf16.msra.mxu0 %v19886_v13 }
0x13f6   : > { %18561 = vmatprep.subr.bf16.mxu0 %v24824_v40 }
0x13f8   : > { %18358 = vmatpush3.bf16.msra.mxu1 %v19805_v36  ;;  %v19855_v36 = vld [vmem:[#allocation6 + $0x920] sm:$0xff]  }
0x13f9   : > { %18359 = vmatprep.subr.bf16.mxu1 %v24824_v40 }
0x13fc   : > { %18360 = vmatpush3.bf16.msra.mxu1 %v19806_v46  ;;  %v19887_v46 = vld [vmem:[%s24209_s7 + $0x20] sm:$0xff]  }
0x13fd   : > { %18361 = vmatprep.subr.bf16.mxu1 %v24824_v40  ;;  %18562 = vmatpush3.bf16.msra.mxu0 %v19887_v46 }
0x13fe   : > { %18563 = vmatprep.subr.bf16.mxu0 %v24824_v40 }
0x1400   : > { %18362 = vmatpush3.bf16.msra.mxu1 %v19807_v30  ;;  %v19856_v30 = vld [vmem:[#allocation6 + $0x928] sm:$0xff]  }
0x1401   : > { %18363 = vmatprep.subr.bf16.mxu1 %v24824_v40 }
0x1404   : > { %18364 = vmatpush3.bf16.msra.mxu1 %v19808_v60  ;;  %v19888_v60 = vld [vmem:[%s24209_s7 + $0x28] sm:$0xff]  }
0x1405   : > { %18365 = vmatprep.subr.bf16.mxu1 %v24824_v40  ;;  %18564 = vmatpush3.bf16.msra.mxu0 %v19888_v60 }
0x1406   : > { %18565 = vmatprep.subr.bf16.mxu0 %v24824_v40 }
0x1408   : > { %18366 = vmatpush3.bf16.msra.mxu1 %v19809_v0  ;;  %v19857_v0 = vld [vmem:[#allocation6 + $0x930] sm:$0xff]  }
0x1409   : > { %18367 = vmatprep.subr.bf16.mxu1 %v24824_v40 }
0x140c   : > { %18368 = vmatpush3.bf16.msra.mxu1 %v19810_v17  ;;  %v19858_v17 = vld [vmem:[#allocation6 + $0x938] sm:$0xff]  }
0x140d   : > { %18373 = vmatprep.subr.bf16.mxu1 %v24824_v40 }
0x140f   : > { %18370 = vmatmul.mubr.bf16.vlgmr.msra.gmra.mrb[36].mxu1 %v13243_v35  ;;  %v13887_v35 = vrot.slane %v24064_v7, 2 }
0x1410   : > { %18374 = vmatpush3.bf16.msra.mxu1 %v19811_v42  ;;  %18389 = vmatprep.mubr.msk.bf16.mxu1 %vm20214_vm2, %v24824_v40  ;;  %v19859_v42 = vld [vmem:[#allocation6 + $0x940] sm:$0xff]  }
0x1411   : > { %18375 = vmatprep.subr.bf16.mxu1 %v24824_v40 }
0x1414   : > { %18376 = vmatpush3.bf16.msra.mxu1 %v19812_v12  ;;  %v19860_v12 = vld [vmem:[#allocation6 + $0x948] sm:$0xff]  }
0x1415   : > { %18377 = vmatprep.subr.bf16.mxu1 %v24824_v40 }
0x1418   : > { %18378 = vmatpush3.bf16.msra.mxu1 %v19813_v27  ;;  %v19861_v27 = vld [vmem:[#allocation6 + $0x950] sm:$0xff]  }
0x1419   : > { %18379 = vmatprep.subr.bf16.mxu1 %v24824_v40 }
0x141c   : > { %18380 = vmatpush3.bf16.msra.mxu1 %v19814_v57  ;;  %v19862_v57 = vld [vmem:[#allocation6 + $0x958] sm:$0xff]  }
0x141d   : > { %18381 = vmatprep.subr.bf16.mxu1 %v24824_v40 }
0x1420   : > { %18382 = vmatpush3.bf16.msra.mxu1 %v19815_v20  ;;  %v19863_v20 = vld [vmem:[#allocation6 + $0x960] sm:$0xff]  }
0x1421   : > { %18383 = vmatprep.subr.bf16.mxu1 %v24824_v40 }
0x1424   : > { %18384 = vmatpush3.bf16.msra.mxu1 %v19816_v18  ;;  %v19864_v18 = vld [vmem:[#allocation6 + $0x968] sm:$0xff]  }
0x1425   : > { %18385 = vmatprep.subr.bf16.mxu1 %v24824_v40 }
0x1428   : > { %18386 = vmatpush3.bf16.msra.mxu1 %v19817_v47  ;;  %v19865_v47 = vld [vmem:[#allocation6 + $0x970] sm:$0xff]  }
0x1429   : > { %18387 = vmatprep.subr.bf16.mxu1 %v24824_v40 }
0x142c   : > { %18388 = vmatpush3.bf16.msra.mxu1 %v19818_v61  ;;  %v19866_v61 = vld [vmem:[#allocation6 + $0x978] sm:$0xff]  }
0x142d   : > { %18393 = vmatprep.subr.bf16.mxu1 %v24824_v40 }
0x142f   : > { %18390 = vmatmul.mubr.bf16.vlgmr.msra.gmra.mrb[36].mxu1 %v13350_v8  ;;  %v13994_v8 = vrot.slane %v24078_v23, 2 }
0x1430   : > { %18394 = vmatpush3.bf16.msra.mxu1 %v19819_v54  ;;  %18409 = vmatprep.mubr.msk.bf16.mxu1 %vm20214_vm2, %v24824_v40  ;;  %v19867_v54 = vld [vmem:[#allocation6 + $0x980] sm:$0xff]  }
0x1431   : > { %18395 = vmatprep.subr.bf16.mxu1 %v24824_v40 }
0x1434   : > { %18396 = vmatpush3.bf16.msra.mxu1 %v19820_v53  ;;  %v19868_v53 = vld [vmem:[#allocation6 + $0x988] sm:$0xff]  }
0x1435   : > { %18397 = vmatprep.subr.bf16.mxu1 %v24824_v40 }
0x1438   : > { %18398 = vmatpush3.bf16.msra.mxu1 %v19821_v19  ;;  %v19869_v19 = vld [vmem:[#allocation6 + $0x990] sm:$0xff]  }
0x1439   : > { %18399 = vmatprep.subr.bf16.mxu1 %v24824_v40 }
0x143c   : > { %18400 = vmatpush3.bf16.msra.mxu1 %v19822_v2  ;;  %v19871_v2 = vld [vmem:[#allocation6 + $0x9a0] sm:$0xff]  }
0x143d   : > { %18401 = vmatprep.subr.bf16.mxu1 %v24824_v40 }
0x1440   : > { %18402 = vmatpush3.bf16.msra.mxu1 %v19823_v38  ;;  %v19872_v38 = vld [vmem:[#allocation6 + $0x9a8] sm:$0xff]  }
0x1441   : > { %18403 = vmatprep.subr.bf16.mxu1 %v24824_v40 }
0x1444   : > { %18404 = vmatpush3.bf16.msra.mxu1 %v19824_v55  ;;  %v19873_v55 = vld [vmem:[#allocation6 + $0x9b0] sm:$0xff]  }
0x1445   : > { %18405 = vmatprep.subr.bf16.mxu1 %v24824_v40 }
0x1448   : > { %18406 = vmatpush3.bf16.msra.mxu1 %v19825_v44  ;;  %v19874_v44 = vld [vmem:[#allocation6 + $0x9b8] sm:$0xff]  }
0x1449   : > { %18407 = vmatprep.subr.bf16.mxu1 %v24824_v40 }
0x144c   : > { %18408 = vmatpush3.bf16.msra.mxu1 %v19826_v24  ;;  %v14101_v24 = vrot.slane %v24064_v7, 3 }
0x144d   : > { %18413 = vmatprep.subr.bf16.mxu1 %v24824_v40 }
0x144f   : > { %18410 = vmatmul.mubr.bf16.vlgmr.msra.gmra.mrb[36].mxu1 %v24064_v7  ;;  %v19879_v7 = vld [vmem:[#allocation6 + $0x9e0] sm:$0xff]  }
0x1450   : > { %18414 = vmatpush3.bf16.msra.mxu1 %v19827_v45  ;;  %18429 = vmatprep.mubr.msk.bf16.mxu1 %vm20214_vm2, %v24824_v40  ;;  %v19877_v45 = vld [vmem:[#allocation6 + $0x9d0] sm:$0xff]  }
0x1451   : > { %18415 = vmatprep.subr.bf16.mxu1 %v24824_v40 }
0x1454   : > { %18416 = vmatpush3.bf16.msra.mxu1 %v19828_v22  ;;  %v19878_v22 = vld [vmem:[#allocation6 + $0x9d8] sm:$0xff]  }
0x1455   : > { %18417 = vmatprep.subr.bf16.mxu1 %v24824_v40 }
0x1458   : > { %18418 = vmatpush3.bf16.msra.mxu1 %v19829_v9  ;;  %v19880_v9 = vld [vmem:[#allocation6 + $0x9e8] sm:$0xff]  }
0x1459   : > { %18419 = vmatprep.subr.bf16.mxu1 %v24824_v40 }
0x145c   : > { %18420 = vmatpush3.bf16.msra.mxu1 %v19830_v28  ;;  %v19881_v28 = vld [vmem:[#allocation6 + $0x9f0] sm:$0xff]  }
0x145d   : > { %18421 = vmatprep.subr.bf16.mxu1 %v24824_v40 }
0x1460   : > { %18422 = vmatpush3.bf16.msra.mxu1 %v19831_v15  ;;  %v19882_v15 = vld [vmem:[#allocation6 + $0x9f8] sm:$0xff]  }
0x1461   : > { %18423 = vmatprep.subr.bf16.mxu1 %v24824_v40 }
0x1464   : > { %18424 = vmatpush3.bf16.msra.mxu1 %v19832_v16  ;;  %v14208_v16 = vrot.slane %v24078_v23, 3 }
0x1465   : > { %18425 = vmatprep.subr.bf16.mxu1 %v24824_v40 }
0x1468   : > { %18426 = vmatpush3.bf16.msra.mxu1 %v19833_v33  ;;  %v19889_v33 = vld [vmem:[%s24209_s7 + $0x30] sm:$0xff]  }
0x1469   : > { %18427 = vmatprep.subr.bf16.mxu1 %v24824_v40  ;;  %18566 = vmatpush3.bf16.msra.mxu0 %v19889_v33 }
0x146a   : > { %18567 = vmatprep.subr.bf16.mxu0 %v24824_v40 }
0x146c   : > { %18428 = vmatpush3.bf16.msra.mxu1 %v19834_v10  ;;  %v19890_v10 = vld [vmem:[%s24209_s7 + $0x38] sm:$0xff]  }
0x146d   : > { %18433 = vmatprep.subr.bf16.mxu1 %v24824_v40  ;;  %18568 = vmatpush3.bf16.msra.mxu0 %v19890_v10 }
0x146e   : > { %18573 = vmatprep.subr.bf16.mxu0 %v24824_v40 }
0x146f   : > { %18430 = vmatmul.mubr.bf16.vlgmr.msra.gmra.mrb[36].mxu1 %v24078_v23 }
0x1470   : > { %18434 = vmatpush3.bf16.msra.mxu1 %v19835_v14  ;;  %18449 = vmatprep.mubr.msk.bf16.mxu1 %vm20214_vm2, %v24824_v40  ;;  %v14299_v14 = vld [vmem:[#allocation7] sm:$0x1] }
0x1471   : > { %18435 = vmatprep.subr.bf16.mxu1 %v24824_v40 }
0x1474   : > { %18436 = vmatpush3.bf16.msra.mxu1 %v19836_v62 }
0x1475   : > { %18437 = vmatprep.subr.bf16.mxu1 %v24824_v40 }
0x1478   : > { %18438 = vmatpush3.bf16.msra.mxu1 %v19837_v11  ;;  %v14301_v11 = vld [vmem:[#allocation9] sm:$0x1] }
0x1479   : > { %18439 = vmatprep.subr.bf16.mxu1 %v24824_v40 }
0x147c   : > { %18440 = vmatpush3.bf16.msra.mxu1 %v19838_v43 }
0x147d   : > { %18441 = vmatprep.subr.bf16.mxu1 %v24824_v40 }
0x1480   : > { %18442 = vmatpush3.bf16.msra.mxu1 %v19839_v25 }
0x1481   : > { %18443 = vmatprep.subr.bf16.mxu1 %v24824_v40 }
0x1484   : > { %18444 = vmatpush3.bf16.msra.mxu1 %v19840_v58 }
0x1485   : > { %18445 = vmatprep.subr.bf16.mxu1 %v24824_v40 }
0x1488   : > { %18446 = vmatpush3.bf16.msra.mxu1 %v19841_v49 }
0x1489   : > { %18447 = vmatprep.subr.bf16.mxu1 %v24824_v40 }
0x148c   : > { %18448 = vmatpush3.bf16.msra.mxu1 %v19842_v37  ;;  %v19891_v37 = vld [vmem:[%s24679_s27] sm:$0xff]  }
0x148d   : > { %18453 = vmatprep.subr.bf16.mxu1 %v24824_v40 }
0x148f   : > { %18450 = vmatmul.mubr.bf16.vlgmr.msra.gmra.mrb[36].mxu1 %v13673_v52  ;;  %v19892_v52 = vld [vmem:[%s24679_s27 + $0x8] sm:$0xff]  }
0x1490   : > { %18454 = vmatpush3.bf16.msra.mxu1 %v19843_v51  ;;  %18469 = vmatprep.mubr.msk.bf16.mxu1 %vm20214_vm2, %v24824_v40 }
0x1491   : > { %18455 = vmatprep.subr.bf16.mxu1 %v24824_v40 }
0x1494   : > { %18456 = vmatpush3.bf16.msra.mxu1 %v19844_v41  ;;  %v19893_v41 = vld [vmem:[%s24679_s27 + $0x10] sm:$0xff]  }
0x1495   : > { %18457 = vmatprep.subr.bf16.mxu1 %v24824_v40 }
0x1498   : > { %18458 = vmatpush3.bf16.msra.mxu1 %v19845_v5  ;;  %v19894_v5 = vld [vmem:[%s24679_s27 + $0x18] sm:$0xff]  }
0x1499   : > { %18459 = vmatprep.subr.bf16.mxu1 %v24824_v40 }
0x149c   : > { %18460 = vmatpush3.bf16.msra.mxu1 %v19846_v56  ;;  %v14408_v56 = vld [vmem:[#allocation10] sm:$0x1] }
0x149d   : > { %18461 = vmatprep.subr.bf16.mxu1 %v24824_v40 }
0x14a0   : > { %18462 = vmatpush3.bf16.msra.mxu1 %v19847_v29 }
0x14a1   : > { %18463 = vmatprep.subr.bf16.mxu1 %v24824_v40 }
0x14a4   : > { %18464 = vmatpush3.bf16.msra.mxu1 %v19848_v34  ;;  %v14410_v34 = vld [vmem:[#allocation12] sm:$0x1] }
0x14a5   : > { %18465 = vmatprep.subr.bf16.mxu1 %v24824_v40 }
0x14a8   : > { %18466 = vmatpush3.bf16.msra.mxu1 %v19849_v32 }
0x14a9   : > { %18467 = vmatprep.subr.bf16.mxu1 %v24824_v40 }
0x14ac   : > { %18468 = vmatpush3.bf16.msra.mxu1 %v19850_v31 }
0x14ad   : > { %18473 = vmatprep.subr.bf16.mxu1 %v24824_v40 }
0x14af   : > { %18470 = vmatmul.mubr.bf16.vlgmr.msra.gmra.mrb[36].mxu1 %v13780_v21 }
0x14b0   : > { %18474 = vmatpush3.bf16.msra.mxu1 %v19851_v1  ;;  %18489 = vmatprep.mubr.msk.bf16.mxu1 %vm20214_vm2, %v24824_v40 }
0x14b1   : > { %18475 = vmatprep.subr.bf16.mxu1 %v24824_v40 }
0x14b4   : > { %18476 = vmatpush3.bf16.msra.mxu1 %v19852_v3 }
0x14b5   : > { %18477 = vmatprep.subr.bf16.mxu1 %v24824_v40 }
0x14b8   : > { %18478 = vmatpush3.bf16.msra.mxu1 %v19853_v48 }
0x14b9   : > { %18479 = vmatprep.subr.bf16.mxu1 %v24824_v40 }
0x14bc   : > { %18480 = vmatpush3.bf16.msra.mxu1 %v19854_v26 }
0x14bd   : > { %18481 = vmatprep.subr.bf16.mxu1 %v24824_v40 }
0x14c0   : > { %18482 = vmatpush3.bf16.msra.mxu1 %v19855_v36 }
0x14c1   : > { %18483 = vmatprep.subr.bf16.mxu1 %v24824_v40 }
0x14c4   : > { %18484 = vmatpush3.bf16.msra.mxu1 %v19856_v30 }
0x14c5   : > { %18485 = vmatprep.subr.bf16.mxu1 %v24824_v40 }
0x14c8   : > { %18486 = vmatpush3.bf16.msra.mxu1 %v19857_v0 }
0x14c9   : > { %18487 = vmatprep.subr.bf16.mxu1 %v24824_v40 }
0x14cc   : > { %18488 = vmatpush3.bf16.msra.mxu1 %v19858_v17 }
0x14cd   : > { %18493 = vmatprep.subr.bf16.mxu1 %v24824_v40 }
0x14cf   : > { %18490 = vmatmul.mubr.bf16.vlgmr.msra.gmra.mrb[36].mxu1 %v13887_v35 }
0x14d0   : > { %18494 = vmatpush3.bf16.msra.mxu1 %v19859_v42  ;;  %18509 = vmatprep.mubr.msk.bf16.mxu1 %vm20214_vm2, %v24824_v40 }
0x14d1   : > { %18495 = vmatprep.subr.bf16.mxu1 %v24824_v40 }
0x14d4   : > { %18496 = vmatpush3.bf16.msra.mxu1 %v19860_v12 }
0x14d5   : > { %18497 = vmatprep.subr.bf16.mxu1 %v24824_v40 }
0x14d8   : > { %18498 = vmatpush3.bf16.msra.mxu1 %v19861_v27 }
0x14d9   : > { %18499 = vmatprep.subr.bf16.mxu1 %v24824_v40 }
0x14dc   : > { %18500 = vmatpush3.bf16.msra.mxu1 %v19862_v57 }
0x14dd   : > { %18501 = vmatprep.subr.bf16.mxu1 %v24824_v40 }
0x14e0   : > { %18502 = vmatpush3.bf16.msra.mxu1 %v19863_v20 }
0x14e1   : > { %18503 = vmatprep.subr.bf16.mxu1 %v24824_v40 }
0x14e4   : > { %18504 = vmatpush3.bf16.msra.mxu1 %v19864_v18 }
0x14e5   : > { %18505 = vmatprep.subr.bf16.mxu1 %v24824_v40 }
0x14e8   : > { %18506 = vmatpush3.bf16.msra.mxu1 %v19865_v47 }
0x14e9   : > { %18507 = vmatprep.subr.bf16.mxu1 %v24824_v40 }
0x14ec   : > { %18508 = vmatpush3.bf16.msra.mxu1 %v19866_v61 }
0x14ed   : > { %18513 = vmatprep.subr.bf16.mxu1 %v24824_v40 }
0x14ef   : > { %18510 = vmatmul.mubr.bf16.vlgmr.msra.gmra.mrb[36].mxu1 %v13994_v8 }
0x14f0   : > { %18514 = vmatpush3.bf16.msra.mxu1 %v19867_v54  ;;  %18529 = vmatprep.mubr.msk.bf16.mxu1 %vm20214_vm2, %v24824_v40 }
0x14f1   : > { %18515 = vmatprep.subr.bf16.mxu1 %v24824_v40 }
0x14f4   : > { %18516 = vmatpush3.bf16.msra.mxu1 %v19868_v53 }
0x14f5   : > { %18517 = vmatprep.subr.bf16.mxu1 %v24824_v40 }
0x14f8   : > { %18518 = vmatpush3.bf16.msra.mxu1 %v19869_v19 }
0x14f9   : > { %18519 = vmatprep.subr.bf16.mxu1 %v24824_v40 }
0x14fc   : > { %18520 = vmatpush3.bf16.msra.mxu1 %v19870_v63 }
0x14fd   : > { %18521 = vmatprep.subr.bf16.mxu1 %v24824_v40 }
0x1500   : > { %18522 = vmatpush3.bf16.msra.mxu1 %v19871_v2 }
0x1501   : > { %18523 = vmatprep.subr.bf16.mxu1 %v24824_v40 }
0x1504   : > { %18524 = vmatpush3.bf16.msra.mxu1 %v19872_v38 }
0x1505   : > { %18525 = vmatprep.subr.bf16.mxu1 %v24824_v40 }
0x1508   : > { %18526 = vmatpush3.bf16.msra.mxu1 %v19873_v55 }
0x1509   : > { %18527 = vmatprep.subr.bf16.mxu1 %v24824_v40 }
0x150c   : > { %18528 = vmatpush3.bf16.msra.mxu1 %v19874_v44 }
0x150d   : > { %18533 = vmatprep.subr.bf16.mxu1 %v24824_v40 }
0x150f   : > { %18530 = vmatmul.mubr.bf16.vlgmr.msra.gmra.mrb[36].mxu1 %v14101_v24 }
0x1510   : > { %18534 = vmatpush3.bf16.msra.mxu1 %v19875_v50  ;;  %18549 = vmatprep.mubr.msk.bf16.mxu1 %vm20214_vm2, %v24824_v40 }
0x1511   : > { %18535 = vmatprep.subr.bf16.mxu1 %v24824_v40 }
0x1514   : > { %18536 = vmatpush3.bf16.msra.mxu1 %v19876_v6 }
0x1515   : > { %18537 = vmatprep.subr.bf16.mxu1 %v24824_v40 }
0x1518   : > { %18538 = vmatpush3.bf16.msra.mxu1 %v19877_v45 }
0x1519   : > { %18539 = vmatprep.subr.bf16.mxu1 %v24824_v40 }
0x151c   : > { %18540 = vmatpush3.bf16.msra.mxu1 %v19878_v22 }
0x151d   : > { %18541 = vmatprep.subr.bf16.mxu1 %v24824_v40 }
0x1520   : > { %18542 = vmatpush3.bf16.msra.mxu1 %v19879_v7 }
0x1521   : > { %18543 = vmatprep.subr.bf16.mxu1 %v24824_v40 }
0x1524   : > { %18544 = vmatpush3.bf16.msra.mxu1 %v19880_v9 }
0x1525   : > { %18545 = vmatprep.subr.bf16.mxu1 %v24824_v40 }
0x1528   : > { %18546 = vmatpush3.bf16.msra.mxu1 %v19881_v28 }
0x1529   : > { %18547 = vmatprep.subr.bf16.mxu1 %v24824_v40 }
0x152c   : > { %18548 = vmatpush3.bf16.msra.mxu1 %v19882_v15 }
0x152f   : > { %18550 = vmatmul.mubr.bf16.vlgmr.msra.gmra.mrb[36].mxu1 %v14208_v16 }
0x1602   : > { %v14292_v62 = vpop.f32.mrb[36].mxu1 }
0x1603   : > { %v14300_v43 = vmul.f32 %v14299_v14, %v14292_v62  ;;  %v18551_v23 = vpop.f32.mrb[37].mxu1 }
0x1604   : > { %v14295_v25 = vpop.f32.mrb[38].mxu1 }
0x1605   : > { %v14302_v58 = vadd.f32 %v14301_v11, %v14300_v43  ;;  %v18552_v49 = vpop.f32.mrb[39].mxu1 }
0x1607   : > { %v14303_v51 = vpack.c.bf16 %v14302_v58, %v14302_v58 }
0x1609   : > { %18570 = vmatmul.mubr.bf16.vlgmr.msra.gmra.mrb[32].mxu0 %v14303_v51 }
0x160a   : > { %18574 = vmatpush3.bf16.msra.mxu0 %v19891_v37  ;;  %18581 = vmatprep.mubr.msk.bf16.mxu0 %vm20214_vm2, %v24824_v40 }
0x160b   : > { %18575 = vmatprep.subr.bf16.mxu0 %v24824_v40 }
0x160e   : > { %18576 = vmatpush3.bf16.msra.mxu0 %v19892_v52 }
0x160f   : > { %18577 = vmatprep.subr.bf16.mxu0 %v24824_v40 }
0x1612   : > { %18578 = vmatpush3.bf16.msra.mxu0 %v19893_v41 }
0x1613   : > { %18579 = vmatprep.subr.bf16.mxu0 %v24824_v40 }
0x1616   : > { %18580 = vmatpush3.bf16.msra.mxu0 %v19894_v5 }
0x16dc   : > { %v14402_v29 = vpop.f32.mrb[32].mxu0 }
0x16dd   : > { %v14409_v32 = vmul.f32 %v14408_v56, %v14402_v29  ;;  %v18571_v31 = vpop.f32.mrb[33].mxu0 }
0x16de   : > { %v14405_v1 = vpop.f32.mrb[34].mxu0 }
0x16df   : > { %v14411_v21 = vadd.f32 %v14410_v34, %v14409_v32  ;;  %v18572_v39 = vpop.f32.mrb[35].mxu0 }
0x16e1   : > { %v14412_v3 = vpack.c.bf16 %v14411_v21, %v14411_v21 }
0x16e3   : > { %18582 = vmatmul.mubr.msk.bf16.vlgmr.msra.gmra.mrb[36].mxu0 %vm7489_vm15, %v14412_v3 }
0x17b6   : > { %v14483_v48 = vpop.f32.mrb[36].mxu0 }
0x17b7   : > { %v14484_v40 = vadd.f32 %v14483_v48, %v14421_v4  ;;  %v18583_v59 = vpop.f32.mrb[37].mxu0 }
0x17b8   : > { %v14486_v26 = vpop.f32.mrb[38].mxu0 }
0x17b9   : > { %15598 = vst.msk [vmem:[%s22512_s3 + $0x1] sm:$0x1] %vm7533_vm0, %v14484_v40  ;;  %v18584_v13 = vpop.f32.mrb[39].mxu0 }
0x17ba PF: > { %s27_s21 = sadd.s32 1, %s20198_s21  }
0x17bb   : > { %p24_p7 = scmp.ge.s32.totalorder %s27_s21, 4  }
0x17bd   :  { %26 = sbr.rel (!%p24_p7) target bundleno = 9 (0x9), region = 172 }
0x17c4   :  { %14511 = vsyncpa [#allocation3], 1 }
0x17c5   :  { %14513 = vsyncpa [#allocation3 + $0x1], 1 }
0x17c6   :  { %14514 = vsyncpa [#allocation5], 1 }
0x17c7   :  { %14515 = vsyncpa [#allocation8], 1 }
0x17c8   :  { %14516 = vsyncpa [#allocation11], 1 }
0x17c9   :  { %14517 = vsyncpa [#allocation14], 1 }

</bundles_post_ra>
